<compile_context>
chip_gen: v7x
topology: tpu7x:2x2x1
jax: 0.10.0
libtpu: 0.0.40
codegen_flags: <defaults>
</compile_context>

<pallas_src>
import functools

import jax
import jax.numpy as jnp
from jax import lax
from jax.experimental import pallas as pl
from jax.experimental.pallas import tpu as pltpu

_EPS = 1e-5     # torch BatchNorm2d default
_LANE = 128


def _ceil_to(v, m):
    return -(-v // m) * m


# ----------------- kernel 1: conv1 (+ 1x1 shortcut conv) + BN partial sums -----------------
def _conv1_kernel(*refs, Ho, Wo, stride, Cpi, has_shortcut):
    if has_shortcut:
        (xp_ref, w1_ref, ws_ref, y1_ref, st1_ref, ysc_ref, stsc_ref, patch_ref) = refs
    else:
        (xp_ref, w1_ref, y1_ref, st1_ref, patch_ref) = refs
        ws_ref = ysc_ref = stsc_ref = None

    M = Ho * Wo
    xp = xp_ref[0]                                   # (H+2, W+2, Cpi) bf16
    xs_center = None
    for dy in range(3):
        for dx in range(3):
            sl = lax.slice(
                xp, (dy, dx, 0),
                (dy + (Ho - 1) * stride + 1, dx + (Wo - 1) * stride + 1, Cpi),
                (stride, stride, 1))
            tap = sl.reshape(M, Cpi)
            k = dy * 3 + dx
            patch_ref[:, k * Cpi:(k + 1) * Cpi] = tap        # fold taps into K (im2col)
            if has_shortcut and k == 4:                      # centre tap == strided x
                xs_center = tap

    y1 = jnp.dot(patch_ref[...], w1_ref[...], preferred_element_type=jnp.float32)
    y1_ref[0] = y1.reshape(Ho, Wo, y1.shape[-1])
    st1_ref[0, 0:1, :] = jnp.sum(y1, axis=0, keepdims=True)
    st1_ref[0, 1:2, :] = jnp.sum(y1 * y1, axis=0, keepdims=True)

    if has_shortcut:
        ysc = jnp.dot(xs_center, ws_ref[...], preferred_element_type=jnp.float32)
        ysc_ref[0] = ysc.reshape(Ho, Wo, ysc.shape[-1])
        stsc_ref[0, 0:1, :] = jnp.sum(ysc, axis=0, keepdims=True)
        stsc_ref[0, 1:2, :] = jnp.sum(ysc * ysc, axis=0, keepdims=True)


# ----------------- kernel 2: bn1 + relu fused into conv2 + BN partial sums -----------------
def _conv2_kernel(y1_ref, s1_ref, t1_ref, w2_ref, y2_ref, st2_ref, hpad_ref, patch_ref,
                  *, Ho, Wo, Cpo):
    M = Ho * Wo
    h = jnp.maximum(y1_ref[0] * s1_ref[...] + t1_ref[...], 0.0).astype(jnp.bfloat16)

    # Re-pad for conv2: zero only the 1-pixel border each step (scratch persists
    # across grid iterations); the interior is fully overwritten below.
    hpad_ref[0:1, :, :] = jnp.zeros((1, Wo + 2, Cpo), jnp.bfloat16)
    hpad_ref[Ho + 1:Ho + 2, :, :] = jnp.zeros((1, Wo + 2, Cpo), jnp.bfloat16)
    hpad_ref[:, 0:1, :] = jnp.zeros((Ho + 2, 1, Cpo), jnp.bfloat16)
    hpad_ref[:, Wo + 1:Wo + 2, :] = jnp.zeros((Ho + 2, 1, Cpo), jnp.bfloat16)
    hpad_ref[1:Ho + 1, 1:Wo + 1, :] = h
    hp = hpad_ref[...]

    for dy in range(3):
        for dx in range(3):
            sl = lax.slice(hp, (dy, dx, 0), (dy + Ho, dx + Wo, Cpo))
            k = dy * 3 + dx
            patch_ref[:, k * Cpo:(k + 1) * Cpo] = sl.reshape(M, Cpo)

    y2 = jnp.dot(patch_ref[...], w2_ref[...], preferred_element_type=jnp.float32)
    y2_ref[0] = y2.reshape(Ho, Wo, Cpo)
    st2_ref[0, 0:1, :] = jnp.sum(y2, axis=0, keepdims=True)
    st2_ref[0, 1:2, :] = jnp.sum(y2 * y2, axis=0, keepdims=True)


# ----------------- kernel 3: bn2 + shortcut-bn + residual add + relu -----------------
def _epilogue_kernel(y2_ref, sc_ref, s2_ref, t2_ref, ss_ref, ts_ref, o_ref):
    out = (y2_ref[0] * s2_ref[...] + t2_ref[...]
           + sc_ref[0] * ss_ref[...] + ts_ref[...])
    o_ref[0] = jnp.maximum(out, 0.0)


# ------------------------------------ wrapper ------------------------------------
def _img_spec(a, b, c):
    return pl.BlockSpec((1, a, b, c), lambda n: (n, 0, 0, 0))


def _const_spec(shape):
    nd = len(shape)
    return pl.BlockSpec(shape, lambda n: (0,) * nd)


def _stat_spec(c):
    return pl.BlockSpec((1, 2, c), lambda n: (n, 0, 0))


def _pad_vec(v, c):
    return jnp.pad(v.astype(jnp.float32), (0, c - v.shape[0]))


def _bn_scale_shift(stats, gamma, beta, count):
    """Combine per-image (sum, sumsq) partials into folded BN scale/shift (f32)."""
    total = jnp.sum(stats[:, 0, :], axis=0)
    total_sq = jnp.sum(stats[:, 1, :], axis=0)
    mean = total / count
    var = jnp.maximum(total_sq / count - mean * mean, 0.0)     # biased batch variance
    scale = gamma * lax.rsqrt(var + _EPS)
    shift = beta - mean * scale
    return scale.reshape(1, -1), shift.reshape(1, -1)


_PPARAMS = pltpu.CompilerParams(dimension_semantics=("parallel",))


@functools.partial(jax.jit, static_argnames=("stride",))
def residual_block(x_nchw, w1, w2, ws, g1, b1, g2, b2, gs, bs, *, stride=1):
    """x_nchw: (N, Cin, H, W) f32; weights in torch layout. Returns (N, Cout, Ho, Wo)."""
    N, Cin, H, W = x_nchw.shape
    Cout = w1.shape[0]
    has_shortcut = (stride != 1) or (Cin != Cout)
    Ho = (H - 1) // stride + 1
    Wo = (W - 1) // stride + 1
    Cpi = _ceil_to(Cin, _LANE)
    Cpo = _ceil_to(Cout, _LANE)
    M = N * Ho * Wo

    # NCHW -> NHWC, channel pad to a lane multiple, spatial pad by 1, bf16 for the MXU.
    x_nhwc = jnp.transpose(x_nchw.astype(jnp.float32), (0, 2, 3, 1))
    x_cpad = jnp.pad(x_nhwc, ((0, 0), (0, 0), (0, 0), (0, Cpi - Cin)))
    xpad = jnp.pad(x_cpad, ((0, 0), (1, 1), (1, 1), (0, 0))).astype(jnp.bfloat16)

    # Weights: OIHW -> HWIO, pad channels, fold the 9 taps into the contraction dim.
    w1f = jnp.pad(jnp.transpose(w1, (2, 3, 1, 0)),
                  ((0, 0), (0, 0), (0, Cpi - Cin), (0, Cpo - Cout)))
    w1f = w1f.reshape(9 * Cpi, Cpo).astype(jnp.bfloat16)
    w2f = jnp.pad(jnp.transpose(w2, (2, 3, 1, 0)),
                  ((0, 0), (0, 0), (0, Cpo - Cout), (0, Cpo - Cout)))
    w2f = w2f.reshape(9 * Cpo, Cpo).astype(jnp.bfloat16)

    g1p, b1p, g2p, b2p = (_pad_vec(v, Cpo) for v in (g1, b1, g2, b2))

    # ---- pass 1: conv1 (+ 1x1 shortcut conv) + per-image BN partials ----
    inputs1 = [xpad, w1f]
    in_specs1 = [_img_spec(H + 2, W + 2, Cpi), _const_spec((9 * Cpi, Cpo))]
    out_shape1 = [jax.ShapeDtypeStruct((N, Ho, Wo, Cpo), jnp.float32),
                  jax.ShapeDtypeStruct((N, 2, Cpo), jnp.float32)]
    out_specs1 = [_img_spec(Ho, Wo, Cpo), _stat_spec(Cpo)]
    flops1 = 2 * M * (9 * Cpi) * Cpo
    bytes1 = xpad.size * 2 + w1f.size * 2 + (M * Cpo + N * 2 * Cpo) * 4
    if has_shortcut:
        wsf = jnp.pad(jnp.transpose(ws.reshape(Cout, Cin), (1, 0)),
                      ((0, Cpi - Cin), (0, Cpo - Cout))).astype(jnp.bfloat16)
        inputs1.append(wsf)
        in_specs1.append(_const_spec((Cpi, Cpo)))
        out_shape1 += [jax.ShapeDtypeStruct((N, Ho, Wo, Cpo), jnp.float32),
                       jax.ShapeDtypeStruct((N, 2, Cpo), jnp.float32)]
        out_specs1 += [_img_spec(Ho, Wo, Cpo), _stat_spec(Cpo)]
        flops1 += 2 * M * Cpi * Cpo
        bytes1 += wsf.size * 2 + (M * Cpo + N * 2 * Cpo) * 4

    outs1 = pl.pallas_call(
        functools.partial(_conv1_kernel, Ho=Ho, Wo=Wo, stride=stride, Cpi=Cpi,
                          has_shortcut=has_shortcut),
        grid=(N,),
        in_specs=in_specs1,
        out_specs=tuple(out_specs1),
        out_shape=tuple(out_shape1),
        scratch_shapes=[pltpu.VMEM((Ho * Wo, 9 * Cpi), jnp.bfloat16)],
        compiler_params=_PPARAMS,
        cost_estimate=pl.CostEstimate(flops=flops1, transcendentals=0,
                                      bytes_accessed=bytes1),
    )(*inputs1)

    if has_shortcut:
        y1, st1, ysc, stsc = outs1
    else:
        y1, st1 = outs1

    scale1, shift1 = _bn_scale_shift(st1, g1p, b1p, float(M))

    # ---- pass 2: bn1 + relu fused into conv2 + per-image BN partials ----
    flops2 = 2 * M * (9 * Cpo) * Cpo
    bytes2 = y1.size * 4 + w2f.size * 2 + (M * Cpo + N * 2 * Cpo) * 4
    y2, st2 = pl.pallas_call(
        functools.partial(_conv2_kernel, Ho=Ho, Wo=Wo, Cpo=Cpo),
        grid=(N,),
        in_specs=[_img_spec(Ho, Wo, Cpo), _const_spec((1, Cpo)),
                  _const_spec((1, Cpo)), _const_spec((9 * Cpo, Cpo))],
        out_specs=(_img_spec(Ho, Wo, Cpo), _stat_spec(Cpo)),
        out_shape=(jax.ShapeDtypeStruct((N, Ho, Wo, Cpo), jnp.float32),
                   jax.ShapeDtypeStruct((N, 2, Cpo), jnp.float32)),
        scratch_shapes=[pltpu.VMEM((Ho + 2, Wo + 2, Cpo), jnp.bfloat16),
                        pltpu.VMEM((Ho * Wo, 9 * Cpo), jnp.bfloat16)],
        compiler_params=_PPARAMS,
        cost_estimate=pl.CostEstimate(flops=flops2, transcendentals=0,
                                      bytes_accessed=bytes2),
    )(y1, scale1, shift1, w2f)

    scale2, shift2 = _bn_scale_shift(st2, g2p, b2p, float(M))

    if has_shortcut:
        scale_sc, shift_sc = _bn_scale_shift(stsc, _pad_vec(gs, Cpo),
                                             _pad_vec(bs, Cpo), float(M))
        sc_pre = ysc
    else:
        scale_sc = jnp.ones((1, Cpo), jnp.float32)
        shift_sc = jnp.zeros((1, Cpo), jnp.float32)
        sc_pre = x_cpad          # identity shortcut: stride == 1 and Cin == Cout

    # ---- pass 3: bn2 + shortcut-bn + residual add + relu ----
    out_pad = pl.pallas_call(
        _epilogue_kernel,
        grid=(N,),
        in_specs=[_img_spec(Ho, Wo, Cpo), _img_spec(Ho, Wo, Cpo)]
                 + [_const_spec((1, Cpo)) for _ in range(4)],
        out_specs=_img_spec(Ho, Wo, Cpo),
        out_shape=jax.ShapeDtypeStruct((N, Ho, Wo, Cpo), jnp.float32),
        compiler_params=_PPARAMS,
    )(y2, sc_pre, scale2, shift2, scale_sc, shift_sc)

    return jnp.transpose(out_pad[..., :Cout], (0, 3, 1, 2))   # back to NCHW


# ------------------------- pure-JAX reference (for checking) -------------------------
def _reference(x, w1, w2, ws, g1, b1, g2, b2, gs, bs, *, stride=1):
    dn = ('NCHW', 'OIHW', 'NCHW')

    def conv(inp, w, s, pad):
        return lax.conv_general_dilated(inp, w, (s, s), pad, dimension_numbers=dn,
                                        precision=lax.Precision.HIGHEST)

    def bn(y, g, b):
        mu = y.mean(axis=(0, 2, 3), keepdims=True)
        var = ((y - mu) ** 2).mean(axis=(0, 2, 3), keepdims=True)
        return (g.reshape(1, -1, 1, 1) * (y - mu) / jnp.sqrt(var + _EPS)
                + b.reshape(1, -1, 1, 1))

    Cin, Cout = x.shape[1], w1.shape[0]
    h = jax.nn.relu(bn(conv(x, w1, stride, ((1, 1), (1, 1))), g1, b1))
    out = bn(conv(h, w2, 1, ((1, 1), (1, 1))), g2, b2)
    if stride != 1 or Cin != Cout:
        sc = bn(conv(x, ws, stride, ((0, 0), (0, 0))), gs, bs)
    else:
        sc = x
    return jax.nn.relu(out + sc)


if __name__ == "__main__":
    def _run_case(N, Cin, Cout, H, W, stride):
        key = jax.random.PRNGKey(0)
        kx, k1, k2, k3 = jax.random.split(key, 4)
        x = jax.random.normal(kx, (N, Cin, H, W), jnp.float32)
        w1 = jax.random.normal(k1, (Cout, Cin, 3, 3), jnp.float32) * 0.1
        w2 = jax.random.normal(k2, (Cout, Cout, 3, 3), jnp.float32) * 0.1
        ws = jax.random.normal(k3, (Cout, Cin, 1, 1), jnp.float32) * 0.1
        # torch BatchNorm2d default init: gamma = 1, beta = 0
        g1 = jnp.ones((Cout,), jnp.float32); b1 = jnp.zeros((Cout,), jnp.float32)
        g2 = jnp.ones((Cout,), jnp.float32); b2 = jnp.zeros((Cout,), jnp.float32)
        gs = jnp.ones((Cout,), jnp.float32); bs = jnp.zeros((Cout,), jnp.float32)

        out = residual_block(x, w1, w2, ws, g1, b1, g2, b2, gs, bs, stride=stride)
        out = jax.block_until_ready(out)
        ref = _reference(x, w1, w2, ws, g1, b1, g2, b2, gs, bs, stride=stride)
        Ho = (H - 1) // stride + 1
        Wo = (W - 1) // stride + 1
        assert out.shape == ref.shape == (N, Cout, Ho, Wo)
        err = float(jnp.max(jnp.abs(out - ref)))
        # bf16 MXU inputs (per perf review) -> slightly looser tolerance vs f32-HIGHEST ref
        assert jnp.allclose(out, ref, atol=3e-2, rtol=3e-2), f"max err {err}"

    _run_case(2, 4, 8, 16, 16, 1)   # projection shortcut (1x1 conv + BN), primary config
    _run_case(2, 8, 8, 16, 16, 1)   # identity shortcut path
    print("KERNEL_OK")
</pallas_src>

<mosaic_0001>
module attributes {stable_mosaic.version = 11 : i64} {
  func.func @_conv1_kernel(%arg0: i32, %arg1: memref<1x18x18x128xbf16, #tpu.memory_space<vmem>>, %arg2: memref<1152x128xbf16, #tpu.memory_space<vmem>>, %arg3: memref<128x128xbf16, #tpu.memory_space<vmem>>, %arg4: memref<1x16x16x128xf32, #tpu.memory_space<vmem>>, %arg5: memref<1x2x128xf32, #tpu.memory_space<vmem>>, %arg6: memref<1x16x16x128xf32, #tpu.memory_space<vmem>>, %arg7: memref<1x2x128xf32, #tpu.memory_space<vmem>>, %arg8: memref<256x1152xbf16, #tpu.memory_space<vmem>>) attributes {dimension_semantics = [#tpu.dimension_semantics<parallel>], iteration_bounds = array<i64: 2>, scalar_prefetch = 0 : i64, scratch_operands = 1 : i64, tpu.core_type = #tpu.core_type<tc>, window_params = [{transform_indices = @transform_0, window_bounds = array<i64: 1, 18, 18, 128>}, {pipeline_mode = #tpu.pipeline_mode<synchronous>, transform_indices = @transform_1, window_bounds = array<i64: 1152, 128>}, {pipeline_mode = #tpu.pipeline_mode<synchronous>, transform_indices = @transform_2, window_bounds = array<i64: 128, 128>}, {transform_indices = @transform_3, window_bounds = array<i64: 1, 16, 16, 128>}, {transform_indices = @transform_4, window_bounds = array<i64: 1, 2, 128>}, {transform_indices = @transform_5, window_bounds = array<i64: 1, 16, 16, 128>}, {transform_indices = @transform_6, window_bounds = array<i64: 1, 2, 128>}]} {
    %c0 = arith.constant 0 : index
    %c0_0 = arith.constant 0 : index
    %c0_1 = arith.constant 0 : index
    %c0_2 = arith.constant 0 : index
    %0 = vector.load %arg1[%c0, %c0_0, %c0_1, %c0_2] : memref<1x18x18x128xbf16, #tpu.memory_space<vmem>>, vector<1x18x18x128xbf16>
    %1 = vector.shape_cast %0 : vector<1x18x18x128xbf16> to vector<18x18x128xbf16>
    %2 = vector.extract_strided_slice %1 {offsets = [0, 0, 0], sizes = [16, 16, 128], strides = [1, 1, 1]} : vector<18x18x128xbf16> to vector<16x16x128xbf16>
    %3 = vector.shape_cast %2 : vector<16x16x128xbf16> to vector<256x128xbf16>
    %c0_3 = arith.constant 0 : index
    %c0_4 = arith.constant 0 : index
    %4 = vector.load %arg8[%c0_3, %c0_4] : memref<256x1152xbf16, #tpu.memory_space<vmem>>, vector<256x128xbf16>
    tpu.vector_store %arg8[%c0_3, %c0_4], %3 {strides = array<i32>} : memref<256x1152xbf16, #tpu.memory_space<vmem>>, vector<256x128xbf16>,
    %5 = vector.extract_strided_slice %1 {offsets = [0, 1, 0], sizes = [16, 16, 128], strides = [1, 1, 1]} : vector<18x18x128xbf16> to vector<16x16x128xbf16>
    %6 = vector.shape_cast %5 : vector<16x16x128xbf16> to vector<256x128xbf16>
    %c0_5 = arith.constant 0 : index
    %c128 = arith.constant 128 : index
    %7 = vector.load %arg8[%c0_5, %c128] : memref<256x1152xbf16, #tpu.memory_space<vmem>>, vector<256x128xbf16>
    tpu.vector_store %arg8[%c0_5, %c128], %6 {strides = array<i32>} : memref<256x1152xbf16, #tpu.memory_space<vmem>>, vector<256x128xbf16>,
    %8 = vector.extract_strided_slice %1 {offsets = [0, 2, 0], sizes = [16, 16, 128], strides = [1, 1, 1]} : vector<18x18x128xbf16> to vector<16x16x128xbf16>
    %9 = vector.shape_cast %8 : vector<16x16x128xbf16> to vector<256x128xbf16>
    %c0_6 = arith.constant 0 : index
    %c256 = arith.constant 256 : index
    %10 = vector.load %arg8[%c0_6, %c256] : memref<256x1152xbf16, #tpu.memory_space<vmem>>, vector<256x128xbf16>
    tpu.vector_store %arg8[%c0_6, %c256], %9 {strides = array<i32>} : memref<256x1152xbf16, #tpu.memory_space<vmem>>, vector<256x128xbf16>,
    %11 = vector.extract_strided_slice %1 {offsets = [1, 0, 0], sizes = [16, 16, 128], strides = [1, 1, 1]} : vector<18x18x128xbf16> to vector<16x16x128xbf16>
    %12 = vector.shape_cast %11 : vector<16x16x128xbf16> to vector<256x128xbf16>
    %c0_7 = arith.constant 0 : index
    %c384 = arith.constant 384 : index
    %13 = vector.load %arg8[%c0_7, %c384] : memref<256x1152xbf16, #tpu.memory_space<vmem>>, vector<256x128xbf16>
    tpu.vector_store %arg8[%c0_7, %c384], %12 {strides = array<i32>} : memref<256x1152xbf16, #tpu.memory_space<vmem>>, vector<256x128xbf16>,
    %14 = vector.extract_strided_slice %1 {offsets = [1, 1, 0], sizes = [16, 16, 128], strides = [1, 1, 1]} : vector<18x18x128xbf16> to vector<16x16x128xbf16>
    %15 = vector.shape_cast %14 : vector<16x16x128xbf16> to vector<256x128xbf16>
    %c0_8 = arith.constant 0 : index
    %c512 = arith.constant 512 : index
    %16 = vector.load %arg8[%c0_8, %c512] : memref<256x1152xbf16, #tpu.memory_space<vmem>>, vector<256x128xbf16>
    tpu.vector_store %arg8[%c0_8, %c512], %15 {strides = array<i32>} : memref<256x1152xbf16, #tpu.memory_space<vmem>>, vector<256x128xbf16>,
    %17 = vector.extract_strided_slice %1 {offsets = [1, 2, 0], sizes = [16, 16, 128], strides = [1, 1, 1]} : vector<18x18x128xbf16> to vector<16x16x128xbf16>
    %18 = vector.shape_cast %17 : vector<16x16x128xbf16> to vector<256x128xbf16>
    %c0_9 = arith.constant 0 : index
    %c640 = arith.constant 640 : index
    %19 = vector.load %arg8[%c0_9, %c640] : memref<256x1152xbf16, #tpu.memory_space<vmem>>, vector<256x128xbf16>
    tpu.vector_store %arg8[%c0_9, %c640], %18 {strides = array<i32>} : memref<256x1152xbf16, #tpu.memory_space<vmem>>, vector<256x128xbf16>,
    %20 = vector.extract_strided_slice %1 {offsets = [2, 0, 0], sizes = [16, 16, 128], strides = [1, 1, 1]} : vector<18x18x128xbf16> to vector<16x16x128xbf16>
    %21 = vector.shape_cast %20 : vector<16x16x128xbf16> to vector<256x128xbf16>
    %c0_10 = arith.constant 0 : index
    %c768 = arith.constant 768 : index
    %22 = vector.load %arg8[%c0_10, %c768] : memref<256x1152xbf16, #tpu.memory_space<vmem>>, vector<256x128xbf16>
    tpu.vector_store %arg8[%c0_10, %c768], %21 {strides = array<i32>} : memref<256x1152xbf16, #tpu.memory_space<vmem>>, vector<256x128xbf16>,
    %23 = vector.extract_strided_slice %1 {offsets = [2, 1, 0], sizes = [16, 16, 128], strides = [1, 1, 1]} : vector<18x18x128xbf16> to vector<16x16x128xbf16>
    %24 = vector.shape_cast %23 : vector<16x16x128xbf16> to vector<256x128xbf16>
    %c0_11 = arith.constant 0 : index
    %c896 = arith.constant 896 : index
    %25 = vector.load %arg8[%c0_11, %c896] : memref<256x1152xbf16, #tpu.memory_space<vmem>>, vector<256x128xbf16>
    tpu.vector_store %arg8[%c0_11, %c896], %24 {strides = array<i32>} : memref<256x1152xbf16, #tpu.memory_space<vmem>>, vector<256x128xbf16>,
    %26 = vector.extract_strided_slice %1 {offsets = [2, 2, 0], sizes = [16, 16, 128], strides = [1, 1, 1]} : vector<18x18x128xbf16> to vector<16x16x128xbf16>
    %27 = vector.shape_cast %26 : vector<16x16x128xbf16> to vector<256x128xbf16>
    %c0_12 = arith.constant 0 : index
    %c1024 = arith.constant 1024 : index
    %28 = vector.load %arg8[%c0_12, %c1024] : memref<256x1152xbf16, #tpu.memory_space<vmem>>, vector<256x128xbf16>
    tpu.vector_store %arg8[%c0_12, %c1024], %27 {strides = array<i32>} : memref<256x1152xbf16, #tpu.memory_space<vmem>>, vector<256x128xbf16>,
    %c0_13 = arith.constant 0 : index
    %c0_14 = arith.constant 0 : index
    %29 = vector.load %arg8[%c0_13, %c0_14] : memref<256x1152xbf16, #tpu.memory_space<vmem>>, vector<256x1152xbf16>
    %c0_15 = arith.constant 0 : index
    %c0_16 = arith.constant 0 : index
    %30 = vector.load %arg2[%c0_15, %c0_16] : memref<1152x128xbf16, #tpu.memory_space<vmem>>, vector<1152x128xbf16>
    %cst = arith.constant dense<0.000000e+00> : vector<256x128xf32>
    %31 = tpu.matmul %29, %30, %cst {dimension_numbers = #tpu.dot_dimension_numbers<[1], [0], [0], [1], [0, 0, 1, 1], [], []>} : vector<256x1152xbf16>, vector<1152x128xbf16>, vector<256x128xf32> -> vector<256x128xf32>
    %32 = vector.shape_cast %31 : vector<256x128xf32> to vector<16x16x128xf32>
    %c0_17 = arith.constant 0 : index
    %c0_18 = arith.constant 0 : index
    %c0_19 = arith.constant 0 : index
    %c0_20 = arith.constant 0 : index
    %33 = vector.load %arg4[%c0_17, %c0_18, %c0_19, %c0_20] : memref<1x16x16x128xf32, #tpu.memory_space<vmem>>, vector<1x16x16x128xf32>
    %34 = vector.shape_cast %33 : vector<1x16x16x128xf32> to vector<16x16x128xf32>
    %35 = vector.shape_cast %32 : vector<16x16x128xf32> to vector<1x16x16x128xf32>
    tpu.vector_store %arg4[%c0_17, %c0_18, %c0_19, %c0_20], %35 {strides = array<i32>} : memref<1x16x16x128xf32, #tpu.memory_space<vmem>>, vector<1x16x16x128xf32>,
    %cst_21 = arith.constant dense<0.000000e+00> : vector<128xf32>
    %36 = vector.multi_reduction <add>, %31, %cst_21 [0] : vector<256x128xf32> to vector<128xf32>
    %37 = vector.shape_cast %36 : vector<128xf32> to vector<1x128xf32>
    %c0_22 = arith.constant 0 : index
    %c0_23 = arith.constant 0 : index
    %c0_24 = arith.constant 0 : index
    %38 = vector.load %arg5[%c0_22, %c0_23, %c0_24] : memref<1x2x128xf32, #tpu.memory_space<vmem>>, vector<1x1x128xf32>
    %39 = vector.shape_cast %38 : vector<1x1x128xf32> to vector<1x128xf32>
    %40 = vector.shape_cast %37 : vector<1x128xf32> to vector<1x1x128xf32>
    tpu.vector_store %arg5[%c0_22, %c0_23, %c0_24], %40 {strides = array<i32>} : memref<1x2x128xf32, #tpu.memory_space<vmem>>, vector<1x1x128xf32>,
    %41 = arith.mulf %31, %31 : vector<256x128xf32>
    %cst_25 = arith.constant dense<0.000000e+00> : vector<128xf32>
    %42 = vector.multi_reduction <add>, %41, %cst_25 [0] : vector<256x128xf32> to vector<128xf32>
    %43 = vector.shape_cast %42 : vector<128xf32> to vector<1x128xf32>
    %c0_26 = arith.constant 0 : index
    %c1 = arith.constant 1 : index
    %c0_27 = arith.constant 0 : index
    %44 = vector.load %arg5[%c0_26, %c1, %c0_27] : memref<1x2x128xf32, #tpu.memory_space<vmem>>, vector<1x1x128xf32>
    %45 = vector.shape_cast %44 : vector<1x1x128xf32> to vector<1x128xf32>
    %46 = vector.shape_cast %43 : vector<1x128xf32> to vector<1x1x128xf32>
    tpu.vector_store %arg5[%c0_26, %c1, %c0_27], %46 {strides = array<i32>} : memref<1x2x128xf32, #tpu.memory_space<vmem>>, vector<1x1x128xf32>,
    %c0_28 = arith.constant 0 : index
    %c0_29 = arith.constant 0 : index
    %47 = vector.load %arg3[%c0_28, %c0_29] : memref<128x128xbf16, #tpu.memory_space<vmem>>, vector<128x128xbf16>
    %cst_30 = arith.constant dense<0.000000e+00> : vector<256x128xf32>
    %48 = tpu.matmul %15, %47, %cst_30 {dimension_numbers = #tpu.dot_dimension_numbers<[1], [0], [0], [1], [0, 0, 1, 1], [], []>} : vector<256x128xbf16>, vector<128x128xbf16>, vector<256x128xf32> -> vector<256x128xf32>
    %49 = vector.shape_cast %48 : vector<256x128xf32> to vector<16x16x128xf32>
    %c0_31 = arith.constant 0 : index
    %c0_32 = arith.constant 0 : index
    %c0_33 = arith.constant 0 : index
    %c0_34 = arith.constant 0 : index
    %50 = vector.load %arg6[%c0_31, %c0_32, %c0_33, %c0_34] : memref<1x16x16x128xf32, #tpu.memory_space<vmem>>, vector<1x16x16x128xf32>
    %51 = vector.shape_cast %50 : vector<1x16x16x128xf32> to vector<16x16x128xf32>
    %52 = vector.shape_cast %49 : vector<16x16x128xf32> to vector<1x16x16x128xf32>
    tpu.vector_store %arg6[%c0_31, %c0_32, %c0_33, %c0_34], %52 {strides = array<i32>} : memref<1x16x16x128xf32, #tpu.memory_space<vmem>>, vector<1x16x16x128xf32>,
    %cst_35 = arith.constant dense<0.000000e+00> : vector<128xf32>
    %53 = vector.multi_reduction <add>, %48, %cst_35 [0] : vector<256x128xf32> to vector<128xf32>
    %54 = vector.shape_cast %53 : vector<128xf32> to vector<1x128xf32>
    %c0_36 = arith.constant 0 : index
    %c0_37 = arith.constant 0 : index
    %c0_38 = arith.constant 0 : index
    %55 = vector.load %arg7[%c0_36, %c0_37, %c0_38] : memref<1x2x128xf32, #tpu.memory_space<vmem>>, vector<1x1x128xf32>
    %56 = vector.shape_cast %55 : vector<1x1x128xf32> to vector<1x128xf32>
    %57 = vector.shape_cast %54 : vector<1x128xf32> to vector<1x1x128xf32>
    tpu.vector_store %arg7[%c0_36, %c0_37, %c0_38], %57 {strides = array<i32>} : memref<1x2x128xf32, #tpu.memory_space<vmem>>, vector<1x1x128xf32>,
    %58 = arith.mulf %48, %48 : vector<256x128xf32>
    %cst_39 = arith.constant dense<0.000000e+00> : vector<128xf32>
    %59 = vector.multi_reduction <add>, %58, %cst_39 [0] : vector<256x128xf32> to vector<128xf32>
    %60 = vector.shape_cast %59 : vector<128xf32> to vector<1x128xf32>
    %c0_40 = arith.constant 0 : index
    %c1_41 = arith.constant 1 : index
    %c0_42 = arith.constant 0 : index
    %61 = vector.load %arg7[%c0_40, %c1_41, %c0_42] : memref<1x2x128xf32, #tpu.memory_space<vmem>>, vector<1x1x128xf32>
    %62 = vector.shape_cast %61 : vector<1x1x128xf32> to vector<1x128xf32>
    %63 = vector.shape_cast %60 : vector<1x128xf32> to vector<1x1x128xf32>
    tpu.vector_store %arg7[%c0_40, %c1_41, %c0_42], %63 {strides = array<i32>} : memref<1x2x128xf32, #tpu.memory_space<vmem>>, vector<1x1x128xf32>,
    return
  }
  func.func @transform_0(%arg0: i32) -> (i32, i32, i32, i32) {
    %c0_i32 = arith.constant 0 : i32
    %c0_i32_0 = arith.constant 0 : i32
    %c0_i32_1 = arith.constant 0 : i32
    %c0_i32_2 = arith.constant 0 : i32
    return %arg0, %c0_i32, %c0_i32_0, %c0_i32_1 : i32, i32, i32, i32
  }
  func.func @transform_1(%arg0: i32) -> (i32, i32) {
    %c0_i32 = arith.constant 0 : i32
    %c0_i32_0 = arith.constant 0 : i32
    %c0_i32_1 = arith.constant 0 : i32
    return %c0_i32, %c0_i32_0 : i32, i32
  }
  func.func @transform_2(%arg0: i32) -> (i32, i32) {
    %c0_i32 = arith.constant 0 : i32
    %c0_i32_0 = arith.constant 0 : i32
    %c0_i32_1 = arith.constant 0 : i32
    return %c0_i32, %c0_i32_0 : i32, i32
  }
  func.func @transform_3(%arg0: i32) -> (i32, i32, i32, i32) {
    %c0_i32 = arith.constant 0 : i32
    %c0_i32_0 = arith.constant 0 : i32
    %c0_i32_1 = arith.constant 0 : i32
    %c0_i32_2 = arith.constant 0 : i32
    return %arg0, %c0_i32, %c0_i32_0, %c0_i32_1 : i32, i32, i32, i32
  }
  func.func @transform_4(%arg0: i32) -> (i32, i32, i32) {
    %c0_i32 = arith.constant 0 : i32
    %c0_i32_0 = arith.constant 0 : i32
    %c0_i32_1 = arith.constant 0 : i32
    return %arg0, %c0_i32, %c0_i32_0 : i32, i32, i32
  }
  func.func @transform_5(%arg0: i32) -> (i32, i32, i32, i32) {
    %c0_i32 = arith.constant 0 : i32
    %c0_i32_0 = arith.constant 0 : i32
    %c0_i32_1 = arith.constant 0 : i32
    %c0_i32_2 = arith.constant 0 : i32
    return %arg0, %c0_i32, %c0_i32_0, %c0_i32_1 : i32, i32, i32, i32
  }
  func.func @transform_6(%arg0: i32) -> (i32, i32, i32) {
    %c0_i32 = arith.constant 0 : i32
    %c0_i32_0 = arith.constant 0 : i32
    %c0_i32_1 = arith.constant 0 : i32
    return %arg0, %c0_i32, %c0_i32_0 : i32, i32, i32
  }
}

module attributes {stable_mosaic.version = 11 : i64} {
  func.func @_epilogue_kernel(%arg0: i32, %arg1: memref<1x16x16x128xf32, #tpu.memory_space<vmem>>, %arg2: memref<1x16x16x128xf32, #tpu.memory_space<vmem>>, %arg3: memref<1x128xf32, #tpu.memory_space<vmem>>, %arg4: memref<1x128xf32, #tpu.memory_space<vmem>>, %arg5: memref<1x128xf32, #tpu.memory_space<vmem>>, %arg6: memref<1x128xf32, #tpu.memory_space<vmem>>, %arg7: memref<1x16x16x128xf32, #tpu.memory_space<vmem>>) attributes {dimension_semantics = [#tpu.dimension_semantics<parallel>], iteration_bounds = array<i64: 2>, scalar_prefetch = 0 : i64, scratch_operands = 0 : i64, tpu.core_type = #tpu.core_type<tc>, window_params = [{transform_indices = @transform_0, window_bounds = array<i64: 1, 16, 16, 128>}, {transform_indices = @transform_1, window_bounds = array<i64: 1, 16, 16, 128>}, {pipeline_mode = #tpu.pipeline_mode<synchronous>, transform_indices = @transform_2, window_bounds = array<i64: 1, 128>}, {pipeline_mode = #tpu.pipeline_mode<synchronous>, transform_indices = @transform_3, window_bounds = array<i64: 1, 128>}, {pipeline_mode = #tpu.pipeline_mode<synchronous>, transform_indices = @transform_4, window_bounds = array<i64: 1, 128>}, {pipeline_mode = #tpu.pipeline_mode<synchronous>, transform_indices = @transform_5, window_bounds = array<i64: 1, 128>}, {transform_indices = @transform_6, window_bounds = array<i64: 1, 16, 16, 128>}]} {
    %c0 = arith.constant 0 : index
    %c0_0 = arith.constant 0 : index
    %c0_1 = arith.constant 0 : index
    %c0_2 = arith.constant 0 : index
    %0 = vector.load %arg1[%c0, %c0_0, %c0_1, %c0_2] : memref<1x16x16x128xf32, #tpu.memory_space<vmem>>, vector<1x16x16x128xf32>
    %1 = vector.shape_cast %0 : vector<1x16x16x128xf32> to vector<16x16x128xf32>
    %c0_3 = arith.constant 0 : index
    %c0_4 = arith.constant 0 : index
    %2 = vector.load %arg3[%c0_3, %c0_4] : memref<1x128xf32, #tpu.memory_space<vmem>>, vector<1x128xf32>
    %3 = vector.shape_cast %2 : vector<1x128xf32> to vector<1x1x128xf32>
    %4 = vector.broadcast %3 : vector<1x1x128xf32> to vector<16x16x128xf32>
    %5 = arith.mulf %1, %4 : vector<16x16x128xf32>
    %c0_5 = arith.constant 0 : index
    %c0_6 = arith.constant 0 : index
    %6 = vector.load %arg4[%c0_5, %c0_6] : memref<1x128xf32, #tpu.memory_space<vmem>>, vector<1x128xf32>
    %7 = vector.shape_cast %6 : vector<1x128xf32> to vector<1x1x128xf32>
    %8 = vector.broadcast %7 : vector<1x1x128xf32> to vector<16x16x128xf32>
    %9 = arith.addf %5, %8 : vector<16x16x128xf32>
    %c0_7 = arith.constant 0 : index
    %c0_8 = arith.constant 0 : index
    %c0_9 = arith.constant 0 : index
    %c0_10 = arith.constant 0 : index
    %10 = vector.load %arg2[%c0_7, %c0_8, %c0_9, %c0_10] : memref<1x16x16x128xf32, #tpu.memory_space<vmem>>, vector<1x16x16x128xf32>
    %11 = vector.shape_cast %10 : vector<1x16x16x128xf32> to vector<16x16x128xf32>
    %c0_11 = arith.constant 0 : index
    %c0_12 = arith.constant 0 : index
    %12 = vector.load %arg5[%c0_11, %c0_12] : memref<1x128xf32, #tpu.memory_space<vmem>>, vector<1x128xf32>
    %13 = vector.shape_cast %12 : vector<1x128xf32> to vector<1x1x128xf32>
    %14 = vector.broadcast %13 : vector<1x1x128xf32> to vector<16x16x128xf32>
    %15 = arith.mulf %11, %14 : vector<16x16x128xf32>
    %16 = arith.addf %9, %15 : vector<16x16x128xf32>
    %c0_13 = arith.constant 0 : index
    %c0_14 = arith.constant 0 : index
    %17 = vector.load %arg6[%c0_13, %c0_14] : memref<1x128xf32, #tpu.memory_space<vmem>>, vector<1x128xf32>
    %18 = vector.shape_cast %17 : vector<1x128xf32> to vector<1x1x128xf32>
    %19 = vector.broadcast %18 : vector<1x1x128xf32> to vector<16x16x128xf32>
    %20 = arith.addf %16, %19 : vector<16x16x128xf32>
    %cst = arith.constant 0.000000e+00 : f32
    %21 = vector.broadcast %cst : f32 to vector<16x16x128xf32>
    %22 = arith.maximumf %20, %21 : vector<16x16x128xf32>
    %c0_15 = arith.constant 0 : index
    %c0_16 = arith.constant 0 : index
    %c0_17 = arith.constant 0 : index
    %c0_18 = arith.constant 0 : index
    %23 = vector.load %arg7[%c0_15, %c0_16, %c0_17, %c0_18] : memref<1x16x16x128xf32, #tpu.memory_space<vmem>>, vector<1x16x16x128xf32>
    %24 = vector.shape_cast %23 : vector<1x16x16x128xf32> to vector<16x16x128xf32>
    %25 = vector.shape_cast %22 : vector<16x16x128xf32> to vector<1x16x16x128xf32>
    tpu.vector_store %arg7[%c0_15, %c0_16, %c0_17, %c0_18], %25 {strides = array<i32>} : memref<1x16x16x128xf32, #tpu.memory_space<vmem>>, vector<1x16x16x128xf32>,
    return
  }
  func.func @transform_0(%arg0: i32) -> (i32, i32, i32, i32) {
    %c0_i32 = arith.constant 0 : i32
    %c0_i32_0 = arith.constant 0 : i32
    %c0_i32_1 = arith.constant 0 : i32
    %c0_i32_2 = arith.constant 0 : i32
    return %arg0, %c0_i32, %c0_i32_0, %c0_i32_1 : i32, i32, i32, i32
  }
  func.func @transform_1(%arg0: i32) -> (i32, i32, i32, i32) {
    %c0_i32 = arith.constant 0 : i32
    %c0_i32_0 = arith.constant 0 : i32
    %c0_i32_1 = arith.constant 0 : i32
    %c0_i32_2 = arith.constant 0 : i32
    return %arg0, %c0_i32, %c0_i32_0, %c0_i32_1 : i32, i32, i32, i32
  }
  func.func @transform_2(%arg0: i32) -> (i32, i32) {
    %c0_i32 = arith.constant 0 : i32
    %c0_i32_0 = arith.constant 0 : i32
    %c0_i32_1 = arith.constant 0 : i32
    return %c0_i32, %c0_i32_0 : i32, i32
  }
  func.func @transform_3(%arg0: i32) -> (i32, i32) {
    %c0_i32 = arith.constant 0 : i32
    %c0_i32_0 = arith.constant 0 : i32
    %c0_i32_1 = arith.constant 0 : i32
    return %c0_i32, %c0_i32_0 : i32, i32
  }
  func.func @transform_4(%arg0: i32) -> (i32, i32) {
    %c0_i32 = arith.constant 0 : i32
    %c0_i32_0 = arith.constant 0 : i32
    %c0_i32_1 = arith.constant 0 : i32
    return %c0_i32, %c0_i32_0 : i32, i32
  }
  func.func @transform_5(%arg0: i32) -> (i32, i32) {
    %c0_i32 = arith.constant 0 : i32
    %c0_i32_0 = arith.constant 0 : i32
    %c0_i32_1 = arith.constant 0 : i32
    return %c0_i32, %c0_i32_0 : i32, i32
  }
  func.func @transform_6(%arg0: i32) -> (i32, i32, i32, i32) {
    %c0_i32 = arith.constant 0 : i32
    %c0_i32_0 = arith.constant 0 : i32
    %c0_i32_1 = arith.constant 0 : i32
    %c0_i32_2 = arith.constant 0 : i32
    return %arg0, %c0_i32, %c0_i32_0, %c0_i32_1 : i32, i32, i32, i32
  }
}

module attributes {stable_mosaic.version = 11 : i64} {
  func.func @_conv2_kernel(%arg0: i32, %arg1: memref<1x16x16x128xf32, #tpu.memory_space<vmem>>, %arg2: memref<1x128xf32, #tpu.memory_space<vmem>>, %arg3: memref<1x128xf32, #tpu.memory_space<vmem>>, %arg4: memref<1152x128xbf16, #tpu.memory_space<vmem>>, %arg5: memref<1x16x16x128xf32, #tpu.memory_space<vmem>>, %arg6: memref<1x2x128xf32, #tpu.memory_space<vmem>>, %arg7: memref<18x18x128xbf16, #tpu.memory_space<vmem>>, %arg8: memref<256x1152xbf16, #tpu.memory_space<vmem>>) attributes {dimension_semantics = [#tpu.dimension_semantics<parallel>], iteration_bounds = array<i64: 2>, scalar_prefetch = 0 : i64, scratch_operands = 2 : i64, tpu.core_type = #tpu.core_type<tc>, window_params = [{transform_indices = @transform_0, window_bounds = array<i64: 1, 16, 16, 128>}, {pipeline_mode = #tpu.pipeline_mode<synchronous>, transform_indices = @transform_1, window_bounds = array<i64: 1, 128>}, {pipeline_mode = #tpu.pipeline_mode<synchronous>, transform_indices = @transform_2, window_bounds = array<i64: 1, 128>}, {pipeline_mode = #tpu.pipeline_mode<synchronous>, transform_indices = @transform_3, window_bounds = array<i64: 1152, 128>}, {transform_indices = @transform_4, window_bounds = array<i64: 1, 16, 16, 128>}, {transform_indices = @transform_5, window_bounds = array<i64: 1, 2, 128>}]} {
    %c0 = arith.constant 0 : index
    %c0_0 = arith.constant 0 : index
    %c0_1 = arith.constant 0 : index
    %c0_2 = arith.constant 0 : index
    %0 = vector.load %arg1[%c0, %c0_0, %c0_1, %c0_2] : memref<1x16x16x128xf32, #tpu.memory_space<vmem>>, vector<1x16x16x128xf32>
    %1 = vector.shape_cast %0 : vector<1x16x16x128xf32> to vector<16x16x128xf32>
    %c0_3 = arith.constant 0 : index
    %c0_4 = arith.constant 0 : index
    %2 = vector.load %arg2[%c0_3, %c0_4] : memref<1x128xf32, #tpu.memory_space<vmem>>, vector<1x128xf32>
    %3 = vector.shape_cast %2 : vector<1x128xf32> to vector<1x1x128xf32>
    %4 = vector.broadcast %3 : vector<1x1x128xf32> to vector<16x16x128xf32>
    %5 = arith.mulf %1, %4 : vector<16x16x128xf32>
    %c0_5 = arith.constant 0 : index
    %c0_6 = arith.constant 0 : index
    %6 = vector.load %arg3[%c0_5, %c0_6] : memref<1x128xf32, #tpu.memory_space<vmem>>, vector<1x128xf32>
    %7 = vector.shape_cast %6 : vector<1x128xf32> to vector<1x1x128xf32>
    %8 = vector.broadcast %7 : vector<1x1x128xf32> to vector<16x16x128xf32>
    %9 = arith.addf %5, %8 : vector<16x16x128xf32>
    %cst = arith.constant 0.000000e+00 : f32
    %10 = vector.broadcast %cst : f32 to vector<16x16x128xf32>
    %11 = arith.maximumf %9, %10 : vector<16x16x128xf32>
    %12 = arith.truncf %11 : vector<16x16x128xf32> to vector<16x16x128xbf16>
    %cst_7 = arith.constant 0.000000e+00 : bf16
    %13 = vector.broadcast %cst_7 : bf16 to vector<1x18x128xbf16>
    %c0_8 = arith.constant 0 : index
    %c0_9 = arith.constant 0 : index
    %c0_10 = arith.constant 0 : index
    %14 = vector.load %arg7[%c0_8, %c0_9, %c0_10] : memref<18x18x128xbf16, #tpu.memory_space<vmem>>, vector<1x18x128xbf16>
    tpu.vector_store %arg7[%c0_8, %c0_9, %c0_10], %13 {strides = array<i32>} : memref<18x18x128xbf16, #tpu.memory_space<vmem>>, vector<1x18x128xbf16>,
    %cst_11 = arith.constant 0.000000e+00 : bf16
    %15 = vector.broadcast %cst_11 : bf16 to vector<1x18x128xbf16>
    %c17 = arith.constant 17 : index
    %c0_12 = arith.constant 0 : index
    %c0_13 = arith.constant 0 : index
    %16 = vector.load %arg7[%c17, %c0_12, %c0_13] : memref<18x18x128xbf16, #tpu.memory_space<vmem>>, vector<1x18x128xbf16>
    tpu.vector_store %arg7[%c17, %c0_12, %c0_13], %15 {strides = array<i32>} : memref<18x18x128xbf16, #tpu.memory_space<vmem>>, vector<1x18x128xbf16>,
    %cst_14 = arith.constant 0.000000e+00 : bf16
    %17 = vector.broadcast %cst_14 : bf16 to vector<18x1x128xbf16>
    %c0_15 = arith.constant 0 : index
    %c0_16 = arith.constant 0 : index
    %c0_17 = arith.constant 0 : index
    %18 = vector.load %arg7[%c0_15, %c0_16, %c0_17] : memref<18x18x128xbf16, #tpu.memory_space<vmem>>, vector<18x1x128xbf16>
    tpu.vector_store %arg7[%c0_15, %c0_16, %c0_17], %17 {strides = array<i32>} : memref<18x18x128xbf16, #tpu.memory_space<vmem>>, vector<18x1x128xbf16>,
    %cst_18 = arith.constant 0.000000e+00 : bf16
    %19 = vector.broadcast %cst_18 : bf16 to vector<18x1x128xbf16>
    %c0_19 = arith.constant 0 : index
    %c17_20 = arith.constant 17 : index
    %c0_21 = arith.constant 0 : index
    %20 = vector.load %arg7[%c0_19, %c17_20, %c0_21] : memref<18x18x128xbf16, #tpu.memory_space<vmem>>, vector<18x1x128xbf16>
    tpu.vector_store %arg7[%c0_19, %c17_20, %c0_21], %19 {strides = array<i32>} : memref<18x18x128xbf16, #tpu.memory_space<vmem>>, vector<18x1x128xbf16>,
    %c1 = arith.constant 1 : index
    %c1_22 = arith.constant 1 : index
    %c0_23 = arith.constant 0 : index
    %21 = vector.load %arg7[%c1, %c1_22, %c0_23] : memref<18x18x128xbf16, #tpu.memory_space<vmem>>, vector<16x16x128xbf16>
    tpu.vector_store %arg7[%c1, %c1_22, %c0_23], %12 {strides = array<i32>} : memref<18x18x128xbf16, #tpu.memory_space<vmem>>, vector<16x16x128xbf16>,
    %c0_24 = arith.constant 0 : index
    %c0_25 = arith.constant 0 : index
    %c0_26 = arith.constant 0 : index
    %22 = vector.load %arg7[%c0_24, %c0_25, %c0_26] : memref<18x18x128xbf16, #tpu.memory_space<vmem>>, vector<18x18x128xbf16>
    %23 = vector.extract_strided_slice %22 {offsets = [0, 0, 0], sizes = [16, 16, 128], strides = [1, 1, 1]} : vector<18x18x128xbf16> to vector<16x16x128xbf16>
    %24 = vector.shape_cast %23 : vector<16x16x128xbf16> to vector<256x128xbf16>
    %c0_27 = arith.constant 0 : index
    %c0_28 = arith.constant 0 : index
    %25 = vector.load %arg8[%c0_27, %c0_28] : memref<256x1152xbf16, #tpu.memory_space<vmem>>, vector<256x128xbf16>
    tpu.vector_store %arg8[%c0_27, %c0_28], %24 {strides = array<i32>} : memref<256x1152xbf16, #tpu.memory_space<vmem>>, vector<256x128xbf16>,
    %26 = vector.extract_strided_slice %22 {offsets = [0, 1, 0], sizes = [16, 16, 128], strides = [1, 1, 1]} : vector<18x18x128xbf16> to vector<16x16x128xbf16>
    %27 = vector.shape_cast %26 : vector<16x16x128xbf16> to vector<256x128xbf16>
    %c0_29 = arith.constant 0 : index
    %c128 = arith.constant 128 : index
    %28 = vector.load %arg8[%c0_29, %c128] : memref<256x1152xbf16, #tpu.memory_space<vmem>>, vector<256x128xbf16>
    tpu.vector_store %arg8[%c0_29, %c128], %27 {strides = array<i32>} : memref<256x1152xbf16, #tpu.memory_space<vmem>>, vector<256x128xbf16>,
    %29 = vector.extract_strided_slice %22 {offsets = [0, 2, 0], sizes = [16, 16, 128], strides = [1, 1, 1]} : vector<18x18x128xbf16> to vector<16x16x128xbf16>
    %30 = vector.shape_cast %29 : vector<16x16x128xbf16> to vector<256x128xbf16>
    %c0_30 = arith.constant 0 : index
    %c256 = arith.constant 256 : index
    %31 = vector.load %arg8[%c0_30, %c256] : memref<256x1152xbf16, #tpu.memory_space<vmem>>, vector<256x128xbf16>
    tpu.vector_store %arg8[%c0_30, %c256], %30 {strides = array<i32>} : memref<256x1152xbf16, #tpu.memory_space<vmem>>, vector<256x128xbf16>,
    %32 = vector.extract_strided_slice %22 {offsets = [1, 0, 0], sizes = [16, 16, 128], strides = [1, 1, 1]} : vector<18x18x128xbf16> to vector<16x16x128xbf16>
    %33 = vector.shape_cast %32 : vector<16x16x128xbf16> to vector<256x128xbf16>
    %c0_31 = arith.constant 0 : index
    %c384 = arith.constant 384 : index
    %34 = vector.load %arg8[%c0_31, %c384] : memref<256x1152xbf16, #tpu.memory_space<vmem>>, vector<256x128xbf16>
    tpu.vector_store %arg8[%c0_31, %c384], %33 {strides = array<i32>} : memref<256x1152xbf16, #tpu.memory_space<vmem>>, vector<256x128xbf16>,
    %35 = vector.extract_strided_slice %22 {offsets = [1, 1, 0], sizes = [16, 16, 128], strides = [1, 1, 1]} : vector<18x18x128xbf16> to vector<16x16x128xbf16>
    %36 = vector.shape_cast %35 : vector<16x16x128xbf16> to vector<256x128xbf16>
    %c0_32 = arith.constant 0 : index
    %c512 = arith.constant 512 : index
    %37 = vector.load %arg8[%c0_32, %c512] : memref<256x1152xbf16, #tpu.memory_space<vmem>>, vector<256x128xbf16>
    tpu.vector_store %arg8[%c0_32, %c512], %36 {strides = array<i32>} : memref<256x1152xbf16, #tpu.memory_space<vmem>>, vector<256x128xbf16>,
    %38 = vector.extract_strided_slice %22 {offsets = [1, 2, 0], sizes = [16, 16, 128], strides = [1, 1, 1]} : vector<18x18x128xbf16> to vector<16x16x128xbf16>
    %39 = vector.shape_cast %38 : vector<16x16x128xbf16> to vector<256x128xbf16>
    %c0_33 = arith.constant 0 : index
    %c640 = arith.constant 640 : index
    %40 = vector.load %arg8[%c0_33, %c640] : memref<256x1152xbf16, #tpu.memory_space<vmem>>, vector<256x128xbf16>
    tpu.vector_store %arg8[%c0_33, %c640], %39 {strides = array<i32>} : memref<256x1152xbf16, #tpu.memory_space<vmem>>, vector<256x128xbf16>,
    %41 = vector.extract_strided_slice %22 {offsets = [2, 0, 0], sizes = [16, 16, 128], strides = [1, 1, 1]} : vector<18x18x128xbf16> to vector<16x16x128xbf16>
    %42 = vector.shape_cast %41 : vector<16x16x128xbf16> to vector<256x128xbf16>
    %c0_34 = arith.constant 0 : index
    %c768 = arith.constant 768 : index
    %43 = vector.load %arg8[%c0_34, %c768] : memref<256x1152xbf16, #tpu.memory_space<vmem>>, vector<256x128xbf16>
    tpu.vector_store %arg8[%c0_34, %c768], %42 {strides = array<i32>} : memref<256x1152xbf16, #tpu.memory_space<vmem>>, vector<256x128xbf16>,
    %44 = vector.extract_strided_slice %22 {offsets = [2, 1, 0], sizes = [16, 16, 128], strides = [1, 1, 1]} : vector<18x18x128xbf16> to vector<16x16x128xbf16>
    %45 = vector.shape_cast %44 : vector<16x16x128xbf16> to vector<256x128xbf16>
    %c0_35 = arith.constant 0 : index
    %c896 = arith.constant 896 : index
    %46 = vector.load %arg8[%c0_35, %c896] : memref<256x1152xbf16, #tpu.memory_space<vmem>>, vector<256x128xbf16>
    tpu.vector_store %arg8[%c0_35, %c896], %45 {strides = array<i32>} : memref<256x1152xbf16, #tpu.memory_space<vmem>>, vector<256x128xbf16>,
    %47 = vector.extract_strided_slice %22 {offsets = [2, 2, 0], sizes = [16, 16, 128], strides = [1, 1, 1]} : vector<18x18x128xbf16> to vector<16x16x128xbf16>
    %48 = vector.shape_cast %47 : vector<16x16x128xbf16> to vector<256x128xbf16>
    %c0_36 = arith.constant 0 : index
    %c1024 = arith.constant 1024 : index
    %49 = vector.load %arg8[%c0_36, %c1024] : memref<256x1152xbf16, #tpu.memory_space<vmem>>, vector<256x128xbf16>
    tpu.vector_store %arg8[%c0_36, %c1024], %48 {strides = array<i32>} : memref<256x1152xbf16, #tpu.memory_space<vmem>>, vector<256x128xbf16>,
    %c0_37 = arith.constant 0 : index
    %c0_38 = arith.constant 0 : index
    %50 = vector.load %arg8[%c0_37, %c0_38] : memref<256x1152xbf16, #tpu.memory_space<vmem>>, vector<256x1152xbf16>
    %c0_39 = arith.constant 0 : index
    %c0_40 = arith.constant 0 : index
    %51 = vector.load %arg4[%c0_39, %c0_40] : memref<1152x128xbf16, #tpu.memory_space<vmem>>, vector<1152x128xbf16>
    %cst_41 = arith.constant dense<0.000000e+00> : vector<256x128xf32>
    %52 = tpu.matmul %50, %51, %cst_41 {dimension_numbers = #tpu.dot_dimension_numbers<[1], [0], [0], [1], [0, 0, 1, 1], [], []>} : vector<256x1152xbf16>, vector<1152x128xbf16>, vector<256x128xf32> -> vector<256x128xf32>
    %53 = vector.shape_cast %52 : vector<256x128xf32> to vector<16x16x128xf32>
    %c0_42 = arith.constant 0 : index
    %c0_43 = arith.constant 0 : index
    %c0_44 = arith.constant 0 : index
    %c0_45 = arith.constant 0 : index
    %54 = vector.load %arg5[%c0_42, %c0_43, %c0_44, %c0_45] : memref<1x16x16x128xf32, #tpu.memory_space<vmem>>, vector<1x16x16x128xf32>
    %55 = vector.shape_cast %54 : vector<1x16x16x128xf32> to vector<16x16x128xf32>
    %56 = vector.shape_cast %53 : vector<16x16x128xf32> to vector<1x16x16x128xf32>
    tpu.vector_store %arg5[%c0_42, %c0_43, %c0_44, %c0_45], %56 {strides = array<i32>} : memref<1x16x16x128xf32, #tpu.memory_space<vmem>>, vector<1x16x16x128xf32>,
    %cst_46 = arith.constant dense<0.000000e+00> : vector<128xf32>
    %57 = vector.multi_reduction <add>, %52, %cst_46 [0] : vector<256x128xf32> to vector<128xf32>
    %58 = vector.shape_cast %57 : vector<128xf32> to vector<1x128xf32>
    %c0_47 = arith.constant 0 : index
    %c0_48 = arith.constant 0 : index
    %c0_49 = arith.constant 0 : index
    %59 = vector.load %arg6[%c0_47, %c0_48, %c0_49] : memref<1x2x128xf32, #tpu.memory_space<vmem>>, vector<1x1x128xf32>
    %60 = vector.shape_cast %59 : vector<1x1x128xf32> to vector<1x128xf32>
    %61 = vector.shape_cast %58 : vector<1x128xf32> to vector<1x1x128xf32>
    tpu.vector_store %arg6[%c0_47, %c0_48, %c0_49], %61 {strides = array<i32>} : memref<1x2x128xf32, #tpu.memory_space<vmem>>, vector<1x1x128xf32>,
    %62 = arith.mulf %52, %52 : vector<256x128xf32>
    %cst_50 = arith.constant dense<0.000000e+00> : vector<128xf32>
    %63 = vector.multi_reduction <add>, %62, %cst_50 [0] : vector<256x128xf32> to vector<128xf32>
    %64 = vector.shape_cast %63 : vector<128xf32> to vector<1x128xf32>
    %c0_51 = arith.constant 0 : index
    %c1_52 = arith.constant 1 : index
    %c0_53 = arith.constant 0 : index
    %65 = vector.load %arg6[%c0_51, %c1_52, %c0_53] : memref<1x2x128xf32, #tpu.memory_space<vmem>>, vector<1x1x128xf32>
    %66 = vector.shape_cast %65 : vector<1x1x128xf32> to vector<1x128xf32>
    %67 = vector.shape_cast %64 : vector<1x128xf32> to vector<1x1x128xf32>
    tpu.vector_store %arg6[%c0_51, %c1_52, %c0_53], %67 {strides = array<i32>} : memref<1x2x128xf32, #tpu.memory_space<vmem>>, vector<1x1x128xf32>,
    return
  }
  func.func @transform_0(%arg0: i32) -> (i32, i32, i32, i32) {
    %c0_i32 = arith.constant 0 : i32
    %c0_i32_0 = arith.constant 0 : i32
    %c0_i32_1 = arith.constant 0 : i32
    %c0_i32_2 = arith.constant 0 : i32
    return %arg0, %c0_i32, %c0_i32_0, %c0_i32_1 : i32, i32, i32, i32
  }
  func.func @transform_1(%arg0: i32) -> (i32, i32) {
    %c0_i32 = arith.constant 0 : i32
    %c0_i32_0 = arith.constant 0 : i32
    %c0_i32_1 = arith.constant 0 : i32
    return %c0_i32, %c0_i32_0 : i32, i32
  }
  func.func @transform_2(%arg0: i32) -> (i32, i32) {
    %c0_i32 = arith.constant 0 : i32
    %c0_i32_0 = arith.constant 0 : i32
    %c0_i32_1 = arith.constant 0 : i32
    return %c0_i32, %c0_i32_0 : i32, i32
  }
  func.func @transform_3(%arg0: i32) -> (i32, i32) {
    %c0_i32 = arith.constant 0 : i32
    %c0_i32_0 = arith.constant 0 : i32
    %c0_i32_1 = arith.constant 0 : i32
    return %c0_i32, %c0_i32_0 : i32, i32
  }
  func.func @transform_4(%arg0: i32) -> (i32, i32, i32, i32) {
    %c0_i32 = arith.constant 0 : i32
    %c0_i32_0 = arith.constant 0 : i32
    %c0_i32_1 = arith.constant 0 : i32
    %c0_i32_2 = arith.constant 0 : i32
    return %arg0, %c0_i32, %c0_i32_0, %c0_i32_1 : i32, i32, i32, i32
  }
  func.func @transform_5(%arg0: i32) -> (i32, i32, i32) {
    %c0_i32 = arith.constant 0 : i32
    %c0_i32_0 = arith.constant 0 : i32
    %c0_i32_1 = arith.constant 0 : i32
    return %arg0, %c0_i32, %c0_i32_0 : i32, i32, i32
  }
}

</mosaic_0001>

<bundles_post_ra>
// kernel: residual_block.5
= control target key start
LH: loop header
LB: loop body
LE: loop exit
PB: predicated region body
PF: predicated region fallthrough
CT: control target
= control target key end

     0   :  { %s726_s21 = smov 0   ;;  %s1001_s0 = inlined_call_operand.vmem [shape: f32[2,16,16,128], index: 0, kind: input, shape index: {}]   ;;  %s1002_s1 = inlined_call_operand.vmem [shape: f32[2,16,16,128], index: 1, kind: input, shape index: {}]   ;;  %s1003_s2 = inlined_call_operand.vmem [shape: f32[1,128], index: 2, kind: input, shape index: {}]   ;;  %s1004_s3 = inlined_call_operand.vmem [shape: f32[1,128], index: 3, kind: input, shape index: {}]   ;;  %s1005_s4 = inlined_call_operand.vmem [shape: f32[1,128], index: 4, kind: input, shape index: {}]   ;;  %s1006_s5 = inlined_call_operand.vmem [shape: f32[1,128], index: 5, kind: input, shape index: {}]   ;;  %s1007_s6 = inlined_call_operand.vmem [shape: f32[2,16,16,128], index: 6, kind: output, shape index: {}]  }
   0x1 LB: > { %s655_s22 = sadd.s32 4294967295, %s689_s21   ;;  %p659_p0 = scmp.ge.s32.totalorder %s689_s21, 1  ;;  %s689_s21 = sphi %s726_s21, %s16_s21  }
   0x2   : > { %p222_p1 = scmp.lt.s32.totalorder %s689_s21, 3 }
   0x4   : > { %p223_p2 = pnand %p659_p0, %p222_p1 }
   0x5   : > { %p257_p3 = scmp.lt.s32.totalorder (!%p223_p2), %s655_s22, 1  ;;  %v739_v0 = vld [vmem:[%s1003_s2] ss:$0 sm:$0xff] (!%p223_p2) }
   0x6   : > { %226 = sbr.rel (%p223_p2) target bundleno = 72 (0x48), region = 44  ;;  %v744_v1 = vld [vmem:[%s1005_s4] ss:$0 sm:$0xff] (!%p223_p2) }
   0x7   : > { %v761_v2 = vld [vmem:[%s1004_s3] ss:$0 sm:$0xff] (!%p223_p2) }
   0x8   : > { %v788_v25 = vld [vmem:[%s1006_s5] ss:$0 sm:$0xff] (!%p223_p2) }
   0xd   : > { %s1009_s22 = smov (!%p257_p3, %s655_s22), 1 }
   0xe   : > { %s734_s23 = sshll.u32 %s1009_s22, 8 }
   0xf   : > { %s750_s30 = scalar_lea.vmem %s1001_s0, %s734_s23  ;;  %s756_s9 = scalar_lea.vmem %s1002_s1, %s734_s23 }
  0x10   : > { %v272_v3 = vld [vmem:[%s750_s30] sm:$0xff]  ;;  %v273_v5 = vld [vmem:[%s750_s30 + $0x8] sm:$0xff]  ;;  %v274_v10 = vld [vmem:[%s750_s30 + $0x10] sm:$0xff]  ;;  %s809_s16 = scalar_lea.vmem %s1007_s6, %s734_s23 }
  0x11   : > { %v382_v4 = vld [vmem:[%s756_s9] sm:$0xff]  ;;  %v311_v6 = vmul.f32 %v739_v0, %v272_v3  ;;  %v312_v8 = vmul.f32 %v739_v0, %v273_v5  ;;  %v383_v9 = vld [vmem:[%s756_s9 + $0x8] sm:$0xff]  ;;  %v384_v11 = vld [vmem:[%s756_s9 + $0x10] sm:$0xff]  ;;  %v313_v13 = vmul.f32 %v739_v0, %v274_v10 }
  0x12   : > { %v421_v7 = vmul.f32 %v744_v1, %v382_v4  ;;  %v422_v12 = vmul.f32 %v744_v1, %v383_v9  ;;  %v423_v14 = vmul.f32 %v744_v1, %v384_v11  ;;  %v275_v15 = vld [vmem:[%s750_s30 + $0x18] sm:$0xff]  ;;  %v276_v17 = vld [vmem:[%s750_s30 + $0x20] sm:$0xff]  ;;  %v277_v23 = vld [vmem:[%s750_s30 + $0x28] sm:$0xff] }
  0x13   : > { %v385_v16 = vld [vmem:[%s756_s9 + $0x18] sm:$0xff]  ;;  %v350_v18 = vadd.f32 %v761_v2, %v311_v6  ;;  %v351_v19 = vadd.f32 %v761_v2, %v312_v8  ;;  %v314_v20 = vmul.f32 %v739_v0, %v275_v15  ;;  %v386_v22 = vld [vmem:[%s756_s9 + $0x20] sm:$0xff]  ;;  %v387_v24 = vld [vmem:[%s756_s9 + $0x28] sm:$0xff]  ;;  %v352_v26 = vadd.f32 %v761_v2, %v313_v13 }
  0x14   : > { %v424_v21 = vmul.f32 %v744_v1, %v385_v16  ;;  %v315_v27 = vmul.f32 %v739_v0, %v276_v17  ;;  %v425_v28 = vmul.f32 %v744_v1, %v386_v22  ;;  %v316_v29 = vmul.f32 %v739_v0, %v277_v23  ;;  %v278_v30 = vld [vmem:[%s750_s30 + $0x30] sm:$0xff]  ;;  %v279_v40 = vld [vmem:[%s750_s30 + $0x38] sm:$0xff]  ;;  %v280_v50 = vld [vmem:[%s750_s30 + $0x40] sm:$0xff] }
  0x15   : > { %v388_v31 = vld [vmem:[%s756_s9 + $0x30] sm:$0xff]  ;;  %v453_v32 = vadd.f32 %v421_v7, %v350_v18  ;;  %v454_v33 = vadd.f32 %v422_v12, %v351_v19  ;;  %v353_v34 = vadd.f32 %v761_v2, %v314_v20  ;;  %v426_v35 = vmul.f32 %v744_v1, %v387_v24  ;;  %v389_v49 = vld [vmem:[%s756_s9 + $0x38] sm:$0xff]  ;;  %v390_v55 = vld [vmem:[%s756_s9 + $0x40] sm:$0xff] }
  0x16   : > { %v455_v36 = vadd.f32 %v423_v14, %v352_v26  ;;  %v354_v37 = vadd.f32 %v761_v2, %v315_v27  ;;  %v355_v38 = vadd.f32 %v761_v2, %v316_v29  ;;  %v317_v39 = vmul.f32 %v739_v0, %v278_v30  ;;  %v281_v60 = vld [vmem:[%s750_s30 + $0x48] sm:$0xff]  ;;  %v282_v5 = vld [vmem:[%s750_s30 + $0x50] sm:$0xff]  ;;  %v283_v7 = vld [vmem:[%s750_s30 + $0x58] sm:$0xff] }
  0x17   : > { %v492_v41 = vadd.f32 %v788_v25, %v453_v32  ;;  %v493_v42 = vadd.f32 %v788_v25, %v454_v33  ;;  %v456_v43 = vadd.f32 %v424_v21, %v353_v34  ;;  %v427_v44 = vmul.f32 %v744_v1, %v388_v31  ;;  %v391_v61 = vld [vmem:[%s756_s9 + $0x48] sm:$0xff]  ;;  %v392_v6 = vld [vmem:[%s756_s9 + $0x50] sm:$0xff]  ;;  %v393_v12 = vld [vmem:[%s756_s9 + $0x58] sm:$0xff] }
  0x18   : > { %v494_v45 = vadd.f32 %v788_v25, %v455_v36  ;;  %v457_v46 = vadd.f32 %v425_v28, %v354_v37  ;;  %v458_v47 = vadd.f32 %v426_v35, %v355_v38  ;;  %v356_v48 = vadd.f32 %v761_v2, %v317_v39  ;;  %v284_v17 = vld [vmem:[%s750_s30 + $0x60] sm:$0xff]  ;;  %v285_v23 = vld [vmem:[%s750_s30 + $0x68] sm:$0xff]  ;;  %v286_v34 = vld [vmem:[%s750_s30 + $0x70] sm:$0xff] }
  0x19   : > { %v524_v51 = vmax.f32 %v492_v41, 0.0  ;;  %v525_v52 = vmax.f32 %v493_v42, 0.0  ;;  %v495_v53 = vadd.f32 %v788_v25, %v456_v43  ;;  %v318_v54 = vmul.f32 %v739_v0, %v279_v40  ;;  %v394_v18 = vld [vmem:[%s756_s9 + $0x60] sm:$0xff]  ;;  %v395_v29 = vld [vmem:[%s756_s9 + $0x68] sm:$0xff]  ;;  %v396_v39 = vld [vmem:[%s756_s9 + $0x70] sm:$0xff] }
  0x1a   : > { %v526_v56 = vmax.f32 %v494_v45, 0.0  ;;  %v496_v57 = vadd.f32 %v788_v25, %v457_v46  ;;  %v497_v58 = vadd.f32 %v788_v25, %v458_v47  ;;  %v459_v59 = vadd.f32 %v427_v44, %v356_v48  ;;  %v287_v44 = vld [vmem:[%s750_s30 + $0x78] sm:$0xff] }
  0x1b   : > { %556 = vst [vmem:[%s809_s16] sm:$0xff] %v524_v51  ;;  %557 = vst [vmem:[%s809_s16 + $0x8] sm:$0xff] %v525_v52  ;;  %v527_v62 = vmax.f32 %v495_v53, 0.0  ;;  %v357_v63 = vadd.f32 %v761_v2, %v318_v54  ;;  %v428_v3 = vmul.f32 %v744_v1, %v389_v49  ;;  %v319_v4 = vmul.f32 %v739_v0, %v280_v50  ;;  %v397_v49 = vld [vmem:[%s756_s9 + $0x78] sm:$0xff]  ;;  %v288_v54 = vld [vmem:[%s750_s30 + $0x80] sm:$0xff] }
  0x1c   : > { %558 = vst [vmem:[%s809_s16 + $0x10] sm:$0xff] %v526_v56  ;;  %v528_v8 = vmax.f32 %v496_v57, 0.0  ;;  %v529_v9 = vmax.f32 %v497_v58, 0.0  ;;  %v498_v10 = vadd.f32 %v788_v25, %v459_v59  ;;  %v429_v11 = vmul.f32 %v744_v1, %v390_v55  ;;  %v398_v59 = vld [vmem:[%s756_s9 + $0x80] sm:$0xff] }
  0x1d   : > { %559 = vst [vmem:[%s809_s16 + $0x18] sm:$0xff] %v527_v62  ;;  %v460_v13 = vadd.f32 %v428_v3, %v357_v63  ;;  %v358_v14 = vadd.f32 %v761_v2, %v319_v4  ;;  %v320_v15 = vmul.f32 %v739_v0, %v281_v60  ;;  %v430_v16 = vmul.f32 %v744_v1, %v391_v61  ;;  %v289_v60 = vld [vmem:[%s750_s30 + $0x88] sm:$0xff] }
  0x1e   : > { %560 = vst [vmem:[%s809_s16 + $0x20] sm:$0xff] %v528_v8  ;;  %561 = vst [vmem:[%s809_s16 + $0x28] sm:$0xff] %v529_v9  ;;  %v530_v19 = vmax.f32 %v498_v10, 0.0  ;;  %v321_v20 = vmul.f32 %v739_v0, %v282_v5  ;;  %v431_v21 = vmul.f32 %v744_v1, %v392_v6  ;;  %v322_v22 = vmul.f32 %v739_v0, %v283_v7  ;;  %v399_v61 = vld [vmem:[%s756_s9 + $0x88] sm:$0xff]  ;;  %v290_v9 = vld [vmem:[%s750_s30 + $0x90] sm:$0xff] }
  0x1f   : > { %v499_v24 = vadd.f32 %v788_v25, %v460_v13  ;;  %v461_v26 = vadd.f32 %v429_v11, %v358_v14  ;;  %v359_v27 = vadd.f32 %v761_v2, %v320_v15  ;;  %v432_v28 = vmul.f32 %v744_v1, %v393_v12  ;;  %v400_v10 = vld [vmem:[%s756_s9 + $0x90] sm:$0xff]  ;;  %v291_v11 = vld [vmem:[%s750_s30 + $0x98] sm:$0xff] }
  0x20   : > { %562 = vst [vmem:[%s809_s16 + $0x30] sm:$0xff] %v530_v19  ;;  %v360_v30 = vadd.f32 %v761_v2, %v321_v20  ;;  %v361_v31 = vadd.f32 %v761_v2, %v322_v22  ;;  %v323_v32 = vmul.f32 %v739_v0, %v284_v17  ;;  %v433_v33 = vmul.f32 %v744_v1, %v394_v18 }
  0x21   : > { %v531_v35 = vmax.f32 %v499_v24, 0.0  ;;  %v500_v36 = vadd.f32 %v788_v25, %v461_v26  ;;  %v462_v37 = vadd.f32 %v430_v16, %v359_v27  ;;  %v324_v38 = vmul.f32 %v739_v0, %v285_v23  ;;  %v401_v16 = vld [vmem:[%s756_s9 + $0x98] sm:$0xff]  ;;  %v402_v27 = vld [vmem:[%s756_s9 + $0xa0] sm:$0xff] }
  0x22   : > { %v463_v40 = vadd.f32 %v431_v21, %v360_v30  ;;  %v464_v41 = vadd.f32 %v432_v28, %v361_v31  ;;  %v362_v42 = vadd.f32 %v761_v2, %v323_v32  ;;  %v434_v43 = vmul.f32 %v744_v1, %v395_v29  ;;  %v292_v21 = vld [vmem:[%s750_s30 + $0xa0] sm:$0xff]  ;;  %v293_v28 = vld [vmem:[%s750_s30 + $0xa8] sm:$0xff] }
  0x23   : > { %563 = vst [vmem:[%s809_s16 + $0x38] sm:$0xff] %v531_v35  ;;  %v532_v45 = vmax.f32 %v500_v36, 0.0  ;;  %v501_v46 = vadd.f32 %v788_v25, %v462_v37  ;;  %v363_v47 = vadd.f32 %v761_v2, %v324_v38  ;;  %v325_v48 = vmul.f32 %v739_v0, %v286_v34  ;;  %v403_v37 = vld [vmem:[%s756_s9 + $0xa8] sm:$0xff]  ;;  %v294_v38 = vld [vmem:[%s750_s30 + $0xb0] sm:$0xff] }
  0x24   : > { %v502_v50 = vadd.f32 %v788_v25, %v463_v40  ;;  %v503_v51 = vadd.f32 %v788_v25, %v464_v41  ;;  %v465_v52 = vadd.f32 %v433_v33, %v362_v42  ;;  %v435_v53 = vmul.f32 %v744_v1, %v396_v39 }
  0x25   : > { %564 = vst [vmem:[%s809_s16 + $0x40] sm:$0xff] %v532_v45  ;;  %v533_v55 = vmax.f32 %v501_v46, 0.0  ;;  %v466_v56 = vadd.f32 %v434_v43, %v363_v47  ;;  %v364_v57 = vadd.f32 %v761_v2, %v325_v48  ;;  %v326_v58 = vmul.f32 %v739_v0, %v287_v44  ;;  %v404_v47 = vld [vmem:[%s756_s9 + $0xb0] sm:$0xff]  ;;  %v295_v48 = vld [vmem:[%s750_s30 + $0xb8] sm:$0xff] }
  0x26   : > { %v534_v62 = vmax.f32 %v502_v50, 0.0  ;;  %v535_v63 = vmax.f32 %v503_v51, 0.0  ;;  %v504_v3 = vadd.f32 %v788_v25, %v465_v52  ;;  %v436_v4 = vmul.f32 %v744_v1, %v397_v49 }
  0x27   : > { %565 = vst [vmem:[%s809_s16 + $0x48] sm:$0xff] %v533_v55  ;;  %v505_v5 = vadd.f32 %v788_v25, %v466_v56  ;;  %v467_v6 = vadd.f32 %v435_v53, %v364_v57  ;;  %v365_v7 = vadd.f32 %v761_v2, %v326_v58  ;;  %v327_v8 = vmul.f32 %v739_v0, %v288_v54  ;;  %v405_v53 = vld [vmem:[%s756_s9 + $0xb8] sm:$0xff]  ;;  %v296_v58 = vld [vmem:[%s750_s30 + $0xc0] sm:$0xff] }
  0x28   : > { %566 = vst [vmem:[%s809_s16 + $0x50] sm:$0xff] %v534_v62  ;;  %567 = vst [vmem:[%s809_s16 + $0x58] sm:$0xff] %v535_v63  ;;  %v536_v12 = vmax.f32 %v504_v3, 0.0  ;;  %v437_v13 = vmul.f32 %v744_v1, %v398_v59  ;;  %v328_v14 = vmul.f32 %v739_v0, %v289_v60  ;;  %v438_v15 = vmul.f32 %v744_v1, %v399_v61  ;;  %v406_v63 = vld [vmem:[%s756_s9 + $0xc0] sm:$0xff]  ;;  %v297_v3 = vld [vmem:[%s750_s30 + $0xc8] sm:$0xff] }
  0x29   : > { %v537_v17 = vmax.f32 %v505_v5, 0.0  ;;  %v506_v18 = vadd.f32 %v788_v25, %v467_v6  ;;  %v468_v19 = vadd.f32 %v436_v4, %v365_v7  ;;  %v366_v20 = vadd.f32 %v761_v2, %v327_v8  ;;  %v407_v4 = vld [vmem:[%s756_s9 + $0xc8] sm:$0xff] }
  0x2a   : > { %568 = vst [vmem:[%s809_s16 + $0x60] sm:$0xff] %v536_v12  ;;  %v367_v22 = vadd.f32 %v761_v2, %v328_v14  ;;  %v329_v23 = vmul.f32 %v739_v0, %v290_v9  ;;  %v439_v24 = vmul.f32 %v744_v1, %v400_v10  ;;  %v330_v26 = vmul.f32 %v739_v0, %v291_v11  ;;  %v408_v14 = vld [vmem:[%s756_s9 + $0xd0] sm:$0xff] }
  0x2b   : > { %569 = vst [vmem:[%s809_s16 + $0x68] sm:$0xff] %v537_v17  ;;  %v538_v29 = vmax.f32 %v506_v18, 0.0  ;;  %v507_v30 = vadd.f32 %v788_v25, %v468_v19  ;;  %v469_v31 = vadd.f32 %v437_v13, %v366_v20  ;;  %v440_v32 = vmul.f32 %v744_v1, %v401_v16  ;;  %v298_v13 = vld [vmem:[%s750_s30 + $0xd0] sm:$0xff]  ;;  %v409_v20 = vld [vmem:[%s756_s9 + $0xd8] sm:$0xff] }
  0x2c   : > { %v470_v33 = vadd.f32 %v438_v15, %v367_v22  ;;  %v368_v34 = vadd.f32 %v761_v2, %v329_v23  ;;  %v369_v35 = vadd.f32 %v761_v2, %v330_v26  ;;  %v331_v36 = vmul.f32 %v739_v0, %v292_v21  ;;  %v299_v15 = vld [vmem:[%s750_s30 + $0xd8] sm:$0xff]  ;;  %v300_v26 = vld [vmem:[%s750_s30 + $0xe0] sm:$0xff] }
  0x2d   : > { %570 = vst [vmem:[%s809_s16 + $0x70] sm:$0xff] %v538_v29  ;;  %v539_v39 = vmax.f32 %v507_v30, 0.0  ;;  %v508_v40 = vadd.f32 %v788_v25, %v469_v31  ;;  %v441_v41 = vmul.f32 %v744_v1, %v402_v27  ;;  %v332_v42 = vmul.f32 %v739_v0, %v293_v28  ;;  %v410_v31 = vld [vmem:[%s756_s9 + $0xe0] sm:$0xff] }
  0x2e   : > { %v509_v43 = vadd.f32 %v788_v25, %v470_v33  ;;  %v471_v44 = vadd.f32 %v439_v24, %v368_v34  ;;  %v472_v45 = vadd.f32 %v440_v32, %v369_v35  ;;  %v370_v46 = vadd.f32 %v761_v2, %v331_v36  ;;  %v301_v32 = vld [vmem:[%s750_s30 + $0xe8] sm:$0xff] }
  0x2f   : > { %571 = vst [vmem:[%s809_s16 + $0x78] sm:$0xff] %v539_v39  ;;  %v540_v49 = vmax.f32 %v508_v40, 0.0  ;;  %v371_v50 = vadd.f32 %v761_v2, %v332_v42  ;;  %v442_v51 = vmul.f32 %v744_v1, %v403_v37  ;;  %v333_v52 = vmul.f32 %v739_v0, %v294_v38  ;;  %v302_v42 = vld [vmem:[%s750_s30 + $0xf0] sm:$0xff] }
  0x30   : > { %v541_v54 = vmax.f32 %v509_v43, 0.0  ;;  %v510_v55 = vadd.f32 %v788_v25, %v471_v44  ;;  %v511_v56 = vadd.f32 %v788_v25, %v472_v45  ;;  %v473_v57 = vadd.f32 %v441_v41, %v370_v46  ;;  %v411_v41 = vld [vmem:[%s756_s9 + $0xe8] sm:$0xff] }
  0x31   : > { %572 = vst [vmem:[%s809_s16 + $0x80] sm:$0xff] %v540_v49  ;;  %v474_v59 = vadd.f32 %v442_v51, %v371_v50  ;;  %v372_v60 = vadd.f32 %v761_v2, %v333_v52  ;;  %v443_v61 = vmul.f32 %v744_v1, %v404_v47  ;;  %v334_v62 = vmul.f32 %v739_v0, %v295_v48  ;;  %v412_v51 = vld [vmem:[%s756_s9 + $0xf0] sm:$0xff]  ;;  %v303_v52 = vld [vmem:[%s750_s30 + $0xf8] sm:$0xff] }
  0x32   : > { %573 = vst [vmem:[%s809_s16 + $0x88] sm:$0xff] %v541_v54  ;;  %v542_v5 = vmax.f32 %v510_v55, 0.0  ;;  %v543_v6 = vmax.f32 %v511_v56, 0.0  ;;  %v512_v7 = vadd.f32 %v788_v25, %v473_v57  ;;  %v444_v8 = vmul.f32 %v744_v1, %v405_v53  ;;  %v413_v57 = vld [vmem:[%s756_s9 + $0xf8] sm:$0xff] }
  0x33   : > { %v513_v9 = vadd.f32 %v788_v25, %v474_v59  ;;  %v475_v10 = vadd.f32 %v443_v61, %v372_v60  ;;  %v373_v11 = vadd.f32 %v761_v2, %v334_v62  ;;  %v335_v12 = vmul.f32 %v739_v0, %v296_v58 }
  0x34   : > { %574 = vst [vmem:[%s809_s16 + $0x90] sm:$0xff] %v542_v5  ;;  %575 = vst [vmem:[%s809_s16 + $0x98] sm:$0xff] %v543_v6  ;;  %v544_v16 = vmax.f32 %v512_v7, 0.0  ;;  %v445_v17 = vmul.f32 %v744_v1, %v406_v63  ;;  %v336_v18 = vmul.f32 %v739_v0, %v297_v3  ;;  %v446_v19 = vmul.f32 %v744_v1, %v407_v4 }
  0x35   : > { %v545_v21 = vmax.f32 %v513_v9, 0.0  ;;  %v514_v22 = vadd.f32 %v788_v25, %v475_v10  ;;  %v476_v23 = vadd.f32 %v444_v8, %v373_v11  ;;  %v374_v24 = vadd.f32 %v761_v2, %v335_v12 }
  0x36   : > { %576 = vst [vmem:[%s809_s16 + $0xa0] sm:$0xff] %v544_v16  ;;  %v375_v27 = vadd.f32 %v761_v2, %v336_v18  ;;  %v337_v28 = vmul.f32 %v739_v0, %v298_v13  ;;  %v447_v29 = vmul.f32 %v744_v1, %v408_v14  ;;  %v338_v30 = vmul.f32 %v739_v0, %v299_v15 }
  0x37   : > { %577 = vst [vmem:[%s809_s16 + $0xa8] sm:$0xff] %v545_v21  ;;  %v546_v33 = vmax.f32 %v514_v22, 0.0  ;;  %v515_v34 = vadd.f32 %v788_v25, %v476_v23  ;;  %v477_v35 = vadd.f32 %v445_v17, %v374_v24  ;;  %v448_v36 = vmul.f32 %v744_v1, %v409_v20 }
  0x38   : > { %v478_v37 = vadd.f32 %v446_v19, %v375_v27  ;;  %v376_v38 = vadd.f32 %v761_v2, %v337_v28  ;;  %v377_v39 = vadd.f32 %v761_v2, %v338_v30  ;;  %v339_v40 = vmul.f32 %v739_v0, %v300_v26 }
  0x39   : > { %578 = vst [vmem:[%s809_s16 + $0xb0] sm:$0xff] %v546_v33  ;;  %v547_v43 = vmax.f32 %v515_v34, 0.0  ;;  %v516_v44 = vadd.f32 %v788_v25, %v477_v35  ;;  %v449_v45 = vmul.f32 %v744_v1, %v410_v31  ;;  %v340_v46 = vmul.f32 %v739_v0, %v301_v32 }
  0x3a   : > { %v517_v47 = vadd.f32 %v788_v25, %v478_v37  ;;  %v479_v48 = vadd.f32 %v447_v29, %v376_v38  ;;  %v480_v49 = vadd.f32 %v448_v36, %v377_v39  ;;  %v378_v50 = vadd.f32 %v761_v2, %v339_v40 }
  0x3b   : > { %579 = vst [vmem:[%s809_s16 + $0xb8] sm:$0xff] %v547_v43  ;;  %v548_v53 = vmax.f32 %v516_v44, 0.0  ;;  %v379_v54 = vadd.f32 %v761_v2, %v340_v46  ;;  %v450_v55 = vmul.f32 %v744_v1, %v411_v41  ;;  %v341_v56 = vmul.f32 %v739_v0, %v302_v42 }
  0x3c   : > { %v549_v58 = vmax.f32 %v517_v47, 0.0  ;;  %v518_v59 = vadd.f32 %v788_v25, %v479_v48  ;;  %v519_v60 = vadd.f32 %v788_v25, %v480_v49  ;;  %v481_v61 = vadd.f32 %v449_v45, %v378_v50 }
  0x3d   : > { %580 = vst [vmem:[%s809_s16 + $0xc0] sm:$0xff] %v548_v53  ;;  %v482_v62 = vadd.f32 %v450_v55, %v379_v54  ;;  %v380_v63 = vadd.f32 %v761_v2, %v341_v56  ;;  %v451_v3 = vmul.f32 %v744_v1, %v412_v51  ;;  %v342_v4 = vmul.f32 %v739_v0, %v303_v52 }
  0x3e   : > { %581 = vst [vmem:[%s809_s16 + $0xc8] sm:$0xff] %v549_v58  ;;  %v550_v5 = vmax.f32 %v518_v59, 0.0  ;;  %v551_v6 = vmax.f32 %v519_v60, 0.0  ;;  %v520_v7 = vadd.f32 %v788_v25, %v481_v61  ;;  %v452_v8 = vmul.f32 %v744_v1, %v413_v57 }
  0x3f   : > { %v521_v9 = vadd.f32 %v788_v25, %v482_v62  ;;  %v483_v10 = vadd.f32 %v451_v3, %v380_v63  ;;  %v381_v11 = vadd.f32 %v761_v2, %v342_v4 }
  0x40   : > { %582 = vst [vmem:[%s809_s16 + $0xd0] sm:$0xff] %v550_v5  ;;  %583 = vst [vmem:[%s809_s16 + $0xd8] sm:$0xff] %v551_v6  ;;  %v552_v12 = vmax.f32 %v520_v7, 0.0 }
  0x41   : > { %v553_v13 = vmax.f32 %v521_v9, 0.0  ;;  %v522_v0 = vadd.f32 %v788_v25, %v483_v10  ;;  %v484_v14 = vadd.f32 %v452_v8, %v381_v11 }
  0x42   : > { %584 = vst [vmem:[%s809_s16 + $0xe0] sm:$0xff] %v552_v12 }
  0x43   : > { %585 = vst [vmem:[%s809_s16 + $0xe8] sm:$0xff] %v553_v13  ;;  %v554_v15 = vmax.f32 %v522_v0, 0.0  ;;  %v523_v16 = vadd.f32 %v788_v25, %v484_v14 }
  0x45   : > { %586 = vst [vmem:[%s809_s16 + $0xf0] sm:$0xff] %v554_v15  ;;  %v555_v1 = vmax.f32 %v523_v16, 0.0 }
  0x47   : > { %587 = vst [vmem:[%s809_s16 + $0xf8] sm:$0xff] %v555_v1 }
  0x48 PF: > { %s16_s21 = sadd.s32 1, %s689_s21  }
  0x49   : > { %p13_p4 = scmp.ge.s32.totalorder %s16_s21, 4  }
  0x4b   :  { %15 = sbr.rel (!%p13_p4) target bundleno = 1 (0x1), region = 77 }

// kernel: residual_block.3
= control target key start
LH: loop header
LB: loop body
LE: loop exit
PB: predicated region body
PF: predicated region fallthrough
CT: control target
= control target key end

     0   :  { %s4408_s21 = smov 0   ;;  %s5705_s0 = inlined_call_operand.vmem [shape: bf16[2,18,18,128], index: 0, kind: input, shape index: {}]   ;;  %s5706_s1 = inlined_call_operand.vmem [shape: bf16[1152,128], index: 1, kind: input, shape index: {}]   ;;  %s5707_s2 = inlined_call_operand.vmem [shape: bf16[128,128], index: 2, kind: input, shape index: {}]   ;;  %s5708_s3 = inlined_call_operand.vmem [shape: f32[2,16,16,128], index: 3, kind: output, shape index: {0}]   ;;  %s5709_s4 = inlined_call_operand.vmem [shape: f32[2,2,128], index: 4, kind: output, shape index: {1}]   ;;  %s5710_s5 = inlined_call_operand.vmem [shape: f32[2,16,16,128], index: 5, kind: output, shape index: {2}]   ;;  %s5711_s6 = inlined_call_operand.vmem [shape: f32[2,2,128], index: 6, kind: output, shape index: {3}]  }
   0x1 LB: > { %s3498_s22 = sadd.s32 4294967295, %s4371_s21   ;;  %p3502_p0 = scmp.ge.s32.totalorder %s4371_s21, 1  ;;  %s4371_s21 = sphi %s4408_s21, %s17_s21  }
   0x2   : > { %p219_p1 = scmp.lt.s32.totalorder %s4371_s21, 3 }
   0x4   : > { %p220_p2 = pnand %p3502_p0, %p219_p1 }
   0x6   : > { %223 = sbr.rel (%p220_p2) target bundleno = 599 (0x257), region = 32 }
   0xd   : > { %v4267_v0 = vld [vmem:[%s5706_s1 + $0x40] sm:$0xff]   ;;  %v4271_v4 = vld [vmem:[%s5706_s1 + $0x48] sm:$0xff]   ;;  %v4275_v8 = vld [vmem:[%s5706_s1 + $0x50] sm:$0xff]   ;;  %p262_p3 = scmp.lt.s32.totalorder %s3498_s22, 1  ;;  %vm935_vm0 = vcmask 1042432   ;;  %vm936_vm1 = vcmask 1046532  }
   0xe   : > { %v4268_v1 = vld [vmem:[%s5706_s1 + $0xc0] sm:$0xff]   ;;  %3666 = vmatprep.subr.bf16.mxu0 %v4267_v0  ;;  %v4272_v5 = vld [vmem:[%s5706_s1 + $0xc8] sm:$0xff]   ;;  %v4276_v9 = vld [vmem:[%s5706_s1 + $0xd0] sm:$0xff]   ;;  %vm452_vm2 = vsmask.f32 3328 }
   0xf   : > { %v4269_v2 = vld [vmem:[%s5706_s1] sm:$0xff]   ;;  %3778 = vmatprep.subr.bf16.mxu1 %v4268_v1  ;;  %v4273_v6 = vld [vmem:[%s5706_s1 + $0x8] sm:$0xff]   ;;  %v4277_v10 = vld [vmem:[%s5706_s1 + $0x10] sm:$0xff]   ;;  %s5760_s22 = smov (!%p262_p3, %s3498_s22), 1  ;;  %vm453_vm3 = vsmask.f32 7440 }
  0x10   : > { %v4270_v3 = vld [vmem:[%s5706_s1 + $0x80] sm:$0xff]   ;;  %3667 = vmatpush3.bf16.msra.mxu0 %v4269_v2  ;;  %v4274_v7 = vld [vmem:[%s5706_s1 + $0x88] sm:$0xff]   ;;  %v4278_v11 = vld [vmem:[%s5706_s1 + $0x90] sm:$0xff]   ;;  %s4258_s7 = smul.u32 216, %s5760_s22  ;;  %s3506_s20 = sshll.u32 %s5760_s22, 1 }
  0x11   : > { %3779 = vmatpush3.bf16.msra.mxu1 %v4270_v3  ;;  %3668 = vmatprep.subr.bf16.mxu0 %v4271_v4  ;;  %v4279_v12 = vld [vmem:[%s5706_s1 + $0x58] sm:$0xff]   ;;  %v4283_v16 = vld [vmem:[%s5706_s1 + $0x60] sm:$0xff]   ;;  %v4287_v20 = vld [vmem:[%s5706_s1 + $0x68] sm:$0xff]   ;;  %s284_s25 = scalar_lea.vmem %s5711_s6, %s3506_s20  ;;  %s275_s28 = scalar_lea.vmem %s5709_s4, %s3506_s20 }
  0x12   : > { %3780 = vmatprep.subr.bf16.mxu1 %v4272_v5  ;;  %v4280_v13 = vld [vmem:[%s5706_s1 + $0xd8] sm:$0xff]   ;;  %v4284_v17 = vld [vmem:[%s5706_s1 + $0xe0] sm:$0xff]   ;;  %v4288_v21 = vld [vmem:[%s5706_s1 + $0xe8] sm:$0xff]   ;;  %s4516_s18 = scalar_lea.vmem %s5705_s0, %s4258_s7 }
  0x13   : > { %v4281_v14 = vld [vmem:[%s5706_s1 + $0x18] sm:$0xff]   ;;  %v4285_v18 = vld [vmem:[%s5706_s1 + $0x20] sm:$0xff]   ;;  %v4289_v22 = vld [vmem:[%s5706_s1 + $0x28] sm:$0xff]  }
  0x14   : > { %3669 = vmatpush3.bf16.msra.mxu0 %v4273_v6  ;;  %v4282_v15 = vld [vmem:[%s5706_s1 + $0x98] sm:$0xff]   ;;  %v4286_v19 = vld [vmem:[%s5706_s1 + $0xa0] sm:$0xff]   ;;  %v4290_v23 = vld [vmem:[%s5706_s1 + $0xa8] sm:$0xff]  }
  0x15   : > { %3781 = vmatpush3.bf16.msra.mxu1 %v4274_v7  ;;  %3670 = vmatprep.subr.bf16.mxu0 %v4275_v8  ;;  %v4291_v24 = vld [vmem:[%s5706_s1 + $0x70] sm:$0xff]   ;;  %v4295_v28 = vld [vmem:[%s5706_s1 + $0x78] sm:$0xff]   ;;  %v4525_v32 = vld [vmem:[%s4516_s18] sm:$0xf] }
  0x16   : > { %3782 = vmatprep.subr.bf16.mxu1 %v4276_v9  ;;  %v4292_v25 = vld [vmem:[%s5706_s1 + $0xf0] sm:$0xff]   ;;  %v4296_v29 = vld [vmem:[%s5706_s1 + $0xf8] sm:$0xff]   ;;  %v4528_v33 = vld [vmem:[%s4516_s18 + $0x4] sm:$0xf]  ;;  %v456_v35 = vshrl.u32 %v4525_v32, 16  ;;  %v459_v36 = vshll.u32 %v4525_v32, 16 }
  0x17   : > { %v4293_v26 = vld [vmem:[%s5706_s1 + $0x30] sm:$0xff]   ;;  %v4297_v30 = vld [vmem:[%s5706_s1 + $0x38] sm:$0xff]   ;;  %v288_v34 = vld [vmem:[%s4516_s18 + $0x8] sm:$0x1]  ;;  %v465_v37 = vshll.u32 %v4528_v33, 16  ;;  %v469_v38 = vshrl.u32 %v4528_v33, 16 }
  0x18   : > { %3671 = vmatpush3.bf16.msra.mxu0 %v4277_v10  ;;  %v4294_v27 = vld [vmem:[%s5706_s1 + $0xb0] sm:$0xff]   ;;  %v4298_v31 = vld [vmem:[%s5706_s1 + $0xb8] sm:$0xff]   ;;  %v475_v39 = vshll.u32 %v288_v34, 16  ;;  %v943_v40 = vrot.slane %v288_v34, 5  ;;  %v4536_v41 = vld [vmem:[%s4516_s18 + $0xc] sm:$0xf]  ;;  %v3510_v10 = vcombine.low %v4525_v32, %v4528_v33 }
  0x19   : > { %3783 = vmatpush3.bf16.msra.mxu1 %v4278_v11  ;;  %3672 = vmatprep.subr.bf16.mxu0 %v4279_v12  ;;  %v458_v42 = vrot.slane %v456_v35, 4  ;;  %v461_v43 = vrot.slane %v459_v36, 5  ;;  %v4539_v44 = vld [vmem:[%s4516_s18 + $0x10] sm:$0xf]  ;;  %v480_v45 = vshrl.u32 %v4536_v41, 16  ;;  %v483_v46 = vshll.u32 %v4536_v41, 16  ;;  %vm4553_vm4 = vmor %vm935_vm0, %vm936_vm1 }
  0x1a   : > { %3784 = vmatprep.subr.bf16.mxu1 %v4280_v13  ;;  %v467_v47 = vrot.slane %v465_v37, 5  ;;  %v471_v48 = vrot.slane %v469_v38, 4  ;;  %v477_v49 = vrot.slane %v475_v39, 5  ;;  %v4545_v50 = vcombine.low %v4536_v41, %v4539_v44  ;;  %v4301_v51 = vld [vmem:[%s5706_s1 + $0x140] sm:$0xff]   ;;  %vm4559_vm5 = vmor %vm452_vm2, %vm453_vm3  ;;  %v291_v7 = vld [vmem:[%s4516_s18 + $0x14] sm:$0x1] }
  0x1b   : > { %v462_v52 = vor.u32 %v461_v43, %v458_v42  ;;  %v482_v53 = vrot.slane %v480_v45, 4  ;;  %v485_v54 = vrot.slane %v483_v46, 5  ;;  %v489_v55 = vshll.u32 %v4539_v44, 16  ;;  %v4303_v2 = vld [vmem:[%s5706_s1 + $0x1c0] sm:$0xff]   ;;  %v4583_v13 = vld [vmem:[%s4516_s18 + $0x18] sm:$0xf] }
  0x1c   : > { %3673 = vmatpush3.bf16.msra.mxu0 %v4281_v14  ;;  %v472_v58 = vor.u32 %v471_v48, %v467_v47  ;;  %v493_v59 = vshrl.u32 %v4539_v44, 16  ;;  %2231 = vmatprep.mubr.bf16.mxu1 %v4545_v50  ;;  %v3542_v60 = vrot.slane %v4525_v32, 9  ;;  %v940_v62 = vrot.slane %v4528_v33, 5  ;;  %v4302_v6 = vld [vmem:[%s5706_s1 + $0x100] sm:$0xff]   ;;  %v4586_v14 = vld [vmem:[%s4516_s18 + $0x1c] sm:$0xf] }
  0x1d   : > { %3785 = vmatpush3.bf16.msra.mxu1 %v4282_v15  ;;  %3674 = vmatprep.subr.bf16.mxu0 %v4283_v16  ;;  %v463_v61 = vrot.slane %v462_v52, 4  ;;  %v486_v63 = vor.u32 %v485_v54, %v482_v53  ;;  %v491_v11 = vrot.slane %v489_v55, 5  ;;  %v499_v12 = vshll.u32 %v291_v7, 16  ;;  %v4308_v32 = vld [vmem:[%s5706_s1 + $0x108] sm:$0xff]  }
  0x1e   : > { %3786 = vmatprep.subr.bf16.mxu1 %v4284_v17  ;;  %v473_v0 = vrot.slane %v472_v58, 4  ;;  %v495_v1 = vrot.slane %v493_v59, 4  ;;  %v941_v4 = vsel %vm4553_vm4, %v3542_v60, %v940_v62  ;;  %v942_v5 = vrot.slane %v940_v62, 4  ;;  %v4304_v17 = vld [vmem:[%s5706_s1 + $0x180] sm:$0xff]   ;;  %v4309_v45 = vld [vmem:[%s5706_s1 + $0x1c8] sm:$0xff]   ;;  %v4313_v59 = vld [vmem:[%s5706_s1 + $0x150] sm:$0xff]  }
  0x1f   : > { %v468_v3 = vsel %vm4559_vm5, %v463_v61, %v467_v47  ;;  %v487_v8 = vrot.slane %v486_v63, 4  ;;  %v3543_v34 = vrot.slane %v4536_v41, 9  ;;  %v947_v35 = vrot.slane %v4539_v44, 5  ;;  %v4644_v58 = vld [vmem:[%s4516_s18 + $0x2c] sm:$0x1] }
  0x20   : > { %3675 = vmatpush3.bf16.msra.mxu0 %v4285_v18  ;;  %v478_v9 = vsel %vm4559_vm5, %v473_v0, %v477_v49  ;;  %v944_v16 = vsel %vm4553_vm4, %v942_v5, %v943_v40  ;;  %v4595_v18 = vcombine.low %v4583_v13, %v4586_v14  ;;  %v950_v36 = vrot.slane %v291_v7, 5  ;;  %v4654_v0 = vld [vmem:[%s4516_s18 + $0x30] sm:$0xf] }
  0x21   : > { %3787 = vmatpush3.bf16.msra.mxu1 %v4286_v19  ;;  %3676 = vmatprep.subr.bf16.mxu0 %v4287_v20  ;;  %v3526_v15 = vcombine.low %v468_v3, %v478_v9  ;;  %v504_v19 = vshrl.u32 %v4583_v13, 16  ;;  %v4599_v20 = vld [vmem:[%s4516_s18 + $0x20] sm:$0x1]  ;;  %v948_v43 = vsel %vm4553_vm4, %v3543_v34, %v947_v35  ;;  %v949_v41 = vrot.slane %v947_v35, 4 }
  0x22   : > { %3788 = vmatprep.subr.bf16.mxu1 %v4288_v21  ;;  %v4602_v21 = vld [vmem:[%s4516_s18 + $0x24] sm:$0xf]  ;;  %v523_v40 = vshll.u32 %v4599_v20, 16  ;;  %v3544_v5 = vrot.slane %v4583_v13, 9 }
  0x23   : > { %2070 = vmatprep.mubr.bf16.mxu0 %v3526_v15  ;;  %v951_v52 = vsel %vm4553_vm4, %v949_v41, %v950_v36  ;;  %v528_v53 = vshrl.u32 %v4602_v21, 16  ;;  %v531_v54 = vshll.u32 %v4602_v21, 16  ;;  %v547_v15 = vshll.u32 %v4644_v58, 16 }
  0x24   : > { %3677 = vmatpush3.bf16.msra.mxu0 %v4289_v22  ;;  %v3558_v22 = vcombine.low %v941_v4, %v944_v16  ;;  %v525_v49 = vrot.slane %v523_v40, 5  ;;  %v4650_v60 = vcombine.low %v948_v43, %v951_v52  ;;  %v3545_v40 = vrot.slane %v4602_v21, 9 }
  0x25   : > { %3789 = vmatpush3.bf16.msra.mxu1 %v4290_v23  ;;  %3678 = vmatprep.subr.bf16.mxu0 %v4291_v24  ;;  %v492_v23 = vsel %vm4559_vm5, %v487_v8, %v491_v11  ;;  %v496_v24 = vor.u32 %v495_v1, %v491_v11  ;;  %v4314_v1 = vld [vmem:[%s5706_s1 + $0x110] sm:$0xff]   ;;  %v533_v3 = vrot.slane %v531_v54, 5 }
  0x26   : > { %3790 = vmatprep.subr.bf16.mxu1 %v4292_v25  ;;  %v501_v25 = vrot.slane %v499_v12, 5  ;;  %v957_v12 = vrot.slane %v4599_v20, 5 }
  0x27   : > { %v497_v33 = vrot.slane %v496_v24, 4  ;;  %v555_v24 = vshll.u32 %v4654_v0, 16 }
  0x28   : > { %3679 = vmatpush3.bf16.msra.mxu0 %v4293_v26  ;;  %v4607_v26 = vld [vmem:[%s4516_s18 + $0x28] sm:$0xf] }
  0x29   : > { %3791 = vmatpush3.bf16.msra.mxu1 %v4294_v27  ;;  %3680 = vmatprep.subr.bf16.mxu0 %v4295_v28  ;;  %v4307_v27 = vld [vmem:[%s5706_s1 + $0x148] sm:$0xff]   ;;  %v506_v28 = vrot.slane %v504_v19, 4  ;;  %v502_v42 = vsel %vm4559_vm5, %v497_v33, %v501_v25  ;;  %v4628_v44 = vcombine.low %v4602_v21, %v4607_v26  ;;  %v537_v55 = vshll.u32 %v4607_v26, 16  ;;  %v4315_v19 = vld [vmem:[%s5706_s1 + $0x1d0] sm:$0xff]   ;;  %v4688_v25 = vld [vmem:[%s4516_s18 + $0x38] sm:$0x1] }
  0x2a   : > { %3792 = vmatprep.subr.bf16.mxu1 %v4296_v29  ;;  %v507_v29 = vshll.u32 %v4583_v13, 16  ;;  %v4633_v46 = vcombine.low %v492_v23, %v502_v42  ;;  %v541_v63 = vshrl.u32 %v4607_v26, 16  ;;  %v552_v23 = vshrl.u32 %v4654_v0, 16  ;;  %v4319_v42 = vld [vmem:[%s5706_s1 + $0x158] sm:$0xff]  }
  0x2b   : > { %v539_v4 = vrot.slane %v537_v55, 5  ;;  %v557_v36 = vrot.slane %v555_v24, 5  ;;  %v961_v41 = vrot.slane %v4607_v26, 5  ;;  %v4725_v55 = vld [vmem:[%s4516_s18 + $0x44] sm:$0x1] }
  0x2c   : > { %3681 = vmatpush3.bf16.msra.mxu0 %v4297_v30  ;;  %v513_v30 = vshll.u32 %v4586_v14, 16  ;;  %v509_v37 = vrot.slane %v507_v29, 5  ;;  %v543_v9 = vrot.slane %v541_v63, 4  ;;  %v554_v35 = vrot.slane %v552_v23, 4 }
  0x2d   : > { %3793 = vmatpush3.bf16.msra.mxu1 %v4298_v31  ;;  %3890 = vmatprep.subr.bf16.mxu0 %v4301_v51  ;;  %v517_v31 = vshrl.u32 %v4586_v14, 16  ;;  %v4310_v51 = vld [vmem:[%s5706_s1 + $0x188] sm:$0xff]   ;;  %v962_v52 = vsel %vm4553_vm4, %v3545_v40, %v961_v41  ;;  %v963_v26 = vrot.slane %v961_v41, 4  ;;  %v4326_v40 = vld [vmem:[%s5706_s1 + $0x120] sm:$0xff]  }
  0x2e   : > { %4002 = vmatprep.subr.bf16.mxu1 %v4303_v2  ;;  %v515_v38 = vrot.slane %v513_v30, 5  ;;  %v510_v47 = vor.u32 %v509_v37, %v506_v28  ;;  %v530_v2 = vrot.slane %v528_v53, 4 }
  0x2f   : > { %2071 = vmatmul.mubr.bf16.vlgmr.msra.gmra.mrb[0].mxu0 %v3510_v10  ;;  %v519_v39 = vrot.slane %v517_v31, 4  ;;  %v954_v10 = vrot.slane %v4586_v14, 5  ;;  %v544_v14 = vor.u32 %v543_v9, %v539_v4 }
  0x30   : > { %2232 = vmatmul.mubr.bf16.vlgmr.msra.gmra.mrb[0].mxu1 %v3558_v22  ;;  %3891 = vmatpush3.bf16.msra.mxu0 %v4302_v6  ;;  %v511_v61 = vrot.slane %v510_v47, 4  ;;  %v4661_v6 = vld [vmem:[%s4516_s18 + $0x34] sm:$0xf]  ;;  %v534_v13 = vor.u32 %v533_v3, %v530_v2  ;;  %v549_v22 = vrot.slane %v547_v15, 5  ;;  %v558_v47 = vor.u32 %v557_v36, %v554_v35 }
  0x31   : > { %4003 = vmatpush3.bf16.msra.mxu1 %v4304_v17  ;;  %2239 = vmatprep.mubr.bf16.mxu1 %v4595_v18  ;;  %v520_v48 = vor.u32 %v519_v39, %v515_v38  ;;  %v955_v16 = vsel %vm4553_vm4, %v3544_v5, %v954_v10  ;;  %v956_v17 = vrot.slane %v954_v10, 4  ;;  %v545_v29 = vrot.slane %v544_v14, 4  ;;  %v4321_v14 = vld [vmem:[%s5706_s1 + $0x1d8] sm:$0xff]  }
  0x32   : > { %3892 = vmatprep.subr.bf16.mxu0 %v4307_v27  ;;  %4004 = vmatprep.subr.bf16.mxu1 %v4309_v45  ;;  %v516_v7 = vsel %vm4559_vm5, %v511_v61, %v515_v38  ;;  %v535_v20 = vrot.slane %v534_v13, 4  ;;  %v4691_v27 = vld [vmem:[%s4516_s18 + $0x3c] sm:$0xf]  ;;  %v561_v30 = vshll.u32 %v4661_v6, 16  ;;  %v565_v31 = vshrl.u32 %v4661_v6, 16 }
  0x33   : > { %2078 = vmatprep.mubr.bf16.mxu0 %v4633_v46  ;;  %v521_v62 = vrot.slane %v520_v48, 4  ;;  %v958_v28 = vsel %vm4553_vm4, %v956_v17, %v957_v12  ;;  %v550_v37 = vsel %vm4559_vm5, %v545_v29, %v549_v22  ;;  %v964_v45 = vrot.slane %v4644_v58, 5  ;;  %v4715_v48 = vld [vmem:[%s4516_s18 + $0x40] sm:$0xf]  ;;  %v4320_v58 = vld [vmem:[%s5706_s1 + $0x118] sm:$0xff]  }
  0x34   : > { %3893 = vmatpush3.bf16.msra.mxu0 %v4308_v32  ;;  %v4316_v32 = vld [vmem:[%s5706_s1 + $0x190] sm:$0xff]   ;;  %v4700_v33 = vcombine.low %v955_v16, %v958_v28  ;;  %v540_v34 = vsel %vm4559_vm5, %v535_v20, %v539_v4  ;;  %v563_v38 = vrot.slane %v561_v30, 5  ;;  %v567_v39 = vrot.slane %v565_v31, 4  ;;  %v4325_v29 = vld [vmem:[%s5706_s1 + $0x160] sm:$0xff]  }
  0x35   : > { %4005 = vmatpush3.bf16.msra.mxu1 %v4310_v51  ;;  %3894 = vmatprep.subr.bf16.mxu0 %v4313_v59  ;;  %v526_v8 = vsel %vm4559_vm5, %v521_v62, %v525_v49  ;;  %v4710_v43 = vcombine.low %v540_v34, %v550_v37  ;;  %v571_v51 = vshll.u32 %v4688_v25, 16  ;;  %v576_v21 = vshrl.u32 %v4691_v27, 16 }
  0x36   : > { %v4670_v11 = vcombine.low %v516_v7, %v526_v8  ;;  %4006 = vmatprep.subr.bf16.mxu1 %v4315_v19  ;;  %v568_v49 = vor.u32 %v567_v39, %v563_v38  ;;  %v559_v53 = vrot.slane %v558_v47, 4  ;;  %v579_v54 = vshll.u32 %v4691_v27, 16  ;;  %v4742_v7 = vld [vmem:[%s4516_s18 + $0x4c] sm:$0xf]  ;;  %v4778_v39 = vld [vmem:[%s4516_s18 + $0x50] sm:$0x1] }
  0x37   : > { %2079 = vmatmul.mubr.bf16.gmra.mrb[4].mxu0 %v4545_v50  ;;  %v4679_v50 = vcombine.low %v4654_v0, %v4661_v6  ;;  %v573_v61 = vrot.slane %v571_v51, 5  ;;  %v578_v62 = vrot.slane %v576_v21, 4  ;;  %v585_v63 = vshll.u32 %v4715_v48, 16 }
  0x38   : > { %2240 = vmatmul.mubr.bf16.gmra.mrb[4].mxu1 %v4650_v60  ;;  %3895 = vmatpush3.bf16.msra.mxu0 %v4314_v1  ;;  %v569_v59 = vrot.slane %v568_v49, 4  ;;  %v4734_v1 = vld [vmem:[%s4516_s18 + $0x48] sm:$0xf]  ;;  %v965_v2 = vsel %vm4553_vm4, %v963_v26, %v964_v45  ;;  %v564_v3 = vsel %vm4559_vm5, %v559_v53, %v563_v38  ;;  %v581_v4 = vrot.slane %v579_v54, 5  ;;  %v4795_v49 = vld [vmem:[%s4516_s18 + $0x54] sm:$0xf] }
  0x39   : > { %2247 = vmatprep.mubr.bf16.mxu1 %v4628_v44  ;;  %2086 = vmatprep.mubr.bf16.mxu0 %v4670_v11  ;;  %v589_v5 = vshrl.u32 %v4715_v48, 16  ;;  %v4748_v9 = vcombine.low %v4691_v27, %v4715_v48  ;;  %v587_v10 = vrot.slane %v585_v63, 5  ;;  %v3546_v12 = vrot.slane %v4654_v0, 9  ;;  %v4802_v53 = vld [vmem:[%s4516_s18 + $0x58] sm:$0xf]  ;;  %v4327_v54 = vld [vmem:[%s5706_s1 + $0x1e0] sm:$0xff]  }
  0x3a   : > { %4007 = vmatpush3.bf16.msra.mxu1 %v4316_v32  ;;  %3896 = vmatprep.subr.bf16.mxu0 %v4319_v42  ;;  %v574_v8 = vsel %vm4559_vm5, %v569_v59, %v573_v61  ;;  %v4751_v13 = vcombine.low %v962_v52, %v965_v2  ;;  %v968_v16 = vrot.slane %v4661_v6, 5  ;;  %v971_v17 = vrot.slane %v4688_v25, 5  ;;  %v4322_v25 = vld [vmem:[%s5706_s1 + $0x198] sm:$0xff]  }
  0x3b   : > { %v591_v15 = vrot.slane %v589_v5, 4  ;;  %v4758_v19 = vcombine.low %v564_v3, %v574_v8  ;;  %v582_v20 = vor.u32 %v581_v4, %v578_v62  ;;  %v595_v22 = vshll.u32 %v4725_v55, 16  ;;  %4008 = vmatprep.subr.bf16.mxu1 %v4321_v14  ;;  %v4820_v3 = vld [vmem:[%s4516_s18 + $0x5c] sm:$0x1]  ;;  %v4828_v14 = vld [vmem:[%s4516_s18 + $0x60] sm:$0xf] }
  0x3c   : > { %3897 = vmatpush3.bf16.msra.mxu0 %v4320_v58  ;;  %v600_v23 = vshrl.u32 %v4734_v1, 16  ;;  %v969_v0 = vsel %vm4553_vm4, %v3546_v12, %v968_v16  ;;  %v970_v24 = vrot.slane %v968_v16, 4  ;;  %v603_v6 = vshll.u32 %v4734_v1, 16 }
  0x3d   : > { %v592_v28 = vor.u32 %v591_v15, %v587_v10  ;;  %v583_v30 = vrot.slane %v582_v20, 4  ;;  %v597_v31 = vrot.slane %v595_v22, 5  ;;  %v609_v34 = vshll.u32 %v4742_v7, 16  ;;  %3898 = vmatprep.subr.bf16.mxu0 %v4325_v29  ;;  %v4331_v20 = vld [vmem:[%s5706_s1 + $0x168] sm:$0xff]  }
  0x3e   : > { %v602_v32 = vrot.slane %v600_v23, 4  ;;  %v972_v35 = vsel %vm4553_vm4, %v970_v24, %v971_v17  ;;  %v605_v37 = vrot.slane %v603_v6, 5  ;;  %v613_v38 = vshrl.u32 %v4742_v7, 16  ;;  %4009 = vmatpush3.bf16.msra.mxu1 %v4322_v25 }
  0x3f   : > { %2087 = vmatmul.mubr.bf16.gmra.mrb[8].mxu0 %v4595_v18  ;;  %v593_v36 = vrot.slane %v592_v28, 4  ;;  %v588_v42 = vsel %vm4559_vm5, %v583_v30, %v587_v10  ;;  %v4789_v41 = vcombine.low %v4734_v1, %v4742_v7  ;;  %v4791_v45 = vrot.slane %v609_v34, 5  ;;  %4010 = vmatprep.subr.bf16.mxu1 %v4327_v54  ;;  %v4332_v28 = vld [vmem:[%s5706_s1 + $0x128] sm:$0xff]   ;;  %v4847_v30 = vld [vmem:[%s4516_s18 + $0x64] sm:$0xf] }
  0x40   : > { %2248 = vmatmul.mubr.bf16.gmra.mrb[8].mxu1 %v4700_v33  ;;  %2094 = vmatprep.mubr.bf16.mxu0 %v4710_v43  ;;  %v3547_v47 = vrot.slane %v4691_v27, 9  ;;  %v615_v21 = vrot.slane %v613_v38, 4  ;;  %v975_v52 = vrot.slane %v4715_v48, 5  ;;  %v978_v26 = vrot.slane %v4725_v55, 5  ;;  %v4328_v48 = vld [vmem:[%s5706_s1 + $0x1a0] sm:$0xff]  }
  0x41   : > { %2255 = vmatprep.mubr.bf16.mxu1 %v4679_v50  ;;  %v598_v51 = vsel %vm4559_vm5, %v593_v36, %v597_v31  ;;  %v4807_v27 = vcombine.low %v969_v0, %v972_v35  ;;  %v606_v59 = vor.u32 %v605_v37, %v602_v32  ;;  %v619_v61 = vshll.u32 %v4778_v39, 16  ;;  %3899 = vmatpush3.bf16.msra.mxu0 %v4326_v40  ;;  %v4333_v35 = vld [vmem:[%s5706_s1 + $0x1e8] sm:$0xff]  }
  0x42   : > { %v4809_v58 = vcombine.low %v588_v42, %v598_v51  ;;  %v976_v55 = vsel %vm4553_vm4, %v3547_v47, %v975_v52  ;;  %v977_v62 = vrot.slane %v975_v52, 4  ;;  %v616_v63 = vor.u32 %v615_v21, %v4791_v45  ;;  %4011 = vmatpush3.bf16.msra.mxu1 %v4328_v48  ;;  %3900 = vmatprep.subr.bf16.mxu0 %v4331_v20  ;;  %v4863_v42 = vld [vmem:[%s4516_s18 + $0x6c] sm:$0xf] }
  0x43   : > { %v624_v2 = vshrl.u32 %v4795_v49, 16  ;;  %v607_v4 = vrot.slane %v606_v59, 4  ;;  %v621_v5 = vrot.slane %v619_v61, 5  ;;  %v627_v8 = vshll.u32 %v4795_v49, 16  ;;  %4012 = vmatprep.subr.bf16.mxu1 %v4333_v35  ;;  %v4334_v21 = vld [vmem:[%s5706_s1 + $0x1a8] sm:$0xff]  }
  0x44   : > { %v633_v10 = vshll.u32 %v4802_v53, 16  ;;  %v979_v12 = vsel %vm4553_vm4, %v977_v62, %v978_v26  ;;  %v617_v15 = vrot.slane %v616_v63, 4  ;;  %v637_v17 = vshrl.u32 %v4802_v53, 16  ;;  %v4877_v59 = vld [vmem:[%s4516_s18 + $0x68] sm:$0x1]  ;;  %v4337_v63 = vld [vmem:[%s5706_s1 + $0x170] sm:$0xff]  }
  0x45   : > { %v626_v16 = vrot.slane %v624_v2, 4  ;;  %v629_v22 = vrot.slane %v627_v8, 5  ;;  %v982_v24 = vrot.slane %v4742_v7, 5  ;;  %v4843_v6 = vcombine.low %v976_v55, %v979_v12  ;;  %3901 = vmatpush3.bf16.msra.mxu0 %v4332_v28  ;;  %v4880_v61 = vld [vmem:[%s4516_s18 + $0x70] sm:$0xf] }
  0x46   : > { %v4833_v23 = vrot.slane %v633_v10, 5  ;;  %v639_v0 = vrot.slane %v637_v17, 4  ;;  %v643_v29 = vshll.u32 %v4820_v3, 16  ;;  %v612_v7 = vsel %vm4559_vm5, %v607_v4, %v4791_v45  ;;  %4013 = vmatpush3.bf16.msra.mxu1 %v4334_v21  ;;  %3902 = vmatprep.subr.bf16.mxu0 %v4337_v63  ;;  %v4340_v63 = vld [vmem:[%s5706_s1 + $0x1b0] sm:$0xff]  }
  0x47   : > { %2095 = vmatmul.mubr.bf16.gmra.mrb[12].mxu0 %v4628_v44  ;;  %v630_v25 = vor.u32 %v629_v22, %v626_v16  ;;  %v622_v31 = vsel %vm4559_vm5, %v617_v15, %v621_v5  ;;  %v3548_v32 = vrot.slane %v4734_v1, 9  ;;  %v984_v36 = vrot.slane %v982_v24, 4  ;;  %v4338_v15 = vld [vmem:[%s5706_s1 + $0x130] sm:$0xff]  }
  0x48   : > { %2256 = vmatmul.mubr.bf16.gmra.mrb[12].mxu1 %v4751_v13  ;;  %2102 = vmatprep.mubr.bf16.mxu0 %v4758_v19  ;;  %v640_v34 = vor.u32 %v639_v0, %v4833_v23  ;;  %v985_v37 = vrot.slane %v4778_v39, 5  ;;  %v648_v38 = vshrl.u32 %v4828_v14, 16  ;;  %v651_v40 = vshll.u32 %v4828_v14, 16 }
  0x49   : > { %2263 = vmatprep.mubr.bf16.mxu1 %v4748_v9  ;;  %v631_v1 = vrot.slane %v630_v25, 4  ;;  %v645_v45 = vrot.slane %v643_v29, 5  ;;  %v657_v47 = vshll.u32 %v4847_v30, 16  ;;  %v661_v51 = vshrl.u32 %v4847_v30, 16  ;;  %3903 = vmatpush3.bf16.msra.mxu0 %v4338_v15 }
  0x4a   : > { %v4870_v39 = vcombine.low %v612_v7, %v622_v31  ;;  %v4874_v52 = vcombine.low %v4795_v49, %v4802_v53  ;;  %v650_v26 = vrot.slane %v648_v38, 4  ;;  %v653_v54 = vrot.slane %v651_v40, 5 }
  0x4b   : > { %v641_v48 = vrot.slane %v640_v34, 4  ;;  %v4882_v55 = vrot.slane %v657_v47, 5  ;;  %v663_v62 = vrot.slane %v661_v51, 4  ;;  %v989_v2 = vrot.slane %v4802_v53, 5  ;;  %v4936_v47 = vld [vmem:[%s4516_s18 + $0x7c] sm:$0xf] }
  0x4c   : > { %v983_v4 = vsel %vm4553_vm4, %v3548_v32, %v982_v24  ;;  %v672_v5 = vshrl.u32 %v4863_v42, 16  ;;  %v986_v8 = vsel %vm4553_vm4, %v984_v36, %v985_v37  ;;  %v636_v53 = vsel %vm4559_vm5, %v631_v1, %v4833_v23  ;;  %v4917_v32 = vld [vmem:[%s4516_s18 + $0x74] sm:$0x1]  ;;  %v4926_v36 = vld [vmem:[%s4516_s18 + $0x78] sm:$0xf] }
  0x4d   : > { %v654_v10 = vor.u32 %v653_v54, %v650_v26  ;;  %v675_v12 = vshll.u32 %v4863_v42, 16  ;;  %v646_v16 = vsel %vm4559_vm5, %v641_v48, %v645_v45  ;;  %v664_v17 = vor.u32 %v663_v62, %v4882_v55  ;;  %v4339_v37 = vld [vmem:[%s5706_s1 + $0x1f0] sm:$0xff]  }
  0x4e   : > { %v667_v20 = vshll.u32 %v4877_v59, 16  ;;  %v681_v22 = vshll.u32 %v4880_v61, 16  ;;  %v3549_v23 = vrot.slane %v4795_v49, 9  ;;  %v991_v0 = vrot.slane %v989_v2, 4  ;;  %4014 = vmatprep.subr.bf16.mxu1 %v4339_v37 }
  0x4f   : > { %2103 = vmatmul.mubr.bf16.gmra.mrb[16].mxu0 %v4679_v50  ;;  %v992_v24 = vrot.slane %v4820_v3, 5  ;;  %v685_v28 = vshrl.u32 %v4880_v61, 16  ;;  %v4912_v25 = vcombine.low %v983_v4, %v986_v8  ;;  %v674_v29 = vrot.slane %v672_v5, 4  ;;  %4015 = vmatpush3.bf16.msra.mxu1 %v4340_v63  ;;  %v5017_v63 = vld [vmem:[%s5706_s1 + $0x200] sm:$0xff]  }
  0x50   : > { %2264 = vmatmul.mubr.bf16.gmra.mrb[16].mxu1 %v4807_v27  ;;  %2110 = vmatprep.mubr.bf16.mxu0 %v4809_v58  ;;  %v677_v7 = vrot.slane %v675_v12, 5  ;;  %v4914_v31 = vrot.slane %v681_v22, 5  ;;  %v4919_v34 = vcombine.low %v636_v53, %v646_v16  ;;  %v4923_v49 = vcombine.low %v4828_v14, %v4847_v30 }
  0x51   : > { %2271 = vmatprep.mubr.bf16.mxu1 %v4789_v41  ;;  %v655_v35 = vrot.slane %v654_v10, 4  ;;  %v687_v3 = vrot.slane %v685_v28, 4  ;;  %v665_v38 = vrot.slane %v664_v17, 4  ;;  %v669_v40 = vrot.slane %v667_v20, 5  ;;  %v4344_v20 = vld [vmem:[%s5706_s1 + $0x138] sm:$0xff]  }
  0x52   : > { %v990_v1 = vsel %vm4553_vm4, %v3549_v23, %v989_v2  ;;  %v993_v45 = vsel %vm4553_vm4, %v991_v0, %v992_v24  ;;  %v996_v51 = vrot.slane %v4847_v30, 5  ;;  %v678_v21 = vor.u32 %v677_v7, %v674_v29  ;;  %v4976_v28 = vld [vmem:[%s4516_s18 + $0x80] sm:$0x1]  ;;  %v4979_v29 = vld [vmem:[%s4516_s18 + $0x84] sm:$0xf] }
  0x53   : > { %v688_v26 = vor.u32 %v687_v3, %v4914_v31  ;;  %v691_v54 = vshll.u32 %v4917_v32, 16  ;;  %v696_v48 = vshrl.u32 %v4926_v36, 16  ;;  %v699_v62 = vshll.u32 %v4926_v36, 16  ;;  %v4345_v3 = vld [vmem:[%s5706_s1 + $0x1f8] sm:$0xff]  }
  0x54   : > { %v660_v30 = vsel %vm4559_vm5, %v655_v35, %v4882_v55  ;;  %v670_v2 = vsel %vm4559_vm5, %v665_v38, %v669_v40  ;;  %v705_v4 = vshll.u32 %v4936_v47, 16  ;;  %v709_v5 = vshrl.u32 %v4936_v47, 16  ;;  %v4343_v55 = vld [vmem:[%s5706_s1 + $0x178] sm:$0xff]   ;;  %v4984_v35 = vld [vmem:[%s4516_s18 + $0x88] sm:$0xf]  ;;  %4016 = vmatprep.subr.bf16.mxu1 %v4345_v3 }
  0x55   : > { %v4957_v8 = vcombine.low %v990_v1, %v993_v45  ;;  %v3550_v53 = vrot.slane %v4828_v14, 9  ;;  %v999_v10 = vrot.slane %v4877_v59, 5  ;;  %v998_v12 = vrot.slane %v996_v51, 4  ;;  %3904 = vmatprep.subr.bf16.mxu0 %v4343_v55 }
  0x56   : > { %v679_v15 = vrot.slane %v678_v21, 4  ;;  %v689_v16 = vrot.slane %v688_v26, 4  ;;  %v693_v17 = vrot.slane %v691_v54, 5  ;;  %v4967_v22 = vcombine.low %v660_v30, %v670_v2  ;;  %3905 = vmatpush3.bf16.msra.mxu0 %v4344_v20  ;;  %v5038_v20 = vld [vmem:[%s5707_s2] sm:$0xff]  }
  0x57   : > { %2111 = vmatmul.mubr.bf16.gmra.mrb[20].mxu0 %v4748_v9  ;;  %v4971_v14 = vcombine.low %v4863_v42, %v4880_v61  ;;  %v698_v59 = vrot.slane %v696_v48, 4  ;;  %v701_v23 = vrot.slane %v699_v62, 5  ;;  %v4973_v0 = vrot.slane %v705_v4, 5  ;;  %4162 = vmatprep.subr.bf16.mxu0 %v5017_v63 }
  0x58   : > { %2272 = vmatmul.mubr.bf16.gmra.mrb[20].mxu1 %v4843_v6  ;;  %2118 = vmatprep.mubr.bf16.mxu0 %v4870_v39  ;;  %v711_v24 = vrot.slane %v709_v5, 4  ;;  %v997_v7 = vsel %vm4553_vm4, %v3550_v53, %v996_v51  ;;  %v1000_v37 = vsel %vm4553_vm4, %v998_v12, %v999_v10  ;;  %v684_v38 = vsel %vm4559_vm5, %v679_v15, %v4914_v31  ;;  %v4346_v31 = vld [vmem:[%s5706_s1 + $0x1b8] sm:$0xff]   ;;  %v5026_v53 = vld [vmem:[%s4516_s18 + $0x90] sm:$0xf]  ;;  %v5029_v10 = vld [vmem:[%s4516_s18 + $0x94] sm:$0xf] }
  0x59   : > { %2279 = vmatprep.mubr.bf16.mxu1 %v4874_v52  ;;  %5737 = vst [vmem:[#allocation3_spill] sm:$0xff] %v4971_v14  ;;  %v694_v40 = vsel %vm4559_vm5, %v689_v16, %v693_v17  ;;  %v1003_v1 = vrot.slane %v4880_v61, 5  ;;  %v702_v45 = vor.u32 %v701_v23, %v698_v59  ;;  %v715_v51 = vshll.u32 %v4976_v28, 16  ;;  %4017 = vmatpush3.bf16.msra.mxu1 %v4346_v31  ;;  %v5032_v17 = vld [vmem:[%s4516_s18 + $0x8c] sm:$0x1] }
  0x5a   : > { %v720_v21 = vshrl.u32 %v4979_v29, 16  ;;  %v723_v26 = vshll.u32 %v4979_v29, 16  ;;  %v712_v54 = vor.u32 %v711_v24, %v4973_v0  ;;  %v729_v61 = vshll.u32 %v4984_v35, 16  ;;  %4210 = vmatprep.subr.bf16.mxu1 %v5038_v20 }
  0x5b   : > { %v733_v48 = vshrl.u32 %v4984_v35, 16  ;;  %v5012_v62 = vcombine.low %v4926_v36, %v4936_v47  ;;  %v5019_v30 = vcombine.low %v997_v7, %v1000_v37  ;;  %v5021_v2 = vcombine.low %v684_v38, %v694_v40 }
  0x5c   : > { %v3551_v4 = vrot.slane %v4863_v42, 9  ;;  %v1006_v5 = vrot.slane %v4917_v32, 5  ;;  %v1005_v55 = vrot.slane %v1003_v1, 4  ;;  %v703_v12 = vrot.slane %v702_v45, 4 }
  0x5d   : > { %5738 = vst [vmem:[#allocation4_spill] sm:$0xff] %v5019_v30  ;;  %5739 = vst [vmem:[#allocation5_spill] sm:$0xff] %v5021_v2  ;;  %v722_v15 = vrot.slane %v720_v21, 4  ;;  %v725_v16 = vrot.slane %v723_v26, 5  ;;  %v713_v42 = vrot.slane %v712_v54, 4  ;;  %v717_v59 = vrot.slane %v715_v51, 5 }
  0x5e   : > { %v5040_v32 = vrot.slane %v729_v61, 5  ;;  %v735_v23 = vrot.slane %v733_v48, 4  ;;  %v1010_v24 = vrot.slane %v4936_v47, 5  ;;  %v744_v7 = vshrl.u32 %v5026_v53, 16  ;;  %v5060_v21 = vld [vmem:[%s4516_s18 + $0x9c] sm:$0xf] }
  0x5f   : > { %2119 = vmatmul.mubr.bf16.gmra.mrb[24].mxu0 %v4789_v41  ;;  %v747_v3 = vshll.u32 %v5026_v53, 16  ;;  %v1004_v37 = vsel %vm4553_vm4, %v3551_v4, %v1003_v1  ;;  %v753_v38 = vshll.u32 %v5029_v10, 16  ;;  %v757_v40 = vshrl.u32 %v5029_v10, 16  ;;  %v5068_v61 = vld [vmem:[%s4516_s18 + $0xa0] sm:$0xf] }
  0x60   : > { %2280 = vmatmul.mubr.bf16.gmra.mrb[24].mxu1 %v4912_v25  ;;  %2126 = vmatprep.mubr.bf16.mxu0 %v4919_v34  ;;  %v1007_v47 = vsel %vm4553_vm4, %v1005_v55, %v1006_v5  ;;  %v708_v45 = vsel %vm4559_vm5, %v703_v12, %v4973_v0  ;;  %v726_v51 = vor.u32 %v725_v16, %v722_v15  ;;  %v3552_v26 = vrot.slane %v4926_v36, 9 }
  0x61   : > { %2287 = vmatprep.mubr.bf16.mxu1 %v4923_v49  ;;  %v718_v1 = vsel %vm4559_vm5, %v713_v42, %v717_v59  ;;  %v736_v31 = vor.u32 %v735_v23, %v5040_v32  ;;  %v739_v54 = vshll.u32 %v5032_v17, 16  ;;  %v1012_v48 = vrot.slane %v1010_v24, 4  ;;  %v5082_v59 = vld [vmem:[%s4516_s18 + $0x98] sm:$0x1] }
  0x62   : > { %v1013_v4 = vrot.slane %v4976_v28, 5  ;;  %v746_v5 = vrot.slane %v744_v7, 4  ;;  %v749_v0 = vrot.slane %v747_v3, 5  ;;  %v5071_v55 = vcombine.low %v1004_v37, %v1007_v47 }
  0x63   : > { %v5073_v12 = vrot.slane %v753_v38, 5  ;;  %v759_v15 = vrot.slane %v757_v40, 4  ;;  %v5075_v16 = vcombine.low %v708_v45, %v718_v1  ;;  %v5079_v36 = vcombine.low %v4979_v29, %v4984_v35 }
  0x64   : > { %5740 = vst [vmem:[#allocation6_spill] sm:$0xff] %v5071_v55  ;;  %v727_v42 = vrot.slane %v726_v51, 4  ;;  %v737_v23 = vrot.slane %v736_v31, 4  ;;  %v768_v28 = vshrl.u32 %v5060_v21, 16  ;;  %v771_v7 = vshll.u32 %v5060_v21, 16 }
  0x65   : > { %5741 = vst [vmem:[#allocation7_spill] sm:$0xff] %v5075_v16  ;;  %v1011_v3 = vsel %vm4553_vm4, %v3552_v26, %v1010_v24  ;;  %v777_v37 = vshll.u32 %v5068_v61, 16  ;;  %v781_v38 = vshrl.u32 %v5068_v61, 16  ;;  %v1014_v40 = vsel %vm4553_vm4, %v1012_v48, %v1013_v4  ;;  %v5103_v26 = vld [vmem:[%s4516_s18 + $0xa4] sm:$0x1] }
  0x66   : > { %v1017_v47 = vrot.slane %v4984_v35, 5  ;;  %v750_v45 = vor.u32 %v749_v0, %v746_v5  ;;  %v760_v51 = vor.u32 %v759_v15, %v5073_v12  ;;  %v732_v24 = vsel %vm4559_vm5, %v727_v42, %v5040_v32  ;;  %v5106_v31 = vld [vmem:[%s4516_s18 + $0xa8] sm:$0xf] }
  0x67   : > { %2127 = vmatmul.mubr.bf16.gmra.mrb[28].mxu0 %v4874_v52  ;;  %v763_v1 = vshll.u32 %v5082_v59, 16  ;;  %v770_v48 = vrot.slane %v768_v28, 4  ;;  %v773_v4 = vrot.slane %v771_v7, 5  ;;  %v5111_v5 = vcombine.low %v1011_v3, %v1014_v40 }
  0x68   : > { %2288 = vmatmul.mubr.bf16.gmra.mrb[28].mxu1 %v4957_v8  ;;  %2134 = vmatprep.mubr.bf16.mxu0 %v4967_v22  ;;  %v779_v0 = vrot.slane %v777_v37, 5  ;;  %v783_v15 = vrot.slane %v781_v38, 4  ;;  %v1019_v32 = vrot.slane %v1017_v47, 4  ;;  %v1020_v42 = vrot.slane %v5032_v17, 5 }
  0x69   : > { %2295 = vmatprep.mubr.bf16.mxu1 %v4971_v14  ;;  %5742 = vst [vmem:[#allocation8_spill] sm:$0xff] %v5111_v5  ;;  %v774_v28 = vor.u32 %v773_v4, %v770_v48  ;;  %v787_v7 = vshll.u32 %v5103_v26, 16  ;;  %v792_v3 = vshrl.u32 %v5106_v31, 16  ;;  %v795_v38 = vshll.u32 %v5106_v31, 16 }
  0x6a   : > { %v784_v37 = vor.u32 %v783_v15, %v779_v0  ;;  %v1021_v40 = vsel %vm4553_vm4, %v1019_v32, %v1020_v42 }
  0x6b   : > { %v789_v48 = vrot.slane %v787_v7, 5  ;;  %v794_v4 = vrot.slane %v792_v3, 4  ;;  %v797_v32 = vrot.slane %v795_v38, 5 }
  0x6c   : > { %v785_v15 = vrot.slane %v784_v37, 4  ;;  %v1031_v37 = vrot.slane %v5068_v61, 5 }
  0x6d   : > { %v798_v38 = vor.u32 %v797_v32, %v794_v4 }
  0x6e   : > { %v790_v3 = vsel %vm4559_vm5, %v785_v15, %v789_v48 }
  0x6f   : > { %2135 = vmatmul.mubr.bf16.gmra.mrb[32].mxu0 %v4923_v49 }
  0x70   : > { %2296 = vmatmul.mubr.bf16.gmra.mrb[32].mxu1 %v5019_v30  ;;  %2142 = vmatprep.mubr.bf16.mxu0 %v5021_v2  ;;  %v741_v2 = vrot.slane %v739_v54, 5  ;;  %v3553_v54 = vrot.slane %v4979_v29, 9  ;;  %v765_v29 = vrot.slane %v763_v1, 5  ;;  %v1027_v1 = vrot.slane %v5082_v59, 5  ;;  %v5159_v59 = vld [vmem:[%s4516_s18 + $0xb8] sm:$0xf] }
  0x71   : > { %2303 = vmatprep.mubr.bf16.mxu1 %v5012_v62 }
  0x72   : > { %v742_v35 = vsel %vm4559_vm5, %v737_v23, %v741_v2  ;;  %v5121_v2 = vcombine.low %v5026_v53, %v5029_v10  ;;  %v1024_v23 = vrot.slane %v5029_v10, 5  ;;  %v1018_v17 = vsel %vm4553_vm4, %v3553_v54, %v1017_v47 }
  0x73   : > { %v5117_v30 = vcombine.low %v732_v24, %v742_v35  ;;  %v3554_v24 = vrot.slane %v5026_v53, 9  ;;  %v775_v54 = vrot.slane %v774_v28, 4  ;;  %v5144_v42 = vcombine.low %v1018_v17, %v1021_v40  ;;  %v5156_v53 = vld [vmem:[%s4516_s18 + $0xb4] sm:$0xf] }
  0x74   : > { %v1026_v35 = vrot.slane %v1024_v23, 4 }
  0x75   : > { %5743 = vst [vmem:[#allocation9_spill] sm:$0xff] %v5117_v30  ;;  %5744 = vst [vmem:[#allocation10_spill] sm:$0xff] %v5144_v42  ;;  %v780_v7 = vsel %vm4559_vm5, %v775_v54, %v779_v0  ;;  %v819_v0 = vshll.u32 %v5156_v53, 16 }
  0x76   : > { %v1028_v28 = vsel %vm4553_vm4, %v1026_v35, %v1027_v1  ;;  %v1033_v1 = vrot.slane %v1031_v37, 4  ;;  %v799_v35 = vrot.slane %v798_v38, 4 }
  0x77   : > { %2143 = vmatmul.mubr.bf16.gmra.mrb[36].mxu0 %v4971_v14  ;;  %v761_v14 = vrot.slane %v760_v51, 4  ;;  %v821_v15 = vrot.slane %v819_v0, 5 }
  0x78   : > { %2304 = vmatmul.mubr.bf16.gmra.mrb[36].mxu1 %v5071_v55  ;;  %2150 = vmatprep.mubr.bf16.mxu0 %v5075_v16  ;;  %v5114_v16 = vld [vmem:[%s4516_s18 + $0xac] sm:$0xf]  ;;  %v751_v55 = vrot.slane %v750_v45, 4 }
  0x79   : > { %2311 = vmatprep.mubr.bf16.mxu1 %v5079_v36  ;;  %v801_v10 = vshll.u32 %v5114_v16, 16  ;;  %v805_v45 = vshrl.u32 %v5114_v16, 16  ;;  %v766_v47 = vsel %vm4559_vm5, %v761_v14, %v765_v29  ;;  %v5150_v14 = vcombine.low %v5060_v21, %v5068_v61 }
  0x7a   : > { %v756_v51 = vsel %vm4559_vm5, %v751_v55, %v5073_v12  ;;  %v5153_v12 = vld [vmem:[%s4516_s18 + $0xb0] sm:$0x1]  ;;  %v1025_v29 = vsel %vm4553_vm4, %v3554_v24, %v1024_v23  ;;  %v816_v23 = vshrl.u32 %v5156_v53, 16  ;;  %v5181_v61 = vcombine.low %v5106_v31, %v5114_v16 }
  0x7b   : > { %v5146_v55 = vcombine.low %v756_v51, %v766_v47  ;;  %v811_v40 = vshll.u32 %v5153_v12, 16  ;;  %v5185_v51 = vcombine.low %v780_v7, %v790_v3  ;;  %v3555_v47 = vrot.slane %v5060_v21, 9 }
  0x7c   : > { %v1034_v24 = vrot.slane %v5103_v26, 5  ;;  %v818_v4 = vrot.slane %v816_v23, 4  ;;  %v1038_v7 = vrot.slane %v5114_v16, 5  ;;  %v3556_v16 = vrot.slane %v5106_v31, 9 }
  0x7d   : > { %5745 = vst [vmem:[#allocation11_spill] sm:$0xff] %v5146_v55  ;;  %5747 = vst [vmem:[#allocation13_spill] sm:$0xff] %v5185_v51  ;;  %v813_v48 = vrot.slane %v811_v40, 5  ;;  %v335_v40 = vld [vmem:[%s4516_s18 + $0xc4] sm:$0xf] }
  0x7e   : > { %v1035_v21 = vsel %vm4553_vm4, %v1033_v1, %v1034_v24  ;;  %v822_v3 = vor.u32 %v821_v15, %v818_v4  ;;  %v1162_v24 = vshll.u32 %v335_v40, 16  ;;  %v1040_v1 = vrot.slane %v1038_v7, 4 }
  0x7f   : > { %2151 = vmatmul.mubr.bf16.gmra.mrb[40].mxu0 %v5012_v62  ;;  %v1039_v31 = vsel %vm4553_vm4, %v3556_v16, %v1038_v7  ;;  %v3557_v7 = vrot.slane %v5156_v53, 9 }
  0x80   : > { %2312 = vmatmul.mubr.bf16.gmra.mrb[40].mxu1 %v5111_v5  ;;  %2158 = vmatprep.mubr.bf16.mxu0 %v5117_v30  ;;  %v803_v30 = vrot.slane %v801_v10, 5  ;;  %v807_v5 = vrot.slane %v805_v45, 4  ;;  %v825_v10 = vshll.u32 %v5159_v59, 16  ;;  %v829_v45 = vshrl.u32 %v5159_v59, 16 }
  0x81   : > { %2319 = vmatprep.mubr.bf16.mxu1 %v5121_v2 }
  0x82   : > { %v808_v17 = vor.u32 %v807_v5, %v803_v30  ;;  %v5183_v5 = vcombine.low %v1025_v29, %v1028_v28  ;;  %v827_v32 = vrot.slane %v825_v10, 5  ;;  %v1032_v29 = vsel %vm4553_vm4, %v3555_v47, %v1031_v37 }
  0x83   : > { %v804_v26 = vsel %vm4559_vm5, %v799_v35, %v803_v30  ;;  %v1166_v10 = vshrl.u32 %v335_v40, 16  ;;  %v5208_v30 = vcombine.low %v1032_v29, %v1035_v21  ;;  %v823_v35 = vrot.slane %v822_v3, 4  ;;  %v336_v21 = vld [vmem:[%s4516_s18 + $0xc8] sm:$0x1] }
  0x84   : > { %5746 = vst [vmem:[#allocation12_spill] sm:$0xff] %v5183_v5  ;;  %v809_v54 = vrot.slane %v808_v17, 4  ;;  %v334_v17 = vld [vmem:[%s4516_s18 + $0xc0] sm:$0xf] }
  0x85   : > { %v1153_v23 = vshrl.u32 %v334_v17, 16  ;;  %v1156_v0 = vshll.u32 %v334_v17, 16  ;;  %v1168_v29 = vrot.slane %v1166_v10, 4  ;;  %v828_v3 = vsel %vm4559_vm5, %v823_v35, %v827_v32 }
  0x86   : > { %v814_v28 = vsel %vm4559_vm5, %v809_v54, %v813_v48 }
  0x87   : > { %2159 = vmatmul.mubr.bf16.gmra.mrb[44].mxu0 %v5079_v36  ;;  %v5214_v47 = vcombine.low %v804_v26, %v814_v28  ;;  %v1155_v4 = vrot.slane %v1153_v23, 4  ;;  %v1158_v15 = vrot.slane %v1156_v0, 5 }
  0x88   : > { %2320 = vmatmul.mubr.bf16.gmra.mrb[44].mxu1 %v5144_v42  ;;  %2166 = vmatprep.mubr.bf16.mxu0 %v5146_v55  ;;  %v831_v55 = vrot.slane %v829_v45, 4  ;;  %v5190_v42 = vld [vmem:[%s4516_s18 + $0xbc] sm:$0x1]  ;;  %v5212_v45 = vcombine.low %v5156_v53, %v5159_v59 }
  0x89   : > { %2327 = vmatprep.mubr.bf16.mxu1 %v5150_v14  ;;  %v835_v38 = vshll.u32 %v5190_v42, 16  ;;  %v1159_v26 = vor.u32 %v1158_v15, %v1155_v4 }
  0x8a   : > { %v832_v37 = vor.u32 %v831_v55, %v827_v32  ;;  %v1041_v55 = vrot.slane %v5153_v12, 5 }
  0x8b   : > { %v837_v48 = vrot.slane %v835_v38, 5  ;;  %v1160_v23 = vrot.slane %v1159_v26, 4 }
  0x8c   : > { %v833_v54 = vrot.slane %v832_v37, 4  ;;  %v1042_v12 = vsel %vm4553_vm4, %v1040_v1, %v1041_v55  ;;  %v1045_v37 = vrot.slane %v5159_v59, 5  ;;  %v1048_v1 = vrot.slane %v5190_v42, 5 }
  0x8d   : > { %v5234_v4 = vcombine.low %v1039_v31, %v1042_v12  ;;  %v1202_v42 = vrot.slane %v336_v21, 5  ;;  %v4357_v31 = vld [vmem:[%s5707_s2 + $0x20] sm:$0xff]   ;;  %v4359_v12 = vld [vmem:[%s5707_s2 + $0x28] sm:$0xff]  }
  0x8e   : > { %v838_v38 = vsel %vm4559_vm5, %v833_v54, %v837_v48  ;;  %v1047_v59 = vrot.slane %v1045_v37, 4  ;;  %v1046_v53 = vsel %vm4553_vm4, %v3557_v7, %v1045_v37  ;;  %v3576_v54 = vrot.slane %v334_v17, 9  ;;  %v4361_v37 = vld [vmem:[%s5707_s2 + $0x30] sm:$0xff]  }
  0x8f   : > { %2167 = vmatmul.mubr.bf16.gmra.mrb[48].mxu0 %v5121_v2  ;;  %v5241_v55 = vcombine.low %v828_v3, %v838_v38  ;;  %v4360_v3 = vld [vmem:[%s5706_s1 + $0x230] sm:$0xff]   ;;  %v4363_v38 = vld [vmem:[%s5707_s2 + $0x38] sm:$0xff]  }
  0x90   : > { %2328 = vmatmul.mubr.bf16.gmra.mrb[48].mxu1 %v5183_v5  ;;  %2174 = vmatprep.mubr.bf16.mxu0 %v5185_v51  ;;  %v1164_v51 = vrot.slane %v1162_v24, 5  ;;  %v1172_v5 = vshll.u32 %v336_v21, 16  ;;  %v5232_v24 = vcombine.low %v334_v17, %v335_v40  ;;  %v4350_v17 = vld [vmem:[%s5706_s1 + $0x208] sm:$0xff]   ;;  %v5754_v7 = vld [vmem:[#allocation9_spill] sm:$0xff] }
  0x91   : > { %2335 = vmatprep.mubr.bf16.mxu1 %v5181_v61  ;;  %v4351_v21 = vld [vmem:[%s5707_s2 + $0x8] sm:$0xff]  }
  0x92   : > { %v1169_v28 = vor.u32 %v1168_v29, %v1164_v51  ;;  %v1174_v10 = vrot.slane %v1172_v5, 5  ;;  %v1165_v16 = vsel %vm4559_vm5, %v1160_v23, %v1164_v51  ;;  %v1199_v5 = vrot.slane %v335_v40, 5  ;;  %v5749_v23 = vld [vmem:[#allocation5_spill] sm:$0xff] }
  0x93   : > { %v1049_v51 = vsel %vm4553_vm4, %v1047_v59, %v1048_v1 }
  0x94   : > { %v1170_v0 = vrot.slane %v1169_v28, 4  ;;  %v1201_v48 = vrot.slane %v1199_v5, 4  ;;  %v5254_v15 = vcombine.low %v1046_v53, %v1049_v51  ;;  %v1200_v29 = vsel %vm4553_vm4, %v3576_v54, %v1199_v5  ;;  %v4353_v28 = vld [vmem:[%s5707_s2 + $0x10] sm:$0xff]  }
  0x96   : > { %v1175_v32 = vsel %vm4559_vm5, %v1170_v0, %v1174_v10  ;;  %v1203_v40 = vsel %vm4553_vm4, %v1201_v48, %v1202_v42  ;;  %v5751_v0 = vld [vmem:[#allocation6_spill] sm:$0xff]  ;;  %v5752_v10 = vld [vmem:[#allocation7_spill] sm:$0xff] }
  0x97   : > { %2175 = vmatmul.mubr.bf16.gmra.mrb[52].mxu0 %v5150_v14  ;;  %v5244_v35 = vcombine.low %v1165_v16, %v1175_v32  ;;  %v5260_v26 = vcombine.low %v1200_v29, %v1203_v40  ;;  %v5756_v16 = vld [vmem:[#allocation11_spill] sm:$0xff]  ;;  %v5757_v32 = vld [vmem:[#allocation12_spill] sm:$0xff] }
  0x98   : > { %2336 = vmatmul.mubr.bf16.gmra.mrb[52].mxu1 %v5208_v30  ;;  %2182 = vmatprep.mubr.bf16.mxu0 %v5214_v47 }
  0x99   : > { %2343 = vmatprep.mubr.bf16.mxu1 %v5212_v45 }
  0x9f   : > { %2183 = vmatmul.mubr.bf16.gmra.mrb[56].mxu0 %v5181_v61 }
  0xa0   : > { %2344 = vmatmul.mubr.bf16.gmra.mrb[56].mxu1 %v5234_v4  ;;  %2190 = vmatprep.mubr.bf16.mxu0 %v5241_v55 }
  0xa1   : > { %2351 = vmatprep.mubr.bf16.mxu1 %v5232_v24 }
  0xa7   : > { %2191 = vmatmul.mubr.bf16.gmra.mrb[60].mxu0 %v5212_v45 }
  0xa8   : > { %2352 = vmatmul.mubr.bf16.gmra.mrb[60].mxu1 %v5254_v15  ;;  %2392 = vmatprep.mubr.bf16.mxu0 %v4650_v60  ;;  %v4352_v60 = vld [vmem:[%s5706_s1 + $0x210] sm:$0xff]  }
  0xa9   : > { %2553 = vmatprep.mubr.bf16.mxu1 %v4670_v11 }
  0xaf   : > { %2393 = vmatmul.mubr.bf16.vlgmr.msra.gmra.mrb[64].mxu0 %v4633_v46 }
  0xb0   : > { %2554 = vmatmul.mubr.bf16.vlgmr.msra.gmra.mrb[64].mxu1 %v4595_v18  ;;  %4163 = vmatpush3.bf16.msra.mxu0 %v5017_v63  ;;  %v4354_v18 = vld [vmem:[%s5706_s1 + $0x218] sm:$0xff]  }
  0xb1   : > { %4211 = vmatpush3.bf16.msra.mxu1 %v5038_v20  ;;  %2400 = vmatprep.mubr.bf16.mxu0 %v4700_v33  ;;  %v4355_v63 = vld [vmem:[%s5707_s2 + $0x18] sm:$0xff]   ;;  %v4356_v20 = vld [vmem:[%s5706_s1 + $0x220] sm:$0xff]  }
  0xb2   : > { %2561 = vmatprep.mubr.bf16.mxu1 %v4710_v43  ;;  %4164 = vmatprep.subr.bf16.mxu0 %v4350_v17 }
  0xb3   : > { %4212 = vmatprep.subr.bf16.mxu1 %v4351_v21 }
  0xb4   : > { %4165 = vmatpush3.bf16.msra.mxu0 %v4350_v17 }
  0xb5   : > { %4213 = vmatpush3.bf16.msra.mxu1 %v4351_v21  ;;  %4166 = vmatprep.subr.bf16.mxu0 %v4352_v60  ;;  %v5357_v21 = vld [vmem:[%s4516_s18 + $0xcc] sm:$0xf] }
  0xb6   : > { %4214 = vmatprep.subr.bf16.mxu1 %v4353_v28 }
  0xb7   : > { %2401 = vmatmul.mubr.bf16.gmra.mrb[68].mxu0 %v4670_v11 }
  0xb8   : > { %2562 = vmatmul.mubr.bf16.gmra.mrb[68].mxu1 %v4628_v44  ;;  %2408 = vmatprep.mubr.bf16.mxu0 %v4751_v13  ;;  %v4358_v44 = vld [vmem:[%s5706_s1 + $0x228] sm:$0xff]  }
  0xb9   : > { %2569 = vmatprep.mubr.bf16.mxu1 %v4758_v19  ;;  %4167 = vmatpush3.bf16.msra.mxu0 %v4352_v60  ;;  %v5360_v60 = vld [vmem:[%s4516_s18 + $0xd0] sm:$0xf] }
  0xba   : > { %4215 = vmatpush3.bf16.msra.mxu1 %v4353_v28  ;;  %4168 = vmatprep.subr.bf16.mxu0 %v4354_v18 }
  0xbb   : > { %4216 = vmatprep.subr.bf16.mxu1 %v4355_v63 }
  0xbd   : > { %4169 = vmatpush3.bf16.msra.mxu0 %v4354_v18  ;;  %v1247_v18 = vshrl.u32 %v5357_v21, 16 }
  0xbe   : > { %4217 = vmatpush3.bf16.msra.mxu1 %v4355_v63  ;;  %4170 = vmatprep.subr.bf16.mxu0 %v4356_v20  ;;  %v1250_v63 = vshll.u32 %v5357_v21, 16 }
  0xbf   : > { %4218 = vmatprep.subr.bf16.mxu1 %v4357_v31  ;;  %2409 = vmatmul.mubr.bf16.gmra.mrb[72].mxu0 %v4710_v43 }
  0xc0   : > { %2570 = vmatmul.mubr.bf16.gmra.mrb[72].mxu1 %v4679_v50  ;;  %2416 = vmatprep.mubr.bf16.mxu0 %v4807_v27  ;;  %v4362_v50 = vld [vmem:[%s5706_s1 + $0x238] sm:$0xff]  }
  0xc1   : > { %2577 = vmatprep.mubr.bf16.mxu1 %v4809_v58  ;;  %4171 = vmatpush3.bf16.msra.mxu0 %v4356_v20  ;;  %v1256_v20 = vshll.u32 %v5360_v60, 16 }
  0xc2   : > { %4219 = vmatpush3.bf16.msra.mxu1 %v4357_v31  ;;  %4172 = vmatprep.subr.bf16.mxu0 %v4358_v44  ;;  %v1260_v31 = vshrl.u32 %v5360_v60, 16 }
  0xc3   : > { %4220 = vmatprep.subr.bf16.mxu1 %v4359_v12 }
  0xc5   : > { %4173 = vmatpush3.bf16.msra.mxu0 %v4358_v44 }
  0xc6   : > { %4221 = vmatpush3.bf16.msra.mxu1 %v4359_v12  ;;  %4174 = vmatprep.subr.bf16.mxu0 %v4360_v3 }
  0xc7   : > { %4222 = vmatprep.subr.bf16.mxu1 %v4361_v37  ;;  %2417 = vmatmul.mubr.bf16.gmra.mrb[76].mxu0 %v4758_v19 }
  0xc8   : > { %2578 = vmatmul.mubr.bf16.gmra.mrb[76].mxu1 %v4748_v9  ;;  %2424 = vmatprep.mubr.bf16.mxu0 %v4843_v6  ;;  %v5748_v9 = vld [vmem:[#allocation4_spill] sm:$0xff] }
  0xc9   : > { %2585 = vmatprep.mubr.bf16.mxu1 %v4870_v39  ;;  %4175 = vmatpush3.bf16.msra.mxu0 %v4360_v3 }
  0xca   : > { %4223 = vmatpush3.bf16.msra.mxu1 %v4361_v37  ;;  %4176 = vmatprep.subr.bf16.mxu0 %v4362_v50 }
  0xcb   : > { %4224 = vmatprep.subr.bf16.mxu1 %v4363_v38 }
  0xcd   : > { %4177 = vmatpush3.bf16.msra.mxu0 %v4362_v50 }
  0xce   : > { %4225 = vmatpush3.bf16.msra.mxu1 %v4363_v38 }
  0xcf   : > { %2425 = vmatmul.mubr.bf16.gmra.mrb[80].mxu0 %v4809_v58 }
  0xd0   : > { %2586 = vmatmul.mubr.bf16.gmra.mrb[80].mxu1 %v4789_v41  ;;  %2432 = vmatprep.mubr.bf16.mxu0 %v4912_v25  ;;  %v5750_v41 = vld [vmem:[#allocation3_spill] sm:$0xff] }
  0xd1   : > { %2593 = vmatprep.mubr.bf16.mxu1 %v4919_v34 }
  0xd7   : > { %2433 = vmatmul.mubr.bf16.gmra.mrb[84].mxu0 %v4870_v39 }
  0xd8   : > { %2594 = vmatmul.mubr.bf16.gmra.mrb[84].mxu1 %v4874_v52  ;;  %2440 = vmatprep.mubr.bf16.mxu0 %v4957_v8  ;;  %v5753_v52 = vld [vmem:[#allocation8_spill] sm:$0xff] }
  0xd9   : > { %2601 = vmatprep.mubr.bf16.mxu1 %v4967_v22 }
  0xdf   : > { %2441 = vmatmul.mubr.bf16.gmra.mrb[88].mxu0 %v4919_v34 }
  0xe0   : > { %2602 = vmatmul.mubr.bf16.gmra.mrb[88].mxu1 %v4923_v49  ;;  %2448 = vmatprep.mubr.bf16.mxu0 %v5748_v9  ;;  %v5755_v49 = vld [vmem:[#allocation10_spill] sm:$0xff] }
  0xe1   : > { %2609 = vmatprep.mubr.bf16.mxu1 %v5749_v23 }
  0xe7   : > { %2449 = vmatmul.mubr.bf16.gmra.mrb[92].mxu0 %v4967_v22 }
  0xe8   : > { %2610 = vmatmul.mubr.bf16.gmra.mrb[92].mxu1 %v5750_v41  ;;  %2456 = vmatprep.mubr.bf16.mxu0 %v5751_v0 }
  0xe9   : > { %2617 = vmatprep.mubr.bf16.mxu1 %v5752_v10 }
  0xef   : > { %2457 = vmatmul.mubr.bf16.gmra.mrb[96].mxu0 %v5749_v23 }
  0xf0   : > { %2618 = vmatmul.mubr.bf16.gmra.mrb[96].mxu1 %v5012_v62  ;;  %2464 = vmatprep.mubr.bf16.mxu0 %v5753_v52  ;;  %v5758_v62 = vld [vmem:[#allocation13_spill] sm:$0xff] }
  0xf1   : > { %2625 = vmatprep.mubr.bf16.mxu1 %v5754_v7 }
  0xf7   : > { %2465 = vmatmul.mubr.bf16.gmra.mrb[100].mxu0 %v5752_v10 }
  0xf8   : > { %2626 = vmatmul.mubr.bf16.gmra.mrb[100].mxu1 %v5079_v36  ;;  %2472 = vmatprep.mubr.bf16.mxu0 %v5755_v49 }
  0xf9   : > { %2633 = vmatprep.mubr.bf16.mxu1 %v5756_v16 }
  0xff   : > { %2473 = vmatmul.mubr.bf16.gmra.mrb[104].mxu0 %v5754_v7 }
 0x100   : > { %2634 = vmatmul.mubr.bf16.gmra.mrb[104].mxu1 %v5121_v2  ;;  %2480 = vmatprep.mubr.bf16.mxu0 %v5757_v32 }
 0x101   : > { %2641 = vmatprep.mubr.bf16.mxu1 %v5758_v62 }
 0x102   : > { %v3682_v59 = vpop.f32.mrb[0].mxu0 }
 0x103   : > { %v3794_v1 = vpop.f32.mrb[0].mxu1  ;;  %v3683_v5 = vpop.f32.mrb[1].mxu0 }
 0x104   : > { %v3795_v53 = vpop.f32.mrb[1].mxu1  ;;  %v3684_v51 = vadd.f32 %v3683_v5, %v3682_v59  ;;  %v3685_v54 = vpop.f32.mrb[2].mxu0  ;;  %v1249_v5 = vrot.slane %v1247_v18, 4 }
 0x105   : > { %v3796_v36 = vadd.f32 %v3795_v53, %v3794_v1  ;;  %v3797_v48 = vpop.f32.mrb[2].mxu1  ;;  %v3686_v42 = vpop.f32.mrb[3].mxu0  ;;  %v1252_v53 = vrot.slane %v1250_v63, 5 }
 0x106   : > { %v3798_v29 = vpop.f32.mrb[3].mxu1  ;;  %v3687_v17 = vadd.f32 %v3686_v42, %v3685_v54 }
 0x107   : > { %v5354_v40 = vadd.f32 %v3796_v36, %v3684_v51  ;;  %v3799_v2 = vadd.f32 %v3798_v29, %v3797_v48  ;;  %2481 = vmatmul.mubr.bf16.gmra.mrb[108].mxu0 %v5756_v16  ;;  %v1258_v51 = vrot.slane %v1256_v20, 5  ;;  %v1262_v36 = vrot.slane %v1260_v31, 4  ;;  %v5375_v29 = vld [vmem:[%s4516_s18 + $0xd4] sm:$0x1]  ;;  %s3664_s18 = sshll.u32 %s5760_s22, 8 }
 0x108   : > { %2642 = vmatmul.mubr.bf16.gmra.mrb[108].mxu1 %v5150_v14  ;;  %2488 = vmatprep.mubr.bf16.mxu0 %v5208_v30  ;;  %v1266_v63 = vshll.u32 %v5375_v29, 16  ;;  %s5588_s15 = scalar_lea.vmem %s5710_s5, %s3664_s18  ;;  %s5595_s19 = scalar_lea.vmem %s5708_s3, %s3664_s18 }
 0x109   : > { %v5364_v28 = vadd.f32 %v3799_v2, %v3687_v17  ;;  %2649 = vmatprep.mubr.bf16.mxu1 %v5214_v47  ;;  %v1253_v2 = vor.u32 %v1252_v53, %v1249_v5  ;;  %v1263_v18 = vor.u32 %v1262_v36, %v1258_v51 }
 0x10a   : > { %v3688_v44 = vpop.f32.mrb[4].mxu0 }
 0x10b   : > { %v3800_v12 = vpop.f32.mrb[4].mxu1  ;;  %v3689_v3 = vpop.f32.mrb[5].mxu0 }
 0x10c   : > { %v3801_v37 = vpop.f32.mrb[5].mxu1  ;;  %v3690_v14 = vadd.f32 %v3689_v3, %v3688_v44  ;;  %v3691_v38 = vpop.f32.mrb[6].mxu0 }
 0x10d   : > { %v3802_v50 = vadd.f32 %v3801_v37, %v3800_v12  ;;  %v3803_v41 = vpop.f32.mrb[6].mxu1  ;;  %v3692_v59 = vpop.f32.mrb[7].mxu0 }
 0x10e   : > { %v3804_v1 = vpop.f32.mrb[7].mxu1  ;;  %v3693_v48 = vadd.f32 %v3692_v59, %v3691_v38  ;;  %v1264_v59 = vrot.slane %v1263_v18, 4 }
 0x10f   : > { %v5372_v54 = vadd.f32 %v3802_v50, %v3690_v14  ;;  %v3805_v42 = vadd.f32 %v3804_v1, %v3803_v41  ;;  %2489 = vmatmul.mubr.bf16.gmra.mrb[112].mxu0 %v5758_v62  ;;  %v1254_v41 = vrot.slane %v1253_v2, 4  ;;  %v1268_v1 = vrot.slane %v1266_v63, 5 }
 0x110   : > { %2650 = vmatmul.mubr.bf16.gmra.mrb[112].mxu1 %v5181_v61  ;;  %2496 = vmatprep.mubr.bf16.mxu0 %v5234_v4 }
 0x111   : > { %v5379_v17 = vadd.f32 %v3805_v42, %v3693_v48  ;;  %2657 = vmatprep.mubr.bf16.mxu1 %v5241_v55  ;;  %v1259_v36 = vsel %vm4559_vm5, %v1254_v41, %v1258_v51  ;;  %v1269_v2 = vsel %vm4559_vm5, %v1264_v59, %v1268_v1 }
 0x112   : > { %v3694_v20 = vpop.f32.mrb[8].mxu0 }
 0x113   : > { %v3806_v31 = vpop.f32.mrb[8].mxu1  ;;  %v3695_v44 = vpop.f32.mrb[9].mxu0 }
 0x114   : > { %v3807_v12 = vpop.f32.mrb[9].mxu1  ;;  %v3696_v3 = vadd.f32 %v3695_v44, %v3694_v20  ;;  %v3697_v14 = vpop.f32.mrb[10].mxu0 }
 0x115   : > { %v3808_v37 = vadd.f32 %v3807_v12, %v3806_v31  ;;  %v3809_v50 = vpop.f32.mrb[10].mxu1  ;;  %v3698_v38 = vpop.f32.mrb[11].mxu0 }
 0x116   : > { %v3810_v61 = vpop.f32.mrb[11].mxu1  ;;  %v3699_v42 = vadd.f32 %v3698_v38, %v3697_v14 }
 0x117   : > { %v5384_v48 = vadd.f32 %v3808_v37, %v3696_v3  ;;  %v3811_v5 = vadd.f32 %v3810_v61, %v3809_v50  ;;  %2497 = vmatmul.mubr.bf16.gmra.mrb[116].mxu0 %v5214_v47  ;;  %v3579_v37 = vcombine.low %v1259_v36, %v1269_v2 }
 0x118   : > { %2658 = vmatmul.mubr.bf16.gmra.mrb[116].mxu1 %v5212_v45  ;;  %2504 = vmatprep.mubr.bf16.mxu0 %v5254_v15 }
 0x119   : > { %v5388_v53 = vadd.f32 %v3811_v5, %v3699_v42  ;;  %2665 = vmatprep.mubr.bf16.mxu1 %v5244_v35  ;;  %v3578_v5 = vcombine.low %v5357_v21, %v5360_v60 }
 0x11a   : > { %v3700_v18 = vpop.f32.mrb[12].mxu0 }
 0x11b   : > { %v3812_v63 = vpop.f32.mrb[12].mxu1  ;;  %v3701_v20 = vpop.f32.mrb[13].mxu0 }
 0x11c   : > { %v3813_v31 = vpop.f32.mrb[13].mxu1  ;;  %v3702_v44 = vadd.f32 %v3701_v20, %v3700_v18  ;;  %v3703_v3 = vpop.f32.mrb[14].mxu0 }
 0x11d   : > { %v3814_v12 = vadd.f32 %v3813_v31, %v3812_v63  ;;  %v3815_v45 = vpop.f32.mrb[14].mxu1  ;;  %v3704_v14 = vpop.f32.mrb[15].mxu0 }
 0x11e   : > { %v3816_v50 = vpop.f32.mrb[15].mxu1  ;;  %v3705_v61 = vadd.f32 %v3704_v14, %v3703_v3 }
 0x11f   : > { %v5396_v38 = vadd.f32 %v3814_v12, %v3702_v44  ;;  %v3817_v42 = vadd.f32 %v3816_v50, %v3815_v45  ;;  %2505 = vmatmul.mubr.bf16.gmra.mrb[120].mxu0 %v5241_v55 }
 0x120   : > { %2666 = vmatmul.mubr.bf16.gmra.mrb[120].mxu1 %v5232_v24  ;;  %2512 = vmatprep.mubr.bf16.mxu0 %v5260_v26 }
 0x121   : > { %v5400_v57 = vadd.f32 %v3817_v42, %v3705_v61  ;;  %2673 = vmatprep.mubr.bf16.mxu1 %v3579_v37 }
 0x122   : > { %v3706_v51 = vpop.f32.mrb[16].mxu0 }
 0x123   : > { %v3818_v41 = vpop.f32.mrb[16].mxu1  ;;  %v3707_v59 = vpop.f32.mrb[17].mxu0 }
 0x124   : > { %v3819_v1 = vpop.f32.mrb[17].mxu1  ;;  %v3708_v36 = vadd.f32 %v3707_v59, %v3706_v51  ;;  %v3709_v18 = vpop.f32.mrb[18].mxu0 }
 0x125   : > { %v3820_v2 = vadd.f32 %v3819_v1, %v3818_v41  ;;  %v3821_v63 = vpop.f32.mrb[18].mxu1  ;;  %v3710_v20 = vpop.f32.mrb[19].mxu0 }
 0x126   : > { %v3822_v31 = vpop.f32.mrb[19].mxu1  ;;  %v3711_v24 = vadd.f32 %v3710_v20, %v3709_v18 }
 0x127   : > { %v5405_v44 = vadd.f32 %v3820_v2, %v3708_v36  ;;  %v3823_v12 = vadd.f32 %v3822_v31, %v3821_v63  ;;  %2513 = vmatmul.mubr.bf16.gmra.mrb[124].mxu0 %v5244_v35 }
 0x128   : > { %2674 = vmatmul.mubr.bf16.gmra.mrb[124].mxu1 %v3578_v5  ;;  %4178 = vmatprep.mubr.bf16.mxu0 %v4700_v33 }
 0x129   : > { %v5408_v3 = vadd.f32 %v3823_v12, %v3711_v24  ;;  %4226 = vmatprep.mubr.bf16.mxu1 %v4633_v46 }
 0x12a   : > { %v3712_v45 = vpop.f32.mrb[20].mxu0 }
 0x12b   : > { %v3824_v37 = vpop.f32.mrb[20].mxu1  ;;  %v3713_v14 = vpop.f32.mrb[21].mxu0 }
 0x12c   : > { %v3825_v50 = vpop.f32.mrb[21].mxu1  ;;  %v3714_v61 = vadd.f32 %v3713_v14, %v3712_v45  ;;  %v3715_v51 = vpop.f32.mrb[22].mxu0 }
 0x12d   : > { %v3826_v42 = vadd.f32 %v3825_v50, %v3824_v37  ;;  %v3827_v41 = vpop.f32.mrb[22].mxu1  ;;  %v3716_v59 = vpop.f32.mrb[23].mxu0 }
 0x12e   : > { %v3828_v1 = vpop.f32.mrb[23].mxu1  ;;  %v3717_v2 = vadd.f32 %v3716_v59, %v3715_v51 }
 0x12f   : > { %v5412_v36 = vadd.f32 %v3826_v42, %v3714_v61  ;;  %v3829_v5 = vadd.f32 %v3828_v1, %v3827_v41  ;;  %4179 = vmatmul.mubr.bf16.vlgmr.msra.gmra.mrb[128].mxu0 %v4751_v13 }
 0x130   : > { %4227 = vmatmul.mubr.bf16.vlgmr.msra.gmra.mrb[128].mxu1 %v4670_v11  ;;  %4182 = vmatprep.mubr.bf16.mxu0 %v4807_v27 }
 0x131   : > { %v5416_v33 = vadd.f32 %v3829_v5, %v3717_v2  ;;  %4230 = vmatprep.mubr.bf16.mxu1 %v4710_v43 }
 0x132   : > { %v3718_v46 = vpop.f32.mrb[24].mxu0 }
 0x133   : > { %v3830_v18 = vpop.f32.mrb[24].mxu1  ;;  %v3719_v63 = vpop.f32.mrb[25].mxu0 }
 0x134   : > { %v3831_v20 = vpop.f32.mrb[25].mxu1  ;;  %v3720_v31 = vadd.f32 %v3719_v63, %v3718_v46  ;;  %v3721_v12 = vpop.f32.mrb[26].mxu0 }
 0x135   : > { %v3832_v24 = vadd.f32 %v3831_v20, %v3830_v18  ;;  %v3833_v45 = vpop.f32.mrb[26].mxu1  ;;  %v3722_v37 = vpop.f32.mrb[27].mxu0 }
 0x136   : > { %v3834_v14 = vpop.f32.mrb[27].mxu1  ;;  %v3723_v13 = vadd.f32 %v3722_v37, %v3721_v12 }
 0x137   : > { %v5420_v50 = vadd.f32 %v3832_v24, %v3720_v31  ;;  %v3835_v11 = vadd.f32 %v3834_v14, %v3833_v45  ;;  %4183 = vmatmul.mubr.bf16.gmra.mrb[132].mxu0 %v4843_v6 }
 0x138   : > { %4231 = vmatmul.mubr.bf16.gmra.mrb[132].mxu1 %v4758_v19  ;;  %4186 = vmatprep.mubr.bf16.mxu0 %v4912_v25 }
 0x139   : > { %v5424_v27 = vadd.f32 %v3835_v11, %v3723_v13  ;;  %4234 = vmatprep.mubr.bf16.mxu1 %v4809_v58 }
 0x13a   : > { %v3724_v43 = vpop.f32.mrb[28].mxu0 }
 0x13b   : > { %v3836_v61 = vpop.f32.mrb[28].mxu1  ;;  %v3725_v42 = vpop.f32.mrb[29].mxu0 }
 0x13c   : > { %v3837_v51 = vpop.f32.mrb[29].mxu1  ;;  %v3726_v41 = vadd.f32 %v3725_v42, %v3724_v43  ;;  %v3727_v1 = vpop.f32.mrb[30].mxu0 }
 0x13d   : > { %v3838_v59 = vadd.f32 %v3837_v51, %v3836_v61  ;;  %v3839_v2 = vpop.f32.mrb[30].mxu1  ;;  %v3728_v5 = vpop.f32.mrb[31].mxu0 }
 0x13e   : > { %v3840_v46 = vpop.f32.mrb[31].mxu1  ;;  %v3729_v6 = vadd.f32 %v3728_v5, %v3727_v1 }
 0x13f   : > { %v5428_v18 = vadd.f32 %v3838_v59, %v3726_v41  ;;  %v3841_v19 = vadd.f32 %v3840_v46, %v3839_v2  ;;  %4187 = vmatmul.mubr.bf16.gmra.mrb[136].mxu0 %v4957_v8 }
 0x140   : > { %4235 = vmatmul.mubr.bf16.gmra.mrb[136].mxu1 %v4870_v39  ;;  %4190 = vmatprep.mubr.bf16.mxu0 %v5748_v9 }
 0x141   : > { %v5432_v25 = vadd.f32 %v3841_v19, %v3729_v6  ;;  %4238 = vmatprep.mubr.bf16.mxu1 %v4919_v34 }
 0x142   : > { %v3730_v58 = vpop.f32.mrb[32].mxu0 }
 0x143   : > { %v3842_v63 = vpop.f32.mrb[32].mxu1  ;;  %v3731_v20 = vpop.f32.mrb[33].mxu0 }
 0x144   : > { %v3843_v31 = vpop.f32.mrb[33].mxu1  ;;  %v3732_v24 = vadd.f32 %v3731_v20, %v3730_v58  ;;  %v3733_v45 = vpop.f32.mrb[34].mxu0 }
 0x145   : > { %v3844_v12 = vadd.f32 %v3843_v31, %v3842_v63  ;;  %v3845_v37 = vpop.f32.mrb[34].mxu1  ;;  %v3734_v14 = vpop.f32.mrb[35].mxu0 }
 0x146   : > { %v3846_v13 = vpop.f32.mrb[35].mxu1  ;;  %v3735_v8 = vadd.f32 %v3734_v14, %v3733_v45 }
 0x147   : > { %v5436_v11 = vadd.f32 %v3844_v12, %v3732_v24  ;;  %v3847_v39 = vadd.f32 %v3846_v13, %v3845_v37  ;;  %4191 = vmatmul.mubr.bf16.gmra.mrb[140].mxu0 %v5751_v0 }
 0x148   : > { %4239 = vmatmul.mubr.bf16.gmra.mrb[140].mxu1 %v4967_v22  ;;  %4194 = vmatprep.mubr.bf16.mxu0 %v5753_v52 }
 0x149   : > { %v5440_v9 = vadd.f32 %v3847_v39, %v3735_v8  ;;  %4242 = vmatprep.mubr.bf16.mxu1 %v5749_v23 }
 0x14a   : > { %v3736_v34 = vpop.f32.mrb[36].mxu0 }
 0x14b   : > { %v3848_v43 = vpop.f32.mrb[36].mxu1  ;;  %v3737_v61 = vpop.f32.mrb[37].mxu0 }
 0x14c   : > { %v3849_v42 = vpop.f32.mrb[37].mxu1  ;;  %v3738_v51 = vadd.f32 %v3737_v61, %v3736_v34  ;;  %v3739_v59 = vpop.f32.mrb[38].mxu0  ;;  %v3580_v34 = vrot.slane %v5357_v21, 9 }
 0x14d   : > { %v3850_v41 = vadd.f32 %v3849_v42, %v3848_v43  ;;  %v3851_v1 = vpop.f32.mrb[38].mxu1  ;;  %v3740_v2 = vpop.f32.mrb[39].mxu0 }
 0x14e   : > { %v3852_v5 = vpop.f32.mrb[39].mxu1  ;;  %v3741_v0 = vadd.f32 %v3740_v2, %v3739_v59 }
 0x14f   : > { %v5444_v46 = vadd.f32 %v3850_v41, %v3738_v51  ;;  %v3853_v22 = vadd.f32 %v3852_v5, %v3851_v1  ;;  %4195 = vmatmul.mubr.bf16.gmra.mrb[144].mxu0 %v5755_v49 }
 0x150   : > { %4243 = vmatmul.mubr.bf16.gmra.mrb[144].mxu1 %v5752_v10  ;;  %4198 = vmatprep.mubr.bf16.mxu0 %v5757_v32 }
 0x151   : > { %v5448_v52 = vadd.f32 %v3853_v22, %v3741_v0  ;;  %4246 = vmatprep.mubr.bf16.mxu1 %v5754_v7  ;;  %v1293_v7 = vrot.slane %v5360_v60, 5 }
 0x152   : > { %v3742_v23 = vpop.f32.mrb[40].mxu0 }
 0x153   : > { %v3854_v6 = vpop.f32.mrb[40].mxu1  ;;  %v3743_v19 = vpop.f32.mrb[41].mxu0  ;;  %v1295_v51 = vrot.slane %v1293_v7, 4  ;;  %v1294_v21 = vsel %vm4553_vm4, %v3580_v34, %v1293_v7 }
 0x154   : > { %v3855_v58 = vpop.f32.mrb[41].mxu1  ;;  %v3744_v63 = vadd.f32 %v3743_v19, %v3742_v23  ;;  %v3745_v31 = vpop.f32.mrb[42].mxu0 }
 0x155   : > { %v3856_v20 = vadd.f32 %v3855_v58, %v3854_v6  ;;  %v3857_v24 = vpop.f32.mrb[42].mxu1  ;;  %v3746_v12 = vpop.f32.mrb[43].mxu0 }
 0x156   : > { %v3858_v45 = vpop.f32.mrb[43].mxu1  ;;  %v3747_v49 = vadd.f32 %v3746_v12, %v3745_v31 }
 0x157   : > { %v5452_v37 = vadd.f32 %v3856_v20, %v3744_v63  ;;  %v3859_v10 = vadd.f32 %v3858_v45, %v3857_v24  ;;  %4199 = vmatmul.mubr.bf16.gmra.mrb[148].mxu0 %v5208_v30 }
 0x158   : > { %4247 = vmatmul.mubr.bf16.gmra.mrb[148].mxu1 %v5756_v16  ;;  %4202 = vmatprep.mubr.bf16.mxu0 %v5234_v4  ;;  %v1296_v16 = vrot.slane %v5375_v29, 5 }
 0x159   : > { %v5456_v32 = vadd.f32 %v3859_v10, %v3747_v49  ;;  %4250 = vmatprep.mubr.bf16.mxu1 %v5758_v62 }
 0x15a   : > { %v3748_v14 = vpop.f32.mrb[44].mxu0  ;;  %v1297_v29 = vsel %vm4553_vm4, %v1295_v51, %v1296_v16 }
 0x15b   : > { %v3860_v13 = vpop.f32.mrb[44].mxu1  ;;  %v3749_v8 = vpop.f32.mrb[45].mxu0  ;;  %v3581_v23 = vcombine.low %v1294_v21, %v1297_v29 }
 0x15c   : > { %v3861_v39 = vpop.f32.mrb[45].mxu1  ;;  %v3750_v43 = vadd.f32 %v3749_v8, %v3748_v14  ;;  %v3751_v42 = vpop.f32.mrb[46].mxu0 }
 0x15d   : > { %v3862_v61 = vadd.f32 %v3861_v39, %v3860_v13  ;;  %v3863_v30 = vpop.f32.mrb[46].mxu1  ;;  %v3752_v41 = vpop.f32.mrb[47].mxu0 }
 0x15e   : > { %v3864_v59 = vpop.f32.mrb[47].mxu1  ;;  %v3753_v62 = vadd.f32 %v3752_v41, %v3751_v42 }
 0x15f   : > { %v5463_v4 = vadd.f32 %v3862_v61, %v3750_v43  ;;  %v3865_v1 = vadd.f32 %v3864_v59, %v3863_v30  ;;  %4203 = vmatmul.mubr.bf16.gmra.mrb[152].mxu0 %v5254_v15 }
 0x160   : > { %4251 = vmatmul.mubr.bf16.gmra.mrb[152].mxu1 %v5214_v47  ;;  %4206 = vmatprep.mubr.bf16.mxu0 %v5260_v26 }
 0x161   : > { %v5467_v60 = vadd.f32 %v3865_v1, %v3753_v62  ;;  %4254 = vmatprep.mubr.bf16.mxu1 %v5241_v55 }
 0x162   : > { %v3754_v2 = vpop.f32.mrb[48].mxu0 }
 0x163   : > { %v3866_v5 = vpop.f32.mrb[48].mxu1  ;;  %v3755_v0 = vpop.f32.mrb[49].mxu0 }
 0x164   : > { %v3867_v22 = vpop.f32.mrb[49].mxu1  ;;  %v3756_v15 = vadd.f32 %v3755_v0, %v3754_v2  ;;  %v3757_v47 = vpop.f32.mrb[50].mxu0 }
 0x165   : > { %v3868_v6 = vadd.f32 %v3867_v22, %v3866_v5  ;;  %v3869_v19 = vpop.f32.mrb[50].mxu1  ;;  %v3758_v58 = vpop.f32.mrb[51].mxu0 }
 0x166   : > { %v3870_v63 = vpop.f32.mrb[51].mxu1  ;;  %v3759_v55 = vadd.f32 %v3758_v58, %v3757_v47 }
 0x167   : > { %v5475_v26 = vadd.f32 %v3868_v6, %v3756_v15  ;;  %v3871_v20 = vadd.f32 %v3870_v63, %v3869_v19  ;;  %4207 = vmatmul.mubr.bf16.gmra.mrb[156].mxu0 %v3581_v23 }
 0x168   : > { %4255 = vmatmul.mubr.bf16.gmra.mrb[156].mxu1 %v5244_v35 }
 0x169   : > { %v5478_v56 = vadd.f32 %v3871_v20, %v3759_v55 }
 0x16a   : > { %v3760_v31 = vpop.f32.mrb[52].mxu0 }
 0x16b   : > { %v3872_v24 = vpop.f32.mrb[52].mxu1  ;;  %v3761_v12 = vpop.f32.mrb[53].mxu0 }
 0x16c   : > { %v3873_v45 = vpop.f32.mrb[53].mxu1  ;;  %v3762_v49 = vadd.f32 %v3761_v12, %v3760_v31  ;;  %v3763_v7 = vpop.f32.mrb[54].mxu0 }
 0x16d   : > { %v3874_v10 = vadd.f32 %v3873_v45, %v3872_v24  ;;  %v3875_v14 = vpop.f32.mrb[54].mxu1  ;;  %v3764_v13 = vpop.f32.mrb[55].mxu0 }
 0x16e   : > { %v3876_v8 = vpop.f32.mrb[55].mxu1  ;;  %v3765_v34 = vadd.f32 %v3764_v13, %v3763_v7 }
 0x16f   : > { %v5480_v39 = vadd.f32 %v3874_v10, %v3762_v49  ;;  %v3877_v43 = vadd.f32 %v3876_v8, %v3875_v14 }
 0x171   : > { %v5482_v61 = vadd.f32 %v3877_v43, %v3765_v34 }
 0x172   : > { %v3766_v42 = vpop.f32.mrb[56].mxu0 }
 0x173   : > { %v3878_v35 = vpop.f32.mrb[56].mxu1  ;;  %v3767_v30 = vpop.f32.mrb[57].mxu0 }
 0x174   : > { %v3879_v51 = vpop.f32.mrb[57].mxu1  ;;  %v3768_v16 = vadd.f32 %v3767_v30, %v3766_v42  ;;  %v3769_v59 = vpop.f32.mrb[58].mxu0 }
 0x175   : > { %v3880_v41 = vadd.f32 %v3879_v51, %v3878_v35  ;;  %v3881_v62 = vpop.f32.mrb[58].mxu1  ;;  %v3770_v1 = vpop.f32.mrb[59].mxu0 }
 0x176   : > { %v3882_v21 = vpop.f32.mrb[59].mxu1  ;;  %v3771_v2 = vadd.f32 %v3770_v1, %v3769_v59 }
 0x177   : > { %v5484_v29 = vadd.f32 %v3880_v41, %v3768_v16  ;;  %v3883_v5 = vadd.f32 %v3882_v21, %v3881_v62 }
 0x179   : > { %v5486_v0 = vadd.f32 %v3883_v5, %v3771_v2 }
 0x17a   : > { %v3772_v22 = vpop.f32.mrb[60].mxu0 }
 0x17b   : > { %v3884_v23 = vpop.f32.mrb[60].mxu1  ;;  %v3773_v15 = vpop.f32.mrb[61].mxu0 }
 0x17c   : > { %v3885_v6 = vpop.f32.mrb[61].mxu1  ;;  %v3774_v47 = vadd.f32 %v3773_v15, %v3772_v22  ;;  %v3775_v58 = vpop.f32.mrb[62].mxu0 }
 0x17d   : > { %v3886_v19 = vadd.f32 %v3885_v6, %v3884_v23  ;;  %v3887_v63 = vpop.f32.mrb[62].mxu1  ;;  %v3776_v55 = vpop.f32.mrb[63].mxu0 }
 0x17e   : > { %v3888_v20 = vpop.f32.mrb[63].mxu1  ;;  %v3777_v24 = vadd.f32 %v3776_v55, %v3775_v58 }
 0x17f   : > { %v5488_v31 = vadd.f32 %v3886_v19, %v3774_v47  ;;  %v3889_v12 = vadd.f32 %v3888_v20, %v3887_v63 }
 0x181   : > { %v5490_v45 = vadd.f32 %v3889_v12, %v3777_v24 }
 0x182   : > { %v3906_v49 = vpop.f32.mrb[64].mxu0 }
 0x183   : > { %v4018_v10 = vpop.f32.mrb[64].mxu1  ;;  %v3907_v7 = vpop.f32.mrb[65].mxu0 }
 0x184   : > { %v4019_v14 = vpop.f32.mrb[65].mxu1  ;;  %v3908_v13 = vadd.f32 %v3907_v7, %v3906_v49  ;;  %v3909_v34 = vpop.f32.mrb[66].mxu0 }
 0x185   : > { %v4020_v8 = vadd.f32 %v4019_v14, %v4018_v10  ;;  %v4021_v43 = vpop.f32.mrb[66].mxu1  ;;  %v3910_v42 = vpop.f32.mrb[67].mxu0 }
 0x186   : > { %v4022_v35 = vpop.f32.mrb[67].mxu1  ;;  %v2395_v30 = vadd.f32 %v3908_v13, %v5354_v40  ;;  %v3911_v51 = vadd.f32 %v3910_v42, %v3909_v34 }
 0x187   : > { %v4023_v16 = vadd.f32 %v4022_v35, %v4021_v43 }
 0x188   : > { %v2398_v41 = vadd.f32 %v3911_v51, %v5364_v28  ;;  %v5494_v59 = vadd.f32 %v4020_v8, %v2395_v30 }
 0x18a   : > { %v3912_v62 = vpop.f32.mrb[68].mxu0  ;;  %v5496_v21 = vadd.f32 %v4023_v16, %v2398_v41 }
 0x18b   : > { %v4024_v1 = vpop.f32.mrb[68].mxu1  ;;  %v3913_v2 = vpop.f32.mrb[69].mxu0 }
 0x18c   : > { %v4025_v5 = vpop.f32.mrb[69].mxu1  ;;  %v3914_v22 = vadd.f32 %v3913_v2, %v3912_v62  ;;  %v3915_v15 = vpop.f32.mrb[70].mxu0 }
 0x18d   : > { %v4026_v23 = vadd.f32 %v4025_v5, %v4024_v1  ;;  %v4027_v6 = vpop.f32.mrb[70].mxu1  ;;  %v3916_v47 = vpop.f32.mrb[71].mxu0 }
 0x18e   : > { %v4028_v19 = vpop.f32.mrb[71].mxu1  ;;  %v2403_v40 = vadd.f32 %v3914_v22, %v5372_v54  ;;  %v3917_v58 = vadd.f32 %v3916_v47, %v3915_v15 }
 0x18f   : > { %v4029_v63 = vadd.f32 %v4028_v19, %v4027_v6 }
 0x190   : > { %v2406_v28 = vadd.f32 %v3917_v58, %v5379_v17  ;;  %v5500_v55 = vadd.f32 %v4026_v23, %v2403_v40 }
 0x192   : > { %v3918_v20 = vpop.f32.mrb[72].mxu0  ;;  %v5502_v12 = vadd.f32 %v4029_v63, %v2406_v28 }
 0x193   : > { %v4030_v24 = vpop.f32.mrb[72].mxu1  ;;  %v3919_v49 = vpop.f32.mrb[73].mxu0 }
 0x194   : > { %v4031_v10 = vpop.f32.mrb[73].mxu1  ;;  %v3920_v7 = vadd.f32 %v3919_v49, %v3918_v20  ;;  %v3921_v13 = vpop.f32.mrb[74].mxu0 }
 0x195   : > { %v4032_v14 = vadd.f32 %v4031_v10, %v4030_v24  ;;  %v4033_v8 = vpop.f32.mrb[74].mxu1  ;;  %v3922_v34 = vpop.f32.mrb[75].mxu0 }
 0x196   : > { %v4034_v43 = vpop.f32.mrb[75].mxu1  ;;  %v2411_v54 = vadd.f32 %v3920_v7, %v5384_v48  ;;  %v3923_v42 = vadd.f32 %v3922_v34, %v3921_v13 }
 0x197   : > { %v4035_v35 = vadd.f32 %v4034_v43, %v4033_v8 }
 0x198   : > { %v2414_v17 = vadd.f32 %v3923_v42, %v5388_v53  ;;  %v5506_v30 = vadd.f32 %v4032_v14, %v2411_v54 }
 0x19a   : > { %v3924_v51 = vpop.f32.mrb[76].mxu0  ;;  %v5508_v41 = vadd.f32 %v4035_v35, %v2414_v17 }
 0x19b   : > { %v4036_v16 = vpop.f32.mrb[76].mxu1  ;;  %v3925_v62 = vpop.f32.mrb[77].mxu0 }
 0x19c   : > { %v4037_v1 = vpop.f32.mrb[77].mxu1  ;;  %v3926_v2 = vadd.f32 %v3925_v62, %v3924_v51  ;;  %v3927_v22 = vpop.f32.mrb[78].mxu0 }
 0x19d   : > { %v4038_v5 = vadd.f32 %v4037_v1, %v4036_v16  ;;  %v4039_v23 = vpop.f32.mrb[78].mxu1  ;;  %v3928_v15 = vpop.f32.mrb[79].mxu0 }
 0x19e   : > { %v4040_v6 = vpop.f32.mrb[79].mxu1  ;;  %v2419_v48 = vadd.f32 %v3926_v2, %v5396_v38  ;;  %v3929_v47 = vadd.f32 %v3928_v15, %v3927_v22 }
 0x19f   : > { %v4041_v19 = vadd.f32 %v4040_v6, %v4039_v23 }
 0x1a0   : > { %v2422_v53 = vadd.f32 %v3929_v47, %v5400_v57  ;;  %v5512_v40 = vadd.f32 %v4038_v5, %v2419_v48 }
 0x1a2   : > { %v3930_v58 = vpop.f32.mrb[80].mxu0  ;;  %v5514_v28 = vadd.f32 %v4041_v19, %v2422_v53 }
 0x1a3   : > { %v4042_v63 = vpop.f32.mrb[80].mxu1  ;;  %v3931_v20 = vpop.f32.mrb[81].mxu0 }
 0x1a4   : > { %v4043_v24 = vpop.f32.mrb[81].mxu1  ;;  %v3932_v49 = vadd.f32 %v3931_v20, %v3930_v58  ;;  %v3933_v7 = vpop.f32.mrb[82].mxu0 }
 0x1a5   : > { %v4044_v10 = vadd.f32 %v4043_v24, %v4042_v63  ;;  %v4045_v14 = vpop.f32.mrb[82].mxu1  ;;  %v3934_v13 = vpop.f32.mrb[83].mxu0 }
 0x1a6   : > { %v4046_v8 = vpop.f32.mrb[83].mxu1  ;;  %v2427_v38 = vadd.f32 %v3932_v49, %v5405_v44  ;;  %v3935_v34 = vadd.f32 %v3934_v13, %v3933_v7 }
 0x1a7   : > { %v4047_v43 = vadd.f32 %v4046_v8, %v4045_v14 }
 0x1a8   : > { %v2430_v57 = vadd.f32 %v3935_v34, %v5408_v3  ;;  %v5518_v54 = vadd.f32 %v4044_v10, %v2427_v38 }
 0x1aa   : > { %v3936_v42 = vpop.f32.mrb[84].mxu0  ;;  %v5520_v17 = vadd.f32 %v4047_v43, %v2430_v57 }
 0x1ab   : > { %v4048_v35 = vpop.f32.mrb[84].mxu1  ;;  %v3937_v51 = vpop.f32.mrb[85].mxu0 }
 0x1ac   : > { %v4049_v16 = vpop.f32.mrb[85].mxu1  ;;  %v3938_v62 = vadd.f32 %v3937_v51, %v3936_v42  ;;  %v3939_v2 = vpop.f32.mrb[86].mxu0 }
 0x1ad   : > { %v4050_v1 = vadd.f32 %v4049_v16, %v4048_v35  ;;  %v4051_v5 = vpop.f32.mrb[86].mxu1  ;;  %v3940_v22 = vpop.f32.mrb[87].mxu0 }
 0x1ae   : > { %v4052_v23 = vpop.f32.mrb[87].mxu1  ;;  %v2435_v44 = vadd.f32 %v3938_v62, %v5412_v36  ;;  %v3941_v15 = vadd.f32 %v3940_v22, %v3939_v2 }
 0x1af   : > { %v4053_v6 = vadd.f32 %v4052_v23, %v4051_v5 }
 0x1b0   : > { %v2438_v3 = vadd.f32 %v3941_v15, %v5416_v33  ;;  %v5524_v48 = vadd.f32 %v4050_v1, %v2435_v44 }
 0x1b2   : > { %v3942_v47 = vpop.f32.mrb[88].mxu0  ;;  %v5526_v53 = vadd.f32 %v4053_v6, %v2438_v3 }
 0x1b3   : > { %v4054_v19 = vpop.f32.mrb[88].mxu1  ;;  %v3943_v58 = vpop.f32.mrb[89].mxu0 }
 0x1b4   : > { %v4055_v63 = vpop.f32.mrb[89].mxu1  ;;  %v3944_v20 = vadd.f32 %v3943_v58, %v3942_v47  ;;  %v3945_v49 = vpop.f32.mrb[90].mxu0 }
 0x1b5   : > { %v4056_v24 = vadd.f32 %v4055_v63, %v4054_v19  ;;  %v4057_v10 = vpop.f32.mrb[90].mxu1  ;;  %v3946_v7 = vpop.f32.mrb[91].mxu0 }
 0x1b6   : > { %v4058_v14 = vpop.f32.mrb[91].mxu1  ;;  %v2443_v36 = vadd.f32 %v3944_v20, %v5420_v50  ;;  %v3947_v13 = vadd.f32 %v3946_v7, %v3945_v49 }
 0x1b7   : > { %v4059_v8 = vadd.f32 %v4058_v14, %v4057_v10 }
 0x1b8   : > { %v2446_v33 = vadd.f32 %v3947_v13, %v5424_v27  ;;  %v5530_v38 = vadd.f32 %v4056_v24, %v2443_v36 }
 0x1ba   : > { %v3948_v34 = vpop.f32.mrb[92].mxu0  ;;  %v5532_v57 = vadd.f32 %v4059_v8, %v2446_v33 }
 0x1bb   : > { %v4060_v43 = vpop.f32.mrb[92].mxu1  ;;  %v3949_v42 = vpop.f32.mrb[93].mxu0 }
 0x1bc   : > { %v4061_v35 = vpop.f32.mrb[93].mxu1  ;;  %v3950_v51 = vadd.f32 %v3949_v42, %v3948_v34  ;;  %v3951_v62 = vpop.f32.mrb[94].mxu0 }
 0x1bd   : > { %v4062_v16 = vadd.f32 %v4061_v35, %v4060_v43  ;;  %v4063_v1 = vpop.f32.mrb[94].mxu1  ;;  %v3952_v2 = vpop.f32.mrb[95].mxu0 }
 0x1be   : > { %v4064_v5 = vpop.f32.mrb[95].mxu1  ;;  %v2451_v50 = vadd.f32 %v3950_v51, %v5428_v18  ;;  %v3953_v22 = vadd.f32 %v3952_v2, %v3951_v62 }
 0x1bf   : > { %v4065_v23 = vadd.f32 %v4064_v5, %v4063_v1 }
 0x1c0   : > { %v2454_v27 = vadd.f32 %v3953_v22, %v5432_v25  ;;  %v5536_v44 = vadd.f32 %v4062_v16, %v2451_v50 }
 0x1c2   : > { %v3954_v15 = vpop.f32.mrb[96].mxu0  ;;  %v5538_v3 = vadd.f32 %v4065_v23, %v2454_v27 }
 0x1c3   : > { %v4066_v6 = vpop.f32.mrb[96].mxu1  ;;  %v3955_v47 = vpop.f32.mrb[97].mxu0 }
 0x1c4   : > { %v4067_v19 = vpop.f32.mrb[97].mxu1  ;;  %v3956_v58 = vadd.f32 %v3955_v47, %v3954_v15  ;;  %v3957_v20 = vpop.f32.mrb[98].mxu0 }
 0x1c5   : > { %v4068_v63 = vadd.f32 %v4067_v19, %v4066_v6  ;;  %v4069_v24 = vpop.f32.mrb[98].mxu1  ;;  %v3958_v49 = vpop.f32.mrb[99].mxu0 }
 0x1c6   : > { %v4070_v10 = vpop.f32.mrb[99].mxu1  ;;  %v2459_v18 = vadd.f32 %v3956_v58, %v5436_v11  ;;  %v3959_v7 = vadd.f32 %v3958_v49, %v3957_v20 }
 0x1c7   : > { %v4071_v14 = vadd.f32 %v4070_v10, %v4069_v24 }
 0x1c8   : > { %v2462_v25 = vadd.f32 %v3959_v7, %v5440_v9  ;;  %v5542_v36 = vadd.f32 %v4068_v63, %v2459_v18 }
 0x1ca   : > { %v3960_v13 = vpop.f32.mrb[100].mxu0  ;;  %v5544_v33 = vadd.f32 %v4071_v14, %v2462_v25 }
 0x1cb   : > { %v4072_v8 = vpop.f32.mrb[100].mxu1  ;;  %v3961_v34 = vpop.f32.mrb[101].mxu0 }
 0x1cc   : > { %v4073_v43 = vpop.f32.mrb[101].mxu1  ;;  %v3962_v42 = vadd.f32 %v3961_v34, %v3960_v13  ;;  %v3963_v51 = vpop.f32.mrb[102].mxu0 }
 0x1cd   : > { %v4074_v35 = vadd.f32 %v4073_v43, %v4072_v8  ;;  %v4075_v16 = vpop.f32.mrb[102].mxu1  ;;  %v3964_v62 = vpop.f32.mrb[103].mxu0 }
 0x1ce   : > { %v4076_v1 = vpop.f32.mrb[103].mxu1  ;;  %v2467_v11 = vadd.f32 %v3962_v42, %v5444_v46  ;;  %v3965_v2 = vadd.f32 %v3964_v62, %v3963_v51 }
 0x1cf   : > { %v4077_v5 = vadd.f32 %v4076_v1, %v4075_v16 }
 0x1d0   : > { %v2470_v9 = vadd.f32 %v3965_v2, %v5448_v52  ;;  %v5548_v50 = vadd.f32 %v4074_v35, %v2467_v11 }
 0x1d2   : > { %v3966_v22 = vpop.f32.mrb[104].mxu0  ;;  %v5550_v27 = vadd.f32 %v4077_v5, %v2470_v9 }
 0x1d3   : > { %v4078_v23 = vpop.f32.mrb[104].mxu1  ;;  %v3967_v15 = vpop.f32.mrb[105].mxu0 }
 0x1d4   : > { %v4079_v6 = vpop.f32.mrb[105].mxu1  ;;  %v3968_v47 = vadd.f32 %v3967_v15, %v3966_v22  ;;  %v3969_v58 = vpop.f32.mrb[106].mxu0 }
 0x1d5   : > { %v4080_v19 = vadd.f32 %v4079_v6, %v4078_v23  ;;  %v4081_v63 = vpop.f32.mrb[106].mxu1  ;;  %v3970_v20 = vpop.f32.mrb[107].mxu0 }
 0x1d6   : > { %v4082_v24 = vpop.f32.mrb[107].mxu1  ;;  %v2475_v46 = vadd.f32 %v3968_v47, %v5452_v37  ;;  %v3971_v49 = vadd.f32 %v3970_v20, %v3969_v58 }
 0x1d7   : > { %v4083_v10 = vadd.f32 %v4082_v24, %v4081_v63 }
 0x1d8   : > { %v2478_v52 = vadd.f32 %v3971_v49, %v5456_v32  ;;  %v5554_v18 = vadd.f32 %v4080_v19, %v2475_v46 }
 0x1da   : > { %v3972_v7 = vpop.f32.mrb[108].mxu0  ;;  %v5556_v25 = vadd.f32 %v4083_v10, %v2478_v52 }
 0x1db   : > { %v4084_v14 = vpop.f32.mrb[108].mxu1  ;;  %v3973_v13 = vpop.f32.mrb[109].mxu0 }
 0x1dc   : > { %v4085_v8 = vpop.f32.mrb[109].mxu1  ;;  %v3974_v34 = vadd.f32 %v3973_v13, %v3972_v7  ;;  %v3975_v42 = vpop.f32.mrb[110].mxu0 }
 0x1dd   : > { %v4086_v43 = vadd.f32 %v4085_v8, %v4084_v14  ;;  %v4087_v35 = vpop.f32.mrb[110].mxu1  ;;  %v3976_v51 = vpop.f32.mrb[111].mxu0 }
 0x1de   : > { %v4088_v16 = vpop.f32.mrb[111].mxu1  ;;  %v2483_v37 = vadd.f32 %v3974_v34, %v5463_v4  ;;  %v3977_v62 = vadd.f32 %v3976_v51, %v3975_v42 }
 0x1df   : > { %v4089_v1 = vadd.f32 %v4088_v16, %v4087_v35 }
 0x1e0   : > { %v2486_v32 = vadd.f32 %v3977_v62, %v5467_v60  ;;  %v5560_v11 = vadd.f32 %v4086_v43, %v2483_v37 }
 0x1e2   : > { %v3978_v2 = vpop.f32.mrb[112].mxu0  ;;  %v5562_v9 = vadd.f32 %v4089_v1, %v2486_v32 }
 0x1e3   : > { %v4090_v5 = vpop.f32.mrb[112].mxu1  ;;  %v3979_v22 = vpop.f32.mrb[113].mxu0 }
 0x1e4   : > { %v4091_v23 = vpop.f32.mrb[113].mxu1  ;;  %v3980_v15 = vadd.f32 %v3979_v22, %v3978_v2  ;;  %v3981_v47 = vpop.f32.mrb[114].mxu0 }
 0x1e5   : > { %v4092_v6 = vadd.f32 %v4091_v23, %v4090_v5  ;;  %v4093_v19 = vpop.f32.mrb[114].mxu1  ;;  %v3982_v58 = vpop.f32.mrb[115].mxu0 }
 0x1e6   : > { %v4094_v63 = vpop.f32.mrb[115].mxu1  ;;  %v2491_v4 = vadd.f32 %v3980_v15, %v5475_v26  ;;  %v3983_v20 = vadd.f32 %v3982_v58, %v3981_v47 }
 0x1e7   : > { %v4095_v24 = vadd.f32 %v4094_v63, %v4093_v19 }
 0x1e8   : > { %v2494_v60 = vadd.f32 %v3983_v20, %v5478_v56  ;;  %v5566_v46 = vadd.f32 %v4092_v6, %v2491_v4 }
 0x1ea   : > { %v3984_v49 = vpop.f32.mrb[116].mxu0  ;;  %v5568_v52 = vadd.f32 %v4095_v24, %v2494_v60 }
 0x1eb   : > { %v4096_v10 = vpop.f32.mrb[116].mxu1  ;;  %v3985_v7 = vpop.f32.mrb[117].mxu0 }
 0x1ec   : > { %v4097_v14 = vpop.f32.mrb[117].mxu1  ;;  %v3986_v13 = vadd.f32 %v3985_v7, %v3984_v49  ;;  %v3987_v34 = vpop.f32.mrb[118].mxu0 }
 0x1ed   : > { %v4098_v8 = vadd.f32 %v4097_v14, %v4096_v10  ;;  %v4099_v43 = vpop.f32.mrb[118].mxu1  ;;  %v3988_v42 = vpop.f32.mrb[119].mxu0 }
 0x1ee   : > { %v4100_v35 = vpop.f32.mrb[119].mxu1  ;;  %v2499_v26 = vadd.f32 %v3986_v13, %v5480_v39  ;;  %v3989_v51 = vadd.f32 %v3988_v42, %v3987_v34 }
 0x1ef   : > { %v4101_v16 = vadd.f32 %v4100_v35, %v4099_v43 }
 0x1f0   : > { %v2502_v56 = vadd.f32 %v3989_v51, %v5482_v61  ;;  %v5572_v37 = vadd.f32 %v4098_v8, %v2499_v26 }
 0x1f2   : > { %v3990_v62 = vpop.f32.mrb[120].mxu0  ;;  %v5574_v32 = vadd.f32 %v4101_v16, %v2502_v56 }
 0x1f3   : > { %v4102_v1 = vpop.f32.mrb[120].mxu1  ;;  %v3991_v2 = vpop.f32.mrb[121].mxu0 }
 0x1f4   : > { %v4103_v5 = vpop.f32.mrb[121].mxu1  ;;  %v3992_v22 = vadd.f32 %v3991_v2, %v3990_v62  ;;  %v3993_v15 = vpop.f32.mrb[122].mxu0 }
 0x1f5   : > { %v4104_v23 = vadd.f32 %v4103_v5, %v4102_v1  ;;  %v4105_v6 = vpop.f32.mrb[122].mxu1  ;;  %v3994_v47 = vpop.f32.mrb[123].mxu0 }
 0x1f6   : > { %v4106_v19 = vpop.f32.mrb[123].mxu1  ;;  %v2507_v39 = vadd.f32 %v3992_v22, %v5484_v29  ;;  %v3995_v58 = vadd.f32 %v3994_v47, %v3993_v15 }
 0x1f7   : > { %v4107_v63 = vadd.f32 %v4106_v19, %v4105_v6 }
 0x1f8   : > { %v2510_v61 = vadd.f32 %v3995_v58, %v5486_v0  ;;  %v5578_v4 = vadd.f32 %v4104_v23, %v2507_v39 }
 0x1fa   : > { %v3996_v20 = vpop.f32.mrb[124].mxu0  ;;  %v5580_v60 = vadd.f32 %v4107_v63, %v2510_v61 }
 0x1fb   : > { %v4108_v24 = vpop.f32.mrb[124].mxu1  ;;  %v3997_v49 = vpop.f32.mrb[125].mxu0 }
 0x1fc   : > { %v4109_v10 = vpop.f32.mrb[125].mxu1  ;;  %v3998_v7 = vadd.f32 %v3997_v49, %v3996_v20  ;;  %v3999_v13 = vpop.f32.mrb[126].mxu0 }
 0x1fd   : > { %v4110_v14 = vadd.f32 %v4109_v10, %v4108_v24  ;;  %v4111_v8 = vpop.f32.mrb[126].mxu1  ;;  %v4000_v34 = vpop.f32.mrb[127].mxu0 }
 0x1fe   : > { %v4112_v43 = vpop.f32.mrb[127].mxu1  ;;  %v2515_v29 = vadd.f32 %v3998_v7, %v5488_v31  ;;  %v4001_v42 = vadd.f32 %v4000_v34, %v3999_v13 }
 0x1ff   : > { %v4113_v35 = vadd.f32 %v4112_v43, %v4111_v8 }
 0x200   : > { %v2518_v0 = vadd.f32 %v4001_v42, %v5490_v45  ;;  %v5590_v26 = vadd.f32 %v4110_v14, %v2515_v29 }
 0x202   : > { %v4180_v31 = vpop.f32.mrb[128].mxu0  ;;  %v5597_v45 = vadd.f32 %v4113_v35, %v2518_v0 }
 0x203   : > { %v4228_v51 = vpop.f32.mrb[128].mxu1  ;;  %v2725_v16 = vadd.f32 %v4180_v31, %v5500_v55  ;;  %v2716_v56 = vpop.f32.mrb[129].mxu0 }
 0x204   : > { %3210 = vst [vmem:[%s5588_s15 + $0x10] sm:$0xff] %v4228_v51  ;;  %v3081_v62 = vpop.f32.mrb[129].mxu1  ;;  %v2717_v1 = vadd.f32 %v2716_v56, %v5494_v59  ;;  %v4181_v5 = vpop.f32.mrb[130].mxu0  ;;  %v3280_v39 = vmul.f32 %v4228_v51, %v4228_v51 }
 0x205   : > { %3208 = vst [vmem:[%s5588_s15] sm:$0xff] %v3081_v62  ;;  %v3278_v2 = vmul.f32 %v3081_v62, %v3081_v62  ;;  %v4229_v22 = vpop.f32.mrb[130].mxu1  ;;  %2845 = vst [vmem:[%s5595_s19 + $0x10] sm:$0xff] %v2725_v16  ;;  %v2728_v23 = vadd.f32 %v4181_v5, %v5502_v12  ;;  %v2719_v15 = vpop.f32.mrb[131].mxu0  ;;  %v2915_v24 = vmul.f32 %v2725_v16, %v2725_v16 }
 0x206   : > { %3211 = vst [vmem:[%s5588_s15 + $0x18] sm:$0xff] %v4229_v22  ;;  %v3084_v6 = vpop.f32.mrb[131].mxu1  ;;  %2843 = vst [vmem:[%s5595_s19] sm:$0xff] %v2717_v1  ;;  %v2720_v55 = vadd.f32 %v2719_v15, %v5496_v21  ;;  %v2913_v59 = vmul.f32 %v2717_v1, %v2717_v1  ;;  %v3281_v8 = vmul.f32 %v4229_v22, %v4229_v22 }
 0x207   : > { %3209 = vst [vmem:[%s5588_s15 + $0x8] sm:$0xff] %v3084_v6  ;;  %v3240_v47 = vadd.f32 %v3084_v6, %v3081_v62  ;;  %v3279_v19 = vmul.f32 %v3084_v6, %v3084_v6  ;;  %2846 = vst [vmem:[%s5595_s19 + $0x18] sm:$0xff] %v2728_v23  ;;  %v2916_v13 = vmul.f32 %v2728_v23, %v2728_v23 }
 0x208   : > { %2844 = vst [vmem:[%s5595_s19 + $0x8] sm:$0xff] %v2720_v55  ;;  %v2875_v58 = vadd.f32 %v2720_v55, %v2717_v1  ;;  %v2914_v63 = vmul.f32 %v2720_v55, %v2720_v55 }
 0x209   : > { %v3241_v61 = vadd.f32 %v4228_v51, %v3240_v47  ;;  %v3310_v20 = vadd.f32 %v3279_v19, %v3278_v2 }
 0x20a   : > { %v2876_v12 = vadd.f32 %v2875_v58, %v2725_v16  ;;  %v2945_v49 = vadd.f32 %v2914_v63, %v2913_v59  ;;  %v4184_v7 = vpop.f32.mrb[132].mxu0 }
 0x20b   : > { %v3311_v10 = vadd.f32 %v3310_v20, %v3280_v39  ;;  %v4232_v21 = vpop.f32.mrb[132].mxu1  ;;  %v3242_v14 = vadd.f32 %v4229_v22, %v3241_v61  ;;  %v2741_v34 = vadd.f32 %v4184_v7, %v5512_v40  ;;  %v2732_v43 = vpop.f32.mrb[133].mxu0 }
 0x20c   : > { %3214 = vst [vmem:[%s5588_s15 + $0x30] sm:$0xff] %v4232_v21  ;;  %v3097_v29 = vpop.f32.mrb[133].mxu1  ;;  %v2946_v42 = vadd.f32 %v2945_v49, %v2915_v24  ;;  %v2733_v35 = vadd.f32 %v2732_v43, %v5506_v30  ;;  %v2877_v0 = vadd.f32 %v2876_v12, %v2728_v23  ;;  %v4185_v51 = vpop.f32.mrb[134].mxu0  ;;  %v3284_v58 = vmul.f32 %v4232_v21, %v4232_v21 }
 0x20d   : > { %3212 = vst [vmem:[%s5588_s15 + $0x20] sm:$0xff] %v3097_v29  ;;  %v3243_v31 = vadd.f32 %v3242_v14, %v3097_v29  ;;  %v4233_v16 = vpop.f32.mrb[134].mxu1  ;;  %2849 = vst [vmem:[%s5595_s19 + $0x30] sm:$0xff] %v2741_v34  ;;  %v3282_v56 = vmul.f32 %v3097_v29, %v3097_v29  ;;  %v3312_v62 = vadd.f32 %v3311_v10, %v3281_v8  ;;  %v2735_v1 = vpop.f32.mrb[135].mxu0 }
 0x20e   : > { %v2744_v40 = vadd.f32 %v4185_v51, %v5514_v28  ;;  %3215 = vst [vmem:[%s5588_s15 + $0x38] sm:$0xff] %v4233_v16  ;;  %v3100_v2 = vpop.f32.mrb[135].mxu1  ;;  %2847 = vst [vmem:[%s5595_s19 + $0x20] sm:$0xff] %v2733_v35  ;;  %v2878_v5 = vadd.f32 %v2877_v0, %v2733_v35  ;;  %v2917_v22 = vmul.f32 %v2733_v35, %v2733_v35 }
 0x20f   : > { %v2947_v30 = vadd.f32 %v2946_v42, %v2916_v13  ;;  %3213 = vst [vmem:[%s5588_s15 + $0x28] sm:$0xff] %v3100_v2  ;;  %v3313_v23 = vadd.f32 %v3312_v62, %v3282_v56  ;;  %v2736_v15 = vadd.f32 %v2735_v1, %v5508_v41  ;;  %v3244_v6 = vadd.f32 %v3243_v31, %v3100_v2 }
 0x210   : > { %2850 = vst [vmem:[%s5595_s19 + $0x38] sm:$0xff] %v2744_v40  ;;  %v3283_v47 = vmul.f32 %v3100_v2, %v3100_v2  ;;  %v2919_v59 = vmul.f32 %v2741_v34, %v2741_v34  ;;  %v3285_v24 = vmul.f32 %v4233_v16, %v4233_v16  ;;  %v2920_v42 = vmul.f32 %v2744_v40, %v2744_v40 }
 0x211   : > { %v2948_v55 = vadd.f32 %v2947_v30, %v2917_v22  ;;  %2848 = vst [vmem:[%s5595_s19 + $0x28] sm:$0xff] %v2736_v15  ;;  %v2879_v19 = vadd.f32 %v2878_v5, %v2736_v15  ;;  %v2918_v39 = vmul.f32 %v2736_v15, %v2736_v15  ;;  %v3245_v28 = vadd.f32 %v4232_v21, %v3244_v6 }
 0x212   : > { %v3314_v63 = vadd.f32 %v3313_v23, %v3283_v47  ;;  %v4188_v61 = vpop.f32.mrb[136].mxu0 }
 0x213   : > { %v4236_v20 = vpop.f32.mrb[136].mxu1  ;;  %v2880_v12 = vadd.f32 %v2879_v19, %v2741_v34  ;;  %v2949_v49 = vadd.f32 %v2948_v55, %v2918_v39  ;;  %v2757_v41 = vadd.f32 %v4188_v61, %v5524_v48  ;;  %v2748_v10 = vpop.f32.mrb[137].mxu0  ;;  %v3246_v8 = vadd.f32 %v4233_v16, %v3245_v28 }
 0x214   : > { %3218 = vst [vmem:[%s5588_s15 + $0x50] sm:$0xff] %v4236_v20  ;;  %v3113_v7 = vpop.f32.mrb[137].mxu1  ;;  %v3315_v14 = vadd.f32 %v3314_v63, %v3284_v58  ;;  %v2749_v13 = vadd.f32 %v2748_v10, %v5518_v54  ;;  %v4189_v43 = vpop.f32.mrb[138].mxu0  ;;  %v3288_v15 = vmul.f32 %v4236_v20, %v4236_v20 }
 0x215   : > { %3216 = vst [vmem:[%s5588_s15 + $0x40] sm:$0xff] %v3113_v7  ;;  %v3286_v21 = vmul.f32 %v3113_v7, %v3113_v7  ;;  %v4237_v29 = vpop.f32.mrb[138].mxu1  ;;  %v2950_v34 = vadd.f32 %v2949_v49, %v2919_v59  ;;  %2853 = vst [vmem:[%s5595_s19 + $0x50] sm:$0xff] %v2757_v41  ;;  %v2881_v35 = vadd.f32 %v2880_v12, %v2744_v40  ;;  %v2751_v0 = vpop.f32.mrb[139].mxu0 }
 0x216   : > { %v2760_v48 = vadd.f32 %v4189_v43, %v5526_v53  ;;  %3219 = vst [vmem:[%s5588_s15 + $0x58] sm:$0xff] %v4237_v29  ;;  %v3116_v31 = vpop.f32.mrb[139].mxu1  ;;  %2851 = vst [vmem:[%s5595_s19 + $0x40] sm:$0xff] %v2749_v13  ;;  %v2921_v51 = vmul.f32 %v2749_v13, %v2749_v13  ;;  %v3247_v54 = vadd.f32 %v3246_v8, %v3113_v7 }
 0x217   : > { %v3316_v56 = vadd.f32 %v3315_v14, %v3285_v24  ;;  %3217 = vst [vmem:[%s5588_s15 + $0x48] sm:$0xff] %v3116_v31  ;;  %v2882_v16 = vadd.f32 %v2881_v35, %v2749_v13  ;;  %v2951_v62 = vadd.f32 %v2950_v34, %v2920_v42  ;;  %v2752_v1 = vadd.f32 %v2751_v0, %v5520_v17 }
 0x218   : > { %2854 = vst [vmem:[%s5595_s19 + $0x58] sm:$0xff] %v2760_v48  ;;  %v3248_v5 = vadd.f32 %v3247_v54, %v3116_v31  ;;  %v3287_v40 = vmul.f32 %v3116_v31, %v3116_v31  ;;  %v2923_v23 = vmul.f32 %v2757_v41, %v2757_v41  ;;  %v3289_v39 = vmul.f32 %v4237_v29, %v4237_v29 }
 0x219   : > { %v3317_v2 = vadd.f32 %v3316_v56, %v3286_v21  ;;  %v2952_v22 = vadd.f32 %v2951_v62, %v2921_v51  ;;  %2852 = vst [vmem:[%s5595_s19 + $0x48] sm:$0xff] %v2752_v1  ;;  %v2883_v53 = vadd.f32 %v2882_v16, %v2752_v1  ;;  %v2922_v30 = vmul.f32 %v2752_v1, %v2752_v1 }
 0x21a   : > { %v3249_v6 = vadd.f32 %v4236_v20, %v3248_v5  ;;  %v4192_v47 = vpop.f32.mrb[140].mxu0  ;;  %v2924_v7 = vmul.f32 %v2760_v48, %v2760_v48 }
 0x21b   : > { %v3318_v55 = vadd.f32 %v3317_v2, %v3287_v40  ;;  %v4240_v19 = vpop.f32.mrb[140].mxu1  ;;  %v2884_v28 = vadd.f32 %v2883_v53, %v2757_v41  ;;  %v2953_v59 = vadd.f32 %v2952_v22, %v2922_v30  ;;  %v2773_v17 = vadd.f32 %v4192_v47, %v5536_v44  ;;  %v2764_v58 = vpop.f32.mrb[141].mxu0 }
 0x21c   : > { %3222 = vst [vmem:[%s5588_s15 + $0x70] sm:$0xff] %v4240_v19  ;;  %v3129_v63 = vpop.f32.mrb[141].mxu1  ;;  %v2765_v24 = vadd.f32 %v2764_v58, %v5530_v38  ;;  %v3250_v12 = vadd.f32 %v4237_v29, %v3249_v6  ;;  %v4193_v49 = vpop.f32.mrb[142].mxu0  ;;  %v3292_v56 = vmul.f32 %v4240_v19, %v4240_v19 }
 0x21d   : > { %v3319_v61 = vadd.f32 %v3318_v55, %v3288_v15  ;;  %3220 = vst [vmem:[%s5588_s15 + $0x60] sm:$0xff] %v3129_v63  ;;  %v3290_v20 = vmul.f32 %v3129_v63, %v3129_v63  ;;  %v4241_v10 = vpop.f32.mrb[142].mxu1  ;;  %v2954_v41 = vadd.f32 %v2953_v59, %v2923_v23  ;;  %2857 = vst [vmem:[%s5595_s19 + $0x70] sm:$0xff] %v2773_v17  ;;  %v2767_v13 = vpop.f32.mrb[143].mxu0 }
 0x21e   : > { %v2885_v14 = vadd.f32 %v2884_v28, %v2760_v48  ;;  %v2776_v44 = vadd.f32 %v4193_v49, %v5538_v3  ;;  %3223 = vst [vmem:[%s5588_s15 + $0x78] sm:$0xff] %v4241_v10  ;;  %v3132_v8 = vpop.f32.mrb[143].mxu1  ;;  %2855 = vst [vmem:[%s5595_s19 + $0x60] sm:$0xff] %v2765_v24  ;;  %v2925_v21 = vmul.f32 %v2765_v24, %v2765_v24 }
 0x21f   : > { %v3251_v38 = vadd.f32 %v3250_v12, %v3129_v63  ;;  %v3320_v43 = vadd.f32 %v3319_v61, %v3289_v39  ;;  %3221 = vst [vmem:[%s5588_s15 + $0x68] sm:$0xff] %v3132_v8  ;;  %v2955_v42 = vadd.f32 %v2954_v41, %v2924_v7  ;;  %v2768_v34 = vadd.f32 %v2767_v13, %v5532_v57 }
 0x220   : > { %v2886_v29 = vadd.f32 %v2885_v14, %v2765_v24  ;;  %2858 = vst [vmem:[%s5595_s19 + $0x78] sm:$0xff] %v2776_v44  ;;  %v3291_v48 = vmul.f32 %v3132_v8, %v3132_v8  ;;  %v2927_v54 = vmul.f32 %v2773_v17, %v2773_v17  ;;  %v3293_v5 = vmul.f32 %v4241_v10, %v4241_v10 }
 0x221   : > { %v3321_v35 = vadd.f32 %v3320_v43, %v3290_v20  ;;  %v3252_v0 = vadd.f32 %v3251_v38, %v3132_v8  ;;  %v2956_v31 = vadd.f32 %v2955_v42, %v2925_v21  ;;  %2856 = vst [vmem:[%s5595_s19 + $0x68] sm:$0xff] %v2768_v34  ;;  %v2926_v51 = vmul.f32 %v2768_v34, %v2768_v34 }
 0x222   : > { %v2887_v3 = vadd.f32 %v2886_v29, %v2768_v34  ;;  %v4196_v1 = vpop.f32.mrb[144].mxu0  ;;  %v2928_v39 = vmul.f32 %v2776_v44, %v2776_v44 }
 0x223   : > { %v3253_v16 = vadd.f32 %v4240_v19, %v3252_v0  ;;  %v3322_v62 = vadd.f32 %v3321_v35, %v3291_v48  ;;  %v4244_v2 = vpop.f32.mrb[144].mxu1  ;;  %v2957_v22 = vadd.f32 %v2956_v31, %v2926_v51  ;;  %v2789_v57 = vadd.f32 %v4196_v1, %v5548_v50  ;;  %v2780_v53 = vpop.f32.mrb[145].mxu0 }
 0x224   : > { %v2888_v40 = vadd.f32 %v2887_v3, %v2773_v17  ;;  %3226 = vst [vmem:[%s5588_s15 + $0x90] sm:$0xff] %v4244_v2  ;;  %v3145_v30 = vpop.f32.mrb[145].mxu1  ;;  %v2781_v15 = vadd.f32 %v2780_v53, %v5542_v36  ;;  %v4197_v47 = vpop.f32.mrb[146].mxu0  ;;  %v3296_v13 = vmul.f32 %v4244_v2, %v4244_v2 }
 0x225   : > { %v3323_v23 = vadd.f32 %v3322_v62, %v3292_v56  ;;  %3224 = vst [vmem:[%s5588_s15 + $0x80] sm:$0xff] %v3145_v30  ;;  %v3254_v6 = vadd.f32 %v4241_v10, %v3253_v16  ;;  %v3294_v55 = vmul.f32 %v3145_v30, %v3145_v30  ;;  %v4245_v19 = vpop.f32.mrb[146].mxu1  ;;  %v2958_v28 = vadd.f32 %v2957_v22, %v2927_v54  ;;  %v2783_v17 = vpop.f32.mrb[147].mxu0 }
 0x226   : > { %2861 = vst [vmem:[%s5595_s19 + $0x90] sm:$0xff] %v2789_v57  ;;  %v2889_v59 = vadd.f32 %v2888_v40, %v2776_v44  ;;  %v2792_v50 = vadd.f32 %v4197_v47, %v5550_v27  ;;  %3227 = vst [vmem:[%s5588_s15 + $0x98] sm:$0xff] %v4245_v19  ;;  %v3148_v58 = vpop.f32.mrb[147].mxu1  ;;  %v2929_v63 = vmul.f32 %v2781_v15, %v2781_v15 }
 0x227   : > { %2859 = vst [vmem:[%s5595_s19 + $0x80] sm:$0xff] %v2781_v15  ;;  %v3255_v36 = vadd.f32 %v3254_v6, %v3145_v30  ;;  %v3324_v61 = vadd.f32 %v3323_v23, %v3293_v5  ;;  %3225 = vst [vmem:[%s5588_s15 + $0x88] sm:$0xff] %v3148_v58  ;;  %v2959_v12 = vadd.f32 %v2958_v28, %v2928_v39 }
 0x228   : > { %v2890_v24 = vadd.f32 %v2889_v59, %v2781_v15  ;;  %2862 = vst [vmem:[%s5595_s19 + $0x98] sm:$0xff] %v2792_v50  ;;  %v2784_v20 = vadd.f32 %v2783_v17, %v5544_v33  ;;  %v3295_v7 = vmul.f32 %v3148_v58, %v3148_v58  ;;  %v2931_v44 = vmul.f32 %v2789_v57, %v2789_v57 }
 0x229   : > { %v3325_v49 = vadd.f32 %v3324_v61, %v3294_v55  ;;  %v3256_v10 = vadd.f32 %v3255_v36, %v3148_v58  ;;  %v2960_v41 = vadd.f32 %v2959_v12, %v2929_v63  ;;  %v3297_v29 = vmul.f32 %v4245_v19, %v4245_v19 }
 0x22a   : > { %2860 = vst [vmem:[%s5595_s19 + $0x88] sm:$0xff] %v2784_v20  ;;  %v2891_v27 = vadd.f32 %v2890_v24, %v2784_v20  ;;  %v2930_v14 = vmul.f32 %v2784_v20, %v2784_v20  ;;  %v4200_v38 = vpop.f32.mrb[148].mxu0  ;;  %v2932_v16 = vmul.f32 %v2792_v50, %v2792_v50 }
 0x22b   : > { %v3257_v8 = vadd.f32 %v4244_v2, %v3256_v10  ;;  %v3326_v21 = vadd.f32 %v3325_v49, %v3295_v7  ;;  %v4248_v43 = vpop.f32.mrb[148].mxu1  ;;  %v2805_v33 = vadd.f32 %v4200_v38, %v5560_v11  ;;  %v2796_v35 = vpop.f32.mrb[149].mxu0 }
 0x22c   : > { %v2892_v42 = vadd.f32 %v2891_v27, %v2789_v57  ;;  %v2961_v34 = vadd.f32 %v2960_v41, %v2930_v14  ;;  %3230 = vst [vmem:[%s5588_s15 + $0xb0] sm:$0xff] %v4248_v43  ;;  %v3161_v0 = vpop.f32.mrb[149].mxu1  ;;  %v2797_v31 = vadd.f32 %v2796_v35, %v5554_v18  ;;  %v4201_v54 = vpop.f32.mrb[150].mxu0  ;;  %v3300_v39 = vmul.f32 %v4248_v43, %v4248_v43 }
 0x22d   : > { %v3327_v48 = vadd.f32 %v3326_v21, %v3296_v13  ;;  %3228 = vst [vmem:[%s5588_s15 + $0xa0] sm:$0xff] %v3161_v0  ;;  %v3258_v3 = vadd.f32 %v4245_v19, %v3257_v8  ;;  %v3298_v51 = vmul.f32 %v3161_v0, %v3161_v0  ;;  %v4249_v56 = vpop.f32.mrb[150].mxu1  ;;  %2865 = vst [vmem:[%s5595_s19 + $0xb0] sm:$0xff] %v2805_v33  ;;  %v2799_v2 = vpop.f32.mrb[151].mxu0 }
 0x22e   : > { %v2962_v62 = vadd.f32 %v2961_v34, %v2931_v44  ;;  %v2893_v1 = vadd.f32 %v2892_v42, %v2792_v50  ;;  %v2808_v11 = vadd.f32 %v4201_v54, %v5562_v9  ;;  %3231 = vst [vmem:[%s5588_s15 + $0xb8] sm:$0xff] %v4249_v56  ;;  %v3164_v5 = vpop.f32.mrb[151].mxu1  ;;  %2863 = vst [vmem:[%s5595_s19 + $0xa0] sm:$0xff] %v2797_v31 }
 0x22f   : > { %v2933_v40 = vmul.f32 %v2797_v31, %v2797_v31  ;;  %v3259_v18 = vadd.f32 %v3258_v3, %v3161_v0  ;;  %v3328_v22 = vadd.f32 %v3327_v48, %v3297_v29  ;;  %3229 = vst [vmem:[%s5588_s15 + $0xa8] sm:$0xff] %v3164_v5  ;;  %v2800_v30 = vadd.f32 %v2799_v2, %v5556_v25 }
 0x230   : > { %v2894_v57 = vadd.f32 %v2893_v1, %v2797_v31  ;;  %v2963_v53 = vadd.f32 %v2962_v62, %v2932_v16  ;;  %2866 = vst [vmem:[%s5595_s19 + $0xb8] sm:$0xff] %v2808_v11  ;;  %v3299_v6 = vmul.f32 %v3164_v5, %v3164_v5  ;;  %v2935_v19 = vmul.f32 %v2805_v33, %v2805_v33 }
 0x231   : > { %v3329_v23 = vadd.f32 %v3328_v22, %v3298_v51  ;;  %v3260_v15 = vadd.f32 %v3259_v18, %v3164_v5  ;;  %2864 = vst [vmem:[%s5595_s19 + $0xa8] sm:$0xff] %v2800_v30  ;;  %v2934_v47 = vmul.f32 %v2800_v30, %v2800_v30  ;;  %v3301_v58 = vmul.f32 %v4249_v56, %v4249_v56 }
 0x232   : > { %v2964_v55 = vadd.f32 %v2963_v53, %v2933_v40  ;;  %v2895_v9 = vadd.f32 %v2894_v57, %v2800_v30  ;;  %v4204_v50 = vpop.f32.mrb[152].mxu0  ;;  %v2936_v27 = vmul.f32 %v2808_v11, %v2808_v11 }
 0x233   : > { %v3261_v28 = vadd.f32 %v4248_v43, %v3260_v15  ;;  %v3330_v59 = vadd.f32 %v3329_v23, %v3299_v6  ;;  %v4252_v17 = vpop.f32.mrb[152].mxu1  ;;  %v2821_v25 = vadd.f32 %v4204_v50, %v5572_v37  ;;  %v2812_v61 = vpop.f32.mrb[153].mxu0 }
 0x234   : > { %v2896_v63 = vadd.f32 %v2895_v9, %v2805_v33  ;;  %v2965_v36 = vadd.f32 %v2964_v55, %v2934_v47  ;;  %3234 = vst [vmem:[%s5588_s15 + $0xd0] sm:$0xff] %v4252_v17  ;;  %v3177_v24 = vpop.f32.mrb[153].mxu1  ;;  %v2813_v20 = vadd.f32 %v2812_v61, %v5566_v46  ;;  %v4205_v7 = vpop.f32.mrb[154].mxu0  ;;  %v3304_v3 = vmul.f32 %v4252_v17, %v4252_v17 }
 0x235   : > { %v3331_v12 = vadd.f32 %v3330_v59, %v3300_v39  ;;  %3232 = vst [vmem:[%s5588_s15 + $0xc0] sm:$0xff] %v3177_v24  ;;  %v3262_v49 = vadd.f32 %v4249_v56, %v3261_v28  ;;  %v3302_v10 = vmul.f32 %v3177_v24, %v3177_v24  ;;  %v4253_v41 = vpop.f32.mrb[154].mxu1  ;;  %2869 = vst [vmem:[%s5595_s19 + $0xd0] sm:$0xff] %v2821_v25  ;;  %v2815_v13 = vpop.f32.mrb[155].mxu0 }
 0x236   : > { %v2966_v14 = vadd.f32 %v2965_v36, %v2935_v19  ;;  %v2897_v44 = vadd.f32 %v2896_v63, %v2808_v11  ;;  %v2824_v37 = vadd.f32 %v4205_v7, %v5574_v32  ;;  %3235 = vst [vmem:[%s5588_s15 + $0xd8] sm:$0xff] %v4253_v41  ;;  %v3180_v8 = vpop.f32.mrb[155].mxu1  ;;  %2867 = vst [vmem:[%s5595_s19 + $0xc0] sm:$0xff] %v2813_v20 }
 0x237   : > { %v2937_v21 = vmul.f32 %v2813_v20, %v2813_v20  ;;  %v3263_v46 = vadd.f32 %v3262_v49, %v3177_v24  ;;  %v3332_v38 = vadd.f32 %v3331_v12, %v3301_v58  ;;  %3233 = vst [vmem:[%s5588_s15 + $0xc8] sm:$0xff] %v3180_v8  ;;  %v2816_v42 = vadd.f32 %v2815_v13, %v5568_v52 }
 0x238   : > { %v2898_v43 = vadd.f32 %v2897_v44, %v2813_v20  ;;  %v2967_v29 = vadd.f32 %v2966_v14, %v2936_v27  ;;  %2870 = vst [vmem:[%s5595_s19 + $0xd8] sm:$0xff] %v2824_v37  ;;  %v3303_v35 = vmul.f32 %v3180_v8, %v3180_v8  ;;  %v2939_v31 = vmul.f32 %v2821_v25, %v2821_v25 }
 0x239   : > { %v3333_v34 = vadd.f32 %v3332_v38, %v3302_v10  ;;  %v3264_v33 = vadd.f32 %v3263_v46, %v3180_v8  ;;  %2868 = vst [vmem:[%s5595_s19 + $0xc8] sm:$0xff] %v2816_v42  ;;  %v2938_v48 = vmul.f32 %v2816_v42, %v2816_v42  ;;  %v3305_v62 = vmul.f32 %v4253_v41, %v4253_v41 }
 0x23a   : > { %v2968_v0 = vadd.f32 %v2967_v29, %v2937_v21  ;;  %v2899_v32 = vadd.f32 %v2898_v43, %v2816_v42  ;;  %v4208_v56 = vpop.f32.mrb[156].mxu0  ;;  %v2940_v23 = vmul.f32 %v2824_v37, %v2824_v37 }
 0x23b   : > { %v3265_v51 = vadd.f32 %v4252_v17, %v3264_v33  ;;  %v3334_v54 = vadd.f32 %v3333_v34, %v3303_v35  ;;  %v4256_v16 = vpop.f32.mrb[156].mxu1  ;;  %v2837_v52 = vadd.f32 %v4208_v56, %v5590_v26  ;;  %v2828_v2 = vpop.f32.mrb[157].mxu0 }
 0x23c   : > { %v2900_v1 = vadd.f32 %v2899_v32, %v2821_v25  ;;  %v2969_v11 = vadd.f32 %v2968_v0, %v2938_v48  ;;  %3238 = vst [vmem:[%s5588_s15 + $0xf0] sm:$0xff] %v4256_v16  ;;  %v3193_v5 = vpop.f32.mrb[157].mxu1  ;;  %v2829_v18 = vadd.f32 %v2828_v2, %v5578_v4  ;;  %v4209_v53 = vpop.f32.mrb[158].mxu0  ;;  %v3308_v25 = vmul.f32 %v4256_v16, %v4256_v16 }
 0x23d   : > { %v3335_v40 = vadd.f32 %v3334_v54, %v3304_v3  ;;  %3236 = vst [vmem:[%s5588_s15 + $0xe0] sm:$0xff] %v3193_v5  ;;  %v3266_v22 = vadd.f32 %v4253_v41, %v3265_v51  ;;  %v3306_v57 = vmul.f32 %v3193_v5, %v3193_v5  ;;  %v4257_v30 = vpop.f32.mrb[158].mxu1  ;;  %2873 = vst [vmem:[%s5595_s19 + $0xf0] sm:$0xff] %v2837_v52  ;;  %v2831_v55 = vpop.f32.mrb[159].mxu0 }
 0x23e   : > { %v2970_v15 = vadd.f32 %v2969_v11, %v2939_v31  ;;  %v2901_v6 = vadd.f32 %v2900_v1, %v2824_v37  ;;  %v2840_v26 = vadd.f32 %v4209_v53, %v5597_v45  ;;  %3239 = vst [vmem:[%s5588_s15 + $0xf8] sm:$0xff] %v4257_v30  ;;  %v3196_v9 = vpop.f32.mrb[159].mxu1  ;;  %2871 = vst [vmem:[%s5595_s19 + $0xe0] sm:$0xff] %v2829_v18 }
 0x23f   : > { %v2941_v47 = vmul.f32 %v2829_v18, %v2829_v18  ;;  %v3267_v4 = vadd.f32 %v3266_v22, %v3193_v5  ;;  %v3336_v19 = vadd.f32 %v3335_v40, %v3305_v62  ;;  %3237 = vst [vmem:[%s5588_s15 + $0xe8] sm:$0xff] %v3196_v9  ;;  %v2832_v59 = vadd.f32 %v2831_v55, %v5580_v60 }
 0x240   : > { %v2902_v39 = vadd.f32 %v2901_v6, %v2829_v18  ;;  %v2971_v28 = vadd.f32 %v2970_v15, %v2940_v23  ;;  %2874 = vst [vmem:[%s5595_s19 + $0xf8] sm:$0xff] %v2840_v26  ;;  %v3307_v58 = vmul.f32 %v3196_v9, %v3196_v9  ;;  %v2943_v12 = vmul.f32 %v2837_v52, %v2837_v52 }
 0x241   : > { %v3337_v50 = vadd.f32 %v3336_v19, %v3306_v57  ;;  %v3268_v17 = vadd.f32 %v3267_v4, %v3196_v9  ;;  %2872 = vst [vmem:[%s5595_s19 + $0xe8] sm:$0xff] %v2832_v59  ;;  %v2942_v36 = vmul.f32 %v2832_v59, %v2832_v59  ;;  %v3309_v10 = vmul.f32 %v4257_v30, %v4257_v30 }
 0x242   : > { %v2972_v63 = vadd.f32 %v2971_v28, %v2941_v47  ;;  %v2903_v45 = vadd.f32 %v2902_v39, %v2832_v59  ;;  %v2944_v27 = vmul.f32 %v2840_v26, %v2840_v26 }
 0x243   : > { %v3269_v61 = vadd.f32 %v4256_v16, %v3268_v17  ;;  %v3338_v24 = vadd.f32 %v3337_v50, %v3307_v58 }
 0x244   : > { %v2904_v20 = vadd.f32 %v2903_v45, %v2837_v52  ;;  %v2973_v49 = vadd.f32 %v2972_v63, %v2942_v36 }
 0x245   : > { %v3270_v7 = vadd.f32 %v4257_v30, %v3269_v61  ;;  %v3339_v41 = vadd.f32 %v3338_v24, %v3308_v25 }
 0x246   : > { %v2905_v14 = vadd.f32 %v2904_v20, %v2840_v26  ;;  %v2974_v60 = vadd.f32 %v2973_v49, %v2943_v12 }
 0x247   : > { %v3271_v44 = vrot.slane %v3270_v7, 4  ;;  %v3340_v37 = vadd.f32 %v3339_v41, %v3309_v10 }
 0x248   : > { %v2906_v13 = vrot.slane %v2905_v14, 4  ;;  %v2975_v8 = vadd.f32 %v2974_v60, %v2944_v27 }
 0x249   : > { %v3272_v21 = vadd.f32 %v3271_v44, %v3270_v7  ;;  %v3341_v46 = vrot.slane %v3340_v37, 4 }
 0x24a   : > { %v2907_v38 = vadd.f32 %v2906_v13, %v2905_v14  ;;  %v2976_v43 = vrot.slane %v2975_v8, 4 }
 0x24b   : > { %v3273_v29 = vrot.slane %v3272_v21, 2  ;;  %v3342_v42 = vadd.f32 %v3341_v46, %v3340_v37 }
 0x24c   : > { %v2908_v34 = vrot.slane %v2907_v38, 2  ;;  %v2977_v33 = vadd.f32 %v2976_v43, %v2975_v8 }
 0x24d   : > { %v3274_v35 = vadd.f32 %v3273_v29, %v3272_v21  ;;  %v3343_v0 = vrot.slane %v3342_v42, 2 }
 0x24e   : > { %v2909_v32 = vadd.f32 %v2908_v34, %v2907_v38  ;;  %v2978_v48 = vrot.slane %v2977_v33, 2 }
 0x24f   : > { %v3275_v31 = vrot.slane %v3274_v35, 1  ;;  %v3344_v3 = vadd.f32 %v3343_v0, %v3342_v42 }
 0x250   : > { %v2910_v51 = vrot.slane %v2909_v32, 1  ;;  %v2979_v54 = vadd.f32 %v2978_v48, %v2977_v33 }
 0x251   : > { %v3276_v56 = vadd.f32 %v3275_v31, %v3274_v35  ;;  %v3345_v16 = vrot.slane %v3344_v3, 1 }
 0x252   : > { %v2911_v62 = vadd.f32 %v2910_v51, %v2909_v32  ;;  %v2980_v1 = vrot.slane %v2979_v54, 1 }
 0x253   : > { %3277 = vst [vmem:[%s284_s25] sm:$0x1] %v3276_v56  ;;  %v3346_v11 = vadd.f32 %v3345_v16, %v3344_v3 }
 0x254   : > { %v2981_v52 = vadd.f32 %v2980_v1, %v2979_v54  ;;  %2912 = vst [vmem:[%s275_s28] sm:$0x1] %v2911_v62 }
 0x255   : > { %3347 = vst [vmem:[%s284_s25 + $0x1] sm:$0x1] %v3346_v11 }
 0x256   : > { %2982 = vst [vmem:[%s275_s28 + $0x1] sm:$0x1] %v2981_v52 }
 0x257 PF: > { %s17_s21 = sadd.s32 1, %s4371_s21  }
 0x258   : > { %p14_p4 = scmp.ge.s32.totalorder %s17_s21, 4  }
 0x25a   :  { %16 = sbr.rel (!%p14_p4) target bundleno = 1 (0x1), region = 98 }

// kernel: residual_block.4
= control target key start
LH: loop header
LB: loop body
LE: loop exit
PB: predicated region body
PF: predicated region fallthrough
CT: control target
= control target key end

     0   :  { %s4729_s18 = smov 0   ;;  %s6322_s0 = inlined_call_operand.vmem [shape: f32[2,16,16,128], index: 0, kind: input, shape index: {}]   ;;  %s6323_s1 = inlined_call_operand.vmem [shape: f32[1,128], index: 1, kind: input, shape index: {}]   ;;  %s6324_s2 = inlined_call_operand.vmem [shape: f32[1,128], index: 2, kind: input, shape index: {}]   ;;  %s6325_s3 = inlined_call_operand.vmem [shape: bf16[1152,128], index: 3, kind: input, shape index: {}]   ;;  %s6326_s4 = inlined_call_operand.vmem [shape: f32[2,16,16,128], index: 4, kind: output, shape index: {0}]   ;;  %s6327_s5 = inlined_call_operand.vmem [shape: f32[2,2,128], index: 5, kind: output, shape index: {1}]  }
   0x1 LB: > { %s3815_s19 = sadd.s32 4294967295, %s4696_s18   ;;  %p3819_p0 = scmp.ge.s32.totalorder %s4696_s18, 1  ;;  %s4696_s18 = sphi %s4729_s18, %s16_s18  }
   0x2   : > { %p190_p1 = scmp.lt.s32.totalorder %s4696_s18, 3 }
   0x4   : > { %p191_p2 = pnand %p3819_p0, %p190_p1 }
   0x6   : > { %194 = sbr.rel (%p191_p2) target bundleno = 644 (0x284), region = 36 }
   0xd   : > { %v4584_v0 = vld [vmem:[%s6325_s3 + $0x40] sm:$0xff]   ;;  %v4698_v2 = vmov 0   ;;  %v4586_v3 = vld [vmem:[%s6325_s3 + $0x48] sm:$0xff]   ;;  %v4588_v5 = vld [vmem:[%s6325_s3 + $0x50] sm:$0xff]   ;;  %p222_p3 = scmp.lt.s32.totalorder %s3815_s19, 1  ;;  %vm402_vm0 = vcmask 1040384  }
   0xe   : > { %v4585_v1 = vld [vmem:[%s6325_s3] sm:$0xff]   ;;  %395 = vst [vmem:[#allocation2] sm:$0xf] %v4698_v2  ;;  %396 = vst [vmem:[#allocation2 + $0x4] sm:$0xf] %v4698_v2  ;;  %4039 = vmatprep.subr.bf16.mxu0 %v4584_v0  ;;  %4559 = vmatprep.subr.bf16.mxu1 %v4584_v0  ;;  %v4587_v4 = vld [vmem:[%s6325_s3 + $0x8] sm:$0xff]  }
   0xf   : > { %397 = vst [vmem:[#allocation2 + $0x8] sm:$0x1] %v4698_v2  ;;  %399 = vst [vmem:[#allocation2 + $0xcc] sm:$0xf] %v4698_v2  ;;  %4040 = vmatpush3.bf16.msra.mxu0 %v4585_v1  ;;  %4567 = vmatpush3.bf16.msra.mxu1 %v4585_v1  ;;  %v4589_v6 = vld [vmem:[%s6325_s3 + $0x10] sm:$0xff]   ;;  %v4590_v7 = vld [vmem:[%s6325_s3 + $0x58] sm:$0xff]  }
  0x10   : > { %400 = vst [vmem:[#allocation2 + $0xd0] sm:$0xf] %v4698_v2  ;;  %401 = vst [vmem:[#allocation2 + $0xd4] sm:$0x1] %v4698_v2  ;;  %4041 = vmatprep.subr.bf16.mxu0 %v4586_v3  ;;  %4560 = vmatprep.subr.bf16.mxu1 %v4586_v3  ;;  %s6378_s19 = smov (!%p222_p3, %s3815_s19), 1  ;;  %v4591_v8 = vld [vmem:[%s6325_s3 + $0x18] sm:$0xff]  }
  0x11   : > { %v4592_v9 = vld [vmem:[%s6325_s3 + $0x60] sm:$0xff]   ;;  %s4005_s13 = sshll.u32 %s6378_s19, 8  ;;  %v4594_v11 = vld [vmem:[%s6325_s3 + $0x68] sm:$0xff]   ;;  %vm403_vm1 = vsmask.f32 256  ;;  %vm1681_vm4 = vcmask 1042432  }
  0x12   : > { %v4593_v10 = vld [vmem:[%s6325_s3 + $0x20] sm:$0xff]   ;;  %s4782_s22 = scalar_lea.vmem %s6322_s0, %s4005_s13  ;;  %vm459_vm2 = vsmask.f32 7938  ;;  %v4595_v13 = vld [vmem:[%s6325_s3 + $0x28] sm:$0xff]   ;;  %vm4789_vm3 = vmand %vm402_vm0, %vm403_vm1  ;;  %vm1682_vm5 = vcmask 1046532   ;;  %vm918_vm8 = vcmask 1043456   ;;  %s6219_s7 = scalar_lea.vmem %s6326_s4, %s4005_s13 }
  0x13   : > { %4042 = vmatpush3.bf16.msra.mxu0 %v4587_v4  ;;  %4568 = vmatpush3.bf16.msra.mxu1 %v4587_v4  ;;  %vm4799_vm6 = vmand %vm402_vm0, %vm459_vm2  ;;  %vm1198_vm7 = vsmask.f32 3328  ;;  %v259_v21 = vld [vmem:[%s4782_s22 + $0xb0] sm:$0xff]  ;;  %v260_v25 = vld [vmem:[%s4782_s22 + $0xb8] sm:$0xff]  ;;  %vm1199_vm9 = vsmask.f32 7440 }
  0x14   : > { %4043 = vmatprep.subr.bf16.mxu0 %v4588_v5  ;;  %4561 = vmatprep.subr.bf16.mxu1 %v4588_v5  ;;  %v4596_v22 = vld [vmem:[%s6325_s3 + $0x70] sm:$0xff]   ;;  %v4816_v26 = vld [vmem:[%s6323_s1] ss:$0 sm:$0xff]  ;;  %v497_v35 = vld [vmem:[#allocation2 + $0x98] sm:$0x1]  ;;  %s3824_s13 = sshll.u32 %s6378_s19, 1 }
  0x15   : > { %v405_v12 = vld [vmem:[#allocation2] sm:$0x1]  ;;  %v4793_v16 = vld [vmem:[#allocation2 + $0x4] sm:$0xf]  ;;  %v298_v29 = vmul.f32 %v4816_v26, %v259_v21  ;;  %v299_v30 = vmul.f32 %v4816_v26, %v260_v25  ;;  %v441_v32 = vld [vmem:[#allocation2 + $0x90] sm:$0x1]  ;;  %s235_s10 = scalar_lea.vmem %s6327_s5, %s3824_s13 }
  0x16   : > { %v461_v15 = vld [vmem:[#allocation2 + $0x8] sm:$0x1]  ;;  %v406_v17 = vsel %vm4789_vm3, 0, %v405_v12  ;;  %v1211_v19 = vshll.u32 %v4793_v16, 16  ;;  %v1215_v20 = vshrl.u32 %v4793_v16, 16  ;;  %v1686_v24 = vrot.slane %v4793_v16, 5  ;;  %vm4864_vm11 = vmor %vm1681_vm4, %vm1682_vm5 }
  0x17   : > { %4044 = vmatpush3.bf16.msra.mxu0 %v4589_v6  ;;  %4569 = vmatpush3.bf16.msra.mxu1 %v4589_v6  ;;  %407 = vst [vmem:[#allocation2] sm:$0x1] %v406_v17  ;;  %v462_v23 = vsel %vm4799_vm6, 0, %v461_v15  ;;  %v4825_v31 = vld [vmem:[%s6324_s2] ss:$0 sm:$0xff]  ;;  %v4597_v33 = vld [vmem:[%s6325_s3 + $0x30] sm:$0xff]   ;;  %vm4876_vm12 = vmor %vm1198_vm7, %vm1199_vm9 }
  0x18   : > { %4045 = vmatprep.subr.bf16.mxu0 %v4590_v7  ;;  %4562 = vmatprep.subr.bf16.mxu1 %v4590_v7  ;;  %463 = vst [vmem:[#allocation2 + $0x8] sm:$0x1] %v462_v23  ;;  %v4818_v27 = vrot.slane %v1211_v19, 5  ;;  %v1217_v28 = vrot.slane %v1215_v20, 4  ;;  %v442_v34 = vsel %vm4789_vm3, 0, %v441_v32  ;;  %v4598_v36 = vld [vmem:[%s6325_s3 + $0x78] sm:$0xff]   ;;  %v337_v38 = vadd.f32 %v4825_v31, %v298_v29  ;;  %vm4887_vm13 = vmand %vm918_vm8, %vm459_vm2 }
  0x19   : > { %v338_v39 = vadd.f32 %v4825_v31, %v299_v30  ;;  %443 = vst [vmem:[#allocation2 + $0x90] sm:$0x1] %v442_v34  ;;  %v498_v40 = vsel %vm4799_vm6, 0, %v497_v35  ;;  %vm595_vm10 = vsmask.f32 4368  ;;  %v1688_v42 = vrot.slane %v1686_v24, 4 }
  0x1a   : > { %v1218_v37 = vor.u32 %v1217_v28, %v4818_v27  ;;  %499 = vst [vmem:[#allocation2 + $0x98] sm:$0x1] %v498_v40  ;;  %v369_v43 = vmax.f32 %v337_v38, 0.0  ;;  %v237_v45 = vld [vmem:[%s4782_s22] sm:$0xff]  ;;  %v238_v46 = vld [vmem:[%s4782_s22 + $0x8] sm:$0xff]  ;;  %v4599_v47 = vld [vmem:[%s6325_s3 + $0x38] sm:$0xff]  }
  0x1b   : > { %4046 = vmatpush3.bf16.msra.mxu0 %v4591_v8  ;;  %4570 = vmatpush3.bf16.msra.mxu1 %v4591_v8  ;;  %v370_v44 = vmax.f32 %v338_v39, 0.0  ;;  %v276_v48 = vmul.f32 %v4816_v26, %v237_v45  ;;  %v277_v49 = vmul.f32 %v4816_v26, %v238_v46  ;;  %v408_v50 = vld [vmem:[#allocation2 + $0xc] sm:$0x1]  ;;  %v464_v51 = vld [vmem:[#allocation2 + $0x14] sm:$0x1]  ;;  %v4601_v55 = vld [vmem:[%s6325_s3 + $0xc0] sm:$0xff]  }
  0x1c   : > { %4047 = vmatprep.subr.bf16.mxu0 %v4592_v9  ;;  %4563 = vmatprep.subr.bf16.mxu1 %v4592_v9  ;;  %v4840_v41 = vrot.slane %v1218_v37, 4  ;;  %v4029_v53 = vpack.c.bf16 %v369_v43, %v369_v43  ;;  %v409_v56 = vsel %vm4789_vm3, 0, %v408_v50  ;;  %v465_v57 = vsel %vm4799_vm6, 0, %v464_v51  ;;  %v4602_v0 = vld [vmem:[%s6325_s3 + $0x140] sm:$0xff]   ;;  %vm4903_vm14 = vmor %vm403_vm1, %vm595_vm10  ;;  %v262_v39 = vld [vmem:[%s4782_s22 + $0xc8] sm:$0xff] }
  0x1d   : > { %v4030_v54 = vpack.c.bf16 %v370_v44, %v370_v44  ;;  %410 = vst [vmem:[#allocation2 + $0xc] sm:$0x1] %v409_v56  ;;  %466 = vst [vmem:[#allocation2 + $0x14] sm:$0x1] %v465_v57  ;;  %v315_v15 = vadd.f32 %v4825_v31, %v276_v48  ;;  %v316_v21 = vadd.f32 %v4825_v31, %v277_v49  ;;  %v444_v46 = vld [vmem:[#allocation2 + $0x9c] sm:$0x1] }
  0x1e   : > { %v4851_v52 = vld [vmem:[#allocation2] sm:$0xf]  ;;  %v785_v3 = vshrl.u32 %v4029_v53, 16  ;;  %v788_v4 = vshll.u32 %v4029_v53, 16  ;;  %v301_v51 = vmul.f32 %v4816_v26, %v262_v39  ;;  %v239_v53 = vld [vmem:[%s4782_s22 + $0x10] sm:$0xff]  ;;  %v4666_v25 = vld [vmem:[%s6325_s3 + $0x218] sm:$0xff]  }
  0x1f   : > { %4048 = vmatpush3.bf16.msra.mxu0 %v4593_v10  ;;  %4571 = vmatpush3.bf16.msra.mxu1 %v4593_v10  ;;  %v1034_v58 = vld [vmem:[#allocation2 + $0x8] sm:$0x1]  ;;  %v1202_v59 = vshrl.u32 %v4851_v52, 16  ;;  %v1205_v60 = vshll.u32 %v4851_v52, 16  ;;  %v3891_v62 = vrot.slane %v4851_v52, 9  ;;  %v3859_v63 = vcombine.low %v4851_v52, %v4793_v16 }
  0x20   : > { %4049 = vmatprep.subr.bf16.mxu0 %v4594_v11  ;;  %4564 = vmatprep.subr.bf16.mxu1 %v4594_v11  ;;  %v1221_v1 = vshll.u32 %v1034_v58, 16  ;;  %v1689_v2 = vrot.slane %v1034_v58, 5  ;;  %v793_v8 = vshrl.u32 %v4030_v54, 16  ;;  %v796_v9 = vshll.u32 %v4030_v54, 16 }
  0x21   : > { %v1204_v6 = vrot.slane %v1202_v59, 4  ;;  %v1207_v7 = vrot.slane %v1205_v60, 5  ;;  %v787_v12 = vrot.slane %v785_v3, 7  ;;  %v1001_v30 = vld [vmem:[#allocation2 + $0x98] sm:$0x1]  ;;  %v347_v32 = vmax.f32 %v315_v15, 0.0 }
  0x22   : > { %v1223_v10 = vrot.slane %v1221_v1, 5  ;;  %v4882_v11 = vsel %vm4864_vm11, %v1688_v42, %v1689_v2  ;;  %v795_v19 = vrot.slane %v793_v8, 7  ;;  %v348_v35 = vmax.f32 %v316_v21, 0.0  ;;  %v240_v59 = vld [vmem:[%s4782_s22 + $0x18] sm:$0xff] }
  0x23   : > { %4050 = vmatpush3.bf16.msra.mxu0 %v4595_v13  ;;  %4572 = vmatpush3.bf16.msra.mxu1 %v4595_v13  ;;  %v997_v13 = vld [vmem:[#allocation2 + $0x90] sm:$0xf]  ;;  %v1208_v17 = vor.u32 %v1207_v7, %v1204_v6  ;;  %v790_v28 = vor.u32 %v788_v4, %v787_v12  ;;  %v791_v29 = vrot.slane %v787_v12, 4  ;;  %v4007_v38 = vpack.c.bf16 %v347_v32, %v347_v32  ;;  %v411_v60 = vld [vmem:[#allocation2 + $0x18] sm:$0x1] }
  0x24   : > { %4051 = vmatprep.subr.bf16.mxu0 %v4596_v22  ;;  %4565 = vmatprep.subr.bf16.mxu1 %v4596_v22  ;;  %v4896_v22 = vsel %vm4864_vm11, %v3891_v62, %v1686_v24  ;;  %v1224_v23 = vsel %vm4876_vm12, %v4840_v41, %v1223_v10  ;;  %v798_v24 = vor.u32 %v796_v9, %v795_v19  ;;  %v800_v34 = vrot.slane %v795_v19, 4  ;;  %v920_v56 = vld [vmem:[#allocation2 + $0xc] sm:$0xf]  ;;  %v467_v4 = vld [vmem:[#allocation2 + $0x20] sm:$0x1] }
  0x25   : > { %v998_v37 = vsel %vm4887_vm13, %v790_v28, %v997_v13  ;;  %v3907_v41 = vcombine.low %v4896_v22, %v4882_v11  ;;  %v4008_v45 = vpack.c.bf16 %v348_v35, %v348_v35  ;;  %v598_v49 = vshrl.u32 %v4007_v38, 16 }
  0x26   : > { %v799_v43 = vsel %vm4903_vm14, %v791_v29, %v798_v24  ;;  %999 = vst [vmem:[#allocation2 + $0x90] sm:$0xf] %v998_v37  ;;  %v1002_v44 = vsel %vm4789_vm3, %v800_v34, %v1001_v30  ;;  %v601_v50 = vshll.u32 %v4007_v38, 16  ;;  %v445_v58 = vsel %vm4789_vm3, 0, %v444_v46  ;;  %v4614_v30 = vld [vmem:[%s6325_s3 + $0x148] sm:$0xff]  }
  0x27   : > { %4052 = vmatpush3.bf16.msra.mxu0 %v4597_v33  ;;  %4573 = vmatpush3.bf16.msra.mxu1 %v4597_v33  ;;  %v1209_v33 = vrot.slane %v1208_v17, 4  ;;  %1000 = vst [vmem:[#allocation2 + $0x94] sm:$0xf] %v799_v43  ;;  %1003 = vst [vmem:[#allocation2 + $0x98] sm:$0x1] %v1002_v44  ;;  %v606_v54 = vshrl.u32 %v4008_v45, 16  ;;  %v340_v1 = vadd.f32 %v4825_v31, %v301_v51 }
  0x28   : > { %4053 = vmatprep.subr.bf16.mxu0 %v4598_v36  ;;  %4566 = vmatprep.subr.bf16.mxu1 %v4598_v36  ;;  %v261_v36 = vld [vmem:[%s4782_s22 + $0xc0] sm:$0xff]  ;;  %v600_v62 = vrot.slane %v598_v49, 7  ;;  %446 = vst [vmem:[#allocation2 + $0x9c] sm:$0x1] %v445_v58  ;;  %v278_v3 = vmul.f32 %v4816_v26, %v239_v53  ;;  %v279_v8 = vmul.f32 %v4816_v26, %v240_v59  ;;  %v412_v9 = vsel %vm4789_vm3, 0, %v411_v60 }
  0x29   : > { %v300_v40 = vmul.f32 %v4816_v26, %v261_v36  ;;  %v1214_v42 = vsel %vm4876_vm12, %v1209_v33, %v4818_v27  ;;  %v4605_v27 = vld [vmem:[%s6325_s3 + $0x100] sm:$0xff]   ;;  %v608_v6 = vrot.slane %v606_v54, 7  ;;  %v372_v13 = vmax.f32 %v340_v1, 0.0  ;;  %413 = vst [vmem:[#allocation2 + $0x18] sm:$0x1] %v412_v9 }
  0x2a   : > { %v3875_v48 = vcombine.low %v1214_v42, %v1224_v23  ;;  %v603_v10 = vor.u32 %v601_v50, %v600_v62  ;;  %v604_v12 = vrot.slane %v600_v62, 4  ;;  %v317_v15 = vadd.f32 %v4825_v31, %v278_v3  ;;  %v4616_v42 = vld [vmem:[%s6325_s3 + $0x108] sm:$0xff]  }
  0x2b   : > { %4054 = vmatpush3.bf16.msra.mxu0 %v4599_v47  ;;  %4574 = vmatpush3.bf16.msra.mxu1 %v4599_v47  ;;  %v500_v47 = vld [vmem:[#allocation2 + $0xa4] sm:$0x1]  ;;  %v339_v57 = vadd.f32 %v4825_v31, %v300_v40  ;;  %v613_v19 = vrot.slane %v608_v6, 4  ;;  %v318_v16 = vadd.f32 %v4825_v31, %v279_v8  ;;  %v4032_v23 = vpack.c.bf16 %v372_v13, %v372_v13 }
  0x2c   : > { %4151 = vmatprep.subr.bf16.mxu1 %v4601_v55  ;;  %4263 = vmatprep.subr.bf16.mxu0 %v4602_v0  ;;  %v609_v55 = vshll.u32 %v4008_v45, 16  ;;  %v924_v0 = vld [vmem:[#allocation2 + $0x14] sm:$0x1]  ;;  %v501_v2 = vsel %vm4799_vm6, 0, %v500_v47  ;;  %v349_v28 = vmax.f32 %v317_v15, 0.0  ;;  %v468_v29 = vsel %vm4799_vm6, 0, %v467_v4 }
  0x2d   : > { %2816 = vmatprep.mubr.bf16.mxu0 %v3875_v48  ;;  %v371_v7 = vmax.f32 %v339_v57, 0.0  ;;  %502 = vst [vmem:[#allocation2 + $0xa4] sm:$0x1] %v501_v2  ;;  %v1068_v52 = vld [vmem:[#allocation2 + $0x90] sm:$0xf]  ;;  %v925_v36 = vsel %vm4789_vm3, %v613_v19, %v924_v0  ;;  %v810_v50 = vshrl.u32 %v4032_v23, 16 }
  0x2e   : > { %2817 = vmatmul.mubr.bf16.vlgmr.msra.gmra.mrb[0].mxu0 %v3859_v63  ;;  %v611_v17 = vor.u32 %v609_v55, %v608_v6  ;;  %v921_v63 = vsel %vm4887_vm13, %v603_v10, %v920_v56  ;;  %v1069_v32 = vld [vmem:[#allocation2 + $0x94] sm:$0xf]  ;;  %v1070_v33 = vld [vmem:[#allocation2 + $0x98] sm:$0x1]  ;;  %v1490_v24 = vshrl.u32 %v1068_v52, 16  ;;  %v1493_v34 = vshll.u32 %v1068_v52, 16 }
  0x2f   : > { %4264 = vmatpush3.bf16.msra.mxu0 %v4605_v27  ;;  %v4031_v21 = vpack.c.bf16 %v371_v7, %v371_v7  ;;  %922 = vst [vmem:[#allocation2 + $0xc] sm:$0xf] %v921_v63  ;;  %469 = vst [vmem:[#allocation2 + $0x20] sm:$0x1] %v468_v29  ;;  %v1499_v37 = vshll.u32 %v1069_v32, 16  ;;  %v1503_v38 = vshrl.u32 %v1069_v32, 16  ;;  %v4953_v40 = vcombine.low %v1068_v52, %v1069_v32 }
  0x30   : > { %v612_v35 = vsel %vm4903_vm14, %v604_v12, %v611_v17  ;;  %v1509_v39 = vshll.u32 %v1070_v33, 16  ;;  %926 = vst [vmem:[#allocation2 + $0x14] sm:$0x1] %v925_v36  ;;  %4265 = vmatprep.subr.bf16.mxu0 %v4614_v30  ;;  %v1492_v43 = vrot.slane %v1490_v24, 4  ;;  %v1495_v44 = vrot.slane %v1493_v34, 5  ;;  %v263_v56 = vld [vmem:[%s4782_s22 + $0xd0] sm:$0xff] }
  0x31   : > { %923 = vst [vmem:[#allocation2 + $0x10] sm:$0xf] %v612_v35  ;;  %v802_v45 = vshrl.u32 %v4031_v21, 16  ;;  %v805_v46 = vshll.u32 %v4031_v21, 16  ;;  %v1501_v47 = vrot.slane %v1499_v37, 5  ;;  %v1505_v48 = vrot.slane %v1503_v38, 4 }
  0x32   : > { %v1511_v49 = vrot.slane %v1509_v39, 5  ;;  %v1496_v27 = vor.u32 %v1495_v44, %v1492_v43  ;;  %v813_v53 = vshll.u32 %v4032_v23, 16  ;;  %v1004_v54 = vld [vmem:[#allocation2 + $0x9c] sm:$0xf]  ;;  %v350_v55 = vmax.f32 %v318_v16, 0.0  ;;  %v4604_v30 = vld [vmem:[%s6325_s3 + $0x80] sm:$0xff]  }
  0x33   : > { %4266 = vmatpush3.bf16.msra.mxu0 %v4616_v42  ;;  %v804_v51 = vrot.slane %v802_v45, 7  ;;  %v1506_v57 = vor.u32 %v1505_v48, %v1501_v47  ;;  %v812_v58 = vrot.slane %v810_v50, 7  ;;  %v4009_v59 = vpack.c.bf16 %v349_v28, %v349_v28  ;;  %v264_v33 = vld [vmem:[%s4782_s22 + $0xd8] sm:$0xff]  ;;  %v4607_v36 = vld [vmem:[%s6325_s3 + $0xc8] sm:$0xff]  }
  0x34   : > { %v302_v60 = vmul.f32 %v4816_v26, %v263_v56  ;;  %v1497_v62 = vrot.slane %v1496_v27, 4  ;;  %v4960_v2 = vpack.c.bf16 %v350_v55, %v350_v55  ;;  %v1008_v63 = vld [vmem:[#allocation2 + $0xa4] sm:$0x1]  ;;  %v927_v38 = vld [vmem:[#allocation2 + $0x18] sm:$0xf]  ;;  %v303_v50 = vmul.f32 %v4816_v26, %v264_v33 }
  0x35   : > { %v807_v0 = vor.u32 %v805_v46, %v804_v51  ;;  %v808_v1 = vrot.slane %v804_v51, 4  ;;  %v1507_v3 = vrot.slane %v1506_v57, 4  ;;  %v815_v6 = vor.u32 %v813_v53, %v812_v58  ;;  %v447_v45 = vld [vmem:[#allocation2 + $0xa8] sm:$0x1]  ;;  %v503_v46 = vld [vmem:[#allocation2 + $0xb0] sm:$0x1] }
  0x36   : > { %v4962_v4 = vld [vmem:[#allocation2 + $0xc] sm:$0xf]  ;;  %v817_v7 = vrot.slane %v812_v58, 4  ;;  %v615_v8 = vshrl.u32 %v4009_v59, 16  ;;  %v1502_v9 = vsel %vm4876_vm12, %v1497_v62, %v1501_v47  ;;  %v618_v44 = vshll.u32 %v4009_v59, 16  ;;  %v4609_v53 = vld [vmem:[%s6325_s3 + $0xd0] sm:$0xff]  }
  0x37   : > { %v4968_v12 = vld [vmem:[#allocation2 + $0x14] sm:$0x1]  ;;  %v1226_v13 = vshrl.u32 %v4962_v4, 16  ;;  %v1229_v15 = vshll.u32 %v4962_v4, 16  ;;  %v1005_v17 = vsel %vm4887_vm13, %v807_v0, %v1004_v54  ;;  %v1512_v19 = vsel %vm4876_vm12, %v1507_v3, %v1511_v49  ;;  %v4608_v51 = vld [vmem:[%s6325_s3 + $0x88] sm:$0xff]   ;;  %v241_v0 = vld [vmem:[%s4782_s22 + $0x20] sm:$0xff] }
  0x38   : > { %v4966_v10 = vld [vmem:[#allocation2 + $0x10] sm:$0xf]  ;;  %v1245_v52 = vshll.u32 %v4968_v12, 16  ;;  %1006 = vst [vmem:[#allocation2 + $0x9c] sm:$0xf] %v1005_v17  ;;  %v4979_v23 = vcombine.low %v1502_v9, %v1512_v19  ;;  %v816_v37 = vsel %vm4903_vm14, %v808_v1, %v815_v6  ;;  %v1009_v42 = vsel %vm4789_vm3, %v817_v7, %v1008_v63 }
  0x39   : > { %v1235_v21 = vshll.u32 %v4966_v10, 16  ;;  %v1239_v16 = vshrl.u32 %v4966_v10, 16  ;;  %v1228_v28 = vrot.slane %v1226_v13, 4  ;;  %v1231_v29 = vrot.slane %v1229_v15, 5  ;;  %1007 = vst [vmem:[#allocation2 + $0xa0] sm:$0xf] %v816_v37 }
  0x3a   : > { %6357 = vst [vmem:[#allocation4_spill] sm:$0xff] %v4979_v23  ;;  %v4986_v32 = vcombine.low %v4962_v4, %v4966_v10  ;;  %v1247_v35 = vrot.slane %v1245_v52, 5  ;;  %2912 = vmatprep.mubr.bf16.mxu1 %v4979_v23  ;;  %v617_v43 = vrot.slane %v615_v8, 7  ;;  %1010 = vst [vmem:[#allocation2 + $0xa4] sm:$0x1] %v1009_v42  ;;  %v623_v48 = vshrl.u32 %v4960_v2, 16 }
  0x3b   : > { %v1237_v24 = vrot.slane %v1235_v21, 5  ;;  %v1241_v34 = vrot.slane %v1239_v16, 4  ;;  %v1232_v39 = vor.u32 %v1231_v29, %v1228_v28  ;;  %2913 = vmatmul.mubr.bf16.vlgmr.msra.gmra.mrb[0].mxu1 %v4953_v40  ;;  %v626_v49 = vshll.u32 %v4960_v2, 16  ;;  %v931_v15 = vld [vmem:[#allocation2 + $0x20] sm:$0x1]  ;;  %v4611_v21 = vld [vmem:[%s6325_s3 + $0x90] sm:$0xff]  }
  0x3c   : > { %4152 = vmatpush3.bf16.msra.mxu1 %v4604_v30  ;;  %v620_v54 = vor.u32 %v618_v44, %v617_v43  ;;  %v621_v55 = vrot.slane %v617_v43, 4  ;;  %v341_v56 = vadd.f32 %v4825_v31, %v302_v60  ;;  %v625_v58 = vrot.slane %v623_v48, 7  ;;  %v4613_v16 = vld [vmem:[%s6325_s3 + $0xd8] sm:$0xff]   ;;  %v242_v28 = vld [vmem:[%s4782_s22 + $0x28] sm:$0xff] }
  0x3d   : > { %v1242_v47 = vor.u32 %v1241_v34, %v1237_v24  ;;  %v1233_v27 = vrot.slane %v1232_v39, 4  ;;  %4153 = vmatprep.subr.bf16.mxu1 %v4607_v36  ;;  %v342_v59 = vadd.f32 %v4825_v31, %v303_v50  ;;  %v448_v62 = vsel %vm4789_vm3, 0, %v447_v45 }
  0x3e   : > { %v928_v3 = vsel %vm4887_vm13, %v620_v54, %v927_v38  ;;  %v373_v6 = vmax.f32 %v341_v56, 0.0  ;;  %449 = vst [vmem:[#allocation2 + $0xa8] sm:$0x1] %v448_v62  ;;  %v504_v60 = vsel %vm4799_vm6, 0, %v503_v46  ;;  %v628_v13 = vor.u32 %v626_v49, %v625_v58  ;;  %v4624_v46 = vld [vmem:[%s6325_s3 + $0x150] sm:$0xff]   ;;  %v4615_v49 = vld [vmem:[%s6325_s3 + $0x98] sm:$0xff]  }
  0x3f   : > { %v1243_v57 = vrot.slane %v1242_v47, 4  ;;  %v1238_v1 = vsel %vm4876_vm12, %v1233_v27, %v1237_v24  ;;  %v1071_v2 = vld [vmem:[#allocation2 + $0x9c] sm:$0xf]  ;;  %929 = vst [vmem:[#allocation2 + $0x18] sm:$0xf] %v928_v3  ;;  %v630_v19 = vrot.slane %v625_v58, 4  ;;  %v280_v34 = vmul.f32 %v4816_v26, %v241_v0  ;;  %4267 = vmatprep.subr.bf16.mxu0 %v4624_v46 }
  0x40   : > { %v1514_v8 = vshrl.u32 %v1071_v2, 16  ;;  %v1517_v9 = vshll.u32 %v1071_v2, 16  ;;  %505 = vst [vmem:[#allocation2 + $0xb0] sm:$0x1] %v504_v60  ;;  %4154 = vmatpush3.bf16.msra.mxu1 %v4608_v51  ;;  %v374_v52 = vmax.f32 %v342_v59, 0.0  ;;  %v4033_v63 = vpack.c.bf16 %v373_v6, %v373_v6  ;;  %v4617_v56 = vld [vmem:[%s6325_s3 + $0xe0] sm:$0xff]  }
  0x41   : > { %v1248_v7 = vsel %vm4876_vm12, %v1243_v57, %v1247_v35  ;;  %v1072_v29 = vld [vmem:[#allocation2 + $0xa0] sm:$0xf]  ;;  %4155 = vmatprep.subr.bf16.mxu1 %v4609_v53  ;;  %v629_v24 = vsel %vm4903_vm14, %v621_v55, %v628_v13  ;;  %v1073_v35 = vld [vmem:[#allocation2 + $0xa4] sm:$0x1]  ;;  %v932_v38 = vsel %vm4789_vm3, %v630_v19, %v931_v15  ;;  %v281_v27 = vmul.f32 %v4816_v26, %v242_v28 }
  0x42   : > { %v5020_v17 = vcombine.low %v1238_v1, %v1248_v7  ;;  %v1516_v30 = vrot.slane %v1514_v8, 4  ;;  %v1519_v33 = vrot.slane %v1517_v9, 5  ;;  %v1523_v36 = vshll.u32 %v1072_v29, 16  ;;  %930 = vst [vmem:[#allocation2 + $0x1c] sm:$0xf] %v629_v24  ;;  %v4619_v8 = vld [vmem:[%s6325_s3 + $0xa0] sm:$0xff]  }
  0x43   : > { %v1527_v37 = vshrl.u32 %v1072_v29, 16  ;;  %v5035_v39 = vcombine.low %v1071_v2, %v1072_v29  ;;  %v1533_v43 = vshll.u32 %v1073_v35, 16  ;;  %933 = vst [vmem:[#allocation2 + $0x20] sm:$0x1] %v932_v38  ;;  %v4034_v44 = vpack.c.bf16 %v374_v52, %v374_v52  ;;  %v414_v7 = vld [vmem:[#allocation2 + $0x24] sm:$0x1] }
  0x44   : > { %2824 = vmatprep.mubr.bf16.mxu0 %v5020_v17  ;;  %v1520_v42 = vor.u32 %v1519_v33, %v1516_v30  ;;  %v819_v45 = vshrl.u32 %v4033_v63, 16  ;;  %v1525_v47 = vrot.slane %v1523_v36, 5  ;;  %4156 = vmatpush3.bf16.msra.mxu1 %v4611_v21  ;;  %v822_v50 = vshll.u32 %v4033_v63, 16  ;;  %v470_v21 = vld [vmem:[#allocation2 + $0x2c] sm:$0x1] }
  0x45   : > { %2825 = vmatmul.mubr.bf16.gmra.mrb[4].mxu0 %v4986_v32  ;;  %v1529_v48 = vrot.slane %v1527_v37, 4  ;;  %v1535_v53 = vrot.slane %v1533_v43, 5  ;;  %4157 = vmatprep.subr.bf16.mxu1 %v4613_v16  ;;  %v827_v55 = vshrl.u32 %v4034_v44, 16  ;;  %v830_v59 = vshll.u32 %v4034_v44, 16  ;;  %v1011_v62 = vld [vmem:[#allocation2 + $0xa8] sm:$0xf] }
  0x46   : > { %v1521_v51 = vrot.slane %v1520_v42, 4  ;;  %v821_v54 = vrot.slane %v819_v45, 7  ;;  %v5048_v58 = vld [vmem:[#allocation2 + $0x18] sm:$0xf]  ;;  %v319_v0 = vadd.f32 %v4825_v31, %v280_v34  ;;  %v320_v1 = vadd.f32 %v4825_v31, %v281_v27  ;;  %v4621_v33 = vld [vmem:[%s6325_s3 + $0xe8] sm:$0xff]   ;;  %v265_v42 = vld [vmem:[%s4782_s22 + $0xe0] sm:$0xff] }
  0x47   : > { %v1530_v57 = vor.u32 %v1529_v48, %v1525_v47  ;;  %v1250_v3 = vshrl.u32 %v5048_v58, 16  ;;  %v1253_v6 = vshll.u32 %v5048_v58, 16  ;;  %v829_v15 = vrot.slane %v827_v55, 7  ;;  %v1015_v29 = vld [vmem:[#allocation2 + $0xb0] sm:$0x1]  ;;  %v4622_v38 = vld [vmem:[%s6325_s3 + $0xa8] sm:$0xff]  }
  0x48   : > { %v1526_v2 = vsel %vm4876_vm12, %v1521_v51, %v1525_v47  ;;  %v824_v60 = vor.u32 %v822_v50, %v821_v54  ;;  %4158 = vmatpush3.bf16.msra.mxu1 %v4615_v49  ;;  %v825_v13 = vrot.slane %v821_v54, 4  ;;  %v351_v19 = vmax.f32 %v319_v0, 0.0  ;;  %v266_v43 = vld [vmem:[%s4782_s22 + $0xe8] sm:$0xff]  ;;  %v450_v44 = vld [vmem:[#allocation2 + $0xb4] sm:$0x1] }
  0x49   : > { %v1531_v9 = vrot.slane %v1530_v57, 4  ;;  %v5059_v16 = vld [vmem:[#allocation2 + $0x1c] sm:$0xf]  ;;  %v1252_v52 = vrot.slane %v1250_v3, 4  ;;  %v1255_v63 = vrot.slane %v1253_v6, 5  ;;  %4159 = vmatprep.subr.bf16.mxu1 %v4617_v56  ;;  %v352_v30 = vmax.f32 %v320_v1, 0.0 }
  0x4a   : > { %v1012_v28 = vsel %vm4887_vm13, %v824_v60, %v1011_v62  ;;  %v5068_v34 = vld [vmem:[#allocation2 + $0x20] sm:$0x1]  ;;  %v1259_v35 = vshll.u32 %v5059_v16, 16  ;;  %v1263_v36 = vshrl.u32 %v5059_v16, 16  ;;  %v5074_v37 = vcombine.low %v5048_v58, %v5059_v16  ;;  %v4627_v49 = vld [vmem:[%s6325_s3 + $0x110] sm:$0xff]  }
  0x4b   : > { %v1536_v24 = vsel %vm4876_vm12, %v1531_v9, %v1535_v53  ;;  %1013 = vst [vmem:[#allocation2 + $0xa8] sm:$0xf] %v1012_v28  ;;  %v1256_v46 = vor.u32 %v1255_v63, %v1252_v52  ;;  %v1269_v47 = vshll.u32 %v5068_v34, 16  ;;  %v832_v48 = vor.u32 %v830_v59, %v829_v15  ;;  %v4623_v59 = vld [vmem:[%s6325_s3 + $0xf0] sm:$0xff]   ;;  %v506_v3 = vld [vmem:[#allocation2 + $0xbc] sm:$0x1]  ;;  %4268 = vmatpush3.bf16.msra.mxu0 %v4627_v49 }
  0x4c   : > { %6358 = vst [vmem:[#allocation5_spill] sm:$0xff] %v5074_v37  ;;  %v5081_v45 = vcombine.low %v1526_v2, %v1536_v24  ;;  %v1261_v50 = vrot.slane %v1259_v35, 5  ;;  %v1265_v27 = vrot.slane %v1263_v36, 4  ;;  %v834_v51 = vrot.slane %v829_v15, 4  ;;  %4160 = vmatpush3.bf16.msra.mxu1 %v4619_v8 }
  0x4d   : > { %v415_v53 = vsel %vm4789_vm3, 0, %v414_v7  ;;  %v1257_v54 = vrot.slane %v1256_v46, 4  ;;  %v1271_v55 = vrot.slane %v1269_v47, 5  ;;  %v833_v56 = vsel %vm4903_vm14, %v825_v13, %v832_v48  ;;  %4161 = vmatprep.subr.bf16.mxu1 %v4621_v33  ;;  %v4629_v33 = vld [vmem:[%s6325_s3 + $0xf8] sm:$0xff]  }
  0x4e   : > { %6359 = vst [vmem:[#allocation6_spill] sm:$0xff] %v5081_v45  ;;  %2920 = vmatprep.mubr.bf16.mxu1 %v5081_v45  ;;  %416 = vst [vmem:[#allocation2 + $0x24] sm:$0x1] %v415_v53  ;;  %v471_v57 = vsel %vm4799_vm6, 0, %v470_v21  ;;  %v1266_v62 = vor.u32 %v1265_v27, %v1261_v50  ;;  %v1016_v0 = vsel %vm4789_vm3, %v834_v51, %v1015_v29  ;;  %v451_v8 = vsel %vm4789_vm3, 0, %v450_v44  ;;  %v4634_v48 = vld [vmem:[%s6325_s3 + $0x158] sm:$0xff]  }
  0x4f   : > { %2921 = vmatmul.mubr.bf16.gmra.mrb[4].mxu1 %v5035_v39  ;;  %1014 = vst [vmem:[#allocation2 + $0xac] sm:$0xf] %v833_v56  ;;  %472 = vst [vmem:[#allocation2 + $0x2c] sm:$0x1] %v471_v57  ;;  %v4011_v1 = vpack.c.bf16 %v351_v19, %v351_v19  ;;  %v4012_v2 = vpack.c.bf16 %v352_v30, %v352_v30  ;;  %v1262_v6 = vsel %vm4876_vm12, %v1257_v54, %v1261_v50  ;;  %v4626_v19 = vld [vmem:[%s6325_s3 + $0xb0] sm:$0xff]   ;;  %v4635_v54 = vld [vmem:[%s6325_s3 + $0x118] sm:$0xff]  }
  0x50   : > { %1017 = vst [vmem:[#allocation2 + $0xb0] sm:$0x1] %v1016_v0  ;;  %v304_v60 = vmul.f32 %v4816_v26, %v265_v42  ;;  %v305_v7 = vmul.f32 %v4816_v26, %v266_v43  ;;  %v1267_v9 = vrot.slane %v1266_v62, 4  ;;  %4162 = vmatpush3.bf16.msra.mxu1 %v4622_v38  ;;  %452 = vst [vmem:[#allocation2 + $0xb4] sm:$0x1] %v451_v8  ;;  %v507_v30 = vsel %vm4799_vm6, 0, %v506_v3 }
  0x51   : > { %v632_v13 = vshrl.u32 %v4011_v1, 16  ;;  %v635_v15 = vshll.u32 %v4011_v1, 16  ;;  %v640_v21 = vshrl.u32 %v4012_v2, 16  ;;  %v643_v63 = vshll.u32 %v4012_v2, 16  ;;  %4163 = vmatprep.subr.bf16.mxu1 %v4623_v59  ;;  %508 = vst [vmem:[#allocation2 + $0xbc] sm:$0x1] %v507_v30  ;;  %4269 = vmatprep.subr.bf16.mxu0 %v4634_v48 }
  0x52   : > { %v1074_v52 = vld [vmem:[#allocation2 + $0xa8] sm:$0xf]  ;;  %v343_v28 = vadd.f32 %v4825_v31, %v304_v60  ;;  %v344_v29 = vadd.f32 %v4825_v31, %v305_v7  ;;  %v1272_v24 = vsel %vm4876_vm12, %v1267_v9, %v1271_v55  ;;  %v4630_v42 = vld [vmem:[%s6325_s3 + $0xb8] sm:$0xff]   ;;  %v243_v1 = vld [vmem:[%s4782_s22 + $0x30] sm:$0xff]  ;;  %4270 = vmatpush3.bf16.msra.mxu0 %v4635_v54 }
  0x53   : > { %v1538_v35 = vshrl.u32 %v1074_v52, 16  ;;  %v1541_v36 = vshll.u32 %v1074_v52, 16  ;;  %v634_v38 = vrot.slane %v632_v13, 7  ;;  %v5121_v43 = vcombine.low %v1262_v6, %v1272_v24  ;;  %v4631_v2 = vld [vmem:[%s6325_s3 + $0x1c0] sm:$0xff]   ;;  %v417_v9 = vld [vmem:[#allocation2 + $0x30] sm:$0x1] }
  0x54   : > { %v642_v44 = vrot.slane %v640_v21, 7  ;;  %v375_v46 = vmax.f32 %v343_v28, 0.0  ;;  %v376_v47 = vmax.f32 %v344_v29, 0.0  ;;  %4164 = vmatpush3.bf16.msra.mxu1 %v4626_v19  ;;  %v473_v28 = vld [vmem:[#allocation2 + $0x38] sm:$0x1] }
  0x55   : > { %v1540_v49 = vrot.slane %v1538_v35, 4  ;;  %v1543_v50 = vrot.slane %v1541_v36, 5  ;;  %v637_v27 = vor.u32 %v635_v15, %v634_v38  ;;  %v638_v51 = vrot.slane %v634_v38, 4  ;;  %v934_v53 = vld [vmem:[#allocation2 + $0x24] sm:$0xf]  ;;  %2832 = vmatprep.mubr.bf16.mxu0 %v5121_v43  ;;  %4165 = vmatprep.subr.bf16.mxu1 %v4629_v33 }
  0x56   : > { %v1075_v55 = vld [vmem:[#allocation2 + $0xac] sm:$0xf]  ;;  %v645_v56 = vor.u32 %v643_v63, %v642_v44  ;;  %v647_v57 = vrot.slane %v642_v44, 4  ;;  %v4035_v62 = vpack.c.bf16 %v375_v46, %v375_v46  ;;  %v4036_v0 = vpack.c.bf16 %v376_v47, %v376_v47  ;;  %2833 = vmatmul.mubr.bf16.gmra.mrb[8].mxu0 %v5074_v37  ;;  %v244_v63 = vld [vmem:[%s4782_s22 + $0x38] sm:$0xff]  ;;  %v245_v46 = vld [vmem:[%s4782_s22 + $0x40] sm:$0xff] }
  0x57   : > { %v938_v59 = vld [vmem:[#allocation2 + $0x2c] sm:$0x1]  ;;  %v1076_v3 = vld [vmem:[#allocation2 + $0xb0] sm:$0x1]  ;;  %v1544_v6 = vor.u32 %v1543_v50, %v1540_v49  ;;  %v1547_v60 = vshll.u32 %v1075_v55, 16  ;;  %v1551_v7 = vshrl.u32 %v1075_v55, 16  ;;  %v935_v8 = vsel %vm4887_vm13, %v637_v27, %v934_v53 }
  0x58   : > { %v1557_v13 = vshll.u32 %v1076_v3, 16  ;;  %v646_v15 = vsel %vm4903_vm14, %v638_v51, %v645_v56  ;;  %936 = vst [vmem:[#allocation2 + $0x24] sm:$0xf] %v935_v8  ;;  %v939_v21 = vsel %vm4789_vm3, %v647_v57, %v938_v59  ;;  %v5141_v19 = vcombine.low %v1074_v52, %v1075_v55  ;;  %4166 = vmatpush3.bf16.msra.mxu1 %v4630_v42  ;;  %v4637_v50 = vld [vmem:[%s6325_s3 + $0x160] sm:$0xff]   ;;  %v1018_v42 = vld [vmem:[#allocation2 + $0xb4] sm:$0xf] }
  0x59   : > { %v1545_v29 = vrot.slane %v1544_v6, 4  ;;  %v1549_v30 = vrot.slane %v1547_v60, 5  ;;  %v1553_v33 = vrot.slane %v1551_v7, 4  ;;  %937 = vst [vmem:[#allocation2 + $0x28] sm:$0xf] %v646_v15  ;;  %v836_v24 = vshrl.u32 %v4035_v62, 16  ;;  %4375 = vmatprep.subr.bf16.mxu1 %v4631_v2  ;;  %4271 = vmatprep.subr.bf16.mxu0 %v4637_v50 }
  0x5a   : > { %940 = vst [vmem:[#allocation2 + $0x2c] sm:$0x1] %v939_v21  ;;  %v1559_v35 = vrot.slane %v1557_v13, 5  ;;  %v839_v36 = vshll.u32 %v4035_v62, 16  ;;  %v844_v38 = vshrl.u32 %v4036_v0, 16  ;;  %v847_v44 = vshll.u32 %v4036_v0, 16 }
  0x5b   : > { %v1550_v52 = vsel %vm4876_vm12, %v1545_v29, %v1549_v30  ;;  %v1554_v47 = vor.u32 %v1553_v33, %v1549_v30  ;;  %v838_v48 = vrot.slane %v836_v24, 7  ;;  %v282_v49 = vmul.f32 %v4816_v26, %v243_v1  ;;  %v246_v55 = vld [vmem:[%s4782_s22 + $0x48] sm:$0xff]  ;;  %v1022_v62 = vld [vmem:[#allocation2 + $0xbc] sm:$0x1]  ;;  %v5169_v13 = vld [vmem:[%s6323_s1] ss:$0 sm:$0xff] }
  0x5c   : > { %v846_v27 = vrot.slane %v844_v38, 7  ;;  %v283_v51 = vmul.f32 %v4816_v26, %v244_v63  ;;  %v418_v53 = vsel %vm4789_vm3, 0, %v417_v9  ;;  %v474_v54 = vsel %vm4799_vm6, 0, %v473_v28 }
  0x5d   : > { %v1555_v56 = vrot.slane %v1554_v47, 4  ;;  %v841_v57 = vor.u32 %v839_v36, %v838_v48  ;;  %v842_v59 = vrot.slane %v838_v48, 4  ;;  %v321_v0 = vadd.f32 %v4825_v31, %v282_v49  ;;  %419 = vst [vmem:[#allocation2 + $0x30] sm:$0x1] %v418_v53  ;;  %475 = vst [vmem:[#allocation2 + $0x38] sm:$0x1] %v474_v54 }
  0x5e   : > { %v849_v1 = vor.u32 %v847_v44, %v846_v27  ;;  %v851_v2 = vrot.slane %v846_v27, 4  ;;  %v322_v3 = vadd.f32 %v4825_v31, %v283_v51  ;;  %v284_v6 = vmul.f32 %v4816_v26, %v245_v46  ;;  %v4639_v36 = vld [vmem:[%s6325_s3 + $0x120] sm:$0xff]   ;;  %v420_v47 = vld [vmem:[#allocation2 + $0x3c] sm:$0x1] }
  0x5f   : > { %v1560_v60 = vsel %vm4876_vm12, %v1555_v56, %v1559_v35  ;;  %v5162_v7 = vld [vmem:[#allocation2 + $0x24] sm:$0xf]  ;;  %v1019_v8 = vsel %vm4887_vm13, %v841_v57, %v1018_v42  ;;  %v353_v9 = vmax.f32 %v321_v0, 0.0  ;;  %v285_v15 = vmul.f32 %v5169_v13, %v246_v55  ;;  %4272 = vmatpush3.bf16.msra.mxu0 %v4639_v36  ;;  %v5199_v53 = vld [vmem:[%s6324_s2] ss:$0 sm:$0xff]  ;;  %v4643_v36 = vld [vmem:[%s6325_s3 + $0x168] sm:$0xff]  }
  0x60   : > { %v5172_v21 = vcombine.low %v1550_v52, %v1560_v60  ;;  %v5174_v31 = vld [vmem:[#allocation2 + $0x28] sm:$0xf]  ;;  %v1274_v63 = vshrl.u32 %v5162_v7, 16  ;;  %v1277_v28 = vshll.u32 %v5162_v7, 16  ;;  %v850_v29 = vsel %vm4903_vm14, %v842_v59, %v849_v1  ;;  %1020 = vst [vmem:[#allocation2 + $0xb4] sm:$0xf] %v1019_v8  ;;  %4273 = vmatprep.subr.bf16.mxu0 %v4643_v36 }
  0x61   : > { %v5176_v26 = vld [vmem:[#allocation2 + $0x2c] sm:$0x1]  ;;  %v1283_v30 = vshll.u32 %v5174_v31, 16  ;;  %v1287_v33 = vshrl.u32 %v5174_v31, 16  ;;  %v5187_v35 = vcombine.low %v5162_v7, %v5174_v31  ;;  %1021 = vst [vmem:[#allocation2 + $0xb8] sm:$0xf] %v850_v29  ;;  %v1023_v46 = vsel %vm4789_vm3, %v851_v2, %v1022_v62 }
  0x62   : > { %6360 = vst [vmem:[#allocation7_spill] sm:$0xff] %v5172_v21  ;;  %v1293_v24 = vshll.u32 %v5176_v26, 16  ;;  %2928 = vmatprep.mubr.bf16.mxu1 %v5172_v21  ;;  %v1276_v38 = vrot.slane %v1274_v63, 4  ;;  %v1279_v44 = vrot.slane %v1277_v28, 5  ;;  %v354_v52 = vmax.f32 %v322_v3, 0.0  ;;  %v4658_v21 = vld [vmem:[%s6325_s3 + $0x1a0] sm:$0xff]  }
  0x63   : > { %6361 = vst [vmem:[#allocation8_spill] sm:$0xff] %v5187_v35  ;;  %v1285_v48 = vrot.slane %v1283_v30, 5  ;;  %v1289_v49 = vrot.slane %v1287_v33, 4  ;;  %2929 = vmatmul.mubr.bf16.gmra.mrb[8].mxu1 %v5141_v19  ;;  %1024 = vst [vmem:[#allocation2 + $0xbc] sm:$0x1] %v1023_v46  ;;  %v4013_v27 = vpack.c.bf16 %v353_v9, %v353_v9  ;;  %v323_v54 = vadd.f32 %v5199_v53, %v284_v6 }
  0x64   : > { %v1295_v50 = vrot.slane %v1293_v24, 5  ;;  %v1280_v42 = vor.u32 %v1279_v44, %v1276_v38  ;;  %v4014_v51 = vpack.c.bf16 %v354_v52, %v354_v52  ;;  %v324_v55 = vadd.f32 %v5199_v53, %v285_v15  ;;  %v476_v56 = vld [vmem:[#allocation2 + $0x44] sm:$0x1] }
  0x65   : > { %v1290_v57 = vor.u32 %v1289_v49, %v1285_v48  ;;  %v649_v59 = vshrl.u32 %v4013_v27, 16  ;;  %v652_v62 = vshll.u32 %v4013_v27, 16  ;;  %v421_v0 = vsel %vm4789_vm3, 0, %v420_v47  ;;  %v941_v47 = vld [vmem:[#allocation2 + $0x30] sm:$0xf] }
  0x66   : > { %v1281_v1 = vrot.slane %v1280_v42, 4  ;;  %v657_v2 = vshrl.u32 %v4014_v51, 16  ;;  %v660_v3 = vshll.u32 %v4014_v51, 16  ;;  %v355_v60 = vmax.f32 %v323_v54, 0.0  ;;  %422 = vst [vmem:[#allocation2 + $0x3c] sm:$0x1] %v421_v0 }
  0x67   : > { %v1291_v8 = vrot.slane %v1290_v57, 4  ;;  %v1077_v9 = vld [vmem:[#allocation2 + $0xb4] sm:$0xf]  ;;  %v651_v63 = vrot.slane %v649_v59, 7  ;;  %v356_v28 = vmax.f32 %v324_v55, 0.0  ;;  %v477_v6 = vsel %vm4799_vm6, 0, %v476_v56 }
  0x68   : > { %v1286_v15 = vsel %vm4876_vm12, %v1281_v1, %v1285_v48  ;;  %v1078_v29 = vld [vmem:[#allocation2 + $0xb8] sm:$0xf]  ;;  %v1562_v30 = vshrl.u32 %v1077_v9, 16  ;;  %v1565_v33 = vshll.u32 %v1077_v9, 16  ;;  %v659_v24 = vrot.slane %v657_v2, 7  ;;  %v4644_v55 = vld [vmem:[%s6325_s3 + $0x128] sm:$0xff]  }
  0x69   : > { %478 = vst [vmem:[#allocation2 + $0x44] sm:$0x1] %v477_v6  ;;  %v1296_v38 = vsel %vm4876_vm12, %v1291_v8, %v1295_v50  ;;  %v1571_v44 = vshll.u32 %v1078_v29, 16  ;;  %v1575_v46 = vshrl.u32 %v1078_v29, 16  ;;  %v654_v52 = vor.u32 %v652_v62, %v651_v63  ;;  %v945_v49 = vld [vmem:[#allocation2 + $0x38] sm:$0x1]  ;;  %4274 = vmatpush3.bf16.msra.mxu0 %v4644_v55 }
  0x6a   : > { %v5214_v27 = vcombine.low %v1286_v15, %v1296_v38  ;;  %v1079_v48 = vld [vmem:[#allocation2 + $0xbc] sm:$0x1]  ;;  %v1564_v42 = vrot.slane %v1562_v30, 4  ;;  %v1567_v51 = vrot.slane %v1565_v33, 5  ;;  %v655_v54 = vrot.slane %v651_v63, 4  ;;  %v247_v0 = vld [vmem:[%s4782_s22 + $0x50] sm:$0xff] }
  0x6b   : > { %v1573_v56 = vrot.slane %v1571_v44, 5  ;;  %v1577_v50 = vrot.slane %v1575_v46, 4  ;;  %v1581_v57 = vshll.u32 %v1079_v48, 16  ;;  %v662_v59 = vor.u32 %v660_v3, %v659_v24  ;;  %v248_v63 = vld [vmem:[%s4782_s22 + $0x58] sm:$0xff]  ;;  %v423_v33 = vld [vmem:[#allocation2 + $0x48] sm:$0x1] }
  0x6c   : > { %2840 = vmatprep.mubr.bf16.mxu0 %v5214_v27  ;;  %v1568_v62 = vor.u32 %v1567_v51, %v1564_v42  ;;  %v664_v1 = vrot.slane %v659_v24, 4  ;;  %v942_v2 = vsel %vm4887_vm13, %v654_v52, %v941_v47  ;;  %v5223_v8 = vcombine.low %v1077_v9, %v1078_v29  ;;  %v479_v47 = vld [vmem:[#allocation2 + $0x50] sm:$0x1] }
  0x6d   : > { %2841 = vmatmul.mubr.bf16.gmra.mrb[12].mxu0 %v5187_v35  ;;  %v1578_v6 = vor.u32 %v1577_v50, %v1573_v56  ;;  %v1583_v15 = vrot.slane %v1581_v57, 5  ;;  %v663_v30 = vsel %vm4903_vm14, %v655_v54, %v662_v59  ;;  %943 = vst [vmem:[#allocation2 + $0x30] sm:$0xf] %v942_v2  ;;  %v4015_v3 = vpack.c.bf16 %v355_v60, %v355_v60  ;;  %v4648_v60 = vld [vmem:[%s6325_s3 + $0x170] sm:$0xff]  }
  0x6e   : > { %6362 = vst [vmem:[#allocation9_spill] sm:$0xff] %v5223_v8  ;;  %v1569_v36 = vrot.slane %v1568_v62, 4  ;;  %944 = vst [vmem:[#allocation2 + $0x34] sm:$0xf] %v663_v30  ;;  %v946_v24 = vsel %vm4789_vm3, %v664_v1, %v945_v49  ;;  %v4016_v38 = vpack.c.bf16 %v356_v28, %v356_v28  ;;  %v286_v9 = vmul.f32 %v5169_v13, %v247_v0  ;;  %v948_v49 = vld [vmem:[#allocation2 + $0x3c] sm:$0xf] }
  0x6f   : > { %v1579_v29 = vrot.slane %v1578_v6, 4  ;;  %947 = vst [vmem:[#allocation2 + $0x38] sm:$0x1] %v946_v24  ;;  %v666_v44 = vshrl.u32 %v4015_v3, 16  ;;  %v669_v46 = vshll.u32 %v4015_v3, 16  ;;  %v287_v52 = vmul.f32 %v5169_v13, %v248_v63  ;;  %4275 = vmatprep.subr.bf16.mxu0 %v4648_v60 }
  0x70   : > { %v1574_v48 = vsel %vm4876_vm12, %v1569_v36, %v1573_v56  ;;  %v674_v42 = vshrl.u32 %v4016_v38, 16  ;;  %v677_v51 = vshll.u32 %v4016_v38, 16  ;;  %v325_v28 = vadd.f32 %v5199_v53, %v286_v9 }
  0x71   : > { %v1584_v54 = vsel %vm4876_vm12, %v1579_v29, %v1583_v15  ;;  %v668_v55 = vrot.slane %v666_v44, 7  ;;  %v326_v50 = vadd.f32 %v5199_v53, %v287_v52  ;;  %v424_v57 = vsel %vm4789_vm3, 0, %v423_v33  ;;  %v952_v33 = vld [vmem:[#allocation2 + $0x44] sm:$0x1] }
  0x72   : > { %v5244_v59 = vcombine.low %v1574_v48, %v1584_v54  ;;  %v676_v0 = vrot.slane %v674_v42, 7  ;;  %v357_v62 = vmax.f32 %v325_v28, 0.0  ;;  %425 = vst [vmem:[#allocation2 + $0x48] sm:$0x1] %v424_v57  ;;  %v480_v56 = vsel %vm4799_vm6, 0, %v479_v47  ;;  %v249_v48 = vld [vmem:[%s4782_s22 + $0x60] sm:$0xff] }
  0x73   : > { %v671_v1 = vor.u32 %v669_v46, %v668_v55  ;;  %v672_v2 = vrot.slane %v668_v55, 4  ;;  %v358_v63 = vmax.f32 %v326_v50, 0.0  ;;  %481 = vst [vmem:[#allocation2 + $0x50] sm:$0x1] %v480_v56  ;;  %v3892_v6 = vrot.slane %v4962_v4, 9  ;;  %v4649_v54 = vld [vmem:[%s6325_s3 + $0x130] sm:$0xff]  }
  0x74   : > { %6363 = vst [vmem:[#allocation10_spill] sm:$0xff] %v5244_v59  ;;  %2936 = vmatprep.mubr.bf16.mxu1 %v5244_v59  ;;  %v5250_v15 = vld [vmem:[#allocation2 + $0x30] sm:$0xf]  ;;  %v679_v30 = vor.u32 %v677_v51, %v676_v0  ;;  %v681_v3 = vrot.slane %v676_v0, 4  ;;  %v4017_v36 = vpack.c.bf16 %v357_v62, %v357_v62  ;;  %v1693_v24 = vrot.slane %v4966_v10, 5  ;;  %4276 = vmatpush3.bf16.msra.mxu0 %v4649_v54 }
  0x75   : > { %v5253_v38 = vld [vmem:[#allocation2 + $0x34] sm:$0xf]  ;;  %v1298_v9 = vshrl.u32 %v5250_v15, 16  ;;  %v1301_v29 = vshll.u32 %v5250_v15, 16  ;;  %2937 = vmatmul.mubr.bf16.gmra.mrb[12].mxu1 %v5223_v8  ;;  %v949_v4 = vsel %vm4887_vm13, %v671_v1, %v948_v49  ;;  %v4018_v44 = vpack.c.bf16 %v358_v63, %v358_v63  ;;  %v485_v59 = vld [vmem:[#allocation2 + $0x68] sm:$0x1] }
  0x76   : > { %v5260_v46 = vld [vmem:[#allocation2 + $0x38] sm:$0x1]  ;;  %v1307_v52 = vshll.u32 %v5253_v38, 16  ;;  %v1311_v47 = vshrl.u32 %v5253_v38, 16  ;;  %v5266_v10 = vcombine.low %v5250_v15, %v5253_v38  ;;  %2977 = vmatprep.mubr.bf16.mxu1 %v4986_v32  ;;  %v680_v60 = vsel %vm4903_vm14, %v672_v2, %v679_v30  ;;  %950 = vst [vmem:[#allocation2 + $0x3c] sm:$0xf] %v949_v4 }
  0x77   : > { %v1300_v42 = vrot.slane %v1298_v9, 4  ;;  %v1303_v51 = vrot.slane %v1301_v29, 5  ;;  %v1317_v49 = vshll.u32 %v5260_v46, 16  ;;  %951 = vst [vmem:[#allocation2 + $0x40] sm:$0xf] %v680_v60  ;;  %v953_v28 = vsel %vm4789_vm3, %v681_v3, %v952_v33  ;;  %v250_v2 = vld [vmem:[%s4782_s22 + $0x68] sm:$0xff] }
  0x78   : > { %6364 = vst [vmem:[#allocation11_spill] sm:$0xff] %v5266_v10  ;;  %v1309_v55 = vrot.slane %v1307_v52, 5  ;;  %v1313_v32 = vrot.slane %v1311_v47, 4  ;;  %954 = vst [vmem:[#allocation2 + $0x44] sm:$0x1] %v953_v28  ;;  %v683_v50 = vshrl.u32 %v4017_v36, 16  ;;  %v1694_v33 = vsel %vm4864_vm11, %v3892_v6, %v1693_v24 }
  0x79   : > { %v686_v57 = vshll.u32 %v4017_v36, 16  ;;  %v1304_v0 = vor.u32 %v1303_v51, %v1300_v42  ;;  %v1319_v62 = vrot.slane %v1317_v49, 5  ;;  %v691_v56 = vshrl.u32 %v4018_v44, 16  ;;  %v4632_v30 = vld [vmem:[%s6325_s3 + $0x180] sm:$0xff]   ;;  %v955_v52 = vld [vmem:[#allocation2 + $0x48] sm:$0xf] }
  0x7a   : > { %v694_v1 = vshll.u32 %v4018_v44, 16  ;;  %v1314_v63 = vor.u32 %v1313_v32, %v1309_v55  ;;  %v685_v3 = vrot.slane %v683_v50, 7  ;;  %v1695_v9 = vrot.slane %v1693_v24, 4  ;;  %v4638_v44 = vld [vmem:[%s6325_s3 + $0x1c8] sm:$0xff]   ;;  %v959_v49 = vld [vmem:[#allocation2 + $0x50] sm:$0x1] }
  0x7b   : > { %v1305_v29 = vrot.slane %v1304_v0, 4  ;;  %v693_v4 = vrot.slane %v691_v56, 7  ;;  %v1696_v36 = vrot.slane %v4968_v12, 5  ;;  %v288_v47 = vmul.f32 %v5169_v13, %v249_v48  ;;  %v4640_v6 = vld [vmem:[%s6325_s3 + $0x188] sm:$0xff]   ;;  %v4645_v50 = vld [vmem:[%s6325_s3 + $0x1d0] sm:$0xff]  }
  0x7c   : > { %v1315_v60 = vrot.slane %v1314_v63, 4  ;;  %v688_v42 = vor.u32 %v686_v57, %v685_v3  ;;  %v689_v51 = vrot.slane %v685_v3, 4  ;;  %v289_v28 = vmul.f32 %v5169_v13, %v250_v2  ;;  %v4654_v57 = vld [vmem:[%s6325_s3 + $0x178] sm:$0xff]   ;;  %v426_v56 = vld [vmem:[#allocation2 + $0x54] sm:$0x1] }
  0x7d   : > { %v1310_v24 = vsel %vm4876_vm12, %v1305_v29, %v1309_v55  ;;  %v5295_v12 = vld [vmem:[#allocation2 + $0x3c] sm:$0xf]  ;;  %2978 = vmatmul.mubr.bf16.vlgmr.msra.gmra.mrb[16].mxu1 %v3907_v41  ;;  %v696_v48 = vor.u32 %v694_v1, %v693_v4  ;;  %v698_v54 = vrot.slane %v693_v4, 4  ;;  %v1697_v32 = vsel %vm4864_vm11, %v1695_v9, %v1696_v36  ;;  %4277 = vmatprep.subr.bf16.mxu0 %v4654_v57  ;;  %v251_v36 = vld [vmem:[%s4782_s22 + $0x70] sm:$0xff] }
  0x7e   : > { %v1320_v55 = vsel %vm4876_vm12, %v1315_v60, %v1319_v62  ;;  %v5310_v0 = vld [vmem:[#allocation2 + $0x40] sm:$0xf]  ;;  %v1322_v11 = vshrl.u32 %v5295_v12, 16  ;;  %v1325_v22 = vshll.u32 %v5295_v12, 16  ;;  %4376 = vmatpush3.bf16.msra.mxu1 %v4632_v30  ;;  %2985 = vmatprep.mubr.bf16.mxu1 %v5074_v37  ;;  %v956_v41 = vsel %vm4887_vm13, %v688_v42, %v955_v52  ;;  %v482_v1 = vld [vmem:[#allocation2 + $0x5c] sm:$0x1] }
  0x7f   : > { %v5317_v2 = vcombine.low %v1310_v24, %v1320_v55  ;;  %v5319_v63 = vld [vmem:[#allocation2 + $0x44] sm:$0x1]  ;;  %v1331_v62 = vshll.u32 %v5310_v0, 16  ;;  %v1335_v3 = vshrl.u32 %v5310_v0, 16  ;;  %v5325_v30 = vcombine.low %v5295_v12, %v5310_v0  ;;  %957 = vst [vmem:[#allocation2 + $0x48] sm:$0xf] %v956_v41  ;;  %4377 = vmatprep.subr.bf16.mxu1 %v4638_v44 }
  0x80   : > { %v1324_v9 = vrot.slane %v1322_v11, 4  ;;  %v1327_v29 = vrot.slane %v1325_v22, 5  ;;  %v1341_v4 = vshll.u32 %v5319_v63, 16  ;;  %v697_v52 = vsel %vm4903_vm14, %v689_v51, %v696_v48  ;;  %v252_v60 = vld [vmem:[%s4782_s22 + $0x78] sm:$0xff]  ;;  %v4646_v51 = vld [vmem:[%s6325_s3 + $0x190] sm:$0xff]   ;;  %v254_v37 = vld [vmem:[%s4782_s22 + $0x88] sm:$0xff] }
  0x81   : > { %v4655_v42 = vld [vmem:[%s6325_s3 + $0x138] sm:$0xff]   ;;  %2848 = vmatprep.mubr.bf16.mxu0 %v5317_v2  ;;  %v1333_v24 = vrot.slane %v1331_v62, 5  ;;  %v1337_v55 = vrot.slane %v1335_v3, 4  ;;  %958 = vst [vmem:[#allocation2 + $0x4c] sm:$0xf] %v697_v52  ;;  %v960_v44 = vsel %vm4789_vm3, %v698_v54, %v959_v49  ;;  %v5338_v57 = vcombine.low %v1694_v33, %v1697_v32 }
  0x82   : > { %2849 = vmatmul.mubr.bf16.gmra.mrb[16].mxu0 %v5266_v10  ;;  %v1328_v48 = vor.u32 %v1327_v29, %v1324_v9  ;;  %v1343_v11 = vrot.slane %v1341_v4, 5  ;;  %961 = vst [vmem:[#allocation2 + $0x50] sm:$0x1] %v960_v44  ;;  %v327_v22 = vadd.f32 %v5199_v53, %v288_v47  ;;  %v328_v41 = vadd.f32 %v5199_v53, %v289_v28  ;;  %v4651_v49 = vld [vmem:[%s6325_s3 + $0x1d8] sm:$0xff]   ;;  %v5357_v47 = vld [vmem:[%s6325_s3 + $0x200] sm:$0xff]  }
  0x83   : > { %4378 = vmatpush3.bf16.msra.mxu1 %v4640_v6  ;;  %v1338_v33 = vor.u32 %v1337_v55, %v1333_v24  ;;  %v427_v54 = vsel %vm4789_vm3, 0, %v426_v56  ;;  %v483_v32 = vsel %vm4799_vm6, 0, %v482_v1  ;;  %v3893_v62 = vrot.slane %v5048_v58, 9  ;;  %4278 = vmatpush3.bf16.msra.mxu0 %v4655_v42 }
  0x84   : > { %4379 = vmatprep.subr.bf16.mxu1 %v4645_v50  ;;  %v1329_v28 = vrot.slane %v1328_v48, 4  ;;  %v359_v6 = vmax.f32 %v327_v22, 0.0  ;;  %v360_v3 = vmax.f32 %v328_v41, 0.0  ;;  %428 = vst [vmem:[#allocation2 + $0x54] sm:$0x1] %v427_v54  ;;  %v1700_v9 = vrot.slane %v5059_v16, 5  ;;  %4511 = vmatprep.subr.bf16.mxu0 %v5357_v47 }
  0x85   : > { %484 = vst [vmem:[#allocation2 + $0x5c] sm:$0x1] %v483_v32  ;;  %v1339_v56 = vrot.slane %v1338_v33, 4  ;;  %2986 = vmatmul.mubr.bf16.gmra.mrb[20].mxu1 %v5338_v57  ;;  %v1703_v1 = vrot.slane %v5068_v34, 5  ;;  %v290_v58 = vmul.f32 %v5169_v13, %v251_v36  ;;  %v5364_v50 = vmul.f32 %v5169_v13, %v252_v60 }
  0x86   : > { %v1334_v29 = vsel %vm4876_vm12, %v1329_v28, %v1333_v24  ;;  %v5369_v4 = vld [vmem:[#allocation2 + $0x48] sm:$0xf]  ;;  %2993 = vmatprep.mubr.bf16.mxu1 %v5187_v35  ;;  %v4019_v16 = vpack.c.bf16 %v359_v6, %v359_v6  ;;  %v4020_v52 = vpack.c.bf16 %v360_v3, %v360_v3  ;;  %v1701_v42 = vsel %vm4864_vm11, %v3893_v62, %v1700_v9  ;;  %v4652_v24 = vld [vmem:[%s6325_s3 + $0x198] sm:$0xff]  }
  0x87   : > { %v1344_v34 = vsel %vm4876_vm12, %v1339_v56, %v1343_v11  ;;  %v1346_v36 = vshrl.u32 %v5369_v4, 16  ;;  %v1349_v60 = vshll.u32 %v5369_v4, 16  ;;  %v1702_v55 = vrot.slane %v1700_v9, 4  ;;  %4380 = vmatpush3.bf16.msra.mxu1 %v4646_v51  ;;  %v4656_v11 = vld [vmem:[%s6325_s3 + $0x1e0] sm:$0xff]  }
  0x88   : > { %v5381_v44 = vcombine.low %v1334_v29, %v1344_v34  ;;  %v5383_v48 = vld [vmem:[#allocation2 + $0x4c] sm:$0xf]  ;;  %v700_v22 = vshrl.u32 %v4019_v16, 16  ;;  %v703_v41 = vshll.u32 %v4019_v16, 16  ;;  %v708_v33 = vshrl.u32 %v4020_v52, 16  ;;  %4381 = vmatprep.subr.bf16.mxu1 %v4651_v49 }
  0x89   : > { %v5388_v54 = vld [vmem:[#allocation2 + $0x50] sm:$0x1]  ;;  %v1348_v32 = vrot.slane %v1346_v36, 4  ;;  %v1351_v51 = vrot.slane %v1349_v60, 5  ;;  %v1355_v62 = vshll.u32 %v5383_v48, 16  ;;  %v1359_v28 = vshrl.u32 %v5383_v48, 16 }
  0x8a   : > { %6365 = vst [vmem:[#allocation12_spill] sm:$0xff] %v5381_v44  ;;  %2856 = vmatprep.mubr.bf16.mxu0 %v5381_v44  ;;  %v1365_v6 = vshll.u32 %v5388_v54, 16  ;;  %v5396_v3 = vcombine.low %v5369_v4, %v5383_v48  ;;  %v702_v49 = vrot.slane %v700_v22, 7  ;;  %v710_v9 = vrot.slane %v708_v33, 7  ;;  %v429_v60 = vld [vmem:[#allocation2 + $0x60] sm:$0x1] }
  0x8b   : > { %2857 = vmatmul.mubr.bf16.gmra.mrb[20].mxu0 %v5325_v30  ;;  %v1352_v56 = vor.u32 %v1351_v51, %v1348_v32  ;;  %v1357_v29 = vrot.slane %v1355_v62, 5  ;;  %v1361_v16 = vrot.slane %v1359_v28, 4  ;;  %v711_v34 = vshll.u32 %v4020_v52, 16  ;;  %v962_v36 = vld [vmem:[#allocation2 + $0x54] sm:$0xf]  ;;  %4382 = vmatpush3.bf16.msra.mxu1 %v4652_v24  ;;  %v4659_v52 = vld [vmem:[%s6325_s3 + $0x1e8] sm:$0xff]  }
  0x8c   : > { %v1367_v45 = vrot.slane %v1365_v6, 5  ;;  %v705_v23 = vor.u32 %v703_v41, %v702_v49  ;;  %v706_v22 = vrot.slane %v702_v49, 4  ;;  %v715_v33 = vrot.slane %v710_v9, 4  ;;  %v966_v35 = vld [vmem:[#allocation2 + $0x5c] sm:$0x1]  ;;  %4383 = vmatprep.subr.bf16.mxu1 %v4656_v11  ;;  %v253_v28 = vld [vmem:[%s4782_s22 + $0x80] sm:$0xff] }
  0x8d   : > { %v1353_v32 = vrot.slane %v1352_v56, 4  ;;  %v1362_v51 = vor.u32 %v1361_v16, %v1357_v29  ;;  %v713_v62 = vor.u32 %v711_v34, %v710_v9  ;;  %v1704_v24 = vsel %vm4864_vm11, %v1702_v55, %v1703_v1  ;;  %v4661_v41 = vld [vmem:[%s6325_s3 + $0x1a8] sm:$0xff]   ;;  %v256_v44 = vld [vmem:[%s4782_s22 + $0x98] sm:$0xff] }
  0x8e   : > { %v963_v6 = vsel %vm4887_vm13, %v705_v23, %v962_v36  ;;  %v967_v11 = vsel %vm4789_vm3, %v715_v33, %v966_v35  ;;  %v5416_v49 = vcombine.low %v1701_v42, %v1704_v24  ;;  %v329_v56 = vadd.f32 %v5199_v53, %v290_v58  ;;  %v432_v9 = vld [vmem:[#allocation2 + $0x6c] sm:$0x1]  ;;  %v4662_v35 = vld [vmem:[%s6325_s3 + $0x1f0] sm:$0xff]  }
  0x8f   : > { %v1358_v1 = vsel %vm4876_vm12, %v1353_v32, %v1357_v29  ;;  %v1363_v55 = vrot.slane %v1362_v51, 4  ;;  %v714_v16 = vsel %vm4903_vm14, %v706_v22, %v713_v62  ;;  %964 = vst [vmem:[#allocation2 + $0x54] sm:$0xf] %v963_v6  ;;  %968 = vst [vmem:[#allocation2 + $0x5c] sm:$0x1] %v967_v11  ;;  %v330_v23 = vadd.f32 %v5199_v53, %v5364_v50 }
  0x90   : > { %4384 = vmatpush3.bf16.msra.mxu1 %v4658_v21  ;;  %965 = vst [vmem:[#allocation2 + $0x58] sm:$0xf] %v714_v16  ;;  %v361_v58 = vmax.f32 %v329_v56, 0.0  ;;  %v430_v42 = vsel %vm4789_vm3, 0, %v429_v60  ;;  %v486_v29 = vsel %vm4799_vm6, 0, %v485_v59  ;;  %v3894_v34 = vrot.slane %v5162_v7, 9 }
  0x91   : > { %2994 = vmatmul.mubr.bf16.gmra.mrb[24].mxu1 %v5416_v49  ;;  %v488_v36 = vld [vmem:[#allocation2 + $0x74] sm:$0x1]  ;;  %4385 = vmatprep.subr.bf16.mxu1 %v4659_v52  ;;  %v1368_v21 = vsel %vm4876_vm12, %v1363_v55, %v1367_v45  ;;  %v362_v50 = vmax.f32 %v330_v23, 0.0  ;;  %431 = vst [vmem:[#allocation2 + $0x60] sm:$0x1] %v430_v42  ;;  %v1707_v22 = vrot.slane %v5174_v31, 5  ;;  %v292_v32 = vmul.f32 %v5169_v13, %v253_v28 }
  0x92   : > { %3001 = vmatprep.mubr.bf16.mxu1 %v5266_v10  ;;  %487 = vst [vmem:[#allocation2 + $0x68] sm:$0x1] %v486_v29  ;;  %v1710_v33 = vrot.slane %v5176_v26, 5  ;;  %v255_v60 = vld [vmem:[%s4782_s22 + $0x90] sm:$0xff]  ;;  %v5443_v7 = vcombine.low %v1358_v1, %v1368_v21  ;;  %v4021_v52 = vpack.c.bf16 %v361_v58, %v361_v58  ;;  %v293_v45 = vmul.f32 %v5169_v13, %v254_v37  ;;  %v4665_v37 = vld [vmem:[%s6325_s3 + $0x1f8] sm:$0xff]  }
  0x93   : > { %v4664_v59 = vld [vmem:[%s6325_s3 + $0x1b0] sm:$0xff]   ;;  %v4022_v51 = vpack.c.bf16 %v362_v50, %v362_v50  ;;  %v1708_v62 = vsel %vm4864_vm11, %v3894_v34, %v1707_v22  ;;  %v1709_v24 = vrot.slane %v1707_v22, 4  ;;  %v433_v31 = vsel %vm4789_vm3, 0, %v432_v9  ;;  %v4667_v55 = vld [vmem:[%s6325_s3 + $0x1b8] sm:$0xff]  }
  0x94   : > { %6366 = vst [vmem:[#allocation13_spill] sm:$0xff] %v5443_v7  ;;  %4386 = vmatpush3.bf16.msra.mxu1 %v4661_v41  ;;  %2864 = vmatprep.mubr.bf16.mxu0 %v5443_v7  ;;  %v717_v26 = vshrl.u32 %v4021_v52, 16  ;;  %v720_v6 = vshll.u32 %v4021_v52, 16  ;;  %v331_v11 = vadd.f32 %v5199_v53, %v292_v32  ;;  %v332_v56 = vadd.f32 %v5199_v53, %v293_v45 }
  0x95   : > { %434 = vst [vmem:[#allocation2 + $0x6c] sm:$0x1] %v433_v31  ;;  %4387 = vmatprep.subr.bf16.mxu1 %v4662_v35  ;;  %2865 = vmatmul.mubr.bf16.gmra.mrb[24].mxu0 %v5396_v3  ;;  %v725_v28 = vshrl.u32 %v4022_v51, 16  ;;  %v728_v1 = vshll.u32 %v4022_v51, 16  ;;  %v1711_v41 = vsel %vm4864_vm11, %v1709_v24, %v1710_v33  ;;  %v489_v9 = vsel %vm4799_vm6, 0, %v488_v36 }
  0x96   : > { %v5465_v16 = vld [vmem:[#allocation2 + $0x54] sm:$0xf]  ;;  %v5467_v23 = vld [vmem:[#allocation2 + $0x5c] sm:$0x1]  ;;  %v719_v35 = vrot.slane %v717_v26, 7  ;;  %v5469_v58 = vcombine.low %v1708_v62, %v1711_v41  ;;  %v363_v42 = vmax.f32 %v331_v11, 0.0  ;;  %v294_v29 = vmul.f32 %v5169_v13, %v255_v60 }
  0x97   : > { %490 = vst [vmem:[#allocation2 + $0x74] sm:$0x1] %v489_v9  ;;  %v5472_v34 = vld [vmem:[#allocation2 + $0x58] sm:$0xf]  ;;  %v1370_v21 = vshrl.u32 %v5465_v16, 16  ;;  %v1373_v36 = vshll.u32 %v5465_v16, 16 }
  0x98   : > { %v1389_v50 = vshll.u32 %v5467_v23, 16  ;;  %v727_v22 = vrot.slane %v725_v28, 7  ;;  %4388 = vmatpush3.bf16.msra.mxu1 %v4664_v59  ;;  %v1379_v33 = vshll.u32 %v5472_v34, 16  ;;  %v1383_v52 = vshrl.u32 %v5472_v34, 16  ;;  %v969_v60 = vld [vmem:[#allocation2 + $0x60] sm:$0xf] }
  0x99   : > { %v5481_v32 = vcombine.low %v5465_v16, %v5472_v34  ;;  %v722_v45 = vor.u32 %v720_v6, %v719_v35  ;;  %v973_v51 = vld [vmem:[#allocation2 + $0x68] sm:$0x1]  ;;  %3002 = vmatmul.mubr.bf16.gmra.mrb[28].mxu1 %v5469_v58  ;;  %4389 = vmatprep.subr.bf16.mxu1 %v4665_v37  ;;  %v1372_v62 = vrot.slane %v1370_v21, 4  ;;  %v1375_v24 = vrot.slane %v1373_v36, 5 }
  0x9a   : > { %v1391_v31 = vrot.slane %v1389_v50, 5  ;;  %v723_v26 = vrot.slane %v719_v35, 4  ;;  %3009 = vmatprep.mubr.bf16.mxu1 %v5325_v30  ;;  %v1381_v59 = vrot.slane %v1379_v33, 5  ;;  %v1385_v11 = vrot.slane %v1383_v52, 4 }
  0x9b   : > { %v730_v28 = vor.u32 %v728_v1, %v727_v22  ;;  %v732_v41 = vrot.slane %v727_v22, 4  ;;  %v1376_v9 = vor.u32 %v1375_v24, %v1372_v62  ;;  %v970_v6 = vsel %vm4887_vm13, %v722_v45, %v969_v60 }
  0x9c   : > { %v364_v10 = vmax.f32 %v332_v56, 0.0  ;;  %v4023_v7 = vpack.c.bf16 %v363_v42, %v363_v42  ;;  %4390 = vmatpush3.bf16.msra.mxu1 %v4667_v55  ;;  %v1386_v8 = vor.u32 %v1385_v11, %v1381_v59  ;;  %971 = vst [vmem:[#allocation2 + $0x60] sm:$0xf] %v970_v6  ;;  %v3895_v21 = vrot.slane %v5250_v15, 9  ;;  %v435_v56 = vld [vmem:[#allocation2 + $0x78] sm:$0x1] }
  0x9d   : > { %v731_v37 = vsel %vm4903_vm14, %v723_v26, %v730_v28  ;;  %v974_v35 = vsel %vm4789_vm3, %v732_v41, %v973_v51  ;;  %v1377_v1 = vrot.slane %v1376_v9, 4  ;;  %v1714_v55 = vrot.slane %v5253_v38, 5  ;;  %v976_v62 = vld [vmem:[#allocation2 + $0x6c] sm:$0xf]  ;;  %v257_v41 = vld [vmem:[%s4782_s22 + $0xa0] sm:$0xff] }
  0x9e   : > { %972 = vst [vmem:[#allocation2 + $0x64] sm:$0xf] %v731_v37  ;;  %975 = vst [vmem:[#allocation2 + $0x68] sm:$0x1] %v974_v35  ;;  %v4024_v36 = vpack.c.bf16 %v364_v10, %v364_v10  ;;  %v734_v50 = vshrl.u32 %v4023_v7, 16  ;;  %v737_v22 = vshll.u32 %v4023_v7, 16  ;;  %v295_v52 = vmul.f32 %v5169_v13, %v256_v44 }
  0x9f   : > { %v1387_v42 = vrot.slane %v1386_v8, 4  ;;  %v1717_v33 = vrot.slane %v5260_v46, 5  ;;  %v1382_v45 = vsel %vm4876_vm12, %v1377_v1, %v1381_v59  ;;  %v1715_v8 = vsel %vm4864_vm11, %v3895_v21, %v1714_v55  ;;  %v980_v35 = vld [vmem:[#allocation2 + $0x74] sm:$0x1] }
  0xa0   : > { %v736_v60 = vrot.slane %v734_v50, 7  ;;  %v742_v15 = vshrl.u32 %v4024_v36, 16  ;;  %v745_v51 = vshll.u32 %v4024_v36, 16  ;;  %v1716_v7 = vrot.slane %v1714_v55, 4 }
  0xa1   : > { %v1392_v10 = vsel %vm4876_vm12, %v1387_v42, %v1391_v31  ;;  %v333_v38 = vadd.f32 %v5199_v53, %v294_v29  ;;  %v334_v11 = vadd.f32 %v5199_v53, %v295_v52  ;;  %v436_v31 = vsel %vm4789_vm3, 0, %v435_v56 }
  0xa2   : > { %v5503_v46 = vcombine.low %v1382_v45, %v1392_v10  ;;  %v739_v44 = vor.u32 %v737_v22, %v736_v60  ;;  %v740_v24 = vrot.slane %v736_v60, 4  ;;  %v744_v26 = vrot.slane %v742_v15, 7  ;;  %437 = vst [vmem:[#allocation2 + $0x78] sm:$0x1] %v436_v31 }
  0xa3   : > { %v1718_v59 = vsel %vm4864_vm11, %v1716_v7, %v1717_v33  ;;  %v365_v28 = vmax.f32 %v333_v38, 0.0  ;;  %v5512_v9 = vld [vmem:[#allocation2 + $0x60] sm:$0xf]  ;;  %v5530_v52 = vmul.f32 %v5169_v13, %v257_v41  ;;  %v366_v7 = vmax.f32 %v334_v11, 0.0 }
  0xa4   : > { %2872 = vmatprep.mubr.bf16.mxu0 %v5503_v46  ;;  %v747_v29 = vor.u32 %v745_v51, %v744_v26  ;;  %v749_v6 = vrot.slane %v744_v26, 4  ;;  %v977_v37 = vsel %vm4887_vm13, %v739_v44, %v976_v62  ;;  %v5516_v21 = vcombine.low %v1715_v8, %v1718_v59  ;;  %v491_v33 = vld [vmem:[#allocation2 + $0x80] sm:$0x1] }
  0xa5   : > { %2873 = vmatmul.mubr.bf16.gmra.mrb[28].mxu0 %v5481_v32  ;;  %v5519_v53 = vld [vmem:[#allocation2 + $0x64] sm:$0xf]  ;;  %v5521_v1 = vld [vmem:[#allocation2 + $0x68] sm:$0x1]  ;;  %v1394_v36 = vshrl.u32 %v5512_v9, 16  ;;  %v1397_v50 = vshll.u32 %v5512_v9, 16  ;;  %v4025_v22 = vpack.c.bf16 %v365_v28, %v365_v28 }
  0xa6   : > { %978 = vst [vmem:[#allocation2 + $0x6c] sm:$0xf] %v977_v37  ;;  %v1403_v56 = vshll.u32 %v5519_v53, 16  ;;  %v1407_v42 = vshrl.u32 %v5519_v53, 16  ;;  %v1413_v55 = vshll.u32 %v5521_v1, 16  ;;  %3010 = vmatmul.mubr.bf16.gmra.mrb[32].mxu1 %v5516_v21  ;;  %v748_v15 = vsel %vm4903_vm14, %v740_v24, %v747_v29 }
  0xa7   : > { %v1396_v45 = vrot.slane %v1394_v36, 4  ;;  %v1399_v60 = vrot.slane %v1397_v50, 5  ;;  %v981_v51 = vsel %vm4789_vm3, %v749_v6, %v980_v35  ;;  %3017 = vmatprep.mubr.bf16.mxu1 %v5396_v3  ;;  %979 = vst [vmem:[#allocation2 + $0x70] sm:$0xf] %v748_v15  ;;  %v492_v13 = vsel %vm4799_vm6, 0, %v491_v33  ;;  %v258_v33 = vld [vmem:[%s4782_s22 + $0xa8] sm:$0xff] }
  0xa8   : > { %v1405_v10 = vrot.slane %v1403_v56, 5  ;;  %v1409_v62 = vrot.slane %v1407_v42, 4  ;;  %v1415_v8 = vrot.slane %v1413_v55, 5  ;;  %982 = vst [vmem:[#allocation2 + $0x74] sm:$0x1] %v981_v51  ;;  %v751_v44 = vshrl.u32 %v4025_v22, 16 }
  0xa9   : > { %v1400_v38 = vor.u32 %v1399_v60, %v1396_v45  ;;  %v754_v26 = vshll.u32 %v4025_v22, 16  ;;  %493 = vst [vmem:[#allocation2 + $0x80] sm:$0x1] %v492_v13  ;;  %v4026_v24 = vpack.c.bf16 %v366_v7, %v366_v7  ;;  %v3896_v28 = vrot.slane %v5295_v12, 9  ;;  %v983_v6 = vld [vmem:[#allocation2 + $0x78] sm:$0xf] }
  0xaa   : > { %v1410_v59 = vor.u32 %v1409_v62, %v1405_v10  ;;  %v1721_v31 = vrot.slane %v5310_v0, 5  ;;  %v5543_v29 = vcombine.low %v5512_v9, %v5519_v53  ;;  %v753_v11 = vrot.slane %v751_v44, 7 }
  0xab   : > { %v1401_v41 = vrot.slane %v1400_v38, 4  ;;  %v1724_v37 = vrot.slane %v5319_v63, 5  ;;  %v759_v50 = vshrl.u32 %v4026_v24, 16  ;;  %v762_v22 = vshll.u32 %v4026_v24, 16 }
  0xac   : > { %v1411_v35 = vrot.slane %v1410_v59, 4  ;;  %v1722_v12 = vsel %vm4864_vm11, %v3896_v28, %v1721_v31  ;;  %v756_v55 = vor.u32 %v754_v26, %v753_v11  ;;  %v757_v45 = vrot.slane %v753_v11, 4  ;;  %v5571_v59 = vld [vmem:[%s6323_s1] ss:$0 sm:$0xff]  ;;  %v438_v28 = vld [vmem:[#allocation2 + $0x84] sm:$0x1] }
  0xad   : > { %v5546_v36 = vld [vmem:[#allocation2 + $0x6c] sm:$0xf]  ;;  %v1406_v0 = vsel %vm4876_vm12, %v1401_v41, %v1405_v10  ;;  %v761_v60 = vrot.slane %v759_v50, 7  ;;  %v1723_v15 = vrot.slane %v1721_v31, 4  ;;  %v297_v24 = vmul.f32 %v5571_v59, %v258_v33 }
  0xae   : > { %v1418_v56 = vshrl.u32 %v5546_v36, 16  ;;  %v1421_v42 = vshll.u32 %v5546_v36, 16  ;;  %v1416_v63 = vsel %vm4876_vm12, %v1411_v35, %v1415_v8  ;;  %v5559_v62 = vld [vmem:[#allocation2 + $0x70] sm:$0xf]  ;;  %v984_v13 = vsel %vm4887_vm13, %v756_v55, %v983_v6  ;;  %v494_v50 = vld [vmem:[#allocation2 + $0x8c] sm:$0x1] }
  0xaf   : > { %v5557_v51 = vcombine.low %v1406_v0, %v1416_v63  ;;  %v5561_v7 = vld [vmem:[#allocation2 + $0x74] sm:$0x1]  ;;  %v1427_v44 = vshll.u32 %v5559_v62, 16  ;;  %v1431_v26 = vshrl.u32 %v5559_v62, 16  ;;  %985 = vst [vmem:[#allocation2 + $0x78] sm:$0xf] %v984_v13  ;;  %v764_v41 = vor.u32 %v762_v22, %v761_v60 }
  0xb0   : > { %v1420_v38 = vrot.slane %v1418_v56, 4  ;;  %v1423_v10 = vrot.slane %v1421_v42, 5  ;;  %v1437_v8 = vshll.u32 %v5561_v7, 16  ;;  %v766_v11 = vrot.slane %v761_v60, 4  ;;  %v987_v6 = vld [vmem:[#allocation2 + $0x80] sm:$0x1] }
  0xb1   : > { %2880 = vmatprep.mubr.bf16.mxu0 %v5557_v51  ;;  %v1725_v35 = vsel %vm4864_vm11, %v1723_v15, %v1724_v37  ;;  %v1429_v0 = vrot.slane %v1427_v44, 5  ;;  %v1433_v56 = vrot.slane %v1431_v26, 4  ;;  %v765_v33 = vsel %vm4903_vm14, %v757_v45, %v764_v41  ;;  %v5587_v60 = vld [vmem:[%s6324_s2] ss:$0 sm:$0xff] }
  0xb2   : > { %v1424_v31 = vor.u32 %v1423_v10, %v1420_v38  ;;  %2881 = vmatmul.mubr.bf16.gmra.mrb[32].mxu0 %v5543_v29  ;;  %v1439_v42 = vrot.slane %v1437_v8, 5  ;;  %v5578_v55 = vcombine.low %v1722_v12, %v1725_v35  ;;  %v988_v22 = vsel %vm4789_vm3, %v766_v11, %v987_v6  ;;  %986 = vst [vmem:[#allocation2 + $0x7c] sm:$0xf] %v765_v33 }
  0xb3   : > { %v335_v37 = vadd.f32 %v5587_v60, %v5530_v52  ;;  %v1434_v15 = vor.u32 %v1433_v56, %v1429_v0  ;;  %989 = vst [vmem:[#allocation2 + $0x80] sm:$0x1] %v988_v22  ;;  %v336_v12 = vadd.f32 %v5587_v60, %v297_v24  ;;  %v439_v45 = vsel %vm4789_vm3, 0, %v438_v28 }
  0xb4   : > { %v1425_v63 = vrot.slane %v1424_v31, 4  ;;  %3018 = vmatmul.mubr.bf16.gmra.mrb[36].mxu1 %v5578_v55  ;;  %v495_v38 = vsel %vm4799_vm6, 0, %v494_v50  ;;  %v5599_v10 = vcombine.low %v5546_v36, %v5559_v62  ;;  %440 = vst [vmem:[#allocation2 + $0x84] sm:$0x1] %v439_v45  ;;  %v3897_v13 = vrot.slane %v5369_v4, 9 }
  0xb5   : > { %3025 = vmatprep.mubr.bf16.mxu1 %v5481_v32  ;;  %v367_v52 = vmax.f32 %v335_v37, 0.0  ;;  %496 = vst [vmem:[#allocation2 + $0x8c] sm:$0x1] %v495_v38  ;;  %v1728_v44 = vrot.slane %v5383_v48, 5  ;;  %v1435_v8 = vrot.slane %v1434_v15, 4  ;;  %v368_v24 = vmax.f32 %v336_v12, 0.0 }
  0xb6   : > { %v1430_v26 = vsel %vm4876_vm12, %v1425_v63, %v1429_v0  ;;  %v1731_v28 = vrot.slane %v5388_v54, 5  ;;  %v5607_v31 = vld [vmem:[#allocation2 + $0x78] sm:$0xf]  ;;  %v1735_v35 = vrot.slane %v5472_v34, 5  ;;  %v3898_v34 = vrot.slane %v5465_v16, 9 }
  0xb7   : > { %v4027_v41 = vpack.c.bf16 %v367_v52, %v367_v52  ;;  %v1729_v11 = vsel %vm4864_vm11, %v3897_v13, %v1728_v44  ;;  %v1730_v6 = vrot.slane %v1728_v44, 4  ;;  %v1440_v4 = vsel %vm4876_vm12, %v1435_v8, %v1439_v42 }
  0xb8   : > { %v1442_v48 = vshrl.u32 %v5607_v31, 16  ;;  %v1445_v50 = vshll.u32 %v5607_v31, 16  ;;  %v4028_v0 = vpack.c.bf16 %v368_v24, %v368_v24  ;;  %v5616_v56 = vcombine.low %v1430_v26, %v1440_v4 }
  0xb9   : > { %v768_v54 = vshrl.u32 %v4027_v41, 16  ;;  %v771_v63 = vshll.u32 %v4027_v41, 16  ;;  %v1732_v33 = vsel %vm4864_vm11, %v1730_v6, %v1731_v28  ;;  %v5622_v42 = vld [vmem:[#allocation2 + $0x7c] sm:$0xf]  ;;  %v1737_v6 = vrot.slane %v1735_v35, 4 }
  0xba   : > { %v1444_v22 = vrot.slane %v1442_v48, 4  ;;  %v1447_v37 = vrot.slane %v1445_v50, 5  ;;  %v776_v15 = vshrl.u32 %v4028_v0, 16  ;;  %2888 = vmatprep.mubr.bf16.mxu0 %v5616_v56  ;;  %v5624_v12 = vld [vmem:[#allocation2 + $0x80] sm:$0x1]  ;;  %v779_v38 = vshll.u32 %v4028_v0, 16 }
  0xbb   : > { %v770_v45 = vrot.slane %v768_v54, 7  ;;  %v5626_v52 = vcombine.low %v1729_v11, %v1732_v33  ;;  %2889 = vmatmul.mubr.bf16.gmra.mrb[36].mxu0 %v5599_v10  ;;  %v1451_v44 = vshll.u32 %v5622_v42, 16  ;;  %v1455_v26 = vshrl.u32 %v5622_v42, 16  ;;  %v990_v16 = vld [vmem:[#allocation2 + $0x84] sm:$0xf] }
  0xbc   : > { %v1448_v13 = vor.u32 %v1447_v37, %v1444_v22  ;;  %v1461_v8 = vshll.u32 %v5624_v12, 16  ;;  %v778_v41 = vrot.slane %v776_v15, 7  ;;  %v994_v50 = vld [vmem:[#allocation2 + $0x8c] sm:$0x1]  ;;  %v1736_v0 = vsel %vm4864_vm11, %v3898_v34, %v1735_v35 }
  0xbd   : > { %v773_v24 = vor.u32 %v771_v63, %v770_v45  ;;  %v774_v28 = vrot.slane %v770_v45, 4  ;;  %3026 = vmatmul.mubr.bf16.gmra.mrb[40].mxu1 %v5626_v52  ;;  %v1453_v48 = vrot.slane %v1451_v44, 5  ;;  %v1457_v11 = vrot.slane %v1455_v26, 4 }
  0xbe   : > { %v1449_v4 = vrot.slane %v1448_v13, 4  ;;  %3033 = vmatprep.mubr.bf16.mxu1 %v5543_v29  ;;  %v781_v54 = vor.u32 %v779_v38, %v778_v41  ;;  %v783_v33 = vrot.slane %v778_v41, 4  ;;  %v1738_v63 = vrot.slane %v5467_v23, 5 }
  0xbf   : > { %v991_v22 = vsel %vm4887_vm13, %v773_v24, %v990_v16  ;;  %v1458_v15 = vor.u32 %v1457_v11, %v1453_v48  ;;  %v1463_v45 = vrot.slane %v1461_v8, 5  ;;  %v1742_v13 = vrot.slane %v5519_v53, 5 }
  0xc0   : > { %v1454_v37 = vsel %vm4876_vm12, %v1449_v4, %v1453_v48  ;;  %992 = vst [vmem:[#allocation2 + $0x84] sm:$0xf] %v991_v22  ;;  %v782_v44 = vsel %vm4903_vm14, %v774_v28, %v781_v54  ;;  %v995_v35 = vsel %vm4789_vm3, %v783_v33, %v994_v50  ;;  %v1739_v34 = vsel %vm4864_vm11, %v1737_v6, %v1738_v63 }
  0xc1   : > { %v3899_v38 = vrot.slane %v5512_v9, 9  ;;  %v1459_v23 = vrot.slane %v1458_v15, 4  ;;  %993 = vst [vmem:[#allocation2 + $0x88] sm:$0xf] %v782_v44  ;;  %996 = vst [vmem:[#allocation2 + $0x8c] sm:$0x1] %v995_v35  ;;  %v5649_v26 = vcombine.low %v1736_v0, %v1739_v34  ;;  %v5656_v24 = vcombine.low %v5607_v31, %v5622_v42 }
  0xc2   : > { %v1744_v8 = vrot.slane %v1742_v13, 4  ;;  %v1745_v16 = vrot.slane %v5521_v1, 5  ;;  %v1749_v9 = vrot.slane %v5559_v62, 5  ;;  %v3900_v62 = vrot.slane %v5546_v36, 9 }
  0xc3   : > { %v1464_v53 = vsel %vm4876_vm12, %v1459_v23, %v1463_v45  ;;  %v1743_v41 = vsel %vm4864_vm11, %v3899_v38, %v1742_v13  ;;  %v1752_v33 = vrot.slane %v5561_v7, 5  ;;  %v1756_v7 = vrot.slane %v5622_v42, 5 }
  0xc4   : > { %v5658_v28 = vcombine.low %v1454_v37, %v1464_v53  ;;  %v1746_v1 = vsel %vm4864_vm11, %v1744_v8, %v1745_v16  ;;  %v1751_v54 = vrot.slane %v1749_v9, 4  ;;  %v1750_v35 = vsel %vm4864_vm11, %v3900_v62, %v1749_v9  ;;  %v267_v16 = vld [vmem:[%s4782_s22 + $0xf0] sm:$0xff]  ;;  %v268_v53 = vld [vmem:[%s4782_s22 + $0xf8] sm:$0xff] }
  0xc5   : > { %3034 = vmatmul.mubr.bf16.gmra.mrb[44].mxu1 %v5649_v26  ;;  %v5678_v0 = vcombine.low %v1743_v41, %v1746_v1  ;;  %v453_v41 = vld [vmem:[#allocation2 + $0xc0] sm:$0x1]  ;;  %v1758_v42 = vrot.slane %v1756_v7, 4  ;;  %v1759_v62 = vrot.slane %v5624_v12, 5 }
  0xc6   : > { %3041 = vmatprep.mubr.bf16.mxu1 %v5599_v10  ;;  %2896 = vmatprep.mubr.bf16.mxu0 %v5658_v28  ;;  %v1753_v8 = vsel %vm4864_vm11, %v1751_v54, %v1752_v33  ;;  %v307_v33 = vmul.f32 %v5571_v59, %v268_v53 }
  0xc7   : > { %v5668_v6 = vld [vmem:[#allocation2 + $0x84] sm:$0xf]  ;;  %2897 = vmatmul.mubr.bf16.gmra.mrb[40].mxu0 %v5656_v24  ;;  %v5696_v9 = vcombine.low %v1750_v35, %v1753_v8 }
  0xc8   : > { %v1466_v4 = vshrl.u32 %v5668_v6, 16  ;;  %v1469_v48 = vshll.u32 %v5668_v6, 16  ;;  %v5674_v11 = vld [vmem:[#allocation2 + $0x88] sm:$0xf]  ;;  %v5676_v50 = vld [vmem:[#allocation2 + $0x8c] sm:$0x1]  ;;  %v346_v12 = vadd.f32 %v5587_v60, %v307_v33 }
  0xc9   : > { %v1475_v37 = vshll.u32 %v5674_v11, 16  ;;  %v1479_v15 = vshrl.u32 %v5674_v11, 16  ;;  %v1485_v45 = vshll.u32 %v5676_v50, 16  ;;  %v5704_v54 = vcombine.low %v5668_v6, %v5674_v11 }
  0xca   : > { %v1468_v22 = vrot.slane %v1466_v4, 4  ;;  %v1471_v63 = vrot.slane %v1469_v48, 5  ;;  %v3901_v48 = vrot.slane %v5607_v31, 9  ;;  %v509_v31 = vld [vmem:[#allocation2 + $0xc8] sm:$0x1]  ;;  %v378_v35 = vmax.f32 %v346_v12, 0.0 }
  0xcb   : > { %v1477_v13 = vrot.slane %v1475_v37, 5  ;;  %v1481_v44 = vrot.slane %v1479_v15, 4  ;;  %v1487_v23 = vrot.slane %v1485_v45, 5  ;;  %v454_v37 = vsel %vm4789_vm3, 0, %v453_v41 }
  0xcc   : > { %v1472_v36 = vor.u32 %v1471_v63, %v1468_v22  ;;  %v306_v22 = vmul.f32 %v5571_v59, %v267_v16  ;;  %455 = vst [vmem:[#allocation2 + $0xc0] sm:$0x1] %v454_v37  ;;  %v1757_v59 = vsel %vm4864_vm11, %v3901_v48, %v1756_v7  ;;  %v3902_v8 = vrot.slane %v5668_v6, 9 }
  0xcd   : > { %3042 = vmatmul.mubr.bf16.gmra.mrb[48].mxu1 %v5678_v0  ;;  %v1482_v38 = vor.u32 %v1481_v44, %v1477_v13  ;;  %v1760_v44 = vsel %vm4864_vm11, %v1758_v42, %v1759_v62  ;;  %v1766_v7 = vrot.slane %v5676_v50, 5  ;;  %v4678_v62 = vld [vmem:[#allocation2 + $0x94] sm:$0xf] }
  0xce   : > { %v1473_v34 = vrot.slane %v1472_v36, 4  ;;  %3049 = vmatprep.mubr.bf16.mxu1 %v5656_v24  ;;  %v345_v45 = vadd.f32 %v5587_v60, %v306_v22  ;;  %v1763_v60 = vrot.slane %v5674_v11, 5  ;;  %v4660_v11 = vld [vmem:[%s6325_s3 + $0x208] sm:$0xff]   ;;  %v1770_v22 = vrot.slane %v4678_v62, 5 }
  0xcf   : > { %v1483_v4 = vrot.slane %v1482_v38, 4  ;;  %v4038_v38 = vpack.c.bf16 %v378_v35, %v378_v35  ;;  %v4680_v35 = vld [vmem:[#allocation2 + $0x98] sm:$0x1] }
  0xd0   : > { %v1478_v1 = vsel %vm4876_vm12, %v1473_v34, %v1477_v13  ;;  %v377_v36 = vmax.f32 %v345_v45, 0.0  ;;  %v510_v13 = vsel %vm4799_vm6, 0, %v509_v31  ;;  %v1765_v41 = vrot.slane %v1763_v60, 4 }
  0xd1   : > { %v1488_v63 = vsel %vm4876_vm12, %v1483_v4, %v1487_v23  ;;  %511 = vst [vmem:[#allocation2 + $0xc8] sm:$0x1] %v510_v13  ;;  %v5725_v23 = vcombine.low %v1757_v59, %v1760_v44  ;;  %v864_v4 = vshll.u32 %v4038_v38, 16  ;;  %v1764_v50 = vsel %vm4864_vm11, %v3902_v8, %v1763_v60  ;;  %v4679_v44 = vld [vmem:[#allocation2 + $0x90] sm:$0xf] }
  0xd2   : > { %v5709_v15 = vcombine.low %v1478_v1, %v1488_v63  ;;  %v4037_v34 = vpack.c.bf16 %v377_v36, %v377_v36  ;;  %v861_v1 = vshrl.u32 %v4038_v38, 16  ;;  %v1767_v37 = vsel %vm4864_vm11, %v1765_v41, %v1766_v7 }
  0xd3   : > { %v5750_v59 = vcombine.low %v1764_v50, %v1767_v37  ;;  %v3903_v60 = vrot.slane %v4679_v44, 9  ;;  %v1773_v20 = vrot.slane %v4680_v35, 5 }
  0xd4   : > { %2904 = vmatprep.mubr.bf16.mxu0 %v5709_v15  ;;  %v853_v16 = vshrl.u32 %v4037_v34, 16  ;;  %v856_v53 = vshll.u32 %v4037_v34, 16  ;;  %v863_v42 = vrot.slane %v861_v1, 7  ;;  %v4681_v34 = vld [vmem:[#allocation2 + $0xa0] sm:$0xf] }
  0xd5   : > { %3050 = vmatmul.mubr.bf16.gmra.mrb[52].mxu1 %v5696_v9  ;;  %2905 = vmatmul.mubr.bf16.gmra.mrb[44].mxu0 %v5704_v54  ;;  %v1777_v38 = vrot.slane %v4681_v34, 5  ;;  %v1771_v8 = vsel %vm4864_vm11, %v3903_v60, %v1770_v22  ;;  %v4670_v60 = vld [vmem:[%s6325_s3 + $0x228] sm:$0xff]  }
  0xd6   : > { %3057 = vmatprep.mubr.bf16.mxu1 %v5704_v54  ;;  %3138 = vmatprep.mubr.bf16.mxu0 %v5338_v57  ;;  %v855_v48 = vrot.slane %v853_v16, 7  ;;  %v1025_v57 = vld [vmem:[#allocation2 + $0xc0] sm:$0xf]  ;;  %v866_v31 = vor.u32 %v864_v4, %v863_v42  ;;  %v868_v45 = vrot.slane %v863_v42, 4 }
  0xd7   : > { %v1779_v7 = vrot.slane %v1777_v38, 4  ;;  %v4669_v4 = vld [vmem:[%s6325_s3 + $0x220] sm:$0xff]  }
  0xd8   : > { %v858_v63 = vor.u32 %v856_v53, %v855_v48  ;;  %v859_v6 = vrot.slane %v855_v48, 4  ;;  %v1029_v33 = vld [vmem:[#allocation2 + $0xc8] sm:$0x1]  ;;  %v4682_v53 = vld [vmem:[#allocation2 + $0x9c] sm:$0xf] }
  0xd9   : > { %v1030_v13 = vsel %vm4789_vm3, %v868_v45, %v1029_v33  ;;  %v3904_v41 = vrot.slane %v4682_v53, 9 }
  0xda   : > { %v1026_v12 = vsel %vm4887_vm13, %v858_v63, %v1025_v57  ;;  %v867_v36 = vsel %vm4903_vm14, %v859_v6, %v866_v31  ;;  %1031 = vst [vmem:[#allocation2 + $0xc8] sm:$0x1] %v1030_v13 }
  0xdb   : > { %1027 = vst [vmem:[#allocation2 + $0xc0] sm:$0xf] %v1026_v12  ;;  %1028 = vst [vmem:[#allocation2 + $0xc4] sm:$0xf] %v867_v36 }
  0xdd   : > { %3058 = vmatmul.mubr.bf16.gmra.mrb[56].mxu1 %v5725_v23  ;;  %3139 = vmatmul.mubr.bf16.vlgmr.msra.gmra.mrb[48].mxu0 %v5020_v17  ;;  %v4663_v17 = vld [vmem:[%s6325_s3 + $0x210] sm:$0xff]  }
  0xde   : > { %3065 = vmatprep.mubr.bf16.mxu1 %v4953_v40  ;;  %3146 = vmatprep.mubr.bf16.mxu0 %v5416_v49 }
  0xdf   : > { %4512 = vmatpush3.bf16.msra.mxu0 %v5357_v47  ;;  %v1772_v47 = vrot.slane %v1770_v22, 4  ;;  %v4683_v22 = vld [vmem:[#allocation2 + $0xa4] sm:$0x1] }
  0xe0   : > { %4513 = vmatprep.subr.bf16.mxu0 %v4660_v11  ;;  %v1780_v63 = vrot.slane %v4683_v22, 5 }
  0xe1   : > { %v1774_v16 = vsel %vm4864_vm11, %v1772_v47, %v1773_v20  ;;  %v1082_v62 = vld [vmem:[#allocation2 + $0xc8] sm:$0x1]  ;;  %v1778_v20 = vsel %vm4864_vm11, %v3904_v41, %v1777_v38  ;;  %v4671_v38 = vld [vmem:[%s6325_s3 + $0x230] sm:$0xff]  }
  0xe2   : > { %v5763_v1 = vld [vmem:[#allocation2 + $0xc0] sm:$0xf]  ;;  %v5768_v48 = vcombine.low %v1771_v8, %v1774_v16  ;;  %v1948_v37 = vrot.slane %v1082_v62, 5  ;;  %v1918_v44 = vshll.u32 %v1082_v62, 16  ;;  %v1781_v34 = vsel %vm4864_vm11, %v1779_v7, %v1780_v63  ;;  %v4685_v63 = vld [vmem:[#allocation2 + $0xa8] sm:$0xf] }
  0xe3   : > { %4514 = vmatpush3.bf16.msra.mxu0 %v4660_v11  ;;  %v1081_v11 = vld [vmem:[#allocation2 + $0xc4] sm:$0xf]  ;;  %v1899_v42 = vshrl.u32 %v5763_v1, 16  ;;  %v1902_v57 = vshll.u32 %v5763_v1, 16  ;;  %v3925_v33 = vrot.slane %v5763_v1, 9  ;;  %v5795_v22 = vcombine.low %v1778_v20, %v1781_v34 }
  0xe4   : > { %4515 = vmatprep.subr.bf16.mxu0 %v4663_v17  ;;  %v1912_v6 = vshrl.u32 %v1081_v11, 16  ;;  %v1945_v50 = vrot.slane %v1081_v11, 5  ;;  %v1908_v12 = vshll.u32 %v1081_v11, 16  ;;  %v1920_v62 = vrot.slane %v1918_v44, 5 }
  0xe5   : > { %3066 = vmatmul.mubr.bf16.gmra.mrb[60].mxu1 %v5750_v59  ;;  %3147 = vmatmul.mubr.bf16.gmra.mrb[52].mxu0 %v5121_v43  ;;  %v1901_v31 = vrot.slane %v1899_v42, 4  ;;  %v1904_v45 = vrot.slane %v1902_v57, 5 }
  0xe6   : > { %3073 = vmatprep.mubr.bf16.mxu1 %v5035_v39  ;;  %3154 = vmatprep.mubr.bf16.mxu0 %v5469_v58  ;;  %v1947_v36 = vrot.slane %v1945_v50, 4  ;;  %v1914_v13 = vrot.slane %v1912_v6, 4  ;;  %v1910_v35 = vrot.slane %v1908_v12, 5  ;;  %v3905_v6 = vrot.slane %v4685_v63, 9  ;;  %v6367_v12 = vld [vmem:[#allocation9_spill] sm:$0xff] }
  0xe7   : > { %4516 = vmatpush3.bf16.msra.mxu0 %v4663_v17  ;;  %v1946_v17 = vsel %vm4864_vm11, %v3925_v33, %v1945_v50  ;;  %v1905_v47 = vor.u32 %v1904_v45, %v1901_v31  ;;  %v4686_v50 = vld [vmem:[#allocation2 + $0xb0] sm:$0x1]  ;;  %v4672_v45 = vld [vmem:[%s6325_s3 + $0x238] sm:$0xff]  }
  0xe8   : > { %4517 = vmatprep.subr.bf16.mxu0 %v4666_v25  ;;  %v1949_v16 = vsel %vm4864_vm11, %v1947_v36, %v1948_v37  ;;  %v1915_v57 = vor.u32 %v1914_v13, %v1910_v35  ;;  %v1787_v37 = vrot.slane %v4686_v50, 5  ;;  %v4687_v13 = vld [vmem:[#allocation2 + $0xb8] sm:$0xf] }
  0xe9   : > { %v5787_v53 = vcombine.low %v1946_v17, %v1949_v16  ;;  %v1906_v42 = vrot.slane %v1905_v47, 4  ;;  %v1791_v44 = vrot.slane %v4687_v13, 5  ;;  %v5815_v47 = vcombine.low %v5763_v1, %v1081_v11 }
  0xea   : > { %v1916_v7 = vrot.slane %v1915_v57, 4 }
  0xeb   : > { %4518 = vmatpush3.bf16.msra.mxu0 %v4666_v25  ;;  %v4684_v25 = vld [vmem:[#allocation2 + $0xac] sm:$0xf]  ;;  %v1911_v41 = vsel %vm4876_vm12, %v1906_v42, %v1910_v35  ;;  %v4688_v35 = vld [vmem:[#allocation2 + $0xb4] sm:$0xf]  ;;  %v1793_v34 = vrot.slane %v1791_v44, 4 }
  0xec   : > { %4519 = vmatprep.subr.bf16.mxu0 %v4669_v4  ;;  %v1784_v8 = vrot.slane %v4684_v25, 5  ;;  %v1921_v31 = vsel %vm4876_vm12, %v1916_v7, %v1920_v62  ;;  %v3906_v20 = vrot.slane %v4688_v35, 9  ;;  %v4689_v25 = vld [vmem:[#allocation2 + $0xbc] sm:$0x1] }
  0xed   : > { %3074 = vmatmul.mubr.bf16.gmra.mrb[64].mxu1 %v5768_v48  ;;  %3155 = vmatmul.mubr.bf16.gmra.mrb[56].mxu0 %v5214_v27  ;;  %v1794_v16 = vrot.slane %v4689_v25, 5  ;;  %v6371_v35 = vld [vmem:[#allocation8_spill] sm:$0xff] }
  0xee   : > { %3081 = vmatprep.mubr.bf16.mxu1 %v5141_v19  ;;  %3162 = vmatprep.mubr.bf16.mxu0 %v5516_v21  ;;  %v1786_v33 = vrot.slane %v1784_v8, 4  ;;  %v1785_v17 = vsel %vm4864_vm11, %v3905_v6, %v1784_v8  ;;  %v6368_v8 = vld [vmem:[#allocation12_spill] sm:$0xff]  ;;  %v1792_v42 = vsel %vm4864_vm11, %v3906_v20, %v1791_v44  ;;  %v6369_v6 = vld [vmem:[#allocation13_spill] sm:$0xff] }
  0xef   : > { %4520 = vmatpush3.bf16.msra.mxu0 %v4669_v4  ;;  %v5799_v4 = vcombine.low %v1911_v41, %v1921_v31  ;;  %v1795_v57 = vsel %vm4864_vm11, %v1793_v34, %v1794_v16 }
  0xf0   : > { %4521 = vmatprep.subr.bf16.mxu0 %v4670_v60  ;;  %v1788_v36 = vsel %vm4864_vm11, %v1786_v33, %v1787_v37  ;;  %v5825_v62 = vcombine.low %v1792_v42, %v1795_v57  ;;  %v456_v33 = vld [vmem:[#allocation2 + $0xcc] sm:$0x1]  ;;  %v512_v37 = vld [vmem:[#allocation2 + $0xd4] sm:$0x1] }
  0xf1   : > { %v457_v50 = vsel %vm4789_vm3, 0, %v456_v33  ;;  %v513_v31 = vsel %vm4799_vm6, 0, %v512_v37  ;;  %v6372_v42 = vld [vmem:[#allocation11_spill] sm:$0xff] }
  0xf2   : > { %458 = vst [vmem:[#allocation2 + $0xcc] sm:$0x1] %v457_v50  ;;  %514 = vst [vmem:[#allocation2 + $0xd4] sm:$0x1] %v513_v31  ;;  %v6373_v31 = vld [vmem:[#allocation4_spill] sm:$0xff] }
  0xf3   : > { %4522 = vmatpush3.bf16.msra.mxu0 %v4670_v60  ;;  %v5812_v60 = vcombine.low %v1785_v17, %v1788_v36 }
  0xf4   : > { %4523 = vmatprep.subr.bf16.mxu0 %v4671_v38 }
  0xf5   : > { %3082 = vmatmul.mubr.bf16.gmra.mrb[68].mxu1 %v5795_v22  ;;  %3163 = vmatmul.mubr.bf16.gmra.mrb[60].mxu0 %v5317_v2 }
  0xf6   : > { %3089 = vmatprep.mubr.bf16.mxu1 %v6367_v12  ;;  %3170 = vmatprep.mubr.bf16.mxu0 %v5578_v55 }
  0xf7   : > { %4524 = vmatpush3.bf16.msra.mxu0 %v4671_v38 }
  0xf8   : > { %4525 = vmatprep.subr.bf16.mxu0 %v4672_v45 }
  0xfb   : > { %4526 = vmatpush3.bf16.msra.mxu0 %v4672_v45  ;;  %v6370_v45 = vld [vmem:[#allocation5_spill] sm:$0xff] }
  0xfd   : > { %3090 = vmatmul.mubr.bf16.gmra.mrb[72].mxu1 %v5812_v60  ;;  %3171 = vmatmul.mubr.bf16.gmra.mrb[64].mxu0 %v6368_v8 }
  0xfe   : > { %3097 = vmatprep.mubr.bf16.mxu1 %v5815_v47  ;;  %3178 = vmatprep.mubr.bf16.mxu0 %v5626_v52 }
 0x101   : > { %v4055_v1 = vpop.f32.mrb[0].mxu0 }
 0x102   : > { %v4056_v11 = vpop.f32.mrb[1].mxu0 }
 0x103   : > { %v5827_v38 = vadd.f32 %v4056_v11, %v4055_v1  ;;  %v4058_v41 = vpop.f32.mrb[2].mxu0 }
 0x104   : > { %v4059_v7 = vpop.f32.mrb[3].mxu0 }
 0x105   : > { %v5829_v63 = vadd.f32 %v4059_v7, %v4058_v41  ;;  %3098 = vmatmul.mubr.bf16.gmra.mrb[76].mxu1 %v5825_v62  ;;  %3179 = vmatmul.mubr.bf16.gmra.mrb[68].mxu0 %v6369_v6 }
 0x106   : > { %3299 = vmatprep.mubr.bf16.mxu1 %v5121_v43  ;;  %3186 = vmatprep.mubr.bf16.mxu0 %v5649_v26 }
 0x10d   : > { %3300 = vmatmul.mubr.bf16.vlgmr.msra.gmra.mrb[80].mxu1 %v6370_v45  ;;  %3187 = vmatmul.mubr.bf16.gmra.mrb[72].mxu0 %v5503_v46 }
 0x10e   : > { %3307 = vmatprep.mubr.bf16.mxu1 %v5214_v27  ;;  %3194 = vmatprep.mubr.bf16.mxu0 %v5678_v0  ;;  %v4127_v43 = vpop.f32.mrb[0].mxu1 }
 0x10f   : > { %v4128_v17 = vpop.f32.mrb[1].mxu1 }
 0x110   : > { %v5843_v36 = vadd.f32 %v4128_v17, %v4127_v43  ;;  %v4130_v14 = vpop.f32.mrb[2].mxu1 }
 0x111   : > { %v4131_v13 = vpop.f32.mrb[3].mxu1 }
 0x112   : > { %v5845_v44 = vadd.f32 %v4131_v13, %v4130_v14  ;;  %v6374_v13 = vld [vmem:[#allocation6_spill] sm:$0xff] }
 0x115   : > { %3308 = vmatmul.mubr.bf16.gmra.mrb[84].mxu1 %v6371_v35  ;;  %3195 = vmatmul.mubr.bf16.gmra.mrb[76].mxu0 %v5557_v51 }
 0x116   : > { %3315 = vmatprep.mubr.bf16.mxu1 %v5317_v2  ;;  %3202 = vmatprep.mubr.bf16.mxu0 %v5696_v9 }
 0x118   : > { %v4061_v18 = vpop.f32.mrb[4].mxu0 }
 0x119   : > { %v4062_v27 = vpop.f32.mrb[5].mxu0 }
 0x11a   : > { %v5851_v20 = vadd.f32 %v4062_v27, %v4061_v18  ;;  %v4064_v34 = vpop.f32.mrb[6].mxu0 }
 0x11b   : > { %v4065_v25 = vpop.f32.mrb[7].mxu0 }
 0x11c   : > { %v5853_v16 = vadd.f32 %v4065_v25, %v4064_v34  ;;  %v6375_v25 = vld [vmem:[#allocation7_spill] sm:$0xff] }
 0x11d   : > { %3316 = vmatmul.mubr.bf16.gmra.mrb[88].mxu1 %v6372_v42  ;;  %3203 = vmatmul.mubr.bf16.gmra.mrb[80].mxu0 %v5616_v56 }
 0x11e   : > { %3323 = vmatprep.mubr.bf16.mxu1 %v6368_v8  ;;  %3210 = vmatprep.mubr.bf16.mxu0 %v5725_v23 }
 0x122   : > { %v4133_v57 = vpop.f32.mrb[4].mxu1 }
 0x123   : > { %v4134_v2 = vpop.f32.mrb[5].mxu1 }
 0x124   : > { %v5860_v1 = vadd.f32 %v4134_v2, %v4133_v57  ;;  %v4136_v11 = vpop.f32.mrb[6].mxu1 }
 0x125   : > { %3324 = vmatmul.mubr.bf16.gmra.mrb[92].mxu1 %v5325_v30  ;;  %3211 = vmatmul.mubr.bf16.gmra.mrb[84].mxu0 %v5658_v28  ;;  %v4137_v41 = vpop.f32.mrb[7].mxu1 }
 0x126   : > { %3331 = vmatprep.mubr.bf16.mxu1 %v6369_v6  ;;  %3218 = vmatprep.mubr.bf16.mxu0 %v5750_v59  ;;  %v5865_v7 = vadd.f32 %v4137_v41, %v4136_v11  ;;  %v6376_v41 = vld [vmem:[#allocation10_spill] sm:$0xff] }
 0x129   : > { %v4067_v33 = vpop.f32.mrb[8].mxu0 }
 0x12a   : > { %v4068_v8 = vpop.f32.mrb[9].mxu0 }
 0x12b   : > { %v5868_v50 = vadd.f32 %v4068_v8, %v4067_v33  ;;  %v4070_v37 = vpop.f32.mrb[10].mxu0 }
 0x12c   : > { %v4071_v30 = vpop.f32.mrb[11].mxu0 }
 0x12d   : > { %3332 = vmatmul.mubr.bf16.gmra.mrb[96].mxu1 %v5396_v3  ;;  %3219 = vmatmul.mubr.bf16.gmra.mrb[88].mxu0 %v5709_v15  ;;  %v5873_v6 = vadd.f32 %v4071_v30, %v4070_v37 }
 0x12e   : > { %3339 = vmatprep.mubr.bf16.mxu1 %v5503_v46  ;;  %3226 = vmatprep.mubr.bf16.mxu0 %v5768_v48 }
 0x135   : > { %3340 = vmatmul.mubr.bf16.gmra.mrb[100].mxu1 %v5481_v32  ;;  %3227 = vmatmul.mubr.bf16.gmra.mrb[92].mxu0 %v6373_v31 }
 0x136   : > { %3347 = vmatprep.mubr.bf16.mxu1 %v5557_v51  ;;  %3234 = vmatprep.mubr.bf16.mxu0 %v5795_v22  ;;  %v4139_v3 = vpop.f32.mrb[8].mxu1 }
 0x137   : > { %v4140_v45 = vpop.f32.mrb[9].mxu1 }
 0x138   : > { %v5879_v43 = vadd.f32 %v4140_v45, %v4139_v3  ;;  %v4142_v17 = vpop.f32.mrb[10].mxu1 }
 0x139   : > { %v4143_v14 = vpop.f32.mrb[11].mxu1 }
 0x13a   : > { %v5881_v46 = vadd.f32 %v4143_v14, %v4142_v17 }
 0x13d   : > { %3348 = vmatmul.mubr.bf16.gmra.mrb[104].mxu1 %v5543_v29  ;;  %3235 = vmatmul.mubr.bf16.gmra.mrb[96].mxu0 %v6374_v13 }
 0x13e   : > { %3355 = vmatprep.mubr.bf16.mxu1 %v5616_v56  ;;  %3242 = vmatprep.mubr.bf16.mxu0 %v5812_v60 }
 0x140   : > { %v4073_v32 = vpop.f32.mrb[12].mxu0 }
 0x141   : > { %v4074_v51 = vpop.f32.mrb[13].mxu0 }
 0x142   : > { %v5887_v35 = vadd.f32 %v4074_v51, %v4073_v32  ;;  %v4076_v18 = vpop.f32.mrb[14].mxu0 }
 0x143   : > { %v4077_v27 = vpop.f32.mrb[15].mxu0 }
 0x144   : > { %v5890_v34 = vadd.f32 %v4077_v27, %v4076_v18 }
 0x145   : > { %3356 = vmatmul.mubr.bf16.gmra.mrb[108].mxu1 %v5599_v10  ;;  %3243 = vmatmul.mubr.bf16.gmra.mrb[100].mxu0 %v6375_v25 }
 0x146   : > { %3363 = vmatprep.mubr.bf16.mxu1 %v5658_v28  ;;  %3250 = vmatprep.mubr.bf16.mxu0 %v5825_v62 }
 0x148   : > { %v4145_v29 = vpop.f32.mrb[12].mxu1 }
 0x149   : > { %v4146_v56 = vpop.f32.mrb[13].mxu1 }
 0x14a   : > { %v5895_v42 = vadd.f32 %v4146_v56, %v4145_v29  ;;  %v4148_v57 = vpop.f32.mrb[14].mxu1 }
 0x14b   : > { %v4149_v2 = vpop.f32.mrb[15].mxu1 }
 0x14c   : > { %v5898_v11 = vadd.f32 %v4149_v2, %v4148_v57 }
 0x14d   : > { %3364 = vmatmul.mubr.bf16.gmra.mrb[112].mxu1 %v5656_v24  ;;  %3251 = vmatmul.mubr.bf16.gmra.mrb[104].mxu0 %v6376_v41 }
 0x14e   : > { %3371 = vmatprep.mubr.bf16.mxu1 %v5709_v15  ;;  %3258 = vmatprep.mubr.bf16.mxu0 %v5787_v53 }
 0x150   : > { %v4167_v10 = vpop.f32.mrb[16].mxu1 }
 0x151   : > { %v4168_v28 = vpop.f32.mrb[17].mxu1 }
 0x152   : > { %v4169_v33 = vadd.f32 %v4168_v28, %v4167_v10  ;;  %v4170_v8 = vpop.f32.mrb[18].mxu1 }
 0x153   : > { %v4171_v37 = vpop.f32.mrb[19].mxu1 }
 0x154   : > { %v5905_v30 = vadd.f32 %v4169_v33, %v5827_v38  ;;  %v4172_v3 = vadd.f32 %v4171_v37, %v4170_v8  ;;  %v5933_v8 = vld [vmem:[#allocation2 + $0xd0] sm:$0xf] }
 0x155   : > { %3372 = vmatmul.mubr.bf16.gmra.mrb[116].mxu1 %v5704_v54  ;;  %3259 = vmatmul.mubr.bf16.gmra.mrb[108].mxu0 %v5799_v4  ;;  %v4079_v24 = vpop.f32.mrb[16].mxu0 }
 0x156   : > { %3379 = vmatprep.mubr.bf16.mxu1 %v6373_v31  ;;  %4527 = vmatprep.mubr.bf16.mxu0 %v5416_v49  ;;  %v4080_v15 = vpop.f32.mrb[17].mxu0  ;;  %v5911_v45 = vadd.f32 %v4172_v3, %v5829_v63 }
 0x157   : > { %v5913_v17 = vadd.f32 %v4080_v15, %v4079_v24  ;;  %v4082_v14 = vpop.f32.mrb[18].mxu0  ;;  %v2002_v24 = vshll.u32 %v5933_v8, 16  ;;  %v2006_v15 = vshrl.u32 %v5933_v8, 16 }
 0x158   : > { %v4083_v32 = vpop.f32.mrb[19].mxu0  ;;  %v4173_v54 = vpop.f32.mrb[20].mxu1 }
 0x159   : > { %v5915_v51 = vadd.f32 %v4083_v32, %v4082_v14  ;;  %v4174_v38 = vpop.f32.mrb[21].mxu1 }
 0x15a   : > { %v4175_v18 = vadd.f32 %v4174_v38, %v4173_v54  ;;  %v4176_v27 = vpop.f32.mrb[22].mxu1 }
 0x15b   : > { %v4177_v29 = vpop.f32.mrb[23].mxu1 }
 0x15c   : > { %v5919_v31 = vadd.f32 %v4175_v18, %v5851_v20  ;;  %v4178_v49 = vadd.f32 %v4177_v29, %v4176_v27  ;;  %v5931_v20 = vld [vmem:[#allocation2 + $0xcc] sm:$0xf]  ;;  %v2004_v27 = vrot.slane %v2002_v24, 5  ;;  %v2008_v29 = vrot.slane %v2006_v15, 4 }
 0x15d   : > { %3380 = vmatmul.mubr.bf16.gmra.mrb[120].mxu1 %v4953_v40  ;;  %4528 = vmatmul.mubr.bf16.vlgmr.msra.gmra.mrb[112].mxu0 %v5469_v58  ;;  %v1996_v3 = vshll.u32 %v5931_v20, 16 }
 0x15e   : > { %3387 = vmatprep.mubr.bf16.mxu1 %v6374_v13  ;;  %4531 = vmatprep.mubr.bf16.mxu0 %v5516_v21  ;;  %v4085_v63 = vpop.f32.mrb[20].mxu0  ;;  %v5925_v56 = vadd.f32 %v4178_v49, %v5853_v16  ;;  %v1993_v13 = vshrl.u32 %v5931_v20, 16 }
 0x15f   : > { %v4086_v57 = vpop.f32.mrb[21].mxu0  ;;  %v1998_v18 = vrot.slane %v1996_v3, 5 }
 0x160   : > { %v5927_v2 = vadd.f32 %v4086_v57, %v4085_v63  ;;  %v4088_v10 = vpop.f32.mrb[22].mxu0  ;;  %v1995_v54 = vrot.slane %v1993_v13, 4  ;;  %v5951_v57 = vld [vmem:[#allocation2 + $0xd4] sm:$0x1] }
 0x161   : > { %v4089_v28 = vpop.f32.mrb[23].mxu0 }
 0x162   : > { %v5929_v40 = vadd.f32 %v4089_v28, %v4088_v10 }
 0x164   : > { %v4179_v33 = vpop.f32.mrb[24].mxu1 }
 0x165   : > { %3388 = vmatmul.mubr.bf16.gmra.mrb[124].mxu1 %v5035_v39  ;;  %v4180_v58 = vpop.f32.mrb[25].mxu1  ;;  %4532 = vmatmul.mubr.bf16.gmra.mrb[116].mxu0 %v5578_v55 }
 0x166   : > { %3395 = vmatprep.mubr.bf16.mxu1 %v6375_v25  ;;  %v4181_v21 = vadd.f32 %v4180_v58, %v4179_v33  ;;  %v4182_v16 = vpop.f32.mrb[26].mxu1  ;;  %4535 = vmatprep.mubr.bf16.mxu0 %v5626_v52  ;;  %v1999_v58 = vor.u32 %v1998_v18, %v1995_v54 }
 0x167   : > { %v4183_v37 = vpop.f32.mrb[27].mxu1 }
 0x168   : > { %v5944_v39 = vadd.f32 %v4181_v21, %v5868_v50  ;;  %v4184_v14 = vadd.f32 %v4183_v37, %v4182_v16  ;;  %v4091_v55 = vpop.f32.mrb[24].mxu0  ;;  %v2009_v21 = vor.u32 %v2008_v29, %v2004_v27  ;;  %v2012_v16 = vshll.u32 %v5951_v57, 16 }
 0x169   : > { %v4092_v32 = vpop.f32.mrb[25].mxu0  ;;  %v2000_v3 = vrot.slane %v1999_v58, 4  ;;  %v3927_v29 = vcombine.low %v5931_v20, %v5933_v8  ;;  %v3929_v58 = vrot.slane %v5931_v20, 9 }
 0x16a   : > { %v5947_v25 = vadd.f32 %v4184_v14, %v5873_v6  ;;  %v5949_v38 = vadd.f32 %v4092_v32, %v4091_v55  ;;  %v4094_v52 = vpop.f32.mrb[26].mxu0  ;;  %v2014_v24 = vrot.slane %v2012_v16, 5 }
 0x16b   : > { %v4095_v49 = vpop.f32.mrb[27].mxu0 }
 0x16c   : > { %v4185_v63 = vpop.f32.mrb[28].mxu1  ;;  %v5954_v50 = vadd.f32 %v4095_v49, %v4094_v52 }
 0x16d   : > { %3396 = vmatmul.mubr.bf16.gmra.mrb[128].mxu1 %v5141_v19  ;;  %v4186_v10 = vpop.f32.mrb[29].mxu1  ;;  %4536 = vmatmul.mubr.bf16.gmra.mrb[120].mxu0 %v5649_v26  ;;  %v2010_v26 = vrot.slane %v2009_v21, 4 }
 0x16e   : > { %3403 = vmatprep.mubr.bf16.mxu1 %v6376_v41  ;;  %v4187_v6 = vadd.f32 %v4186_v10, %v4185_v63  ;;  %v4188_v28 = vpop.f32.mrb[30].mxu1  ;;  %4539 = vmatprep.mubr.bf16.mxu0 %v5678_v0  ;;  %v2005_v0 = vsel %vm4876_vm12, %v2000_v3, %v2004_v27 }
 0x16f   : > { %v4189_v33 = vpop.f32.mrb[31].mxu1 }
 0x170   : > { %v5961_v13 = vadd.f32 %v4187_v6, %v5887_v35  ;;  %v4190_v19 = vadd.f32 %v4189_v33, %v4188_v28  ;;  %v2015_v35 = vsel %vm4876_vm12, %v2010_v26, %v2014_v24 }
 0x172   : > { %v5964_v37 = vadd.f32 %v4190_v19, %v5890_v34  ;;  %v2042_v19 = vrot.slane %v5951_v57, 5 }
 0x175   : > { %3404 = vmatmul.mubr.bf16.gmra.mrb[132].mxu1 %v6367_v12  ;;  %4540 = vmatmul.mubr.bf16.gmra.mrb[124].mxu0 %v5696_v9  ;;  %v3928_v12 = vcombine.low %v2005_v0, %v2015_v35 }
 0x176   : > { %3411 = vmatprep.mubr.bf16.mxu1 %v5799_v4  ;;  %4543 = vmatprep.mubr.bf16.mxu0 %v5725_v23 }
 0x178   : > { %v4097_v41 = vpop.f32.mrb[28].mxu0 }
 0x179   : > { %v4098_v34 = vpop.f32.mrb[29].mxu0  ;;  %v4191_v15 = vpop.f32.mrb[32].mxu1 }
 0x17a   : > { %v5974_v14 = vadd.f32 %v4098_v34, %v4097_v41  ;;  %v4100_v55 = vpop.f32.mrb[30].mxu0  ;;  %v4192_v32 = vpop.f32.mrb[33].mxu1 }
 0x17b   : > { %v4101_v54 = vpop.f32.mrb[31].mxu0  ;;  %v4193_v9 = vadd.f32 %v4192_v32, %v4191_v15  ;;  %v4194_v52 = vpop.f32.mrb[34].mxu1 }
 0x17c   : > { %v5976_v4 = vadd.f32 %v4101_v54, %v4100_v55  ;;  %v4195_v23 = vpop.f32.mrb[35].mxu1 }
 0x17d   : > { %3412 = vmatmul.mubr.bf16.gmra.mrb[136].mxu1 %v5815_v47  ;;  %v5980_v18 = vadd.f32 %v4193_v9, %v5913_v17  ;;  %v4196_v5 = vadd.f32 %v4195_v23, %v4194_v52  ;;  %4544 = vmatmul.mubr.bf16.gmra.mrb[128].mxu0 %v5750_v59  ;;  %v2039_v59 = vrot.slane %v5933_v8, 5 }
 0x17e   : > { %3419 = vmatprep.mubr.bf16.mxu1 %v3928_v12  ;;  %4547 = vmatprep.mubr.bf16.mxu0 %v5768_v48 }
 0x17f   : > { %v5985_v27 = vadd.f32 %v4196_v5, %v5915_v51  ;;  %v2041_v16 = vrot.slane %v2039_v59, 4  ;;  %v2040_v8 = vsel %vm4864_vm11, %v3929_v58, %v2039_v59 }
 0x181   : > { %v2043_v20 = vsel %vm4864_vm11, %v2041_v16, %v2042_v19 }
 0x182   : > { %v3930_v41 = vcombine.low %v2040_v8, %v2043_v20 }
 0x185   : > { %v4103_v49 = vpop.f32.mrb[32].mxu0  ;;  %3420 = vmatmul.mubr.bf16.gmra.mrb[140].mxu1 %v3927_v29  ;;  %4548 = vmatmul.mubr.bf16.gmra.mrb[132].mxu0 %v5795_v22 }
 0x186   : > { %v4104_v47 = vpop.f32.mrb[33].mxu0  ;;  %4551 = vmatprep.mubr.bf16.mxu0 %v5812_v60 }
 0x187   : > { %v4105_v17 = vadd.f32 %v4104_v47, %v4103_v49  ;;  %v4106_v63 = vpop.f32.mrb[34].mxu0  ;;  %v4197_v10 = vpop.f32.mrb[36].mxu1 }
 0x188   : > { %v4107_v6 = vpop.f32.mrb[35].mxu0  ;;  %v4198_v48 = vpop.f32.mrb[37].mxu1 }
 0x189   : > { %v4108_v28 = vadd.f32 %v4107_v6, %v4106_v63  ;;  %v4199_v51 = vadd.f32 %v4198_v48, %v4197_v10  ;;  %v4200_v33 = vpop.f32.mrb[38].mxu1 }
 0x18a   : > { %v4201_v21 = vpop.f32.mrb[39].mxu1 }
 0x18b   : > { %v5995_v22 = vadd.f32 %v4199_v51, %v5927_v2  ;;  %v4202_v60 = vadd.f32 %v4201_v21, %v4200_v33 }
 0x18d   : > { %v5998_v3 = vadd.f32 %v4202_v60, %v5929_v40  ;;  %4552 = vmatmul.mubr.bf16.gmra.mrb[136].mxu0 %v5825_v62 }
 0x18e   : > { %4555 = vmatprep.mubr.bf16.mxu0 %v5787_v53  ;;  %v4109_v26 = vpop.f32.mrb[36].mxu0 }
 0x18f   : > { %v4110_v24 = vpop.f32.mrb[37].mxu0 }
 0x190   : > { %v4203_v57 = vpop.f32.mrb[40].mxu1  ;;  %v4111_v0 = vadd.f32 %v4110_v24, %v4109_v26  ;;  %v4112_v2 = vpop.f32.mrb[38].mxu0 }
 0x191   : > { %v4204_v35 = vpop.f32.mrb[41].mxu1  ;;  %v4113_v34 = vpop.f32.mrb[39].mxu0 }
 0x192   : > { %v4205_v40 = vadd.f32 %v4204_v35, %v4203_v57  ;;  %v4206_v15 = vpop.f32.mrb[42].mxu1  ;;  %v4114_v55 = vadd.f32 %v4113_v34, %v4112_v2 }
 0x193   : > { %v4207_v62 = vpop.f32.mrb[43].mxu1 }
 0x194   : > { %v6007_v53 = vadd.f32 %v4205_v40, %v5949_v38  ;;  %v4208_v32 = vadd.f32 %v4207_v62, %v4206_v15 }
 0x195   : > { %4556 = vmatmul.mubr.bf16.gmra.mrb[140].mxu0 %v3930_v41 }
 0x196   : > { %v6010_v61 = vadd.f32 %v4208_v32, %v5954_v50 }
 0x198   : > { %v4209_v12 = vpop.f32.mrb[44].mxu1 }
 0x199   : > { %v4210_v54 = vpop.f32.mrb[45].mxu1 }
 0x19a   : > { %v4211_v9 = vadd.f32 %v4210_v54, %v4209_v12  ;;  %v4212_v52 = vpop.f32.mrb[46].mxu1  ;;  %v4115_v23 = vpop.f32.mrb[40].mxu0 }
 0x19b   : > { %v4213_v5 = vpop.f32.mrb[47].mxu1  ;;  %v4116_v29 = vpop.f32.mrb[41].mxu0 }
 0x19c   : > { %v6013_v49 = vadd.f32 %v4211_v9, %v5974_v14  ;;  %v4214_v47 = vadd.f32 %v4213_v5, %v4212_v52  ;;  %v4117_v63 = vadd.f32 %v4116_v29, %v4115_v23  ;;  %v4118_v59 = vpop.f32.mrb[42].mxu0 }
 0x19d   : > { %v4119_v38 = vpop.f32.mrb[43].mxu0 }
 0x19e   : > { %v6016_v10 = vadd.f32 %v4214_v47, %v5976_v4  ;;  %v4120_v6 = vadd.f32 %v4119_v38, %v4118_v59 }
 0x1a0   : > { %v4215_v50 = vpop.f32.mrb[48].mxu1 }
 0x1a1   : > { %v4216_v48 = vpop.f32.mrb[49].mxu1 }
 0x1a2   : > { %v4217_v51 = vadd.f32 %v4216_v48, %v4215_v50  ;;  %v4218_v33 = vpop.f32.mrb[50].mxu1 }
 0x1a3   : > { %v4219_v58 = vpop.f32.mrb[51].mxu1 }
 0x1a4   : > { %v6018_v21 = vadd.f32 %v4217_v51, %v4105_v17  ;;  %v4220_v16 = vadd.f32 %v4219_v58, %v4218_v33 }
 0x1a6   : > { %v6020_v19 = vadd.f32 %v4220_v16, %v4108_v28 }
 0x1a8   : > { %v4221_v14 = vpop.f32.mrb[52].mxu1  ;;  %v4121_v60 = vpop.f32.mrb[44].mxu0 }
 0x1a9   : > { %v4222_v8 = vpop.f32.mrb[53].mxu1  ;;  %v4122_v20 = vpop.f32.mrb[45].mxu0 }
 0x1aa   : > { %v4223_v26 = vadd.f32 %v4222_v8, %v4221_v14  ;;  %v4224_v24 = vpop.f32.mrb[54].mxu1  ;;  %v4123_v57 = vadd.f32 %v4122_v20, %v4121_v60  ;;  %v4124_v4 = vpop.f32.mrb[46].mxu0 }
 0x1ab   : > { %v4225_v2 = vpop.f32.mrb[55].mxu1  ;;  %v4125_v35 = vpop.f32.mrb[47].mxu0 }
 0x1ac   : > { %v6022_v41 = vadd.f32 %v4223_v26, %v4111_v0  ;;  %v4226_v34 = vadd.f32 %v4225_v2, %v4224_v24  ;;  %v4126_v40 = vadd.f32 %v4125_v35, %v4124_v4 }
 0x1ae   : > { %v6024_v15 = vadd.f32 %v4226_v34, %v4114_v55 }
 0x1b0   : > { %v4227_v17 = vpop.f32.mrb[56].mxu1  ;;  %v4279_v62 = vpop.f32.mrb[48].mxu0 }
 0x1b1   : > { %v4228_v28 = vpop.f32.mrb[57].mxu1  ;;  %v4280_v32 = vpop.f32.mrb[49].mxu0 }
 0x1b2   : > { %v4229_v12 = vadd.f32 %v4228_v28, %v4227_v17  ;;  %v4230_v54 = vpop.f32.mrb[58].mxu1  ;;  %v4281_v9 = vadd.f32 %v4280_v32, %v4279_v62  ;;  %v4282_v52 = vpop.f32.mrb[50].mxu0 }
 0x1b3   : > { %v4231_v23 = vpop.f32.mrb[59].mxu1  ;;  %v4283_v5 = vpop.f32.mrb[51].mxu0 }
 0x1b4   : > { %v6026_v29 = vadd.f32 %v4229_v12, %v4117_v63  ;;  %v4232_v47 = vadd.f32 %v4231_v23, %v4230_v54  ;;  %v6029_v0 = vadd.f32 %v4281_v9, %v5905_v30  ;;  %v4284_v59 = vadd.f32 %v4283_v5, %v4282_v52 }
 0x1b6   : > { %v6031_v38 = vadd.f32 %v4232_v47, %v4120_v6  ;;  %v6034_v55 = vadd.f32 %v4284_v59, %v5911_v45 }
 0x1b8   : > { %v4233_v50 = vpop.f32.mrb[60].mxu1  ;;  %v4285_v48 = vpop.f32.mrb[52].mxu0 }
 0x1b9   : > { %v4234_v51 = vpop.f32.mrb[61].mxu1  ;;  %v4286_v33 = vpop.f32.mrb[53].mxu0 }
 0x1ba   : > { %v4235_v58 = vadd.f32 %v4234_v51, %v4233_v50  ;;  %v4236_v16 = vpop.f32.mrb[62].mxu1  ;;  %v4287_v14 = vadd.f32 %v4286_v33, %v4285_v48  ;;  %v4288_v60 = vpop.f32.mrb[54].mxu0 }
 0x1bb   : > { %v4237_v63 = vpop.f32.mrb[63].mxu1  ;;  %v4289_v8 = vpop.f32.mrb[55].mxu0 }
 0x1bc   : > { %v6036_v20 = vadd.f32 %v4235_v58, %v4123_v57  ;;  %v4238_v30 = vadd.f32 %v4237_v63, %v4236_v16  ;;  %v6039_v26 = vadd.f32 %v4287_v14, %v5919_v31  ;;  %v4290_v6 = vadd.f32 %v4289_v8, %v4288_v60 }
 0x1be   : > { %v6041_v24 = vadd.f32 %v4238_v30, %v4126_v40  ;;  %v6044_v45 = vadd.f32 %v4290_v6, %v5925_v56 }
 0x1c0   : > { %v4239_v4 = vpop.f32.mrb[64].mxu1  ;;  %v4291_v2 = vpop.f32.mrb[56].mxu0 }
 0x1c1   : > { %v4240_v35 = vpop.f32.mrb[65].mxu1  ;;  %v4292_v34 = vpop.f32.mrb[57].mxu0 }
 0x1c2   : > { %v4241_v17 = vadd.f32 %v4240_v35, %v4239_v4  ;;  %v4242_v62 = vpop.f32.mrb[66].mxu1  ;;  %v4293_v28 = vadd.f32 %v4292_v34, %v4291_v2  ;;  %v4294_v32 = vpop.f32.mrb[58].mxu0 }
 0x1c3   : > { %v4243_v57 = vpop.f32.mrb[67].mxu1  ;;  %v4295_v12 = vpop.f32.mrb[59].mxu0 }
 0x1c4   : > { %v6047_v54 = vadd.f32 %v4241_v17, %v5843_v36  ;;  %v4244_v31 = vadd.f32 %v4243_v57, %v4242_v62  ;;  %v6050_v40 = vadd.f32 %v4293_v28, %v5944_v39  ;;  %v4296_v9 = vadd.f32 %v4295_v12, %v4294_v32 }
 0x1c6   : > { %v6053_v56 = vadd.f32 %v4244_v31, %v5845_v44  ;;  %v6056_v52 = vadd.f32 %v4296_v9, %v5947_v25 }
 0x1c8   : > { %v4245_v23 = vpop.f32.mrb[68].mxu1  ;;  %v4297_v5 = vpop.f32.mrb[60].mxu0 }
 0x1c9   : > { %v4246_v47 = vpop.f32.mrb[69].mxu1  ;;  %v4298_v59 = vpop.f32.mrb[61].mxu0 }
 0x1ca   : > { %v4247_v50 = vadd.f32 %v4246_v47, %v4245_v23  ;;  %v4248_v48 = vpop.f32.mrb[70].mxu1  ;;  %v4299_v51 = vadd.f32 %v4298_v59, %v4297_v5  ;;  %v4300_v36 = vpop.f32.mrb[62].mxu0 }
 0x1cb   : > { %v4249_v33 = vpop.f32.mrb[71].mxu1  ;;  %v4301_v58 = vpop.f32.mrb[63].mxu0 }
 0x1cc   : > { %v6059_v39 = vadd.f32 %v4247_v50, %v5860_v1  ;;  %v4250_v16 = vadd.f32 %v4249_v33, %v4248_v48  ;;  %v6062_v44 = vadd.f32 %v4299_v51, %v5961_v13  ;;  %v4302_v14 = vadd.f32 %v4301_v58, %v4300_v36 }
 0x1ce   : > { %v6065_v25 = vadd.f32 %v4250_v16, %v5865_v7  ;;  %v6068_v60 = vadd.f32 %v4302_v14, %v5964_v37 }
 0x1d0   : > { %v4251_v63 = vpop.f32.mrb[72].mxu1  ;;  %v4303_v8 = vpop.f32.mrb[64].mxu0 }
 0x1d1   : > { %v4252_v30 = vpop.f32.mrb[73].mxu1  ;;  %v4304_v6 = vpop.f32.mrb[65].mxu0 }
 0x1d2   : > { %v4253_v4 = vadd.f32 %v4252_v30, %v4251_v63  ;;  %v4254_v2 = vpop.f32.mrb[74].mxu1  ;;  %v4305_v35 = vadd.f32 %v4304_v6, %v4303_v8  ;;  %v4306_v1 = vpop.f32.mrb[66].mxu0 }
 0x1d3   : > { %v4255_v34 = vpop.f32.mrb[75].mxu1  ;;  %v4307_v17 = vpop.f32.mrb[67].mxu0 }
 0x1d4   : > { %v6071_v13 = vadd.f32 %v4253_v4, %v5879_v43  ;;  %v4256_v62 = vadd.f32 %v4255_v34, %v4254_v2  ;;  %v6074_v7 = vadd.f32 %v4305_v35, %v5980_v18  ;;  %v4308_v28 = vadd.f32 %v4307_v17, %v4306_v1 }
 0x1d6   : > { %v6077_v37 = vadd.f32 %v4256_v62, %v5881_v46  ;;  %v6080_v32 = vadd.f32 %v4308_v28, %v5985_v27 }
 0x1d8   : > { %v4257_v57 = vpop.f32.mrb[76].mxu1  ;;  %v4309_v12 = vpop.f32.mrb[68].mxu0 }
 0x1d9   : > { %v4258_v31 = vpop.f32.mrb[77].mxu1  ;;  %v4310_v9 = vpop.f32.mrb[69].mxu0 }
 0x1da   : > { %v4259_v23 = vadd.f32 %v4258_v31, %v4257_v57  ;;  %v4260_v5 = vpop.f32.mrb[78].mxu1  ;;  %v4311_v47 = vadd.f32 %v4310_v9, %v4309_v12  ;;  %v4312_v43 = vpop.f32.mrb[70].mxu0 }
 0x1db   : > { %v4261_v59 = vpop.f32.mrb[79].mxu1  ;;  %v4313_v50 = vpop.f32.mrb[71].mxu0 }
 0x1dc   : > { %v6083_v18 = vadd.f32 %v4259_v23, %v5895_v42  ;;  %v4262_v48 = vadd.f32 %v4261_v59, %v4260_v5  ;;  %v6086_v46 = vadd.f32 %v4311_v47, %v5995_v22  ;;  %v4314_v51 = vadd.f32 %v4313_v50, %v4312_v43 }
 0x1de   : > { %v6089_v27 = vadd.f32 %v4262_v48, %v5898_v11  ;;  %v6092_v36 = vadd.f32 %v4314_v51, %v5998_v3 }
 0x1e0   : > { %v4391_v33 = vpop.f32.mrb[80].mxu1  ;;  %v4315_v58 = vpop.f32.mrb[72].mxu0 }
 0x1e1   : > { %v4392_v16 = vpop.f32.mrb[81].mxu1  ;;  %v4316_v14 = vpop.f32.mrb[73].mxu0 }
 0x1e2   : > { %v4393_v63 = vadd.f32 %v4392_v16, %v4391_v33  ;;  %v4394_v8 = vpop.f32.mrb[82].mxu1  ;;  %v4317_v30 = vadd.f32 %v4316_v14, %v4315_v58  ;;  %v4318_v42 = vpop.f32.mrb[74].mxu0 }
 0x1e3   : > { %v4395_v6 = vpop.f32.mrb[83].mxu1  ;;  %v4319_v4 = vpop.f32.mrb[75].mxu0 }
 0x1e4   : > { %v4396_v2 = vadd.f32 %v4395_v6, %v4394_v8  ;;  %v6095_v22 = vadd.f32 %v4393_v63, %v6029_v0  ;;  %v6098_v11 = vadd.f32 %v4317_v30, %v6007_v53  ;;  %v4320_v35 = vadd.f32 %v4319_v4, %v4318_v42 }
 0x1e6   : > { %v6101_v3 = vadd.f32 %v4396_v2, %v6034_v55  ;;  %v6104_v1 = vadd.f32 %v4320_v35, %v6010_v61 }
 0x1e8   : > { %v4397_v34 = vpop.f32.mrb[84].mxu1  ;;  %v4321_v17 = vpop.f32.mrb[76].mxu0 }
 0x1e9   : > { %v4398_v62 = vpop.f32.mrb[85].mxu1  ;;  %v4322_v28 = vpop.f32.mrb[77].mxu0 }
 0x1ea   : > { %v4399_v57 = vadd.f32 %v4398_v62, %v4397_v34  ;;  %v4400_v12 = vpop.f32.mrb[86].mxu1  ;;  %v4323_v31 = vadd.f32 %v4322_v28, %v4321_v17  ;;  %v4324_v9 = vpop.f32.mrb[78].mxu0 }
 0x1eb   : > { %v4401_v0 = vpop.f32.mrb[87].mxu1  ;;  %v4325_v23 = vpop.f32.mrb[79].mxu0 }
 0x1ec   : > { %v4402_v5 = vadd.f32 %v4401_v0, %v4400_v12  ;;  %v6107_v53 = vadd.f32 %v4399_v57, %v6039_v26  ;;  %v6110_v55 = vadd.f32 %v4323_v31, %v6013_v49  ;;  %v4326_v47 = vadd.f32 %v4325_v23, %v4324_v9 }
 0x1ee   : > { %v6113_v61 = vadd.f32 %v4402_v5, %v6044_v45  ;;  %v6116_v43 = vadd.f32 %v4326_v47, %v6016_v10 }
 0x1f0   : > { %v4403_v59 = vpop.f32.mrb[88].mxu1  ;;  %v4327_v50 = vpop.f32.mrb[80].mxu0 }
 0x1f1   : > { %v4404_v48 = vpop.f32.mrb[89].mxu1  ;;  %v4328_v51 = vpop.f32.mrb[81].mxu0 }
 0x1f2   : > { %v4405_v33 = vadd.f32 %v4404_v48, %v4403_v59  ;;  %v4406_v58 = vpop.f32.mrb[90].mxu1  ;;  %v4329_v16 = vadd.f32 %v4328_v51, %v4327_v50  ;;  %v4330_v14 = vpop.f32.mrb[82].mxu0 }
 0x1f3   : > { %v4407_v26 = vpop.f32.mrb[91].mxu1  ;;  %v4331_v63 = vpop.f32.mrb[83].mxu0 }
 0x1f4   : > { %v4408_v8 = vadd.f32 %v4407_v26, %v4406_v58  ;;  %v6119_v49 = vadd.f32 %v4405_v33, %v6050_v40  ;;  %v6122_v45 = vadd.f32 %v4329_v16, %v6018_v21  ;;  %v4332_v30 = vadd.f32 %v4331_v63, %v4330_v14 }
 0x1f6   : > { %v6125_v10 = vadd.f32 %v4408_v8, %v6056_v52  ;;  %v6128_v42 = vadd.f32 %v4332_v30, %v6020_v19 }
 0x1f8   : > { %v4409_v6 = vpop.f32.mrb[92].mxu1  ;;  %v4333_v4 = vpop.f32.mrb[84].mxu0 }
 0x1f9   : > { %v4410_v2 = vpop.f32.mrb[93].mxu1  ;;  %v4334_v35 = vpop.f32.mrb[85].mxu0 }
 0x1fa   : > { %v4411_v34 = vadd.f32 %v4410_v2, %v4409_v6  ;;  %v4412_v17 = vpop.f32.mrb[94].mxu1  ;;  %v4335_v62 = vadd.f32 %v4334_v35, %v4333_v4  ;;  %v4336_v28 = vpop.f32.mrb[86].mxu0 }
 0x1fb   : > { %v4413_v40 = vpop.f32.mrb[95].mxu1  ;;  %v4337_v57 = vpop.f32.mrb[87].mxu0 }
 0x1fc   : > { %v4414_v12 = vadd.f32 %v4413_v40, %v4412_v17  ;;  %v6131_v21 = vadd.f32 %v4411_v34, %v6062_v44  ;;  %v6134_v52 = vadd.f32 %v4335_v62, %v6022_v41  ;;  %v4338_v31 = vadd.f32 %v4337_v57, %v4336_v28 }
 0x1fe   : > { %v6137_v19 = vadd.f32 %v4414_v12, %v6068_v60  ;;  %v6140_v9 = vadd.f32 %v4338_v31, %v6024_v15 }
 0x200   : > { %v4415_v0 = vpop.f32.mrb[96].mxu1  ;;  %v4339_v23 = vpop.f32.mrb[88].mxu0 }
 0x201   : > { %v4416_v5 = vpop.f32.mrb[97].mxu1  ;;  %v4340_v47 = vpop.f32.mrb[89].mxu0 }
 0x202   : > { %v4417_v59 = vadd.f32 %v4416_v5, %v4415_v0  ;;  %v4418_v50 = vpop.f32.mrb[98].mxu1  ;;  %v4341_v48 = vadd.f32 %v4340_v47, %v4339_v23  ;;  %v4342_v51 = vpop.f32.mrb[90].mxu0 }
 0x203   : > { %v4419_v44 = vpop.f32.mrb[99].mxu1  ;;  %v4343_v33 = vpop.f32.mrb[91].mxu0 }
 0x204   : > { %v4420_v58 = vadd.f32 %v4419_v44, %v4418_v50  ;;  %v6143_v41 = vadd.f32 %v4417_v59, %v6074_v7  ;;  %v6146_v60 = vadd.f32 %v4341_v48, %v6026_v29  ;;  %v4344_v16 = vadd.f32 %v4343_v33, %v4342_v51 }
 0x206   : > { %v6149_v15 = vadd.f32 %v4420_v58, %v6080_v32  ;;  %v6152_v14 = vadd.f32 %v4344_v16, %v6031_v38 }
 0x208   : > { %v4421_v26 = vpop.f32.mrb[100].mxu1  ;;  %v4345_v63 = vpop.f32.mrb[92].mxu0 }
 0x209   : > { %v4422_v8 = vpop.f32.mrb[101].mxu1  ;;  %v4346_v30 = vpop.f32.mrb[93].mxu0 }
 0x20a   : > { %v4423_v6 = vadd.f32 %v4422_v8, %v4421_v26  ;;  %v4424_v4 = vpop.f32.mrb[102].mxu1  ;;  %v4347_v2 = vadd.f32 %v4346_v30, %v4345_v63  ;;  %v4348_v35 = vpop.f32.mrb[94].mxu0 }
 0x20b   : > { %v4425_v7 = vpop.f32.mrb[103].mxu1  ;;  %v4349_v34 = vpop.f32.mrb[95].mxu0 }
 0x20c   : > { %v4426_v17 = vadd.f32 %v4425_v7, %v4424_v4  ;;  %v6155_v29 = vadd.f32 %v4423_v6, %v6086_v46  ;;  %v6158_v32 = vadd.f32 %v4347_v2, %v6036_v20  ;;  %v4350_v62 = vadd.f32 %v4349_v34, %v4348_v35 }
 0x20e   : > { %v6161_v38 = vadd.f32 %v4426_v17, %v6092_v36  ;;  %v6164_v28 = vadd.f32 %v4350_v62, %v6041_v24 }
 0x210   : > { %v4427_v40 = vpop.f32.mrb[104].mxu1  ;;  %v4351_v57 = vpop.f32.mrb[96].mxu0 }
 0x211   : > { %v4428_v12 = vpop.f32.mrb[105].mxu1  ;;  %v4352_v31 = vpop.f32.mrb[97].mxu0 }
 0x212   : > { %v4429_v0 = vadd.f32 %v4428_v12, %v4427_v40  ;;  %v4430_v23 = vpop.f32.mrb[106].mxu1  ;;  %v4353_v5 = vadd.f32 %v4352_v31, %v4351_v57  ;;  %v4354_v47 = vpop.f32.mrb[98].mxu0 }
 0x213   : > { %v4431_v46 = vpop.f32.mrb[107].mxu1  ;;  %v4355_v59 = vpop.f32.mrb[99].mxu0 }
 0x214   : > { %v4432_v50 = vadd.f32 %v4431_v46, %v4430_v23  ;;  %v6167_v20 = vadd.f32 %v4429_v0, %v6098_v11  ;;  %v6170_v36 = vadd.f32 %v4353_v5, %v6047_v54  ;;  %v4356_v48 = vadd.f32 %v4355_v59, %v4354_v47 }
 0x216   : > { %v6173_v24 = vadd.f32 %v4432_v50, %v6104_v1  ;;  %v6176_v51 = vadd.f32 %v4356_v48, %v6053_v56 }
 0x218   : > { %v4433_v44 = vpop.f32.mrb[108].mxu1  ;;  %v4357_v33 = vpop.f32.mrb[100].mxu0 }
 0x219   : > { %v4434_v58 = vpop.f32.mrb[109].mxu1  ;;  %v4358_v16 = vpop.f32.mrb[101].mxu0 }
 0x21a   : > { %v4435_v26 = vadd.f32 %v4434_v58, %v4433_v44  ;;  %v4436_v63 = vpop.f32.mrb[110].mxu1  ;;  %v4359_v8 = vadd.f32 %v4358_v16, %v4357_v33  ;;  %v4360_v30 = vpop.f32.mrb[102].mxu0 }
 0x21b   : > { %v4437_v11 = vpop.f32.mrb[111].mxu1  ;;  %v4361_v6 = vpop.f32.mrb[103].mxu0 }
 0x21c   : > { %v4438_v4 = vadd.f32 %v4437_v11, %v4436_v63  ;;  %v6179_v54 = vadd.f32 %v4435_v26, %v6110_v55  ;;  %v6182_v1 = vadd.f32 %v4359_v8, %v6059_v39  ;;  %v4362_v2 = vadd.f32 %v4361_v6, %v4360_v30 }
 0x21e   : > { %v6185_v56 = vadd.f32 %v4438_v4, %v6116_v43  ;;  %v6188_v35 = vadd.f32 %v4362_v2, %v6065_v25 }
 0x220   : > { %v4439_v7 = vpop.f32.mrb[112].mxu1  ;;  %v4363_v34 = vpop.f32.mrb[104].mxu0 }
 0x221   : > { %v4440_v17 = vpop.f32.mrb[113].mxu1  ;;  %v4364_v62 = vpop.f32.mrb[105].mxu0 }
 0x222   : > { %v4441_v40 = vadd.f32 %v4440_v17, %v4439_v7  ;;  %v4442_v57 = vpop.f32.mrb[114].mxu1  ;;  %v4365_v12 = vadd.f32 %v4364_v62, %v4363_v34  ;;  %v4366_v31 = vpop.f32.mrb[106].mxu0 }
 0x223   : > { %v4443_v55 = vpop.f32.mrb[115].mxu1  ;;  %v4367_v0 = vpop.f32.mrb[107].mxu0 }
 0x224   : > { %v4444_v23 = vadd.f32 %v4443_v55, %v4442_v57  ;;  %v6191_v39 = vadd.f32 %v4441_v40, %v6122_v45  ;;  %v6194_v43 = vadd.f32 %v4365_v12, %v6071_v13  ;;  %v4368_v5 = vadd.f32 %v4367_v0, %v4366_v31 }
 0x226   : > { %v6197_v25 = vadd.f32 %v4444_v23, %v6128_v42  ;;  %v6200_v47 = vadd.f32 %v4368_v5, %v6077_v37 }
 0x228   : > { %v4445_v46 = vpop.f32.mrb[116].mxu1  ;;  %v4369_v59 = vpop.f32.mrb[108].mxu0 }
 0x229   : > { %v4446_v50 = vpop.f32.mrb[117].mxu1  ;;  %v4370_v48 = vpop.f32.mrb[109].mxu0 }
 0x22a   : > { %v4447_v44 = vadd.f32 %v4446_v50, %v4445_v46  ;;  %v4448_v33 = vpop.f32.mrb[118].mxu1  ;;  %v4371_v58 = vadd.f32 %v4370_v48, %v4369_v59  ;;  %v4372_v45 = vpop.f32.mrb[110].mxu0 }
 0x22b   : > { %v4449_v16 = vpop.f32.mrb[119].mxu1  ;;  %v4373_v26 = vpop.f32.mrb[111].mxu0 }
 0x22c   : > { %v4450_v13 = vadd.f32 %v4449_v16, %v4448_v33  ;;  %v6203_v63 = vadd.f32 %v4447_v44, %v6134_v52  ;;  %v6206_v42 = vadd.f32 %v4371_v58, %v6083_v18  ;;  %v4374_v37 = vadd.f32 %v4373_v26, %v4372_v45 }
 0x22e   : > { %v6209_v8 = vadd.f32 %v4450_v13, %v6140_v9  ;;  %v6212_v30 = vadd.f32 %v4374_v37, %v6089_v27 }
 0x230   : > { %v4451_v11 = vpop.f32.mrb[120].mxu1  ;;  %v4529_v52 = vpop.f32.mrb[112].mxu0 }
 0x231   : > { %v4452_v18 = vpop.f32.mrb[121].mxu1  ;;  %v3471_v6 = vadd.f32 %v4529_v52, %v6107_v53  ;;  %v3462_v4 = vpop.f32.mrb[113].mxu0 }
 0x232   : > { %v4453_v9 = vadd.f32 %v4452_v18, %v4451_v11  ;;  %v4454_v2 = vpop.f32.mrb[122].mxu1  ;;  %v3463_v27 = vadd.f32 %v3462_v4, %v6095_v22  ;;  %v4530_v7 = vpop.f32.mrb[114].mxu0 }
 0x233   : > { %v4455_v34 = vpop.f32.mrb[123].mxu1  ;;  %3591 = vst [vmem:[%s6219_s7 + $0x10] sm:$0xff] %v3471_v6  ;;  %v3474_v17 = vadd.f32 %v4530_v7, %v6113_v61  ;;  %v3465_v62 = vpop.f32.mrb[115].mxu0  ;;  %v3661_v23 = vmul.f32 %v3471_v6, %v3471_v6 }
 0x234   : > { %v4456_v40 = vadd.f32 %v4455_v34, %v4454_v2  ;;  %v6226_v57 = vadd.f32 %v4453_v9, %v6146_v60  ;;  %3589 = vst [vmem:[%s6219_s7] sm:$0xff] %v3463_v27  ;;  %v3466_v12 = vadd.f32 %v3465_v62, %v6101_v3  ;;  %v3659_v31 = vmul.f32 %v3463_v27, %v3463_v27 }
 0x235   : > { %3592 = vst [vmem:[%s6219_s7 + $0x18] sm:$0xff] %v3474_v17  ;;  %v3662_v44 = vmul.f32 %v3474_v17, %v3474_v17 }
 0x236   : > { %v6232_v53 = vadd.f32 %v4456_v40, %v6152_v14  ;;  %3590 = vst [vmem:[%s6219_s7 + $0x8] sm:$0xff] %v3466_v12  ;;  %v3621_v22 = vadd.f32 %v3466_v12, %v3463_v27  ;;  %v3660_v55 = vmul.f32 %v3466_v12, %v3466_v12 }
 0x238   : > { %v4457_v0 = vpop.f32.mrb[124].mxu1  ;;  %v3622_v61 = vadd.f32 %v3621_v22, %v3471_v6  ;;  %v3691_v5 = vadd.f32 %v3660_v55, %v3659_v31  ;;  %v4533_v46 = vpop.f32.mrb[116].mxu0 }
 0x239   : > { %v4458_v59 = vpop.f32.mrb[125].mxu1  ;;  %v3487_v60 = vadd.f32 %v4533_v46, %v6131_v21  ;;  %v3478_v50 = vpop.f32.mrb[117].mxu0 }
 0x23a   : > { %v4459_v3 = vadd.f32 %v4458_v59, %v4457_v0  ;;  %v4460_v48 = vpop.f32.mrb[126].mxu1  ;;  %v3692_v14 = vadd.f32 %v3691_v5, %v3661_v23  ;;  %v3479_v33 = vadd.f32 %v3478_v50, %v6119_v49  ;;  %v3623_v58 = vadd.f32 %v3622_v61, %v3474_v17  ;;  %v4534_v45 = vpop.f32.mrb[118].mxu0 }
 0x23b   : > { %v4461_v16 = vpop.f32.mrb[127].mxu1  ;;  %3595 = vst [vmem:[%s6219_s7 + $0x30] sm:$0xff] %v3487_v60  ;;  %v3490_v26 = vadd.f32 %v4534_v45, %v6137_v19  ;;  %v3481_v13 = vpop.f32.mrb[119].mxu0  ;;  %v3665_v27 = vmul.f32 %v3487_v60, %v3487_v60 }
 0x23c   : > { %v4462_v37 = vadd.f32 %v4461_v16, %v4460_v48  ;;  %v6240_v11 = vadd.f32 %v4459_v3, %v6158_v32  ;;  %3593 = vst [vmem:[%s6219_s7 + $0x20] sm:$0xff] %v3479_v33  ;;  %v3624_v21 = vadd.f32 %v3623_v58, %v3479_v33  ;;  %v3663_v52 = vmul.f32 %v3479_v33, %v3479_v33 }
 0x23d   : > { %v3693_v18 = vadd.f32 %v3692_v14, %v3662_v44  ;;  %v3482_v6 = vadd.f32 %v3481_v13, %v6125_v10  ;;  %3596 = vst [vmem:[%s6219_s7 + $0x38] sm:$0xff] %v3490_v26  ;;  %v3666_v31 = vmul.f32 %v3490_v26, %v3490_v26 }
 0x23e   : > { %v6246_v49 = vadd.f32 %v4462_v37, %v6164_v28 }
 0x23f   : > { %v3694_v4 = vadd.f32 %v3693_v18, %v3663_v52  ;;  %3594 = vst [vmem:[%s6219_s7 + $0x28] sm:$0xff] %v3482_v6  ;;  %v3625_v9 = vadd.f32 %v3624_v21, %v3482_v6  ;;  %v3664_v2 = vmul.f32 %v3482_v6, %v3482_v6 }
 0x240   : > { %v4463_v19 = vpop.f32.mrb[128].mxu1  ;;  %v4537_v34 = vpop.f32.mrb[120].mxu0 }
 0x241   : > { %v3626_v7 = vadd.f32 %v3625_v9, %v3487_v60  ;;  %v3695_v32 = vadd.f32 %v3694_v4, %v3664_v2  ;;  %v4464_v17 = vpop.f32.mrb[129].mxu1  ;;  %v3503_v62 = vadd.f32 %v4537_v34, %v6155_v29  ;;  %v3494_v40 = vpop.f32.mrb[121].mxu0 }
 0x242   : > { %v4465_v10 = vadd.f32 %v4464_v17, %v4463_v19  ;;  %v4466_v12 = vpop.f32.mrb[130].mxu1  ;;  %v3495_v22 = vadd.f32 %v3494_v40, %v6143_v41  ;;  %v4538_v0 = vpop.f32.mrb[122].mxu0 }
 0x243   : > { %v3696_v28 = vadd.f32 %v3695_v32, %v3665_v27  ;;  %v3627_v55 = vadd.f32 %v3626_v7, %v3490_v26  ;;  %v4467_v23 = vpop.f32.mrb[131].mxu1  ;;  %3599 = vst [vmem:[%s6219_s7 + $0x50] sm:$0xff] %v3503_v62  ;;  %v3506_v61 = vadd.f32 %v4538_v0, %v6161_v38  ;;  %v3497_v5 = vpop.f32.mrb[123].mxu0  ;;  %v3669_v33 = vmul.f32 %v3503_v62, %v3503_v62 }
 0x244   : > { %v4468_v46 = vadd.f32 %v4467_v23, %v4466_v12  ;;  %v6254_v59 = vadd.f32 %v4465_v10, %v6170_v36  ;;  %3597 = vst [vmem:[%s6219_s7 + $0x40] sm:$0xff] %v3495_v22  ;;  %v3667_v60 = vmul.f32 %v3495_v22, %v3495_v22  ;;  %v3498_v3 = vadd.f32 %v3497_v5, %v6149_v15 }
 0x245   : > { %v3628_v29 = vadd.f32 %v3627_v55, %v3495_v22  ;;  %v3697_v50 = vadd.f32 %v3696_v28, %v3666_v31  ;;  %3600 = vst [vmem:[%s6219_s7 + $0x58] sm:$0xff] %v3506_v61  ;;  %v3670_v21 = vmul.f32 %v3506_v61, %v3506_v61 }
 0x246   : > { %v6260_v41 = vadd.f32 %v4468_v46, %v6176_v51  ;;  %3598 = vst [vmem:[%s6219_s7 + $0x48] sm:$0xff] %v3498_v3  ;;  %v3668_v14 = vmul.f32 %v3498_v3, %v3498_v3 }
 0x247   : > { %v3698_v48 = vadd.f32 %v3697_v50, %v3667_v60  ;;  %v3629_v44 = vadd.f32 %v3628_v29, %v3498_v3 }
 0x248   : > { %v4469_v38 = vpop.f32.mrb[132].mxu1  ;;  %v4541_v45 = vpop.f32.mrb[124].mxu0 }
 0x249   : > { %v3630_v58 = vadd.f32 %v3629_v44, %v3503_v62  ;;  %v3699_v36 = vadd.f32 %v3698_v48, %v3668_v14  ;;  %v4470_v16 = vpop.f32.mrb[133].mxu1  ;;  %v3519_v26 = vadd.f32 %v4541_v45, %v6179_v54  ;;  %v3510_v13 = vpop.f32.mrb[125].mxu0 }
 0x24a   : > { %v4471_v15 = vadd.f32 %v4470_v16, %v4469_v38  ;;  %v4472_v37 = vpop.f32.mrb[134].mxu1  ;;  %v3511_v52 = vadd.f32 %v3510_v13, %v6167_v20  ;;  %v4542_v6 = vpop.f32.mrb[126].mxu0 }
 0x24b   : > { %v3700_v51 = vadd.f32 %v3699_v36, %v3669_v33  ;;  %v3631_v18 = vadd.f32 %v3630_v58, %v3506_v61  ;;  %v4473_v4 = vpop.f32.mrb[135].mxu1  ;;  %3603 = vst [vmem:[%s6219_s7 + $0x70] sm:$0xff] %v3519_v26  ;;  %v3522_v9 = vadd.f32 %v4542_v6, %v6185_v56  ;;  %v3513_v2 = vpop.f32.mrb[127].mxu0  ;;  %v3673_v10 = vmul.f32 %v3519_v26, %v3519_v26 }
 0x24c   : > { %v6268_v19 = vadd.f32 %v4471_v15, %v6182_v1  ;;  %v4474_v54 = vadd.f32 %v4473_v4, %v4472_v37  ;;  %3601 = vst [vmem:[%s6219_s7 + $0x60] sm:$0xff] %v3511_v52  ;;  %v3671_v7 = vmul.f32 %v3511_v52, %v3511_v52  ;;  %v3514_v34 = vadd.f32 %v3513_v2, %v6173_v24 }
 0x24d   : > { %v3632_v27 = vadd.f32 %v3631_v18, %v3511_v52  ;;  %v3701_v32 = vadd.f32 %v3700_v51, %v3670_v21  ;;  %3604 = vst [vmem:[%s6219_s7 + $0x78] sm:$0xff] %v3522_v9  ;;  %v3674_v23 = vmul.f32 %v3522_v9, %v3522_v9 }
 0x24e   : > { %v6274_v20 = vadd.f32 %v4474_v54, %v6188_v35  ;;  %3602 = vst [vmem:[%s6219_s7 + $0x68] sm:$0xff] %v3514_v34  ;;  %v3672_v40 = vmul.f32 %v3514_v34, %v3514_v34 }
 0x24f   : > { %v3702_v17 = vadd.f32 %v3701_v32, %v3671_v7  ;;  %v3633_v62 = vadd.f32 %v3632_v27, %v3514_v34 }
 0x250   : > { %v4475_v56 = vpop.f32.mrb[136].mxu1  ;;  %v4545_v31 = vpop.f32.mrb[128].mxu0 }
 0x251   : > { %v3634_v1 = vadd.f32 %v3633_v62, %v3519_v26  ;;  %v3703_v12 = vadd.f32 %v3702_v17, %v3672_v40  ;;  %v4476_v28 = vpop.f32.mrb[137].mxu1  ;;  %v3535_v22 = vadd.f32 %v4545_v31, %v6203_v63  ;;  %v3526_v55 = vpop.f32.mrb[129].mxu0 }
 0x252   : > { %v4477_v24 = vadd.f32 %v4476_v28, %v4475_v56  ;;  %v4478_v0 = vpop.f32.mrb[138].mxu1  ;;  %v3527_v61 = vadd.f32 %v3526_v55, %v6191_v39  ;;  %v4546_v46 = vpop.f32.mrb[130].mxu0 }
 0x253   : > { %v3704_v35 = vadd.f32 %v3703_v12, %v3673_v10  ;;  %v3635_v5 = vadd.f32 %v3634_v1, %v3522_v9  ;;  %v4479_v29 = vpop.f32.mrb[139].mxu1  ;;  %3607 = vst [vmem:[%s6219_s7 + $0x90] sm:$0xff] %v3535_v22  ;;  %v3538_v60 = vadd.f32 %v4546_v46, %v6209_v8  ;;  %v3529_v50 = vpop.f32.mrb[131].mxu0  ;;  %v3677_v45 = vmul.f32 %v3535_v22, %v3535_v22 }
 0x254   : > { %v4480_v3 = vadd.f32 %v4479_v29, %v4478_v0  ;;  %v6282_v48 = vadd.f32 %v4477_v24, %v6194_v43  ;;  %3605 = vst [vmem:[%s6219_s7 + $0x80] sm:$0xff] %v3527_v61  ;;  %v3675_v44 = vmul.f32 %v3527_v61, %v3527_v61  ;;  %v3530_v38 = vadd.f32 %v3529_v50, %v6197_v25 }
 0x255   : > { %v3636_v63 = vadd.f32 %v3635_v5, %v3527_v61  ;;  %v3705_v14 = vadd.f32 %v3704_v35, %v3674_v23  ;;  %3608 = vst [vmem:[%s6219_s7 + $0x98] sm:$0xff] %v3538_v60  ;;  %v3678_v51 = vmul.f32 %v3538_v60, %v3538_v60 }
 0x256   : > { %v6288_v39 = vadd.f32 %v4480_v3, %v6200_v47  ;;  %3606 = vst [vmem:[%s6219_s7 + $0x88] sm:$0xff] %v3530_v38  ;;  %v3676_v36 = vmul.f32 %v3530_v38, %v3530_v38 }
 0x257   : > { %v3706_v33 = vadd.f32 %v3705_v14, %v3675_v44  ;;  %v3637_v58 = vadd.f32 %v3636_v63, %v3530_v38 }
 0x258   : > { %v4481_v8 = vpop.f32.mrb[140].mxu1  ;;  %v4549_v26 = vpop.f32.mrb[132].mxu0 }
 0x259   : > { %v3638_v16 = vadd.f32 %v3637_v58, %v3535_v22  ;;  %v3707_v43 = vadd.f32 %v3706_v33, %v3676_v36  ;;  %v4482_v13 = vpop.f32.mrb[141].mxu1  ;;  %v3551_v15 = vadd.f32 %v4549_v26, %v6240_v11  ;;  %v3542_v37 = vpop.f32.mrb[133].mxu0 }
 0x25a   : > { %v4483_v25 = vadd.f32 %v4482_v13, %v4481_v8  ;;  %v4484_v21 = vpop.f32.mrb[142].mxu1  ;;  %v3543_v52 = vadd.f32 %v3542_v37, %v6226_v57  ;;  %v4550_v6 = vpop.f32.mrb[134].mxu0 }
 0x25b   : > { %v3708_v47 = vadd.f32 %v3707_v43, %v3677_v45  ;;  %v3639_v18 = vadd.f32 %v3638_v16, %v3538_v60  ;;  %v4485_v4 = vpop.f32.mrb[143].mxu1  ;;  %3611 = vst [vmem:[%s6219_s7 + $0xb0] sm:$0xff] %v3551_v15  ;;  %v3554_v9 = vadd.f32 %v4550_v6, %v6246_v49  ;;  %v3545_v2 = vpop.f32.mrb[135].mxu0  ;;  %v3681_v49 = vmul.f32 %v3551_v15, %v3551_v15 }
 0x25c   : > { %v3422_v54 = vadd.f32 %v4483_v25, %v6206_v42  ;;  %v4486_v27 = vadd.f32 %v4485_v4, %v4484_v21  ;;  %3609 = vst [vmem:[%s6219_s7 + $0xa0] sm:$0xff] %v3543_v52  ;;  %v3679_v7 = vmul.f32 %v3543_v52, %v3543_v52  ;;  %v3546_v34 = vadd.f32 %v3545_v2, %v6232_v53 }
 0x25d   : > { %v3640_v11 = vadd.f32 %v3639_v18, %v3543_v52  ;;  %v3709_v32 = vadd.f32 %v3708_v47, %v3678_v51  ;;  %3612 = vst [vmem:[%s6219_s7 + $0xb8] sm:$0xff] %v3554_v9  ;;  %v3682_v31 = vmul.f32 %v3554_v9, %v3554_v9 }
 0x25e   : > { %v3425_v57 = vadd.f32 %v4486_v27, %v6212_v30  ;;  %3610 = vst [vmem:[%s6219_s7 + $0xa8] sm:$0xff] %v3546_v34  ;;  %v3680_v40 = vmul.f32 %v3546_v34, %v3546_v34 }
 0x25f   : > { %v3710_v17 = vadd.f32 %v3709_v32, %v3679_v7  ;;  %v3641_v62 = vadd.f32 %v3640_v11, %v3546_v34 }
 0x260   : > { %v4553_v42 = vpop.f32.mrb[136].mxu0 }
 0x261   : > { %v3642_v56 = vadd.f32 %v3641_v62, %v3551_v15  ;;  %v3711_v10 = vadd.f32 %v3710_v17, %v3680_v40  ;;  %v3567_v1 = vadd.f32 %v4553_v42, %v6268_v19  ;;  %v3558_v12 = vpop.f32.mrb[137].mxu0 }
 0x262   : > { %v3559_v28 = vadd.f32 %v3558_v12, %v6254_v59  ;;  %v4554_v22 = vpop.f32.mrb[138].mxu0 }
 0x263   : > { %v3712_v53 = vadd.f32 %v3711_v10, %v3681_v49  ;;  %v3643_v30 = vadd.f32 %v3642_v56, %v3554_v9  ;;  %3615 = vst [vmem:[%s6219_s7 + $0xd0] sm:$0xff] %v3567_v1  ;;  %v3570_v55 = vadd.f32 %v4554_v22, %v6274_v20  ;;  %v3561_v24 = vpop.f32.mrb[139].mxu0  ;;  %v3685_v19 = vmul.f32 %v3567_v1, %v3567_v1 }
 0x264   : > { %3613 = vst [vmem:[%s6219_s7 + $0xc0] sm:$0xff] %v3559_v28  ;;  %v3683_v23 = vmul.f32 %v3559_v28, %v3559_v28  ;;  %v3562_v61 = vadd.f32 %v3561_v24, %v6260_v41 }
 0x265   : > { %v3644_v0 = vadd.f32 %v3643_v30, %v3559_v28  ;;  %v3713_v35 = vadd.f32 %v3712_v53, %v3682_v31  ;;  %3616 = vst [vmem:[%s6219_s7 + $0xd8] sm:$0xff] %v3570_v55  ;;  %v3686_v29 = vmul.f32 %v3570_v55, %v3570_v55 }
 0x266   : > { %3614 = vst [vmem:[%s6219_s7 + $0xc8] sm:$0xff] %v3562_v61  ;;  %v3684_v59 = vmul.f32 %v3562_v61, %v3562_v61 }
 0x267   : > { %v3714_v5 = vadd.f32 %v3713_v35, %v3683_v23  ;;  %v3645_v46 = vadd.f32 %v3644_v0, %v3562_v61 }
 0x268   : > { %v4557_v20 = vpop.f32.mrb[140].mxu0 }
 0x269   : > { %v3646_v60 = vadd.f32 %v3645_v46, %v3567_v1  ;;  %v3715_v50 = vadd.f32 %v3714_v5, %v3684_v59  ;;  %v3574_v3 = vpop.f32.mrb[141].mxu0  ;;  %v3583_v63 = vadd.f32 %v4557_v20, %v3422_v54 }
 0x26a   : > { %v3575_v14 = vadd.f32 %v3574_v3, %v6282_v48  ;;  %v4558_v38 = vpop.f32.mrb[142].mxu0 }
 0x26b   : > { %v3716_v44 = vadd.f32 %v3715_v50, %v3685_v19  ;;  %v3647_v41 = vadd.f32 %v3646_v60, %v3570_v55  ;;  %v3577_v33 = vpop.f32.mrb[143].mxu0  ;;  %3619 = vst [vmem:[%s6219_s7 + $0xf0] sm:$0xff] %v3583_v63  ;;  %v3586_v58 = vadd.f32 %v4558_v38, %v3425_v57  ;;  %v3689_v15 = vmul.f32 %v3583_v63, %v3583_v63 }
 0x26c   : > { %3617 = vst [vmem:[%s6219_s7 + $0xe0] sm:$0xff] %v3575_v14  ;;  %v3687_v8 = vmul.f32 %v3575_v14, %v3575_v14  ;;  %v3578_v16 = vadd.f32 %v3577_v33, %v6288_v39 }
 0x26d   : > { %v3648_v36 = vadd.f32 %v3647_v41, %v3575_v14  ;;  %v3717_v45 = vadd.f32 %v3716_v44, %v3686_v29  ;;  %3620 = vst [vmem:[%s6219_s7 + $0xf8] sm:$0xff] %v3586_v58  ;;  %v3690_v25 = vmul.f32 %v3586_v58, %v3586_v58 }
 0x26e   : > { %3618 = vst [vmem:[%s6219_s7 + $0xe8] sm:$0xff] %v3578_v16  ;;  %v3688_v13 = vmul.f32 %v3578_v16, %v3578_v16 }
 0x26f   : > { %v3718_v43 = vadd.f32 %v3717_v45, %v3687_v8  ;;  %v3649_v26 = vadd.f32 %v3648_v36, %v3578_v16 }
 0x271   : > { %v3719_v37 = vadd.f32 %v3718_v43, %v3688_v13  ;;  %v3650_v48 = vadd.f32 %v3649_v26, %v3583_v63 }
 0x273   : > { %v3720_v21 = vadd.f32 %v3719_v37, %v3689_v15  ;;  %v3651_v51 = vadd.f32 %v3650_v48, %v3586_v58 }
 0x275   : > { %v3652_v47 = vrot.slane %v3651_v51, 4  ;;  %v3721_v52 = vadd.f32 %v3720_v21, %v3690_v25 }
 0x277   : > { %v3653_v18 = vadd.f32 %v3652_v47, %v3651_v51  ;;  %v3722_v6 = vrot.slane %v3721_v52, 4 }
 0x279   : > { %v3654_v4 = vrot.slane %v3653_v18, 2  ;;  %v3723_v9 = vadd.f32 %v3722_v6, %v3721_v52 }
 0x27b   : > { %v3655_v39 = vadd.f32 %v3654_v4, %v3653_v18  ;;  %v3724_v2 = vrot.slane %v3723_v9, 2 }
 0x27d   : > { %v3656_v54 = vrot.slane %v3655_v39, 1  ;;  %v3725_v27 = vadd.f32 %v3724_v2, %v3723_v9 }
 0x27f   : > { %v3657_v11 = vadd.f32 %v3656_v54, %v3655_v39  ;;  %v3726_v7 = vrot.slane %v3725_v27, 1 }
 0x281   : > { %3658 = vst [vmem:[%s235_s10] sm:$0x1] %v3657_v11  ;;  %v3727_v32 = vadd.f32 %v3726_v7, %v3725_v27 }
 0x283   : > { %3728 = vst [vmem:[%s235_s10 + $0x1] sm:$0x1] %v3727_v32 }
 0x284 PF: > { %s16_s18 = sadd.s32 1, %s4696_s18  }
 0x285   : > { %p13_p4 = scmp.ge.s32.totalorder %s16_s18, 4  }
 0x287   :  { %15 = sbr.rel (!%p13_p4) target bundleno = 1 (0x1), region = 80 }

</bundles_post_ra>
